<compile_context>
chip_gen: v7x
topology: tpu7x:2x2x1
jax: 0.10.0
libtpu: 0.0.40
codegen_flags: <defaults>
</compile_context>

<pallas_src>
import jax
import jax.numpy as jnp
from jax.experimental import pallas as pl
from jax.experimental.pallas import tpu as pltpu

LN_EPS = 1e-5  # PyTorch nn.LayerNorm default


def _layernorm(h, gamma, beta):
    """Single-pass LayerNorm: var = E[h^2] - mean^2, all math in f32."""
    inv_n = 1.0 / h.shape[-1]
    mu = jnp.sum(h, axis=-1, keepdims=True) * inv_n
    mean_sq = jnp.sum(h * h, axis=-1, keepdims=True) * inv_n
    var = jnp.maximum(mean_sq - mu * mu, 0.0)  # guard tiny negative from cancellation
    return (h - mu) * jax.lax.rsqrt(var + LN_EPS) * gamma + beta


def vision_encoder_kernel(
    x_ref,
    w1_ref, b1_ref, g1_ref, be1_ref,
    w2_ref, b2_ref, g2_ref, be2_ref,
    w3_ref, b3_ref, g3_ref, be3_ref,
    o_ref,
):
    x = x_ref[...]  # already bf16 (cast in wrapper), so astype below is a no-op

    # Block 1: Linear(input_dim -> 2*hidden) + LayerNorm + ReLU (+Dropout = id)
    h = jnp.dot(x.astype(w1_ref.dtype), w1_ref[...],
                preferred_element_type=jnp.float32) + b1_ref[...]
    h = jnp.maximum(_layernorm(h, g1_ref[...], be1_ref[...]), 0.0)

    # Block 2: Linear(2*hidden -> hidden) + LayerNorm + ReLU (+Dropout = id)
    h = jnp.dot(h.astype(w2_ref.dtype), w2_ref[...],
                preferred_element_type=jnp.float32) + b2_ref[...]
    h = jnp.maximum(_layernorm(h, g2_ref[...], be2_ref[...]), 0.0)

    # Block 3: Linear(hidden -> output_dim) + LayerNorm
    h = jnp.dot(h.astype(w3_ref.dtype), w3_ref[...],
                preferred_element_type=jnp.float32) + b3_ref[...]
    o_ref[...] = _layernorm(h, g3_ref[...], be3_ref[...]).astype(o_ref.dtype)


def vision_encoder(x, params, *, block_batch=256):
    (w1, b1, g1, be1, w2, b2, g2, be2, w3, b3, g3, be3) = params
    batch, in_dim = x.shape
    d1, d2, out_dim = w1.shape[1], w2.shape[1], w3.shape[1]
    param_list = [w1, b1, g1, be1, w2, b2, g2, be2, w3, b3, g3, be3]

    # Stream x as the weight dtype (bf16): halves input DMA + VMEM, identical math
    # because the kernel casts before the MXU dot anyway.
    x_in = x if x.dtype == w1.dtype else x.astype(w1.dtype)

    # Batch tile: multiple of 8 sublanes (or the full batch). The feature axis is
    # NEVER tiled (LayerNorm reduces over it). No jnp.pad: cdiv grid + masked
    # partial last block.
    if batch <= block_batch:
        tb = batch
    else:
        tb = max(8, (block_batch // 8) * 8)
    grid = (pl.cdiv(batch, tb),)

    # Per-generation VMEM budget.
    param_bytes = sum(int(p.size) * p.dtype.itemsize for p in param_list)
    need = (2 * tb * in_dim * x_in.dtype.itemsize      # double-buffered x tile
            + 2 * tb * out_dim * 4                     # double-buffered out tile
            + 2 * param_bytes                          # resident params (worst case 2 bufs)
            + 3 * tb * max(d1, d2, out_dim) * 4)       # live f32 intermediates
    try:
        vmem_cap = int(pltpu.get_tpu_info().vmem_capacity_bytes)
    except Exception:
        vmem_cap = 64 << 20  # conservative: v7x per-TC physical VMEM
    vmem_limit = int(min(0.85 * vmem_cap,
                         max(32 << 20, 1.5 * need + (4 << 20))))

    # Advisory cost estimate for XLA scheduling around the custom call.
    flops = 2 * batch * (in_dim * d1 + d1 * d2 + d2 * out_dim)
    transcendentals = 3 * batch  # one rsqrt per row per LayerNorm
    bytes_accessed = (int(x_in.size) * x_in.dtype.itemsize
                      + param_bytes
                      + batch * out_dim * 4)

    def _call(single_buffer_params):
        # Grid-invariant params (constant index_map): DMA'd once, VMEM-resident.
        # Buffered(1) removes the useless second buffer for them.
        extra = dict(pipeline_mode=pl.Buffered(1)) if single_buffer_params else {}
        param_specs = [pl.BlockSpec(p.shape, lambda i: (0, 0), **extra)
                       for p in param_list]
        return pl.pallas_call(
            vision_encoder_kernel,
            out_shape=jax.ShapeDtypeStruct((batch, out_dim), jnp.float32),
            grid=grid,
            in_specs=[pl.BlockSpec((tb, in_dim), lambda i: (i, 0))] + param_specs,
            out_specs=pl.BlockSpec((tb, out_dim), lambda i: (i, 0)),
            compiler_params=pltpu.CompilerParams(
                dimension_semantics=("parallel",),  # shard batch grid across TCs (v7x)
                vmem_limit_bytes=vmem_limit,
            ),
            cost_estimate=pl.CostEstimate(
                flops=flops,
                transcendentals=transcendentals,
                bytes_accessed=bytes_accessed,
            ),
        )(x_in, *param_list)

    try:
        return _call(single_buffer_params=True)
    except Exception:
        # pipeline_mode=pl.Buffered(1) unsupported on this jax version ->
        # fall back to default double-buffering of the invariant params.
        return _call(single_buffer_params=False)


def vision_encoder_ref(x, params):
    """Pure-JAX reference: same precision path (bf16 dots, f32 math), canonical
    two-pass LayerNorm to validate the kernel's single-pass variance."""
    (w1, b1, g1, be1, w2, b2, g2, be2, w3, b3, g3, be3) = params

    def ln(h, g, b):
        mu = jnp.mean(h, axis=-1, keepdims=True)
        var = jnp.mean(jnp.square(h - mu), axis=-1, keepdims=True)
        return (h - mu) * jax.lax.rsqrt(var + LN_EPS) * g + b

    h = jnp.dot(x.astype(w1.dtype), w1, preferred_element_type=jnp.float32) + b1
    h = jnp.maximum(ln(h, g1, be1), 0.0)
    h = jnp.dot(h.astype(w2.dtype), w2, preferred_element_type=jnp.float32) + b2
    h = jnp.maximum(ln(h, g2, be2), 0.0)
    h = jnp.dot(h.astype(w3.dtype), w3, preferred_element_type=jnp.float32) + b3
    return ln(h, g3, be3)


def init_params(key, input_dim, hidden_dim, output_dim, weight_dtype=jnp.bfloat16):
    """Deterministic synthetic parameter init (not a checkpoint load).

    Weights stored as [in_features, out_features] in bf16 (MXU-friendly);
    bias / LayerNorm gamma / beta stay f32 so elementwise math is f32 everywhere.
    """
    dims = [(input_dim, 2 * hidden_dim), (2 * hidden_dim, hidden_dim), (hidden_dim, output_dim)]
    params = []
    for i, (din, dout) in enumerate(dims):
        kw, kb = jax.random.split(jax.random.fold_in(key, i))
        w = (jax.random.normal(kw, (din, dout), jnp.float32) / jnp.sqrt(din)).astype(weight_dtype)
        b = jax.random.normal(kb, (1, dout), jnp.float32) * 0.01
        gamma = jnp.ones((1, dout), jnp.float32)
        beta = jnp.zeros((1, dout), jnp.float32)
        params.extend([w, b, gamma, beta])
    return tuple(params)


if __name__ == "__main__":
    # Small but lane-dense / MXU-friendly shapes (all feature dims multiples of
    # 128). batch=384 with block_batch=256 exercises a 2-step grid including a
    # masked partial last tile (the no-pad path). The real module's dims
    # (2048 -> 1024 -> 512 -> 768) are also 128-multiples.
    batch, input_dim, hidden_dim, output_dim = 384, 256, 128, 128

    key = jax.random.PRNGKey(0)
    kx, kp = jax.random.split(key)
    x = jax.random.normal(kx, (batch, input_dim), jnp.float32)
    params = init_params(kp, input_dim, hidden_dim, output_dim)

    out = jax.block_until_ready(vision_encoder(x, params, block_batch=256))
    ref = jax.block_until_ready(vision_encoder_ref(x, params))

    assert out.shape == (batch, output_dim)
    assert jnp.allclose(out, ref, atol=3e-3, rtol=3e-3), "mismatch vs pure-JAX reference"
    print("KERNEL_OK")
</pallas_src>

<mosaic_0001>
module attributes {stable_mosaic.version = 11 : i64} {
  func.func @vision_encoder_kernel(%arg0: i32, %arg1: memref<256x256xbf16, #tpu.memory_space<vmem>>, %arg2: memref<256x256xbf16, #tpu.memory_space<vmem>>, %arg3: memref<1x256xf32, #tpu.memory_space<vmem>>, %arg4: memref<1x256xf32, #tpu.memory_space<vmem>>, %arg5: memref<1x256xf32, #tpu.memory_space<vmem>>, %arg6: memref<256x128xbf16, #tpu.memory_space<vmem>>, %arg7: memref<1x128xf32, #tpu.memory_space<vmem>>, %arg8: memref<1x128xf32, #tpu.memory_space<vmem>>, %arg9: memref<1x128xf32, #tpu.memory_space<vmem>>, %arg10: memref<128x128xbf16, #tpu.memory_space<vmem>>, %arg11: memref<1x128xf32, #tpu.memory_space<vmem>>, %arg12: memref<1x128xf32, #tpu.memory_space<vmem>>, %arg13: memref<1x128xf32, #tpu.memory_space<vmem>>, %arg14: memref<256x128xf32, #tpu.memory_space<vmem>>) attributes {dimension_semantics = [#tpu.dimension_semantics<parallel>], iteration_bounds = array<i64: 2>, scalar_prefetch = 0 : i64, scratch_operands = 0 : i64, tpu.core_type = #tpu.core_type<tc>, window_params = [{transform_indices = @transform_0, window_bounds = array<i64: 256, 256>}, {pipeline_mode = #tpu.pipeline_mode<synchronous>, transform_indices = @transform_1, window_bounds = array<i64: 256, 256>}, {pipeline_mode = #tpu.pipeline_mode<synchronous>, transform_indices = @transform_2, window_bounds = array<i64: 1, 256>}, {pipeline_mode = #tpu.pipeline_mode<synchronous>, transform_indices = @transform_3, window_bounds = array<i64: 1, 256>}, {pipeline_mode = #tpu.pipeline_mode<synchronous>, transform_indices = @transform_4, window_bounds = array<i64: 1, 256>}, {pipeline_mode = #tpu.pipeline_mode<synchronous>, transform_indices = @transform_5, window_bounds = array<i64: 256, 128>}, {pipeline_mode = #tpu.pipeline_mode<synchronous>, transform_indices = @transform_6, window_bounds = array<i64: 1, 128>}, {pipeline_mode = #tpu.pipeline_mode<synchronous>, transform_indices = @transform_7, window_bounds = array<i64: 1, 128>}, {pipeline_mode = #tpu.pipeline_mode<synchronous>, transform_indices = @transform_8, window_bounds = array<i64: 1, 128>}, {pipeline_mode = #tpu.pipeline_mode<synchronous>, transform_indices = @transform_9, window_bounds = array<i64: 128, 128>}, {pipeline_mode = #tpu.pipeline_mode<synchronous>, transform_indices = @transform_10, window_bounds = array<i64: 1, 128>}, {pipeline_mode = #tpu.pipeline_mode<synchronous>, transform_indices = @transform_11, window_bounds = array<i64: 1, 128>}, {pipeline_mode = #tpu.pipeline_mode<synchronous>, transform_indices = @transform_12, window_bounds = array<i64: 1, 128>}, {transform_indices = @transform_13, window_bounds = array<i64: 256, 128>}]} {
    %c0 = arith.constant 0 : index
    %c0_0 = arith.constant 0 : index
    %0 = vector.load %arg1[%c0, %c0_0] : memref<256x256xbf16, #tpu.memory_space<vmem>>, vector<256x256xbf16>
    %c0_1 = arith.constant 0 : index
    %c0_2 = arith.constant 0 : index
    %1 = vector.load %arg2[%c0_1, %c0_2] : memref<256x256xbf16, #tpu.memory_space<vmem>>, vector<256x256xbf16>
    %cst = arith.constant dense<0.000000e+00> : vector<256x256xf32>
    %2 = tpu.matmul %0, %1, %cst {dimension_numbers = #tpu.dot_dimension_numbers<[1], [0], [0], [1], [0, 0, 1, 1], [], []>} : vector<256x256xbf16>, vector<256x256xbf16>, vector<256x256xf32> -> vector<256x256xf32>
    %c0_3 = arith.constant 0 : index
    %c0_4 = arith.constant 0 : index
    %3 = vector.load %arg3[%c0_3, %c0_4] : memref<1x256xf32, #tpu.memory_space<vmem>>, vector<1x256xf32>
    %4 = vector.broadcast %3 : vector<1x256xf32> to vector<256x256xf32>
    %5 = arith.addf %2, %4 : vector<256x256xf32>
    %c0_5 = arith.constant 0 : index
    %c0_6 = arith.constant 0 : index
    %6 = vector.load %arg4[%c0_5, %c0_6] : memref<1x256xf32, #tpu.memory_space<vmem>>, vector<1x256xf32>
    %c0_7 = arith.constant 0 : index
    %c0_8 = arith.constant 0 : index
    %7 = vector.load %arg5[%c0_7, %c0_8] : memref<1x256xf32, #tpu.memory_space<vmem>>, vector<1x256xf32>
    %cst_9 = arith.constant dense<0.000000e+00> : vector<256xf32>
    %8 = vector.multi_reduction <add>, %5, %cst_9 [1] : vector<256x256xf32> to vector<256xf32>
    %9 = vector.shape_cast %8 : vector<256xf32> to vector<256x1xf32>
    %cst_10 = arith.constant 3.906250e-03 : f32
    %10 = vector.broadcast %cst_10 : f32 to vector<256x1xf32>
    %11 = arith.mulf %9, %10 : vector<256x1xf32>
    %12 = arith.mulf %5, %5 : vector<256x256xf32>
    %cst_11 = arith.constant dense<0.000000e+00> : vector<256xf32>
    %13 = vector.multi_reduction <add>, %12, %cst_11 [1] : vector<256x256xf32> to vector<256xf32>
    %14 = vector.shape_cast %13 : vector<256xf32> to vector<256x1xf32>
    %cst_12 = arith.constant 3.906250e-03 : f32
    %15 = vector.broadcast %cst_12 : f32 to vector<256x1xf32>
    %16 = arith.mulf %14, %15 : vector<256x1xf32>
    %17 = arith.mulf %11, %11 : vector<256x1xf32>
    %18 = arith.subf %16, %17 : vector<256x1xf32>
    %cst_13 = arith.constant 0.000000e+00 : f32
    %19 = vector.broadcast %cst_13 : f32 to vector<256x1xf32>
    %20 = arith.maximumf %18, %19 : vector<256x1xf32>
    %21 = vector.broadcast %11 : vector<256x1xf32> to vector<256x256xf32>
    %22 = arith.subf %5, %21 : vector<256x256xf32>
    %cst_14 = arith.constant 9.99999974E-6 : f32
    %23 = vector.broadcast %cst_14 : f32 to vector<256x1xf32>
    %24 = arith.addf %20, %23 : vector<256x1xf32>
    %25 = math.rsqrt %24 : vector<256x1xf32>
    %26 = vector.broadcast %25 : vector<256x1xf32> to vector<256x256xf32>
    %27 = arith.mulf %22, %26 : vector<256x256xf32>
    %28 = vector.broadcast %6 : vector<1x256xf32> to vector<256x256xf32>
    %29 = arith.mulf %27, %28 : vector<256x256xf32>
    %30 = vector.broadcast %7 : vector<1x256xf32> to vector<256x256xf32>
    %31 = arith.addf %29, %30 : vector<256x256xf32>
    %cst_15 = arith.constant 0.000000e+00 : f32
    %32 = vector.broadcast %cst_15 : f32 to vector<256x256xf32>
    %33 = arith.maximumf %31, %32 : vector<256x256xf32>
    %34 = arith.truncf %33 : vector<256x256xf32> to vector<256x256xbf16>
    %c0_16 = arith.constant 0 : index
    %c0_17 = arith.constant 0 : index
    %35 = vector.load %arg6[%c0_16, %c0_17] : memref<256x128xbf16, #tpu.memory_space<vmem>>, vector<256x128xbf16>
    %cst_18 = arith.constant dense<0.000000e+00> : vector<256x128xf32>
    %36 = tpu.matmul %34, %35, %cst_18 {dimension_numbers = #tpu.dot_dimension_numbers<[1], [0], [0], [1], [0, 0, 1, 1], [], []>} : vector<256x256xbf16>, vector<256x128xbf16>, vector<256x128xf32> -> vector<256x128xf32>
    %c0_19 = arith.constant 0 : index
    %c0_20 = arith.constant 0 : index
    %37 = vector.load %arg7[%c0_19, %c0_20] : memref<1x128xf32, #tpu.memory_space<vmem>>, vector<1x128xf32>
    %38 = vector.broadcast %37 : vector<1x128xf32> to vector<256x128xf32>
    %39 = arith.addf %36, %38 : vector<256x128xf32>
    %c0_21 = arith.constant 0 : index
    %c0_22 = arith.constant 0 : index
    %40 = vector.load %arg8[%c0_21, %c0_22] : memref<1x128xf32, #tpu.memory_space<vmem>>, vector<1x128xf32>
    %c0_23 = arith.constant 0 : index
    %c0_24 = arith.constant 0 : index
    %41 = vector.load %arg9[%c0_23, %c0_24] : memref<1x128xf32, #tpu.memory_space<vmem>>, vector<1x128xf32>
    %cst_25 = arith.constant dense<0.000000e+00> : vector<256xf32>
    %42 = vector.multi_reduction <add>, %39, %cst_25 [1] : vector<256x128xf32> to vector<256xf32>
    %43 = vector.shape_cast %42 : vector<256xf32> to vector<256x1xf32>
    %cst_26 = arith.constant 7.812500e-03 : f32
    %44 = vector.broadcast %cst_26 : f32 to vector<256x1xf32>
    %45 = arith.mulf %43, %44 : vector<256x1xf32>
    %46 = arith.mulf %39, %39 : vector<256x128xf32>
    %cst_27 = arith.constant dense<0.000000e+00> : vector<256xf32>
    %47 = vector.multi_reduction <add>, %46, %cst_27 [1] : vector<256x128xf32> to vector<256xf32>
    %48 = vector.shape_cast %47 : vector<256xf32> to vector<256x1xf32>
    %cst_28 = arith.constant 7.812500e-03 : f32
    %49 = vector.broadcast %cst_28 : f32 to vector<256x1xf32>
    %50 = arith.mulf %48, %49 : vector<256x1xf32>
    %51 = arith.mulf %45, %45 : vector<256x1xf32>
    %52 = arith.subf %50, %51 : vector<256x1xf32>
    %cst_29 = arith.constant 0.000000e+00 : f32
    %53 = vector.broadcast %cst_29 : f32 to vector<256x1xf32>
    %54 = arith.maximumf %52, %53 : vector<256x1xf32>
    %55 = vector.broadcast %45 : vector<256x1xf32> to vector<256x128xf32>
    %56 = arith.subf %39, %55 : vector<256x128xf32>
    %cst_30 = arith.constant 9.99999974E-6 : f32
    %57 = vector.broadcast %cst_30 : f32 to vector<256x1xf32>
    %58 = arith.addf %54, %57 : vector<256x1xf32>
    %59 = math.rsqrt %58 : vector<256x1xf32>
    %60 = vector.broadcast %59 : vector<256x1xf32> to vector<256x128xf32>
    %61 = arith.mulf %56, %60 : vector<256x128xf32>
    %62 = vector.broadcast %40 : vector<1x128xf32> to vector<256x128xf32>
    %63 = arith.mulf %61, %62 : vector<256x128xf32>
    %64 = vector.broadcast %41 : vector<1x128xf32> to vector<256x128xf32>
    %65 = arith.addf %63, %64 : vector<256x128xf32>
    %cst_31 = arith.constant 0.000000e+00 : f32
    %66 = vector.broadcast %cst_31 : f32 to vector<256x128xf32>
    %67 = arith.maximumf %65, %66 : vector<256x128xf32>
    %68 = arith.truncf %67 : vector<256x128xf32> to vector<256x128xbf16>
    %c0_32 = arith.constant 0 : index
    %c0_33 = arith.constant 0 : index
    %69 = vector.load %arg10[%c0_32, %c0_33] : memref<128x128xbf16, #tpu.memory_space<vmem>>, vector<128x128xbf16>
    %cst_34 = arith.constant dense<0.000000e+00> : vector<256x128xf32>
    %70 = tpu.matmul %68, %69, %cst_34 {dimension_numbers = #tpu.dot_dimension_numbers<[1], [0], [0], [1], [0, 0, 1, 1], [], []>} : vector<256x128xbf16>, vector<128x128xbf16>, vector<256x128xf32> -> vector<256x128xf32>
    %c0_35 = arith.constant 0 : index
    %c0_36 = arith.constant 0 : index
    %71 = vector.load %arg11[%c0_35, %c0_36] : memref<1x128xf32, #tpu.memory_space<vmem>>, vector<1x128xf32>
    %72 = vector.broadcast %71 : vector<1x128xf32> to vector<256x128xf32>
    %73 = arith.addf %70, %72 : vector<256x128xf32>
    %c0_37 = arith.constant 0 : index
    %c0_38 = arith.constant 0 : index
    %74 = vector.load %arg12[%c0_37, %c0_38] : memref<1x128xf32, #tpu.memory_space<vmem>>, vector<1x128xf32>
    %c0_39 = arith.constant 0 : index
    %c0_40 = arith.constant 0 : index
    %75 = vector.load %arg13[%c0_39, %c0_40] : memref<1x128xf32, #tpu.memory_space<vmem>>, vector<1x128xf32>
    %cst_41 = arith.constant dense<0.000000e+00> : vector<256xf32>
    %76 = vector.multi_reduction <add>, %73, %cst_41 [1] : vector<256x128xf32> to vector<256xf32>
    %77 = vector.shape_cast %76 : vector<256xf32> to vector<256x1xf32>
    %cst_42 = arith.constant 7.812500e-03 : f32
    %78 = vector.broadcast %cst_42 : f32 to vector<256x1xf32>
    %79 = arith.mulf %77, %78 : vector<256x1xf32>
    %80 = arith.mulf %73, %73 : vector<256x128xf32>
    %cst_43 = arith.constant dense<0.000000e+00> : vector<256xf32>
    %81 = vector.multi_reduction <add>, %80, %cst_43 [1] : vector<256x128xf32> to vector<256xf32>
    %82 = vector.shape_cast %81 : vector<256xf32> to vector<256x1xf32>
    %cst_44 = arith.constant 7.812500e-03 : f32
    %83 = vector.broadcast %cst_44 : f32 to vector<256x1xf32>
    %84 = arith.mulf %82, %83 : vector<256x1xf32>
    %85 = arith.mulf %79, %79 : vector<256x1xf32>
    %86 = arith.subf %84, %85 : vector<256x1xf32>
    %cst_45 = arith.constant 0.000000e+00 : f32
    %87 = vector.broadcast %cst_45 : f32 to vector<256x1xf32>
    %88 = arith.maximumf %86, %87 : vector<256x1xf32>
    %89 = vector.broadcast %79 : vector<256x1xf32> to vector<256x128xf32>
    %90 = arith.subf %73, %89 : vector<256x128xf32>
    %cst_46 = arith.constant 9.99999974E-6 : f32
    %91 = vector.broadcast %cst_46 : f32 to vector<256x1xf32>
    %92 = arith.addf %88, %91 : vector<256x1xf32>
    %93 = math.rsqrt %92 : vector<256x1xf32>
    %94 = vector.broadcast %93 : vector<256x1xf32> to vector<256x128xf32>
    %95 = arith.mulf %90, %94 : vector<256x128xf32>
    %96 = vector.broadcast %74 : vector<1x128xf32> to vector<256x128xf32>
    %97 = arith.mulf %95, %96 : vector<256x128xf32>
    %98 = vector.broadcast %75 : vector<1x128xf32> to vector<256x128xf32>
    %99 = arith.addf %97, %98 : vector<256x128xf32>
    %c0_47 = arith.constant 0 : index
    %c0_48 = arith.constant 0 : index
    %100 = vector.load %arg14[%c0_47, %c0_48] : memref<256x128xf32, #tpu.memory_space<vmem>>, vector<256x128xf32>
    tpu.vector_store %arg14[%c0_47, %c0_48], %99 {strides = array<i32>} : memref<256x128xf32, #tpu.memory_space<vmem>>, vector<256x128xf32>,
    return
  }
  func.func @transform_0(%arg0: i32) -> (i32, i32) {
    %c0_i32 = arith.constant 0 : i32
    %c0_i32_0 = arith.constant 0 : i32
    return %arg0, %c0_i32 : i32, i32
  }
  func.func @transform_1(%arg0: i32) -> (i32, i32) {
    %c0_i32 = arith.constant 0 : i32
    %c0_i32_0 = arith.constant 0 : i32
    %c0_i32_1 = arith.constant 0 : i32
    return %c0_i32, %c0_i32_0 : i32, i32
  }
  func.func @transform_2(%arg0: i32) -> (i32, i32) {
    %c0_i32 = arith.constant 0 : i32
    %c0_i32_0 = arith.constant 0 : i32
    %c0_i32_1 = arith.constant 0 : i32
    return %c0_i32, %c0_i32_0 : i32, i32
  }
  func.func @transform_3(%arg0: i32) -> (i32, i32) {
    %c0_i32 = arith.constant 0 : i32
    %c0_i32_0 = arith.constant 0 : i32
    %c0_i32_1 = arith.constant 0 : i32
    return %c0_i32, %c0_i32_0 : i32, i32
  }
  func.func @transform_4(%arg0: i32) -> (i32, i32) {
    %c0_i32 = arith.constant 0 : i32
    %c0_i32_0 = arith.constant 0 : i32
    %c0_i32_1 = arith.constant 0 : i32
    return %c0_i32, %c0_i32_0 : i32, i32
  }
  func.func @transform_5(%arg0: i32) -> (i32, i32) {
    %c0_i32 = arith.constant 0 : i32
    %c0_i32_0 = arith.constant 0 : i32
    %c0_i32_1 = arith.constant 0 : i32
    return %c0_i32, %c0_i32_0 : i32, i32
  }
  func.func @transform_6(%arg0: i32) -> (i32, i32) {
    %c0_i32 = arith.constant 0 : i32
    %c0_i32_0 = arith.constant 0 : i32
    %c0_i32_1 = arith.constant 0 : i32
    return %c0_i32, %c0_i32_0 : i32, i32
  }
  func.func @transform_7(%arg0: i32) -> (i32, i32) {
    %c0_i32 = arith.constant 0 : i32
    %c0_i32_0 = arith.constant 0 : i32
    %c0_i32_1 = arith.constant 0 : i32
    return %c0_i32, %c0_i32_0 : i32, i32
  }
  func.func @transform_8(%arg0: i32) -> (i32, i32) {
    %c0_i32 = arith.constant 0 : i32
    %c0_i32_0 = arith.constant 0 : i32
    %c0_i32_1 = arith.constant 0 : i32
    return %c0_i32, %c0_i32_0 : i32, i32
  }
  func.func @transform_9(%arg0: i32) -> (i32, i32) {
    %c0_i32 = arith.constant 0 : i32
    %c0_i32_0 = arith.constant 0 : i32
    %c0_i32_1 = arith.constant 0 : i32
    return %c0_i32, %c0_i32_0 : i32, i32
  }
  func.func @transform_10(%arg0: i32) -> (i32, i32) {
    %c0_i32 = arith.constant 0 : i32
    %c0_i32_0 = arith.constant 0 : i32
    %c0_i32_1 = arith.constant 0 : i32
    return %c0_i32, %c0_i32_0 : i32, i32
  }
  func.func @transform_11(%arg0: i32) -> (i32, i32) {
    %c0_i32 = arith.constant 0 : i32
    %c0_i32_0 = arith.constant 0 : i32
    %c0_i32_1 = arith.constant 0 : i32
    return %c0_i32, %c0_i32_0 : i32, i32
  }
  func.func @transform_12(%arg0: i32) -> (i32, i32) {
    %c0_i32 = arith.constant 0 : i32
    %c0_i32_0 = arith.constant 0 : i32
    %c0_i32_1 = arith.constant 0 : i32
    return %c0_i32, %c0_i32_0 : i32, i32
  }
  func.func @transform_13(%arg0: i32) -> (i32, i32) {
    %c0_i32 = arith.constant 0 : i32
    %c0_i32_0 = arith.constant 0 : i32
    return %arg0, %c0_i32 : i32, i32
  }
}

module attributes {stable_mosaic.version = 11 : i64} {
  func.func @vision_encoder_kernel(%arg0: i32, %arg1: memref<256x256xbf16, #tpu.memory_space<vmem>>, %arg2: memref<256x256xbf16, #tpu.memory_space<vmem>>, %arg3: memref<1x256xf32, #tpu.memory_space<vmem>>, %arg4: memref<1x256xf32, #tpu.memory_space<vmem>>, %arg5: memref<1x256xf32, #tpu.memory_space<vmem>>, %arg6: memref<256x128xbf16, #tpu.memory_space<vmem>>, %arg7: memref<1x128xf32, #tpu.memory_space<vmem>>, %arg8: memref<1x128xf32, #tpu.memory_space<vmem>>, %arg9: memref<1x128xf32, #tpu.memory_space<vmem>>, %arg10: memref<128x128xbf16, #tpu.memory_space<vmem>>, %arg11: memref<1x128xf32, #tpu.memory_space<vmem>>, %arg12: memref<1x128xf32, #tpu.memory_space<vmem>>, %arg13: memref<1x128xf32, #tpu.memory_space<vmem>>, %arg14: memref<256x128xf32, #tpu.memory_space<vmem>>) attributes {dimension_semantics = [#tpu.dimension_semantics<parallel>], iteration_bounds = array<i64: 2>, scalar_prefetch = 0 : i64, scratch_operands = 0 : i64, tpu.core_type = #tpu.core_type<tc>, window_params = [{transform_indices = @transform_0, window_bounds = array<i64: 256, 256>}, {pipeline_mode = #tpu.pipeline_mode<synchronous>, transform_indices = @transform_1, window_bounds = array<i64: 256, 256>}, {pipeline_mode = #tpu.pipeline_mode<synchronous>, transform_indices = @transform_2, window_bounds = array<i64: 1, 256>}, {pipeline_mode = #tpu.pipeline_mode<synchronous>, transform_indices = @transform_3, window_bounds = array<i64: 1, 256>}, {pipeline_mode = #tpu.pipeline_mode<synchronous>, transform_indices = @transform_4, window_bounds = array<i64: 1, 256>}, {pipeline_mode = #tpu.pipeline_mode<synchronous>, transform_indices = @transform_5, window_bounds = array<i64: 256, 128>}, {pipeline_mode = #tpu.pipeline_mode<synchronous>, transform_indices = @transform_6, window_bounds = array<i64: 1, 128>}, {pipeline_mode = #tpu.pipeline_mode<synchronous>, transform_indices = @transform_7, window_bounds = array<i64: 1, 128>}, {pipeline_mode = #tpu.pipeline_mode<synchronous>, transform_indices = @transform_8, window_bounds = array<i64: 1, 128>}, {pipeline_mode = #tpu.pipeline_mode<synchronous>, transform_indices = @transform_9, window_bounds = array<i64: 128, 128>}, {pipeline_mode = #tpu.pipeline_mode<synchronous>, transform_indices = @transform_10, window_bounds = array<i64: 1, 128>}, {pipeline_mode = #tpu.pipeline_mode<synchronous>, transform_indices = @transform_11, window_bounds = array<i64: 1, 128>}, {pipeline_mode = #tpu.pipeline_mode<synchronous>, transform_indices = @transform_12, window_bounds = array<i64: 1, 128>}, {transform_indices = @transform_13, window_bounds = array<i64: 256, 128>}]} {
    %c0 = arith.constant 0 : index
    %c0_0 = arith.constant 0 : index
    %0 = vector.load %arg1[%c0, %c0_0] : memref<256x256xbf16, #tpu.memory_space<vmem>>, vector<256x256xbf16>
    %c0_1 = arith.constant 0 : index
    %c0_2 = arith.constant 0 : index
    %1 = vector.load %arg2[%c0_1, %c0_2] : memref<256x256xbf16, #tpu.memory_space<vmem>>, vector<256x256xbf16>
    %cst = arith.constant dense<0.000000e+00> : vector<256x256xf32>
    %2 = tpu.matmul %0, %1, %cst {dimension_numbers = #tpu.dot_dimension_numbers<[1], [0], [0], [1], [0, 0, 1, 1], [], []>} : vector<256x256xbf16>, vector<256x256xbf16>, vector<256x256xf32> -> vector<256x256xf32>
    %c0_3 = arith.constant 0 : index
    %c0_4 = arith.constant 0 : index
    %3 = vector.load %arg3[%c0_3, %c0_4] : memref<1x256xf32, #tpu.memory_space<vmem>>, vector<1x256xf32>
    %4 = vector.broadcast %3 : vector<1x256xf32> to vector<256x256xf32>
    %5 = arith.addf %2, %4 : vector<256x256xf32>
    %c0_5 = arith.constant 0 : index
    %c0_6 = arith.constant 0 : index
    %6 = vector.load %arg4[%c0_5, %c0_6] : memref<1x256xf32, #tpu.memory_space<vmem>>, vector<1x256xf32>
    %c0_7 = arith.constant 0 : index
    %c0_8 = arith.constant 0 : index
    %7 = vector.load %arg5[%c0_7, %c0_8] : memref<1x256xf32, #tpu.memory_space<vmem>>, vector<1x256xf32>
    %cst_9 = arith.constant dense<0.000000e+00> : vector<256xf32>
    %8 = vector.multi_reduction <add>, %5, %cst_9 [1] : vector<256x256xf32> to vector<256xf32>
    %9 = vector.shape_cast %8 : vector<256xf32> to vector<256x1xf32>
    %cst_10 = arith.constant 3.906250e-03 : f32
    %10 = vector.broadcast %cst_10 : f32 to vector<256x1xf32>
    %11 = arith.mulf %9, %10 : vector<256x1xf32>
    %12 = arith.mulf %5, %5 : vector<256x256xf32>
    %cst_11 = arith.constant dense<0.000000e+00> : vector<256xf32>
    %13 = vector.multi_reduction <add>, %12, %cst_11 [1] : vector<256x256xf32> to vector<256xf32>
    %14 = vector.shape_cast %13 : vector<256xf32> to vector<256x1xf32>
    %cst_12 = arith.constant 3.906250e-03 : f32
    %15 = vector.broadcast %cst_12 : f32 to vector<256x1xf32>
    %16 = arith.mulf %14, %15 : vector<256x1xf32>
    %17 = arith.mulf %11, %11 : vector<256x1xf32>
    %18 = arith.subf %16, %17 : vector<256x1xf32>
    %cst_13 = arith.constant 0.000000e+00 : f32
    %19 = vector.broadcast %cst_13 : f32 to vector<256x1xf32>
    %20 = arith.maximumf %18, %19 : vector<256x1xf32>
    %21 = vector.broadcast %11 : vector<256x1xf32> to vector<256x256xf32>
    %22 = arith.subf %5, %21 : vector<256x256xf32>
    %cst_14 = arith.constant 9.99999974E-6 : f32
    %23 = vector.broadcast %cst_14 : f32 to vector<256x1xf32>
    %24 = arith.addf %20, %23 : vector<256x1xf32>
    %25 = math.rsqrt %24 : vector<256x1xf32>
    %26 = vector.broadcast %25 : vector<256x1xf32> to vector<256x256xf32>
    %27 = arith.mulf %22, %26 : vector<256x256xf32>
    %28 = vector.broadcast %6 : vector<1x256xf32> to vector<256x256xf32>
    %29 = arith.mulf %27, %28 : vector<256x256xf32>
    %30 = vector.broadcast %7 : vector<1x256xf32> to vector<256x256xf32>
    %31 = arith.addf %29, %30 : vector<256x256xf32>
    %cst_15 = arith.constant 0.000000e+00 : f32
    %32 = vector.broadcast %cst_15 : f32 to vector<256x256xf32>
    %33 = arith.maximumf %31, %32 : vector<256x256xf32>
    %34 = arith.truncf %33 : vector<256x256xf32> to vector<256x256xbf16>
    %c0_16 = arith.constant 0 : index
    %c0_17 = arith.constant 0 : index
    %35 = vector.load %arg6[%c0_16, %c0_17] : memref<256x128xbf16, #tpu.memory_space<vmem>>, vector<256x128xbf16>
    %cst_18 = arith.constant dense<0.000000e+00> : vector<256x128xf32>
    %36 = tpu.matmul %34, %35, %cst_18 {dimension_numbers = #tpu.dot_dimension_numbers<[1], [0], [0], [1], [0, 0, 1, 1], [], []>} : vector<256x256xbf16>, vector<256x128xbf16>, vector<256x128xf32> -> vector<256x128xf32>
    %c0_19 = arith.constant 0 : index
    %c0_20 = arith.constant 0 : index
    %37 = vector.load %arg7[%c0_19, %c0_20] : memref<1x128xf32, #tpu.memory_space<vmem>>, vector<1x128xf32>
    %38 = vector.broadcast %37 : vector<1x128xf32> to vector<256x128xf32>
    %39 = arith.addf %36, %38 : vector<256x128xf32>
    %c0_21 = arith.constant 0 : index
    %c0_22 = arith.constant 0 : index
    %40 = vector.load %arg8[%c0_21, %c0_22] : memref<1x128xf32, #tpu.memory_space<vmem>>, vector<1x128xf32>
    %c0_23 = arith.constant 0 : index
    %c0_24 = arith.constant 0 : index
    %41 = vector.load %arg9[%c0_23, %c0_24] : memref<1x128xf32, #tpu.memory_space<vmem>>, vector<1x128xf32>
    %cst_25 = arith.constant dense<0.000000e+00> : vector<256xf32>
    %42 = vector.multi_reduction <add>, %39, %cst_25 [1] : vector<256x128xf32> to vector<256xf32>
    %43 = vector.shape_cast %42 : vector<256xf32> to vector<256x1xf32>
    %cst_26 = arith.constant 7.812500e-03 : f32
    %44 = vector.broadcast %cst_26 : f32 to vector<256x1xf32>
    %45 = arith.mulf %43, %44 : vector<256x1xf32>
    %46 = arith.mulf %39, %39 : vector<256x128xf32>
    %cst_27 = arith.constant dense<0.000000e+00> : vector<256xf32>
    %47 = vector.multi_reduction <add>, %46, %cst_27 [1] : vector<256x128xf32> to vector<256xf32>
    %48 = vector.shape_cast %47 : vector<256xf32> to vector<256x1xf32>
    %cst_28 = arith.constant 7.812500e-03 : f32
    %49 = vector.broadcast %cst_28 : f32 to vector<256x1xf32>
    %50 = arith.mulf %48, %49 : vector<256x1xf32>
    %51 = arith.mulf %45, %45 : vector<256x1xf32>
    %52 = arith.subf %50, %51 : vector<256x1xf32>
    %cst_29 = arith.constant 0.000000e+00 : f32
    %53 = vector.broadcast %cst_29 : f32 to vector<256x1xf32>
    %54 = arith.maximumf %52, %53 : vector<256x1xf32>
    %55 = vector.broadcast %45 : vector<256x1xf32> to vector<256x128xf32>
    %56 = arith.subf %39, %55 : vector<256x128xf32>
    %cst_30 = arith.constant 9.99999974E-6 : f32
    %57 = vector.broadcast %cst_30 : f32 to vector<256x1xf32>
    %58 = arith.addf %54, %57 : vector<256x1xf32>
    %59 = math.rsqrt %58 : vector<256x1xf32>
    %60 = vector.broadcast %59 : vector<256x1xf32> to vector<256x128xf32>
    %61 = arith.mulf %56, %60 : vector<256x128xf32>
    %62 = vector.broadcast %40 : vector<1x128xf32> to vector<256x128xf32>
    %63 = arith.mulf %61, %62 : vector<256x128xf32>
    %64 = vector.broadcast %41 : vector<1x128xf32> to vector<256x128xf32>
    %65 = arith.addf %63, %64 : vector<256x128xf32>
    %cst_31 = arith.constant 0.000000e+00 : f32
    %66 = vector.broadcast %cst_31 : f32 to vector<256x128xf32>
    %67 = arith.maximumf %65, %66 : vector<256x128xf32>
    %68 = arith.truncf %67 : vector<256x128xf32> to vector<256x128xbf16>
    %c0_32 = arith.constant 0 : index
    %c0_33 = arith.constant 0 : index
    %69 = vector.load %arg10[%c0_32, %c0_33] : memref<128x128xbf16, #tpu.memory_space<vmem>>, vector<128x128xbf16>
    %cst_34 = arith.constant dense<0.000000e+00> : vector<256x128xf32>
    %70 = tpu.matmul %68, %69, %cst_34 {dimension_numbers = #tpu.dot_dimension_numbers<[1], [0], [0], [1], [0, 0, 1, 1], [], []>} : vector<256x128xbf16>, vector<128x128xbf16>, vector<256x128xf32> -> vector<256x128xf32>
    %c0_35 = arith.constant 0 : index
    %c0_36 = arith.constant 0 : index
    %71 = vector.load %arg11[%c0_35, %c0_36] : memref<1x128xf32, #tpu.memory_space<vmem>>, vector<1x128xf32>
    %72 = vector.broadcast %71 : vector<1x128xf32> to vector<256x128xf32>
    %73 = arith.addf %70, %72 : vector<256x128xf32>
    %c0_37 = arith.constant 0 : index
    %c0_38 = arith.constant 0 : index
    %74 = vector.load %arg12[%c0_37, %c0_38] : memref<1x128xf32, #tpu.memory_space<vmem>>, vector<1x128xf32>
    %c0_39 = arith.constant 0 : index
    %c0_40 = arith.constant 0 : index
    %75 = vector.load %arg13[%c0_39, %c0_40] : memref<1x128xf32, #tpu.memory_space<vmem>>, vector<1x128xf32>
    %cst_41 = arith.constant dense<0.000000e+00> : vector<256xf32>
    %76 = vector.multi_reduction <add>, %73, %cst_41 [1] : vector<256x128xf32> to vector<256xf32>
    %77 = vector.shape_cast %76 : vector<256xf32> to vector<256x1xf32>
    %cst_42 = arith.constant 7.812500e-03 : f32
    %78 = vector.broadcast %cst_42 : f32 to vector<256x1xf32>
    %79 = arith.mulf %77, %78 : vector<256x1xf32>
    %80 = arith.mulf %73, %73 : vector<256x128xf32>
    %cst_43 = arith.constant dense<0.000000e+00> : vector<256xf32>
    %81 = vector.multi_reduction <add>, %80, %cst_43 [1] : vector<256x128xf32> to vector<256xf32>
    %82 = vector.shape_cast %81 : vector<256xf32> to vector<256x1xf32>
    %cst_44 = arith.constant 7.812500e-03 : f32
    %83 = vector.broadcast %cst_44 : f32 to vector<256x1xf32>
    %84 = arith.mulf %82, %83 : vector<256x1xf32>
    %85 = arith.mulf %79, %79 : vector<256x1xf32>
    %86 = arith.subf %84, %85 : vector<256x1xf32>
    %cst_45 = arith.constant 0.000000e+00 : f32
    %87 = vector.broadcast %cst_45 : f32 to vector<256x1xf32>
    %88 = arith.maximumf %86, %87 : vector<256x1xf32>
    %89 = vector.broadcast %79 : vector<256x1xf32> to vector<256x128xf32>
    %90 = arith.subf %73, %89 : vector<256x128xf32>
    %cst_46 = arith.constant 9.99999974E-6 : f32
    %91 = vector.broadcast %cst_46 : f32 to vector<256x1xf32>
    %92 = arith.addf %88, %91 : vector<256x1xf32>
    %93 = math.rsqrt %92 : vector<256x1xf32>
    %94 = vector.broadcast %93 : vector<256x1xf32> to vector<256x128xf32>
    %95 = arith.mulf %90, %94 : vector<256x128xf32>
    %96 = vector.broadcast %74 : vector<1x128xf32> to vector<256x128xf32>
    %97 = arith.mulf %95, %96 : vector<256x128xf32>
    %98 = vector.broadcast %75 : vector<1x128xf32> to vector<256x128xf32>
    %99 = arith.addf %97, %98 : vector<256x128xf32>
    %c0_47 = arith.constant 0 : index
    %c0_48 = arith.constant 0 : index
    %100 = vector.load %arg14[%c0_47, %c0_48] : memref<256x128xf32, #tpu.memory_space<vmem>>, vector<256x128xf32>
    tpu.vector_store %arg14[%c0_47, %c0_48], %99 {strides = array<i32>} : memref<256x128xf32, #tpu.memory_space<vmem>>, vector<256x128xf32>,
    return
  }
  func.func @transform_0(%arg0: i32) -> (i32, i32) {
    %c0_i32 = arith.constant 0 : i32
    %c0_i32_0 = arith.constant 0 : i32
    return %arg0, %c0_i32 : i32, i32
  }
  func.func @transform_1(%arg0: i32) -> (i32, i32) {
    %c0_i32 = arith.constant 0 : i32
    %c0_i32_0 = arith.constant 0 : i32
    %c0_i32_1 = arith.constant 0 : i32
    return %c0_i32, %c0_i32_0 : i32, i32
  }
  func.func @transform_2(%arg0: i32) -> (i32, i32) {
    %c0_i32 = arith.constant 0 : i32
    %c0_i32_0 = arith.constant 0 : i32
    %c0_i32_1 = arith.constant 0 : i32
    return %c0_i32, %c0_i32_0 : i32, i32
  }
  func.func @transform_3(%arg0: i32) -> (i32, i32) {
    %c0_i32 = arith.constant 0 : i32
    %c0_i32_0 = arith.constant 0 : i32
    %c0_i32_1 = arith.constant 0 : i32
    return %c0_i32, %c0_i32_0 : i32, i32
  }
  func.func @transform_4(%arg0: i32) -> (i32, i32) {
    %c0_i32 = arith.constant 0 : i32
    %c0_i32_0 = arith.constant 0 : i32
    %c0_i32_1 = arith.constant 0 : i32
    return %c0_i32, %c0_i32_0 : i32, i32
  }
  func.func @transform_5(%arg0: i32) -> (i32, i32) {
    %c0_i32 = arith.constant 0 : i32
    %c0_i32_0 = arith.constant 0 : i32
    %c0_i32_1 = arith.constant 0 : i32
    return %c0_i32, %c0_i32_0 : i32, i32
  }
  func.func @transform_6(%arg0: i32) -> (i32, i32) {
    %c0_i32 = arith.constant 0 : i32
    %c0_i32_0 = arith.constant 0 : i32
    %c0_i32_1 = arith.constant 0 : i32
    return %c0_i32, %c0_i32_0 : i32, i32
  }
  func.func @transform_7(%arg0: i32) -> (i32, i32) {
    %c0_i32 = arith.constant 0 : i32
    %c0_i32_0 = arith.constant 0 : i32
    %c0_i32_1 = arith.constant 0 : i32
    return %c0_i32, %c0_i32_0 : i32, i32
  }
  func.func @transform_8(%arg0: i32) -> (i32, i32) {
    %c0_i32 = arith.constant 0 : i32
    %c0_i32_0 = arith.constant 0 : i32
    %c0_i32_1 = arith.constant 0 : i32
    return %c0_i32, %c0_i32_0 : i32, i32
  }
  func.func @transform_9(%arg0: i32) -> (i32, i32) {
    %c0_i32 = arith.constant 0 : i32
    %c0_i32_0 = arith.constant 0 : i32
    %c0_i32_1 = arith.constant 0 : i32
    return %c0_i32, %c0_i32_0 : i32, i32
  }
  func.func @transform_10(%arg0: i32) -> (i32, i32) {
    %c0_i32 = arith.constant 0 : i32
    %c0_i32_0 = arith.constant 0 : i32
    %c0_i32_1 = arith.constant 0 : i32
    return %c0_i32, %c0_i32_0 : i32, i32
  }
  func.func @transform_11(%arg0: i32) -> (i32, i32) {
    %c0_i32 = arith.constant 0 : i32
    %c0_i32_0 = arith.constant 0 : i32
    %c0_i32_1 = arith.constant 0 : i32
    return %c0_i32, %c0_i32_0 : i32, i32
  }
  func.func @transform_12(%arg0: i32) -> (i32, i32) {
    %c0_i32 = arith.constant 0 : i32
    %c0_i32_0 = arith.constant 0 : i32
    %c0_i32_1 = arith.constant 0 : i32
    return %c0_i32, %c0_i32_0 : i32, i32
  }
  func.func @transform_13(%arg0: i32) -> (i32, i32) {
    %c0_i32 = arith.constant 0 : i32
    %c0_i32_0 = arith.constant 0 : i32
    return %arg0, %c0_i32 : i32, i32
  }
}

</mosaic_0001>

<bundles_post_ra>
// kernel: tpu_custom_call.1
= control target key start
LH: loop header
LB: loop body
LE: loop exit
PB: predicated region body
PF: predicated region fallthrough
CT: control target
= control target key end

     0   :  { %s6937_s0 = inlined_call_operand.hbm [shape: bf16[384,256], index: 0, kind: input, shape index: {}]   ;;  %s6938_s1 = inlined_call_operand.hbm [shape: bf16[256,256], index: 1, kind: input, shape index: {}]   ;;  %s6939_s2 = inlined_call_operand.vmem [shape: f32[1,256], index: 2, kind: input, shape index: {}]   ;;  %s6940_s3 = inlined_call_operand.vmem [shape: f32[1,256], index: 3, kind: input, shape index: {}]   ;;  %s6941_s4 = inlined_call_operand.vmem [shape: f32[1,256], index: 4, kind: input, shape index: {}]   ;;  %s6942_s5 = inlined_call_operand.hbm [shape: bf16[256,128], index: 5, kind: input, shape index: {}]   ;;  %s6943_s6 = inlined_call_operand.vmem [shape: f32[1,128], index: 6, kind: input, shape index: {}]   ;;  %s6944_s7 = inlined_call_operand.vmem [shape: f32[1,128], index: 7, kind: input, shape index: {}]   ;;  %s6945_s8 = inlined_call_operand.vmem [shape: f32[1,128], index: 8, kind: input, shape index: {}]   ;;  %s6946_s9 = inlined_call_operand.hbm [shape: bf16[128,128], index: 9, kind: input, shape index: {}]   ;;  %s6947_s10 = inlined_call_operand.vmem [shape: f32[1,128], index: 10, kind: input, shape index: {}]   ;;  %s6948_s11 = inlined_call_operand.vmem [shape: f32[1,128], index: 11, kind: input, shape index: {}]   ;;  %s6949_s12 = inlined_call_operand.vmem [shape: f32[1,128], index: 12, kind: input, shape index: {}]   ;;  %s6950_s13 = inlined_call_operand.hbm [shape: f32[384,128], index: 13, kind: output, shape index: {}]  }
   0x1   :  { %7012 = sst [smem:[#allocation49_spill]] %s6938_s1 }
   0x2   :  { %7013 = sst [smem:[#allocation50_spill]] %s6945_s8 }
   0x3   :  { %7014 = sst [smem:[#allocation51_spill]] %s6947_s10 }
   0x4   :  { %7015 = sst [smem:[#allocation52_spill]] %s6948_s11 }
   0x5   :  { %7016 = sst [smem:[#allocation53_spill]] %s6949_s12 }
   0x6   :  { %7017 = sst [smem:[#allocation54_spill]] %s6950_s13 }
   0x7   :  { %18 = vsyncpa [#allocation3], 0 }
   0x8   :  { %20 = vsyncpa [#allocation3 + $0x1], 0 }
   0x9   :  { %21 = vsyncpa [#allocation6], 0 }
   0xa   :  { %22 = vsyncpa [#allocation9], 0 }
   0xb   :  { %23 = vsyncpa [#allocation4], 0 }
   0xc   :  { %25 = vsyncpa [#allocation4 + $0x1], 0  ;;  %s4739_s25 = smov 0   ;;  %s4741_s26 = smov 0  }
   0xd   :  { %s4743_s27 = smov 0   ;;  %s4745_s28 = smov 0  }
   0xe LB: > { %7018 = sst [smem:[#allocation15_spill]] %s4642_s25  ;;  %s4760_s29 = sadd.s32 4294967295, %s4654_s28   ;;  %s4654_s28 = sphi %s4745_s28, %s7127_s28   ;;  %s4650_s27 = sphi %s4743_s27, %s7131_s27   ;;  %s4646_s26 = sphi %s4741_s26, %s7130_s26   ;;  %s4642_s25 = sphi %s4739_s25, %s7129_s25  }
   0xf   : > { %s3750_s30 = sadd.s32 4294967294, %s4654_s28   ;;  %s4764_s14 = sadd.s32 1, %s4654_s28  }
  0x10   : > { %7019 = sst [smem:[#allocation16_spill]] %s4764_s14  ;;  %s38_s15 = sadd.s32 1, %s4650_s27 }
  0x11   : > { %s35_s16 = ssub.s32 %s4654_s28, %s4764_s14  ;;  %p45_p0 = scmp.ne.s32.totalorder %s4650_s27, %s4646_s26 }
  0x12   : > { %p36_p1 = scmp.eq.s32.totalorder %s35_s16, 0  ;;  %p46_p2 = scmp.eq.s32.totalorder %s4654_s28, 0 }
  0x13   : > { %p51_p3 = scmp.ne.s32.totalorder %s4646_s26, %s4642_s25  ;;  %p6957_p4 = scmp.eq.s32.totalorder %s4760_s29, 0 }
  0x14   : > { %s4776_s17 = scalar_select %p36_p1, %s4650_s27, %s38_s15  }
  0x15   : > { %p4778_p5 = por %p46_p2, %p45_p0  ;;  %p4784_p6 = por %p6957_p4, %p51_p3 }
  0x16   : > { %7020 = sst [smem:[#allocation17_spill]] %s4776_s17  ;;  %p327_p7 = scmp.eq.s32.totalorder %s4760_s29, 1 }
  0x17   : > { %s7021_s18 = scalar_select %p4778_p5, 1, 0 }
  0x18   : > { %s7022_s19 = scalar_select %p4784_p6, 1, 0 }
  0x19   : > { %p333_p8 = scmp.eq.s32.totalorder %s3750_s30, 1  ;;  %p3751_p9 = scmp.ge.s32.totalorder %s4654_s28, 1 }
  0x1a   : > { %p340_p10 = scmp.lt.s32.totalorder %s4654_s28, 3  ;;  %p4791_p11 = por %p327_p7, %p45_p0 }
  0x1b   : > { %p4795_p12 = por %p333_p8, %p51_p3  ;;  %s4656_s23 = smov [#allocation5]  }
  0x1c   : > { %s7023_s20 = scalar_select %p4791_p11, 1, 0 }
  0x1d   : > { %s7025_s21 = scalar_select %p4795_p12, 1, 0 }
  0x1e   : > { %7024 = sst [smem:[#allocation18_spill]] %s7023_s20  ;;  %p4799_p13 = pnand %p3751_p9, %p340_p10 }
  0x1f   : > { %7026 = sst [smem:[#allocation19_spill]] %s7025_s21  ;;  %s352_s24 = sshll.u32 %s4656_s23, 4  ;;  %s353_s24 = int_to_ptr.vmem [resolvable:$true] %s352_s24 }
  0x20   : > { %s7027_s22 = scalar_select %p4799_p13, 1, 0 }
  0x21   : > { %p4092_p1 = pneg %p4799_p13  ;;  %s4657_s15 = smov [#allocation7]  }
  0x22   : > { %s374_s16 = sshll.u32 %s4657_s15, 4  ;;  %s7029_s1 = sld [smem:[#allocation49_spill]]  ;;  %s4811_s16 = int_to_ptr.vmem [resolvable:$true] %s374_s16 }
  0x23   : > { %p4807_p2 = pnand %p4092_p1, %p6957_p4 }
  0x25   : > { %p4821_p3 = pneg %p4807_p2 }
  0x28   : > { %s4468_s21 = scalar_lea.hbm %s7029_s1, 4096 }
  0x29   : > { %p4469_p0 = scmp.ne.s32.totalorder %s7029_s1, %s4468_s21  ;;  %p4475_p9 = scmp.lt.u32.totalorder %s4468_s21, %s7029_s1 }
  0x2b   : > { %p4471_p7 = pnand %p4821_p3, %p4469_p0 }
  0x2d   : > { %p4472_p8 = pneg %p4471_p7 }
  0x2f   : > { %p4477_p10 = pnand %p4475_p9, %p4472_p8 }
  0x31   : > { %4480 = shalt.err (!%p4477_p10)
}
  0x32   : > { %s4481_s14 = scalar_lea.vmem %s353_s24, 4096  ;;  %p4489_p11 = scmp.lt.s32.totalorder %s353_s24, %s353_s24 }
  0x33   : > { %p4482_p1 = scmp.ne.s32.totalorder %s353_s24, %s4481_s14  ;;  %p4490_p6 = scmp.lt.s32.totalorder %s4481_s14, %s4481_s14 }
  0x35   : > { %p4484_p4 = pnand %p4482_p1, %p4821_p3  ;;  %p4491_p13 = por %p4490_p6, %p4489_p11 }
  0x37   : > { %p4485_p12 = pneg %p4484_p4 }
  0x39   : > { %p4492_p5 = pnand %p4491_p13, %p4485_p12 }
  0x3b   : > { %4495 = shalt.err (!%p4492_p5)
}
  0x3c   : > { %s4658_s13 = smov 128   ;;  %s4659_s25 = smov 8  }
  0x3d   : > { %4095 = dma.hbm_to_vmem [thread:$0]  (!%p4807_p2), %s7029_s1, 4096, %s353_s24, [#allocation6], %s4658_s13, %s4658_s13, %s4659_s25  }
  0x3e   : > { %s4496_s12 = scalar_lea.hbm %s6942_s5, 2048 }
  0x3f   : > { %p4497_p4 = scmp.ne.s32.totalorder %s6942_s5, %s4496_s12  ;;  %p4503_p11 = scmp.lt.u32.totalorder %s4496_s12, %s6942_s5 }
  0x41   : > { %p4499_p6 = pnand %p4497_p4, %p4821_p3 }
  0x43   : > { %p4500_p5 = pneg %p4499_p6 }
  0x45   : > { %p4505_p12 = pnand %p4503_p11, %p4500_p5 }
  0x47   : > { %4508 = shalt.err (!%p4505_p12)
}
  0x48   : > { %s4509_s24 = scalar_lea.vmem %s4811_s16, 2048  ;;  %p4517_p8 = scmp.lt.s32.totalorder %s4811_s16, %s4811_s16 }
  0x49   : > { %p4510_p13 = scmp.ne.s32.totalorder %s4811_s16, %s4509_s24  ;;  %p4518_p9 = scmp.lt.s32.totalorder %s4509_s24, %s4509_s24 }
  0x4b   : > { %p4512_p0 = pnand %p4510_p13, %p4821_p3  ;;  %p4519_p10 = por %p4518_p9, %p4517_p8 }
  0x4d   : > { %p4513_p7 = pneg %p4512_p0 }
  0x4f   : > { %p4520_p1 = pnand %p4519_p10, %p4513_p7 }
  0x51   : > { %4523 = shalt.err (!%p4520_p1)
}
  0x52   : > { %s4660_s10 = smov 64   ;;  %s4661_s8 = smov 4  }
  0x53   : > { %4098 = dma.hbm_to_vmem [thread:$0]  (!%p4807_p2), %s6942_s5, 2048, %s4811_s16, [#allocation6], %s4660_s10, %s4660_s10, %s4661_s8  }
  0x54   : > { %s4662_s13 = smov [#allocation8]   ;;  %s4524_s21 = scalar_lea.hbm %s6946_s9, 1024 }
  0x55   : > { %s396_s25 = sshll.u32 %s4662_s13, 4  ;;  %p4525_p4 = scmp.ne.s32.totalorder %s6946_s9, %s4524_s21  ;;  %s397_s25 = int_to_ptr.vmem [resolvable:$true] %s396_s25 }
  0x56   : > { %p4531_p11 = scmp.lt.u32.totalorder %s4524_s21, %s6946_s9 }
  0x57   : > { %p4527_p6 = pnand %p4525_p4, %p4821_p3 }
  0x59   : > { %p4528_p5 = pneg %p4527_p6 }
  0x5b   : > { %p4533_p12 = pnand %p4531_p11, %p4528_p5 }
  0x5d   : > { %4536 = shalt.err (!%p4533_p12)
}
  0x5e   : > { %s4537_s16 = scalar_lea.vmem %s397_s25, 1024  ;;  %p4545_p8 = scmp.lt.s32.totalorder %s397_s25, %s397_s25 }
  0x5f   : > { %p4538_p13 = scmp.ne.s32.totalorder %s397_s25, %s4537_s16  ;;  %p4546_p9 = scmp.lt.s32.totalorder %s4537_s16, %s4537_s16 }
  0x61   : > { %p4540_p0 = pnand %p4538_p13, %p4821_p3  ;;  %p4547_p10 = por %p4546_p9, %p4545_p8 }
  0x63   : > { %p4541_p7 = pneg %p4540_p0 }
  0x65   : > { %p4548_p1 = pnand %p4547_p10, %p4541_p7 }
  0x67   : > { %4551 = shalt.err (!%p4548_p1)
}
  0x68   : > { %4101 = dma.hbm_to_vmem [thread:$0]  (!%p4807_p2), %s6946_s9, 1024, %s397_s25, [#allocation9], %s4660_s10, %s4660_s10, %s4661_s8  }
  0x69   : > { %p3755_p4 = scmp.ge.s32.totalorder %s4654_s28, 2 }
  0x6a   : > { %p7031_p6 = scmp.ne.s32.totalorder (!%p3755_p4), %s7021_s18, 0 }
  0x6b   : > { %415 = sbr.rel (%p3755_p4) target bundleno = 149 (0x95), region = 64 }
  0x72   : > { %418 = sbr.rel (!%p7031_p6) target bundleno = 149 (0x95), region = 68  ;;  %s419_s1 = sand.u32 (%p7031_p6), 1, %s4650_s27  }
  0x73   : > { %s3757_s23 = sshll.u32 (%p7031_p6), %s4654_s28, 5  ;;  %s3756_s13 = sshll.u32 (%p7031_p6), %s419_s1, 8 }
  0x74   : > { %s425_s17 = ssub.s32 (%p7031_p6), 48, %s3757_s23  ;;  %s4888_s8 = scalar_lea.sflag (%p7031_p6), [#allocation3], %s419_s1 }
  0x75   : > { %p426_p3 = scmp.lt.s32.totalorder (%p7031_p6), %s425_s17, 32  ;;  %s423_s25 = scalar_lea.vmem (%p7031_p6), [#allocation2], %s3756_s13 }
  0x79   : > { %s7133_s17 = smov (!%p426_p3, %s425_s17), 32 }
  0x7a   : > { %s4885_s30 = sshll.u32 %s7133_s17, 7 }
  0x7b   : > { %s431_s10 = ssub.s32 4096, %s4885_s30 }
  0x7c   : > { %432 = vsyncadd %s4888_s8, %s431_s10  ;;  %p3760_p2 = scmp.ne.s32.totalorder %s4885_s30, 0  ;;  %s3876_s18 = sshll.u32 %s4654_s28, 12 }
  0x7d   : > { %s4896_s15 = scalar_lea.hbm %s6937_s0, %s3876_s18  ;;  %s438_s14 = sshll.u32 %s423_s25, 4  ;;  %s4898_s14 = int_to_ptr.vmem [resolvable:$true] %s438_s14 }
  0x7e   : > { %s4552_s24 = scalar_lea.hbm %s4896_s15, %s4885_s30  ;;  %s4556_s12 = scalar_lea.hbm %s6937_s0, 6144 }
  0x7f   : > { %p4553_p5 = scmp.ne.s32.totalorder %s4896_s15, %s4552_s24  ;;  %p4557_p13 = scmp.lt.u32.totalorder %s4896_s15, %s6937_s0 }
  0x80   : > { %p4558_p0 = scmp.lt.u32.totalorder %s4556_s12, %s4552_s24  ;;  %p4560_p8 = scmp.lt.u32.totalorder %s4552_s24, %s4896_s15 }
  0x81   : > { %p4554_p11 = pnand %p4553_p5, %p3760_p2 }
  0x82   : > { %p4559_p7 = por %p4558_p0, %p4557_p13 }
  0x83   : > { %p4555_p12 = pneg %p4554_p11 }
  0x84   : > { %p4561_p9 = por %p4560_p8, %p4559_p7 }
  0x86   : > { %p4562_p10 = pnand %p4561_p9, %p4555_p12 }
  0x88   : > { %4565 = shalt.err (!%p4562_p10)
}
  0x89   : > { %s4566_s13 = scalar_lea.vmem %s4898_s14, %s4885_s30  ;;  %s4663_s17 = smov [#allocation2]  }
  0x8a   : > { %p4567_p1 = scmp.ne.s32.totalorder %s4898_s14, %s4566_s13  ;;  %s4570_s10 = sshll.u32 %s4663_s17, 4  ;;  %s4571_s10 = int_to_ptr.vmem [resolvable:$false] %s4570_s10 }
  0x8b   : > { %s4572_s25 = scalar_lea.vmem %s4571_s10, 8192  ;;  %p4573_p5 = scmp.lt.s32.totalorder %s4898_s14, %s4571_s10 }
  0x8c   : > { %p4568_p6 = pnand %p4567_p1, %p3760_p2  ;;  %p4574_p11 = scmp.lt.s32.totalorder %s4572_s25, %s4566_s13 }
  0x8e   : > { %p4569_p3 = pneg %p4568_p6  ;;  %p4575_p13 = por %p4574_p11, %p4573_p5 }
  0x90   : > { %p4576_p0 = pnand %p4575_p13, %p4569_p3 }
  0x92   : > { %4579 = shalt.err (!%p4576_p0)
}
  0x93   : > { %s4664_s18 = smov 128   ;;  %s4665_s20 = smov 8  }
  0x94   : > { %444 = dma.hbm_to_vmem [thread:$0]  (%p3760_p2), %s4896_s15, %s4885_s30, %s4898_s14, %s4888_s8, %s4664_s18, %s4664_s18, %s4665_s20  }
  0x95 PF: > { %p7032_p12 = scmp.ne.s32.totalorder %s7027_s22, 0 }
  0x97   : > { %450 = sbr.rel (%p7032_p12) target bundleno = 1587 (0x633), region = 72 }
  0x9e   : > { %s4928_s21 = sand.u32 1, %s4646_s26   ;;  %p7033_p7 = scmp.ne.s32.totalorder %s7022_s19, 0 }
  0x9f   : > { %s3766_s24 = sshll.u32 %s4928_s21, 8  ;;  %s453_s16 = scalar_lea.sflag [#allocation3], %s4928_s21 }
  0xa0   : > { %s4934_s11 = scalar_lea.vmem [#allocation2], %s3766_s24 }
  0xa1   : > { %4625 = dma.done.wait (%p7033_p7), %s453_s16, 4096  }
  0xa2   : > { %4627 = vsyncadd (%p7033_p7), %s453_s16, 4294963200  ;;  %p7034_p2 = scmp.eq.s32.totalorder %s4760_s29, 0 }
  0xa4   : > { %4629 = dma.done.wait (%p7034_p2), [#allocation6], 6144   ;;  %p7035_p8 = pmov %p7034_p2 }
  0xa5   : > { %p7036_p9 = pmov %p7034_p2 }
  0xa6   : > { %4631 = vsyncadd (%p7035_p8), [#allocation6], 4294961152 }
  0xa7   : > { %4633 = dma.done.wait (%p7036_p9), [#allocation9], 1024   ;;  %p7037_p10 = pmov %p7034_p2 }
  0xa8   : > { %v4156_v0 = vld [vmem:[#allocation5 + $0x4] ss:$8 sps:$4 sm:$0xff]   ;;  %v4158_v1 = vld [vmem:[#allocation5] ss:$8 sps:$4 sm:$0xff]   ;;  %v4159_v2 = vld [vmem:[#allocation5 + $0x14] ss:$8 sps:$4 sm:$0xff]  }
  0xa9   : > { %4635 = vsyncadd (%p7037_p10), [#allocation9], 4294966272  ;;  %919 = vmatprep.subr.bf16.mxu0 %v4156_v0  ;;  %v4161_v3 = vld [vmem:[#allocation5 + $0x10] ss:$8 sps:$4 sm:$0xff]   ;;  %v4162_v4 = vld [vmem:[#allocation5 + $0x24] ss:$8 sps:$4 sm:$0xff]  }
  0xaa   : > { %920 = vmatpush1.bf16.msra.mxu0 %v4158_v1  ;;  %v4164_v5 = vld [vmem:[#allocation5 + $0x20] ss:$8 sps:$4 sm:$0xff]   ;;  %v4165_v6 = vld [vmem:[#allocation5 + $0x34] ss:$8 sps:$4 sm:$0xff]   ;;  %v4167_v7 = vld [vmem:[#allocation5 + $0x30] ss:$8 sps:$4 sm:$0xff]  }
  0xab   : > { %921 = vmatprep.subr.bf16.mxu0 %v4159_v2  ;;  %v4168_v8 = vld [vmem:[#allocation5 + $0x44] ss:$8 sps:$4 sm:$0xff]   ;;  %v4170_v9 = vld [vmem:[#allocation5 + $0x40] ss:$8 sps:$4 sm:$0xff]   ;;  %v4171_v10 = vld [vmem:[#allocation5 + $0x54] ss:$8 sps:$4 sm:$0xff]  }
  0xac   : > { %v4173_v11 = vld [vmem:[#allocation5 + $0x50] ss:$8 sps:$4 sm:$0xff]   ;;  %v4174_v12 = vld [vmem:[#allocation5 + $0x64] ss:$8 sps:$4 sm:$0xff]   ;;  %v4176_v14 = vld [vmem:[#allocation5 + $0x60] ss:$8 sps:$4 sm:$0xff]  }
  0xad   : > { %v4206_v13 = vld [vmem:[%s4934_s11 + $0x4] ss:$8 sps:$4 sm:$0xff]   ;;  %v4177_v15 = vld [vmem:[#allocation5 + $0x74] ss:$8 sps:$4 sm:$0xff]   ;;  %v4179_v16 = vld [vmem:[#allocation5 + $0x70] ss:$8 sps:$4 sm:$0xff]  }
  0xae   : > { %922 = vmatpush1.bf16.msra.mxu0 %v4161_v3  ;;  %951 = vmatprep.mubr.bf16.mxu0 %v4206_v13  ;;  %v4180_v17 = vld [vmem:[#allocation5 + $0x84] ss:$8 sps:$4 sm:$0xff]   ;;  %v4182_v18 = vld [vmem:[#allocation5 + $0x80] ss:$8 sps:$4 sm:$0xff]   ;;  %v4183_v19 = vld [vmem:[#allocation5 + $0x94] ss:$8 sps:$4 sm:$0xff]  }
  0xaf   : > { %923 = vmatprep.subr.bf16.mxu0 %v4162_v4  ;;  %v4185_v20 = vld [vmem:[#allocation5 + $0x90] ss:$8 sps:$4 sm:$0xff]   ;;  %v4186_v21 = vld [vmem:[#allocation5 + $0xa4] ss:$8 sps:$4 sm:$0xff]   ;;  %v4188_v22 = vld [vmem:[#allocation5 + $0xa0] ss:$8 sps:$4 sm:$0xff]  }
  0xb0   : > { %v4189_v23 = vld [vmem:[#allocation5 + $0xb4] ss:$8 sps:$4 sm:$0xff]   ;;  %v4191_v24 = vld [vmem:[#allocation5 + $0xb0] ss:$8 sps:$4 sm:$0xff]   ;;  %v4192_v25 = vld [vmem:[#allocation5 + $0xc4] ss:$8 sps:$4 sm:$0xff]  }
  0xb1   : > { %v4194_v26 = vld [vmem:[#allocation5 + $0xc0] ss:$8 sps:$4 sm:$0xff]   ;;  %v4195_v27 = vld [vmem:[#allocation5 + $0xd4] ss:$8 sps:$4 sm:$0xff]   ;;  %v4197_v28 = vld [vmem:[#allocation5 + $0xd0] ss:$8 sps:$4 sm:$0xff]  }
  0xb2   : > { %924 = vmatpush1.bf16.msra.mxu0 %v4164_v5  ;;  %v4198_v29 = vld [vmem:[#allocation5 + $0xe4] ss:$8 sps:$4 sm:$0xff]   ;;  %v4200_v30 = vld [vmem:[#allocation5 + $0xe0] ss:$8 sps:$4 sm:$0xff]   ;;  %v4201_v31 = vld [vmem:[#allocation5 + $0xf4] ss:$8 sps:$4 sm:$0xff]  }
  0xb3   : > { %925 = vmatprep.subr.bf16.mxu0 %v4165_v6  ;;  %v4203_v32 = vld [vmem:[#allocation5 + $0xf0] ss:$8 sps:$4 sm:$0xff]   ;;  %v4204_v33 = vld [vmem:[%s4934_s11] ss:$8 sps:$4 sm:$0xff]   ;;  %v4207_v34 = vld [vmem:[%s4934_s11 + $0x14] ss:$8 sps:$4 sm:$0xff]   ;;  %v589_v6 = vlaneseq }
  0xb4   : > { %v4209_v35 = vld [vmem:[%s4934_s11 + $0x10] ss:$8 sps:$4 sm:$0xff]   ;;  %v4210_v36 = vld [vmem:[%s4934_s11 + $0x24] ss:$8 sps:$4 sm:$0xff]   ;;  %v4212_v37 = vld [vmem:[%s4934_s11 + $0x20] ss:$8 sps:$4 sm:$0xff]  }
  0xb5   : > { %v4213_v38 = vld [vmem:[%s4934_s11 + $0x34] ss:$8 sps:$4 sm:$0xff]   ;;  %v4215_v39 = vld [vmem:[%s4934_s11 + $0x30] ss:$8 sps:$4 sm:$0xff]   ;;  %v4216_v40 = vld [vmem:[%s4934_s11 + $0x44] ss:$8 sps:$4 sm:$0xff]  }
  0xb6   : > { %926 = vmatpush1.bf16.msra.mxu0 %v4167_v7  ;;  %v4218_v41 = vld [vmem:[%s4934_s11 + $0x40] ss:$8 sps:$4 sm:$0xff]   ;;  %v4219_v42 = vld [vmem:[%s4934_s11 + $0x54] ss:$8 sps:$4 sm:$0xff]   ;;  %v4221_v43 = vld [vmem:[%s4934_s11 + $0x50] ss:$8 sps:$4 sm:$0xff]  }
  0xb7   : > { %927 = vmatprep.subr.bf16.mxu0 %v4168_v8  ;;  %v4222_v44 = vld [vmem:[%s4934_s11 + $0x64] ss:$8 sps:$4 sm:$0xff]   ;;  %v4224_v45 = vld [vmem:[%s4934_s11 + $0x60] ss:$8 sps:$4 sm:$0xff]   ;;  %v4225_v46 = vld [vmem:[%s4934_s11 + $0x74] ss:$8 sps:$4 sm:$0xff]  }
  0xb8   : > { %v4227_v47 = vld [vmem:[%s4934_s11 + $0x70] ss:$8 sps:$4 sm:$0xff]   ;;  %v4228_v48 = vld [vmem:[%s4934_s11 + $0x84] ss:$8 sps:$4 sm:$0xff]   ;;  %v4230_v49 = vld [vmem:[%s4934_s11 + $0x80] ss:$8 sps:$4 sm:$0xff]  }
  0xb9   : > { %v4231_v50 = vld [vmem:[%s4934_s11 + $0x94] ss:$8 sps:$4 sm:$0xff]   ;;  %v4233_v51 = vld [vmem:[%s4934_s11 + $0x90] ss:$8 sps:$4 sm:$0xff]   ;;  %v4234_v52 = vld [vmem:[%s4934_s11 + $0xa4] ss:$8 sps:$4 sm:$0xff]  }
  0xba   : > { %928 = vmatpush1.bf16.msra.mxu0 %v4170_v9  ;;  %v4236_v53 = vld [vmem:[%s4934_s11 + $0xa0] ss:$8 sps:$4 sm:$0xff]   ;;  %v4237_v54 = vld [vmem:[%s4934_s11 + $0xb4] ss:$8 sps:$4 sm:$0xff]   ;;  %v4239_v55 = vld [vmem:[%s4934_s11 + $0xb0] ss:$8 sps:$4 sm:$0xff]  }
  0xbb   : > { %929 = vmatprep.subr.bf16.mxu0 %v4171_v10  ;;  %v4240_v56 = vld [vmem:[%s4934_s11 + $0xc4] ss:$8 sps:$4 sm:$0xff]   ;;  %v4242_v57 = vld [vmem:[%s4934_s11 + $0xc0] ss:$8 sps:$4 sm:$0xff]   ;;  %v4243_v58 = vld [vmem:[%s4934_s11 + $0xd4] ss:$8 sps:$4 sm:$0xff]  }
  0xbc   : > { %v4245_v59 = vld [vmem:[%s4934_s11 + $0xd0] ss:$8 sps:$4 sm:$0xff]   ;;  %v4246_v60 = vld [vmem:[%s4934_s11 + $0xe4] ss:$8 sps:$4 sm:$0xff]   ;;  %v4248_v61 = vld [vmem:[%s4934_s11 + $0xe0] ss:$8 sps:$4 sm:$0xff]  }
  0xbd   : > { %v4249_v62 = vld [vmem:[%s4934_s11 + $0xf4] ss:$8 sps:$4 sm:$0xff]   ;;  %v4251_v63 = vld [vmem:[%s4934_s11 + $0xf0] ss:$8 sps:$4 sm:$0xff]   ;;  %v4252_v0 = vld [vmem:[#allocation7 + $0x40] sm:$0xff]   ;;  %v590_v9 = vshrl.u32 %v589_v6, 7 }
  0xbe   : > { %930 = vmatpush1.bf16.msra.mxu0 %v4173_v11  ;;  %v4253_v1 = vld [vmem:[#allocation7] sm:$0xff]   ;;  %4062 = vmatprep.subr.bf16.mxu1 %v4252_v0  ;;  %v4254_v2 = vld [vmem:[#allocation7 + $0x48] sm:$0xff]   ;;  %v4256_v4 = vld [vmem:[#allocation7 + $0x50] sm:$0xff]   ;;  %s7117_s25 = sld [smem:[#allocation50_spill]]  ;;  %s7118_s16 = sld [smem:[#allocation51_spill]] }
  0xbf   : > { %931 = vmatprep.subr.bf16.mxu0 %v4174_v12  ;;  %4070 = vmatpush3.bf16.msra.mxu1 %v4253_v1  ;;  %v4255_v3 = vld [vmem:[#allocation7 + $0x8] sm:$0xff]   ;;  %v4257_v5 = vld [vmem:[#allocation7 + $0x10] sm:$0xff]   ;;  %v4258_v7 = vld [vmem:[#allocation7 + $0x58] sm:$0xff]   ;;  %v4980_v10 = vsub.s32 0, %v590_v9  ;;  %v4985_v12 = vsub.s32 1, %v590_v9  ;;  %s7119_s22 = sld [smem:[#allocation52_spill]] }
  0xc0   : > { %4063 = vmatprep.subr.bf16.mxu1 %v4254_v2  ;;  %v4259_v8 = vld [vmem:[#allocation7 + $0x18] sm:$0xff]   ;;  %v587_v11 = vld [vmem:[%s6939_s2] sm:$0x3]  ;;  %s7120_s15 = sld [smem:[#allocation53_spill]]  ;;  %s6627_s14 = scalar_lea.vmem [#allocation10], %s3766_s24 }
  0xc1   : > { %v4988_v13 = vrot.slane %v587_v11, %v4980_v10  ;;  %s3629_s24 = scalar_lea.sflag [#allocation4], %s4928_s21  ;;  %s7121_s12 = sld [smem:[#allocation18_spill]] }
  0xc2   : > { %932 = vmatpush1.bf16.msra.mxu0 %v4176_v14  ;;  %v4991_v14 = vrot.slane %v587_v11, %v4985_v12 }
  0xc3   : > { %933 = vmatprep.subr.bf16.mxu0 %v4177_v15  ;;  %4071 = vmatpush3.bf16.msra.mxu1 %v4255_v3 }
  0xc4   : > { %4064 = vmatprep.subr.bf16.mxu1 %v4256_v4 }
  0xc6   : > { %934 = vmatpush1.bf16.msra.mxu0 %v4179_v16  ;;  %v4260_v16 = vld [vmem:[#allocation7 + $0x60] sm:$0xff]  }
  0xc7   : > { %935 = vmatprep.subr.bf16.mxu0 %v4180_v17  ;;  %4072 = vmatpush3.bf16.msra.mxu1 %v4257_v5  ;;  %v4261_v17 = vld [vmem:[#allocation7 + $0x20] sm:$0xff]   ;;  %p7122_p1 = scmp.ne.s32.totalorder %s7121_s12, 0 }
  0xc8   : > { %4065 = vmatprep.subr.bf16.mxu1 %v4258_v7  ;;  %s3866_s1 = sshll.u32 (%p7122_p1), %s4760_s29, 5 }
  0xc9   : > { %s3637_s23 = ssub.s32 (%p7122_p1), 48, %s3866_s1 }
  0xca   : > { %936 = vmatpush1.bf16.msra.mxu0 %v4182_v18  ;;  %p3638_p6 = scmp.lt.s32.totalorder (%p7122_p1), %s3637_s23, 32 }
  0xcb   : > { %937 = vmatprep.subr.bf16.mxu0 %v4183_v19  ;;  %4073 = vmatpush3.bf16.msra.mxu1 %v4259_v8 }
  0xcc   : > { %4066 = vmatprep.subr.bf16.mxu1 %v4260_v16 }
  0xce   : > { %938 = vmatpush1.bf16.msra.mxu0 %v4185_v20 }
  0xcf   : > { %939 = vmatprep.subr.bf16.mxu0 %v4186_v21  ;;  %4074 = vmatpush3.bf16.msra.mxu1 %v4261_v17 }
  0xd2   : > { %940 = vmatpush1.bf16.msra.mxu0 %v4188_v22 }
  0xd3   : > { %941 = vmatprep.subr.bf16.mxu0 %v4189_v23 }
  0xd6   : > { %942 = vmatpush1.bf16.msra.mxu0 %v4191_v24 }
  0xd7   : > { %943 = vmatprep.subr.bf16.mxu0 %v4192_v25 }
  0xda   : > { %944 = vmatpush1.bf16.msra.mxu0 %v4194_v26 }
  0xdb   : > { %945 = vmatprep.subr.bf16.mxu0 %v4195_v27 }
  0xde   : > { %946 = vmatpush1.bf16.msra.mxu0 %v4197_v28 }
  0xdf   : > { %947 = vmatprep.subr.bf16.mxu0 %v4198_v29 }
  0xe2   : > { %948 = vmatpush1.bf16.msra.mxu0 %v4200_v30 }
  0xe3   : > { %949 = vmatprep.subr.bf16.mxu0 %v4201_v31  ;;  %v4262_v31 = vld [vmem:[#allocation7 + $0x68] sm:$0xff]  }
  0xe4   : > { %4067 = vmatprep.subr.bf16.mxu1 %v4262_v31 }
  0xe6   : > { %950 = vmatpush1.bf16.msra.mxu0 %v4203_v32  ;;  %v4263_v32 = vld [vmem:[#allocation7 + $0x28] sm:$0xff]  }
  0xe7   : > { %3878 = vmatprep.subr.bf16.mxu0 %v4252_v0  ;;  %4075 = vmatpush3.bf16.msra.mxu1 %v4263_v32 }
  0xe9   : > { %952 = vmatmul.mubr.bf16.vlgmr.msra.gmra.mrb[0].mxu0 %v4204_v33 }
  0xea   : > { %961 = vmatprep.mubr.bf16.mxu0 %v4207_v34  ;;  %3879 = vmatpush3.bf16.msra.mxu0 %v4253_v1 }
  0xeb   : > { %3880 = vmatprep.subr.bf16.mxu0 %v4254_v2 }
  0xee   : > { %3881 = vmatpush3.bf16.msra.mxu0 %v4255_v3 }
  0xef   : > { %3882 = vmatprep.subr.bf16.mxu0 %v4256_v4 }
  0xf1   : > { %962 = vmatmul.mubr.bf16.gmra.mrb[4].mxu0 %v4209_v35 }
  0xf2   : > { %971 = vmatprep.mubr.bf16.mxu0 %v4210_v36  ;;  %3883 = vmatpush3.bf16.msra.mxu0 %v4257_v5 }
  0xf3   : > { %3884 = vmatprep.subr.bf16.mxu0 %v4258_v7 }
  0xf6   : > { %3885 = vmatpush3.bf16.msra.mxu0 %v4259_v8 }
  0xf7   : > { %3886 = vmatprep.subr.bf16.mxu0 %v4260_v16 }
  0xf9   : > { %972 = vmatmul.mubr.bf16.gmra.mrb[8].mxu0 %v4212_v37 }
  0xfa   : > { %981 = vmatprep.mubr.bf16.mxu0 %v4213_v38  ;;  %3887 = vmatpush3.bf16.msra.mxu0 %v4261_v17 }
  0xfb   : > { %3888 = vmatprep.subr.bf16.mxu0 %v4262_v31 }
  0xfe   : > { %3889 = vmatpush3.bf16.msra.mxu0 %v4263_v32 }
 0x101   : > { %982 = vmatmul.mubr.bf16.gmra.mrb[12].mxu0 %v4215_v39 }
 0x102   : > { %991 = vmatprep.mubr.bf16.mxu0 %v4216_v40 }
 0x109   : > { %992 = vmatmul.mubr.bf16.gmra.mrb[16].mxu0 %v4218_v41 }
 0x10a   : > { %1001 = vmatprep.mubr.bf16.mxu0 %v4219_v42 }
 0x111   : > { %1002 = vmatmul.mubr.bf16.gmra.mrb[20].mxu0 %v4221_v43 }
 0x112   : > { %1011 = vmatprep.mubr.bf16.mxu0 %v4222_v44 }
 0x119   : > { %1012 = vmatmul.mubr.bf16.gmra.mrb[24].mxu0 %v4224_v45 }
 0x11a   : > { %1021 = vmatprep.mubr.bf16.mxu0 %v4225_v46 }
 0x121   : > { %1022 = vmatmul.mubr.bf16.gmra.mrb[28].mxu0 %v4227_v47 }
 0x122   : > { %1031 = vmatprep.mubr.bf16.mxu0 %v4228_v48 }
 0x129   : > { %1032 = vmatmul.mubr.bf16.gmra.mrb[32].mxu0 %v4230_v49 }
 0x12a   : > { %1041 = vmatprep.mubr.bf16.mxu0 %v4231_v50 }
 0x131   : > { %1042 = vmatmul.mubr.bf16.gmra.mrb[36].mxu0 %v4233_v51 }
 0x132   : > { %1051 = vmatprep.mubr.bf16.mxu0 %v4234_v52 }
 0x139   : > { %1052 = vmatmul.mubr.bf16.gmra.mrb[40].mxu0 %v4236_v53 }
 0x13a   : > { %1061 = vmatprep.mubr.bf16.mxu0 %v4237_v54 }
 0x141   : > { %1062 = vmatmul.mubr.bf16.gmra.mrb[44].mxu0 %v4239_v55 }
 0x142   : > { %1071 = vmatprep.mubr.bf16.mxu0 %v4240_v56 }
 0x149   : > { %1072 = vmatmul.mubr.bf16.gmra.mrb[48].mxu0 %v4242_v57 }
 0x14a   : > { %1081 = vmatprep.mubr.bf16.mxu0 %v4243_v58 }
 0x151   : > { %1082 = vmatmul.mubr.bf16.gmra.mrb[52].mxu0 %v4245_v59 }
 0x152   : > { %1091 = vmatprep.mubr.bf16.mxu0 %v4246_v60 }
 0x159   : > { %1092 = vmatmul.mubr.bf16.gmra.mrb[56].mxu0 %v4248_v61 }
 0x15a   : > { %1101 = vmatprep.mubr.bf16.mxu0 %v4249_v62 }
 0x161   : > { %1102 = vmatmul.mubr.bf16.gmra.mrb[60].mxu0 %v4251_v63 }
 0x1bc   : > { %v953_v15 = vpop.f32.mrb[0].mxu0 }
 0x1bd   : > { %v4994_v18 = vadd.f32 %v953_v15, %v4988_v13  ;;  %v955_v19 = vpop.f32.mrb[1].mxu0 }
 0x1be   : > { %v4997_v20 = vadd.f32 %v955_v19, %v4991_v14  ;;  %v957_v21 = vpop.f32.mrb[2].mxu0 }
 0x1bf   : > { %v5000_v22 = vadd.f32 %v957_v21, %v4988_v13  ;;  %v959_v23 = vpop.f32.mrb[3].mxu0  ;;  %v1242_v26 = vmul.f32 %v4994_v18, %v4994_v18 }
 0x1c0   : > { %v5003_v24 = vadd.f32 %v959_v23, %v4991_v14  ;;  %v1114_v25 = vadd.f32 %v4997_v20, %v4994_v18  ;;  %v1243_v27 = vmul.f32 %v4997_v20, %v4997_v20 }
 0x1c1   : > { %v1244_v29 = vmul.f32 %v5000_v22, %v5000_v22 }
 0x1c2   : > { %1115 = vadd.xlane.f32.xlu0 %v1114_v25  ;;  %v1117_v28 = vadd.f32 %v5003_v24, %v5000_v22  ;;  %v1245_v30 = vmul.f32 %v5003_v24, %v5003_v24  ;;  %v1306_v34 = vadd.f32 %v1243_v27, %v1242_v26 }
 0x1c4   : > { %v963_v33 = vpop.f32.mrb[4].mxu0  ;;  %1118 = vadd.xlane.f32.xlu1 %v1117_v28  ;;  %v1309_v39 = vadd.f32 %v1245_v30, %v1244_v29 }
 0x1c5   : > { %v5018_v35 = vadd.f32 %v963_v33, %v4988_v13  ;;  %v965_v36 = vpop.f32.mrb[5].mxu0 }
 0x1c6   : > { %v5021_v37 = vadd.f32 %v965_v36, %v4991_v14  ;;  %v967_v38 = vpop.f32.mrb[6].mxu0  ;;  %1307 = vadd.xlane.f32.xlu0 %v1306_v34 }
 0x1c7   : > { %v5024_v40 = vadd.f32 %v967_v38, %v4988_v13  ;;  %v969_v41 = vpop.f32.mrb[7].mxu0  ;;  %v1246_v0 = vmul.f32 %v5018_v35, %v5018_v35 }
 0x1c8   : > { %v5027_v42 = vadd.f32 %v969_v41, %v4991_v14  ;;  %1310 = vadd.xlane.f32.xlu1 %v1309_v39  ;;  %v1120_v43 = vadd.f32 %v5021_v37, %v5018_v35  ;;  %v1247_v1 = vmul.f32 %v5021_v37, %v5021_v37 }
 0x1c9   : > { %v1248_v45 = vmul.f32 %v5024_v40, %v5024_v40 }
 0x1ca   : > { %1121 = vadd.xlane.f32.xlu0 %v1120_v43  ;;  %v1123_v44 = vadd.f32 %v5027_v42, %v5024_v40  ;;  %v1249_v46 = vmul.f32 %v5027_v42, %v5027_v42  ;;  %v1312_v11 = vadd.f32 %v1247_v1, %v1246_v0 }
 0x1cc   : > { %v973_v47 = vpop.f32.mrb[8].mxu0  ;;  %1124 = vadd.xlane.f32.xlu1 %v1123_v44  ;;  %v1315_v52 = vadd.f32 %v1249_v46, %v1248_v45 }
 0x1cd   : > { %v5038_v48 = vadd.f32 %v973_v47, %v4988_v13  ;;  %v975_v49 = vpop.f32.mrb[9].mxu0 }
 0x1ce   : > { %v5041_v50 = vadd.f32 %v975_v49, %v4991_v14  ;;  %v977_v51 = vpop.f32.mrb[10].mxu0 }
 0x1cf   : > { %v5044_v53 = vadd.f32 %v977_v51, %v4988_v13  ;;  %v979_v54 = vpop.f32.mrb[11].mxu0  ;;  %v1250_v55 = vmul.f32 %v5038_v48, %v5038_v48 }
 0x1d0   : > { %v5049_v56 = vadd.f32 %v979_v54, %v4991_v14  ;;  %1316 = vadd.xlane.f32.xlu1 %v1315_v52  ;;  %v1126_v57 = vadd.f32 %v5041_v50, %v5038_v48  ;;  %v1251_v58 = vmul.f32 %v5041_v50, %v5041_v50 }
 0x1d1   : > { %v1252_v60 = vmul.f32 %v5044_v53, %v5044_v53 }
 0x1d2   : > { %1127 = vadd.xlane.f32.xlu0 %v1126_v57  ;;  %v1318_v59 = vadd.f32 %v1251_v58, %v1250_v55  ;;  %v1253_v61 = vmul.f32 %v5049_v56, %v5049_v56  ;;  %v1129_v63 = vadd.f32 %v5049_v56, %v5044_v53 }
 0x1d4   : > { %v983_v62 = vpop.f32.mrb[12].mxu0  ;;  %1319 = vadd.xlane.f32.xlu1 %v1318_v59  ;;  %v1321_v6 = vadd.f32 %v1253_v61, %v1252_v60  ;;  %v4264_v61 = vld [vmem:[#allocation7 + $0x70] sm:$0xff]  }
 0x1d5   : > { %v985_v2 = vpop.f32.mrb[13].mxu0  ;;  %v5066_v3 = vadd.f32 %v983_v62, %v4988_v13  ;;  %v4265_v62 = vld [vmem:[#allocation7 + $0x30] sm:$0xff]   ;;  %3890 = vmatprep.subr.bf16.mxu0 %v4264_v61  ;;  %4068 = vmatprep.subr.bf16.mxu1 %v4264_v61 }
 0x1d6   : > { %v5069_v4 = vadd.f32 %v985_v2, %v4991_v14  ;;  %v987_v5 = vpop.f32.mrb[14].mxu0  ;;  %1130 = vadd.xlane.f32.xlu0 %v1129_v63  ;;  %3891 = vmatpush3.bf16.msra.mxu0 %v4265_v62 }
 0x1d7   : > { %v5072_v7 = vadd.f32 %v987_v5, %v4988_v13  ;;  %v989_v8 = vpop.f32.mrb[15].mxu0  ;;  %v1254_v16 = vmul.f32 %v5066_v3, %v5066_v3  ;;  %4076 = vmatpush3.bf16.msra.mxu1 %v4265_v62 }
 0x1d8   : > { %v5075_v9 = vadd.f32 %v989_v8, %v4991_v14  ;;  %1322 = vadd.xlane.f32.xlu1 %v1321_v6  ;;  %v1132_v19 = vadd.f32 %v5069_v4, %v5066_v3  ;;  %v1255_v23 = vmul.f32 %v5069_v4, %v5069_v4 }
 0x1d9   : > { %v1256_v15 = vmul.f32 %v5072_v7, %v5072_v7 }
 0x1da   : > { %1313 = vadd.xlane.f32.xlu0 %v1312_v11  ;;  %v1135_v17 = vadd.f32 %v5075_v9, %v5072_v7  ;;  %v1257_v21 = vmul.f32 %v5075_v9, %v5075_v9  ;;  %v1324_v31 = vadd.f32 %v1255_v23, %v1254_v16  ;;  %v4266_v23 = vld [vmem:[#allocation7 + $0x78] sm:$0xff]  }
 0x1db   : > { %3892 = vmatprep.subr.bf16.mxu0 %v4266_v23  ;;  %4069 = vmatprep.subr.bf16.mxu1 %v4266_v23 }
 0x1dc   : > { %v993_v25 = vpop.f32.mrb[16].mxu0  ;;  %1136 = vadd.xlane.f32.xlu1 %v1135_v17  ;;  %v1327_v26 = vadd.f32 %v1257_v21, %v1256_v15 }
 0x1dd   : > { %v995_v27 = vpop.f32.mrb[17].mxu0  ;;  %v5090_v28 = vadd.f32 %v993_v25, %v4988_v13 }
 0x1de   : > { %v5093_v29 = vadd.f32 %v995_v27, %v4991_v14  ;;  %v997_v30 = vpop.f32.mrb[18].mxu0  ;;  %1133 = vadd.xlane.f32.xlu0 %v1132_v19 }
 0x1df   : > { %v5096_v32 = vadd.f32 %v997_v30, %v4988_v13  ;;  %v999_v33 = vpop.f32.mrb[19].mxu0  ;;  %v1258_v38 = vmul.f32 %v5090_v28, %v5090_v28 }
 0x1e0   : > { %v5099_v34 = vadd.f32 %v999_v33, %v4991_v14  ;;  %1328 = vadd.xlane.f32.xlu1 %v1327_v26  ;;  %v1138_v41 = vadd.f32 %v5093_v29, %v5090_v28  ;;  %v1259_v44 = vmul.f32 %v5093_v29, %v5093_v29  ;;  %v4267_v26 = vld [vmem:[#allocation7 + $0x38] sm:$0xff]  }
 0x1e1   : > { %v1260_v36 = vmul.f32 %v5096_v32, %v5096_v32  ;;  %3893 = vmatpush3.bf16.msra.mxu0 %v4267_v26  ;;  %4077 = vmatpush3.bf16.msra.mxu1 %v4267_v26 }
 0x1e2   : > { %1325 = vadd.xlane.f32.xlu0 %v1324_v31  ;;  %v1141_v39 = vadd.f32 %v5099_v34, %v5096_v32  ;;  %v1261_v43 = vmul.f32 %v5099_v34, %v5099_v34  ;;  %v1330_v54 = vadd.f32 %v1259_v44, %v1258_v38 }
 0x1e4   : > { %v1003_v45 = vpop.f32.mrb[20].mxu0  ;;  %1142 = vadd.xlane.f32.xlu1 %v1141_v39  ;;  %v1333_v46 = vadd.f32 %v1261_v43, %v1260_v36 }
 0x1e5   : > { %v1005_v47 = vpop.f32.mrb[21].mxu0  ;;  %v5114_v49 = vadd.f32 %v1003_v45, %v4988_v13 }
 0x1e6   : > { %v5117_v51 = vadd.f32 %v1005_v47, %v4991_v14  ;;  %v1007_v52 = vpop.f32.mrb[22].mxu0  ;;  %1139 = vadd.xlane.f32.xlu0 %v1138_v41 }
 0x1e7   : > { %v5120_v55 = vadd.f32 %v1007_v52, %v4988_v13  ;;  %v1009_v57 = vpop.f32.mrb[23].mxu0  ;;  %v1262_v60 = vmul.f32 %v5114_v49, %v5114_v49 }
 0x1e8   : > { %v5123_v58 = vadd.f32 %v1009_v57, %v4991_v14  ;;  %1334 = vadd.xlane.f32.xlu1 %v1333_v46  ;;  %v1144_v0 = vadd.f32 %v5117_v51, %v5114_v49  ;;  %v1263_v2 = vmul.f32 %v5117_v51, %v5117_v51 }
 0x1e9   : > { %7038 = vst [vmem:[#allocation20_spill] sm:$0xff] %v5120_v55  ;;  %v1264_v59 = vmul.f32 %v5120_v55, %v5120_v55 }
 0x1ea   : > { %1331 = vadd.xlane.f32.xlu0 %v1330_v54  ;;  %v1147_v63 = vadd.f32 %v5123_v58, %v5120_v55  ;;  %v1265_v1 = vmul.f32 %v5123_v58, %v5123_v58  ;;  %v1336_v17 = vadd.f32 %v1263_v2, %v1262_v60 }
 0x1ec   : > { %v1013_v5 = vpop.f32.mrb[24].mxu0  ;;  %1148 = vadd.xlane.f32.xlu1 %v1147_v63  ;;  %v1339_v6 = vadd.f32 %v1265_v1, %v1264_v59 }
 0x1ed   : > { %v5138_v8 = vadd.f32 %v1013_v5, %v4988_v13  ;;  %v1015_v11 = vpop.f32.mrb[25].mxu0 }
 0x1ee   : > { %v5141_v15 = vadd.f32 %v1015_v11, %v4991_v14  ;;  %v1017_v16 = vpop.f32.mrb[26].mxu0  ;;  %1145 = vadd.xlane.f32.xlu0 %v1144_v0 }
 0x1ef   : > { %v5144_v19 = vadd.f32 %v1017_v16, %v4988_v13  ;;  %v1019_v21 = vpop.f32.mrb[27].mxu0  ;;  %v1266_v31 = vmul.f32 %v5138_v8, %v5138_v8 }
 0x1f0   : > { %v5147_v25 = vadd.f32 %v1019_v21, %v4991_v14  ;;  %1340 = vadd.xlane.f32.xlu1 %v1339_v6  ;;  %v1150_v27 = vadd.f32 %v5141_v15, %v5138_v8  ;;  %v1267_v38 = vmul.f32 %v5141_v15, %v5141_v15 }
 0x1f1   : > { %v1268_v30 = vmul.f32 %v5144_v19, %v5144_v19 }
 0x1f2   : > { %1337 = vadd.xlane.f32.xlu0 %v1336_v17  ;;  %v1153_v33 = vadd.f32 %v5147_v25, %v5144_v19  ;;  %v1269_v36 = vmul.f32 %v5147_v25, %v5147_v25  ;;  %v1342_v47 = vadd.f32 %v1267_v38, %v1266_v31 }
 0x1f4   : > { %v1023_v39 = vpop.f32.mrb[28].mxu0  ;;  %1154 = vadd.xlane.f32.xlu1 %v1153_v33  ;;  %v1345_v41 = vadd.f32 %v1269_v36, %v1268_v30 }
 0x1f5   : > { %v1025_v43 = vpop.f32.mrb[29].mxu0  ;;  %v5162_v44 = vadd.f32 %v1023_v39, %v4988_v13 }
 0x1f6   : > { %v5165_v45 = vadd.f32 %v1025_v43, %v4991_v14  ;;  %v1027_v46 = vpop.f32.mrb[30].mxu0  ;;  %1151 = vadd.xlane.f32.xlu0 %v1150_v27 }
 0x1f7   : > { %v5168_v52 = vadd.f32 %v1027_v46, %v4988_v13  ;;  %v1029_v54 = vpop.f32.mrb[31].mxu0  ;;  %v1270_v60 = vmul.f32 %v5162_v44, %v5162_v44 }
 0x1f8   : > { %v5171_v57 = vadd.f32 %v1029_v54, %v4991_v14  ;;  %1346 = vadd.xlane.f32.xlu1 %v1345_v41  ;;  %v1156_v62 = vadd.f32 %v5165_v45, %v5162_v44  ;;  %v1271_v0 = vmul.f32 %v5165_v45, %v5165_v45 }
 0x1f9   : > { %v1272_v59 = vmul.f32 %v5168_v52, %v5168_v52 }
 0x1fa   : > { %1343 = vadd.xlane.f32.xlu0 %v1342_v47  ;;  %v1159_v61 = vadd.f32 %v5171_v57, %v5168_v52  ;;  %v1273_v63 = vmul.f32 %v5171_v57, %v5171_v57  ;;  %v1348_v17 = vadd.f32 %v1271_v0, %v1270_v60 }
 0x1fc   : > { %v1033_v1 = vpop.f32.mrb[32].mxu0  ;;  %1160 = vadd.xlane.f32.xlu1 %v1159_v61  ;;  %v1351_v2 = vadd.f32 %v1273_v63, %v1272_v59 }
 0x1fd   : > { %v1035_v5 = vpop.f32.mrb[33].mxu0  ;;  %v5186_v6 = vadd.f32 %v1033_v1, %v4988_v13 }
 0x1fe   : > { %v5189_v11 = vadd.f32 %v1035_v5, %v4991_v14  ;;  %v1037_v16 = vpop.f32.mrb[34].mxu0  ;;  %1157 = vadd.xlane.f32.xlu0 %v1156_v62 }
 0x1ff   : > { %v5192_v21 = vadd.f32 %v1037_v16, %v4988_v13  ;;  %v1039_v23 = vpop.f32.mrb[35].mxu0  ;;  %v1274_v30 = vmul.f32 %v5186_v6, %v5186_v6 }
 0x200   : > { %v5195_v26 = vadd.f32 %v1039_v23, %v4991_v14  ;;  %1352 = vadd.xlane.f32.xlu1 %v1351_v2  ;;  %v1162_v33 = vadd.f32 %v5189_v11, %v5186_v6  ;;  %v1275_v38 = vmul.f32 %v5189_v11, %v5189_v11 }
 0x201   : > { %v1276_v27 = vmul.f32 %v5192_v21, %v5192_v21 }
 0x202   : > { %1349 = vadd.xlane.f32.xlu0 %v1348_v17  ;;  %v1165_v31 = vadd.f32 %v5195_v26, %v5192_v21  ;;  %v1277_v36 = vmul.f32 %v5195_v26, %v5195_v26  ;;  %v1354_v59 = vadd.f32 %v1275_v38, %v1274_v30 }
 0x204   : > { %v1043_v39 = vpop.f32.mrb[36].mxu0  ;;  %1166 = vadd.xlane.f32.xlu1 %v1165_v31  ;;  %v1357_v41 = vadd.f32 %v1277_v36, %v1276_v27 }
 0x205   : > { %v1045_v43 = vpop.f32.mrb[37].mxu0  ;;  %v5210_v46 = vadd.f32 %v1043_v39, %v4988_v13 }
 0x206   : > { %v5213_v47 = vadd.f32 %v1045_v43, %v4991_v14  ;;  %v1047_v54 = vpop.f32.mrb[38].mxu0  ;;  %1163 = vadd.xlane.f32.xlu0 %v1162_v33 }
 0x207   : > { %7039 = vst [vmem:[#allocation21_spill] sm:$0xff] %v5210_v46  ;;  %v5216_v60 = vadd.f32 %v1047_v54, %v4988_v13  ;;  %v1049_v61 = vpop.f32.mrb[39].mxu0  ;;  %v1278_v0 = vmul.f32 %v5210_v46, %v5210_v46 }
 0x208   : > { %7040 = vst [vmem:[#allocation22_spill] sm:$0xff] %v5213_v47  ;;  %v5219_v62 = vadd.f32 %v1049_v61, %v4991_v14  ;;  %1358 = vadd.xlane.f32.xlu1 %v1357_v41  ;;  %v1168_v2 = vadd.f32 %v5213_v47, %v5210_v46  ;;  %v1279_v16 = vmul.f32 %v5213_v47, %v5213_v47 }
 0x209   : > { %7041 = vst [vmem:[#allocation23_spill] sm:$0xff] %v5216_v60  ;;  %v1280_v63 = vmul.f32 %v5216_v60, %v5216_v60 }
 0x20a   : > { %7042 = vst [vmem:[#allocation24_spill] sm:$0xff] %v5219_v62  ;;  %1355 = vadd.xlane.f32.xlu0 %v1354_v59  ;;  %v1171_v1 = vadd.f32 %v5219_v62, %v5216_v60  ;;  %v1281_v5 = vmul.f32 %v5219_v62, %v5219_v62  ;;  %v1360_v36 = vadd.f32 %v1279_v16, %v1278_v0 }
 0x20c   : > { %v1053_v17 = vpop.f32.mrb[40].mxu0  ;;  %1172 = vadd.xlane.f32.xlu1 %v1171_v1  ;;  %v1363_v23 = vadd.f32 %v1281_v5, %v1280_v63 }
 0x20d   : > { %v1055_v27 = vpop.f32.mrb[41].mxu0  ;;  %v5234_v30 = vadd.f32 %v1053_v17, %v4988_v13 }
 0x20e   : > { %v5237_v31 = vadd.f32 %v1055_v27, %v4991_v14  ;;  %v1057_v33 = vpop.f32.mrb[42].mxu0  ;;  %1169 = vadd.xlane.f32.xlu0 %v1168_v2 }
 0x20f   : > { %7043 = vst [vmem:[#allocation25_spill] sm:$0xff] %v5234_v30  ;;  %v5240_v38 = vadd.f32 %v1057_v33, %v4988_v13  ;;  %v1059_v39 = vpop.f32.mrb[43].mxu0  ;;  %v1282_v54 = vmul.f32 %v5234_v30, %v5234_v30 }
 0x210   : > { %7044 = vst [vmem:[#allocation26_spill] sm:$0xff] %v5237_v31  ;;  %v5243_v41 = vadd.f32 %v1059_v39, %v4991_v14  ;;  %1364 = vadd.xlane.f32.xlu1 %v1363_v23  ;;  %v1174_v61 = vadd.f32 %v5237_v31, %v5234_v30  ;;  %v1283_v0 = vmul.f32 %v5237_v31, %v5237_v31 }
 0x211   : > { %7045 = vst [vmem:[#allocation27_spill] sm:$0xff] %v5240_v38  ;;  %v1284_v43 = vmul.f32 %v5240_v38, %v5240_v38 }
 0x212   : > { %7046 = vst [vmem:[#allocation28_spill] sm:$0xff] %v5243_v41  ;;  %1361 = vadd.xlane.f32.xlu0 %v1360_v36  ;;  %v1177_v59 = vadd.f32 %v5243_v41, %v5240_v38  ;;  %v1285_v63 = vmul.f32 %v5243_v41, %v5243_v41  ;;  %v1366_v27 = vadd.f32 %v1283_v0, %v1282_v54 }
 0x214   : > { %v1063_v1 = vpop.f32.mrb[44].mxu0  ;;  %1178 = vadd.xlane.f32.xlu1 %v1177_v59  ;;  %v1369_v2 = vadd.f32 %v1285_v63, %v1284_v43 }
 0x215   : > { %v1065_v5 = vpop.f32.mrb[45].mxu0  ;;  %v5258_v16 = vadd.f32 %v1063_v1, %v4988_v13 }
 0x216   : > { %v5261_v17 = vadd.f32 %v1065_v5, %v4991_v14  ;;  %v1067_v23 = vpop.f32.mrb[46].mxu0  ;;  %1175 = vadd.xlane.f32.xlu0 %v1174_v61 }
 0x217   : > { %7047 = vst [vmem:[#allocation29_spill] sm:$0xff] %v5258_v16  ;;  %v5264_v33 = vadd.f32 %v1067_v23, %v4988_v13  ;;  %v1069_v36 = vpop.f32.mrb[47].mxu0  ;;  %v1286_v59 = vmul.f32 %v5258_v16, %v5258_v16 }
 0x218   : > { %7048 = vst [vmem:[#allocation30_spill] sm:$0xff] %v5261_v17  ;;  %v5267_v39 = vadd.f32 %v1069_v36, %v4991_v14  ;;  %1370 = vadd.xlane.f32.xlu1 %v1369_v2  ;;  %v1180_v54 = vadd.f32 %v5261_v17, %v5258_v16  ;;  %v1287_v0 = vmul.f32 %v5261_v17, %v5261_v17 }
 0x219   : > { %7049 = vst [vmem:[#allocation31_spill] sm:$0xff] %v5264_v33  ;;  %v1288_v43 = vmul.f32 %v5264_v33, %v5264_v33 }
 0x21a   : > { %7050 = vst [vmem:[#allocation32_spill] sm:$0xff] %v5267_v39  ;;  %1367 = vadd.xlane.f32.xlu0 %v1366_v27  ;;  %v1183_v63 = vadd.f32 %v5267_v39, %v5264_v33  ;;  %v1289_v61 = vmul.f32 %v5267_v39, %v5267_v39  ;;  %v1372_v33 = vadd.f32 %v1287_v0, %v1286_v59 }
 0x21c   : > { %v1073_v1 = vpop.f32.mrb[48].mxu0  ;;  %1184 = vadd.xlane.f32.xlu1 %v1183_v63  ;;  %v1375_v2 = vadd.f32 %v1289_v61, %v1288_v43 }
 0x21d   : > { %v1075_v5 = vpop.f32.mrb[49].mxu0  ;;  %v5282_v23 = vadd.f32 %v1073_v1, %v4988_v13 }
 0x21e   : > { %v5285_v27 = vadd.f32 %v1075_v5, %v4991_v14  ;;  %v1077_v36 = vpop.f32.mrb[50].mxu0  ;;  %1181 = vadd.xlane.f32.xlu0 %v1180_v54 }
 0x21f   : > { %7051 = vst [vmem:[#allocation33_spill] sm:$0xff] %v5282_v23  ;;  %v5288_v16 = vadd.f32 %v1077_v36, %v4988_v13  ;;  %v1079_v39 = vpop.f32.mrb[51].mxu0  ;;  %v1290_v63 = vmul.f32 %v5282_v23, %v5282_v23 }
 0x220   : > { %7052 = vst [vmem:[#allocation34_spill] sm:$0xff] %v5285_v27  ;;  %v5291_v31 = vadd.f32 %v1079_v39, %v4991_v14  ;;  %1376 = vadd.xlane.f32.xlu1 %v1375_v2  ;;  %v1186_v59 = vadd.f32 %v5285_v27, %v5282_v23  ;;  %v1291_v39 = vmul.f32 %v5285_v27, %v5285_v27 }
 0x221   : > { %7053 = vst [vmem:[#allocation35_spill] sm:$0xff] %v5288_v16  ;;  %v1292_v43 = vmul.f32 %v5288_v16, %v5288_v16 }
 0x222   : > { %7054 = vst [vmem:[#allocation36_spill] sm:$0xff] %v5291_v31  ;;  %1373 = vadd.xlane.f32.xlu0 %v1372_v33  ;;  %v1189_v61 = vadd.f32 %v5291_v31, %v5288_v16  ;;  %v1293_v54 = vmul.f32 %v5291_v31, %v5291_v31  ;;  %v1378_v16 = vadd.f32 %v1291_v39, %v1290_v63 }
 0x224   : > { %v1083_v0 = vpop.f32.mrb[52].mxu0  ;;  %1190 = vadd.xlane.f32.xlu1 %v1189_v61  ;;  %v1381_v1 = vadd.f32 %v1293_v54, %v1292_v43 }
 0x225   : > { %v1085_v2 = vpop.f32.mrb[53].mxu0  ;;  %v5306_v5 = vadd.f32 %v1083_v0, %v4988_v13 }
 0x226   : > { %v5309_v33 = vadd.f32 %v1085_v2, %v4991_v14  ;;  %v1087_v36 = vpop.f32.mrb[54].mxu0  ;;  %1187 = vadd.xlane.f32.xlu0 %v1186_v59 }
 0x227   : > { %7055 = vst [vmem:[#allocation37_spill] sm:$0xff] %v5306_v5  ;;  %v5312_v23 = vadd.f32 %v1087_v36, %v4988_v13  ;;  %v1089_v31 = vpop.f32.mrb[55].mxu0  ;;  %v1294_v61 = vmul.f32 %v5306_v5, %v5306_v5 }
 0x228   : > { %7056 = vst [vmem:[#allocation38_spill] sm:$0xff] %v5309_v33  ;;  %v5315_v17 = vadd.f32 %v1089_v31, %v4991_v14  ;;  %1382 = vadd.xlane.f32.xlu1 %v1381_v1  ;;  %v1192_v63 = vadd.f32 %v5309_v33, %v5306_v5  ;;  %v1295_v31 = vmul.f32 %v5309_v33, %v5309_v33 }
 0x229   : > { %7057 = vst [vmem:[#allocation39_spill] sm:$0xff] %v5312_v23  ;;  %v1296_v43 = vmul.f32 %v5312_v23, %v5312_v23 }
 0x22a   : > { %7058 = vst [vmem:[#allocation40_spill] sm:$0xff] %v5315_v17  ;;  %1379 = vadd.xlane.f32.xlu0 %v1378_v16  ;;  %v1195_v54 = vadd.f32 %v5315_v17, %v5312_v23  ;;  %v1297_v59 = vmul.f32 %v5315_v17, %v5315_v17  ;;  %v1384_v23 = vadd.f32 %v1295_v31, %v1294_v61 }
 0x22c   : > { %v1093_v39 = vpop.f32.mrb[56].mxu0  ;;  %1196 = vadd.xlane.f32.xlu1 %v1195_v54  ;;  %v1387_v0 = vadd.f32 %v1297_v59, %v1296_v43 }
 0x22d   : > { %v1095_v1 = vpop.f32.mrb[57].mxu0  ;;  %v5330_v2 = vadd.f32 %v1093_v39, %v4988_v13 }
 0x22e   : > { %v5333_v16 = vadd.f32 %v1095_v1, %v4991_v14  ;;  %v1097_v36 = vpop.f32.mrb[58].mxu0  ;;  %1193 = vadd.xlane.f32.xlu0 %v1192_v63 }
 0x22f   : > { %7059 = vst [vmem:[#allocation41_spill] sm:$0xff] %v5330_v2  ;;  %v5336_v5 = vadd.f32 %v1097_v36, %v4988_v13  ;;  %v1099_v17 = vpop.f32.mrb[59].mxu0  ;;  %v1298_v54 = vmul.f32 %v5330_v2, %v5330_v2 }
 0x230   : > { %7060 = vst [vmem:[#allocation42_spill] sm:$0xff] %v5333_v16  ;;  %v5339_v27 = vadd.f32 %v1099_v17, %v4991_v14  ;;  %1388 = vadd.xlane.f32.xlu1 %v1387_v0  ;;  %v1198_v61 = vadd.f32 %v5333_v16, %v5330_v2  ;;  %v1299_v17 = vmul.f32 %v5333_v16, %v5333_v16 }
 0x231   : > { %7061 = vst [vmem:[#allocation43_spill] sm:$0xff] %v5336_v5  ;;  %v1300_v43 = vmul.f32 %v5336_v5, %v5336_v5 }
 0x232   : > { %7062 = vst [vmem:[#allocation44_spill] sm:$0xff] %v5339_v27  ;;  %1385 = vadd.xlane.f32.xlu0 %v1384_v23  ;;  %v1201_v59 = vadd.f32 %v5339_v27, %v5336_v5  ;;  %v1301_v63 = vmul.f32 %v5339_v27, %v5339_v27  ;;  %v1390_v5 = vadd.f32 %v1299_v17, %v1298_v54 }
 0x234   : > { %v1103_v31 = vpop.f32.mrb[60].mxu0  ;;  %1202 = vadd.xlane.f32.xlu1 %v1201_v59  ;;  %v1393_v39 = vadd.f32 %v1301_v63, %v1300_v43 }
 0x235   : > { %v1105_v0 = vpop.f32.mrb[61].mxu0  ;;  %v5354_v1 = vadd.f32 %v1103_v31, %v4988_v13 }
 0x236   : > { %v5357_v23 = vadd.f32 %v1105_v0, %v4991_v14  ;;  %v1107_v36 = vpop.f32.mrb[62].mxu0  ;;  %1199 = vadd.xlane.f32.xlu0 %v1198_v61 }
 0x237   : > { %7063 = vst [vmem:[#allocation45_spill] sm:$0xff] %v5354_v1  ;;  %v5360_v2 = vadd.f32 %v1107_v36, %v4988_v13  ;;  %v1109_v27 = vpop.f32.mrb[63].mxu0  ;;  %v1302_v59 = vmul.f32 %v5354_v1, %v5354_v1 }
 0x238   : > { %7064 = vst [vmem:[#allocation46_spill] sm:$0xff] %v5357_v23  ;;  %v5363_v33 = vadd.f32 %v1109_v27, %v4991_v14  ;;  %1394 = vadd.xlane.f32.xlu1 %v1393_v39  ;;  %v1204_v54 = vadd.f32 %v5357_v23, %v5354_v1  ;;  %v1303_v14 = vmul.f32 %v5357_v23, %v5357_v23 }
 0x239   : > { %7065 = vst [vmem:[#allocation47_spill] sm:$0xff] %v5360_v2  ;;  %v1304_v43 = vmul.f32 %v5360_v2, %v5360_v2 }
 0x23a   : > { %7066 = vst [vmem:[#allocation48_spill] sm:$0xff] %v5363_v33  ;;  %1391 = vadd.xlane.f32.xlu0 %v1390_v5  ;;  %v1207_v63 = vadd.f32 %v5363_v33, %v5360_v2  ;;  %v1305_v13 = vmul.f32 %v5363_v33, %v5363_v33  ;;  %v1396_v61 = vadd.f32 %v1303_v14, %v1302_v59 }
 0x23c   : > { %1208 = vadd.xlane.f32.xlu1 %v1207_v63  ;;  %v1399_v27 = vadd.f32 %v1305_v13, %v1304_v43 }
 0x23e   : > { %1205 = vadd.xlane.f32.xlu0 %v1204_v54 }
 0x240   : > { %1400 = vadd.xlane.f32.xlu1 %v1399_v27 }
 0x242   : > { %1397 = vadd.xlane.f32.xlu0 %v1396_v61 }
 0x24f   : > { %v1116_v17 = vpop.xlane.xlu0 %1115 }
 0x250   : > { %v1210_v5 = vmul.f32 0.00390625, %v1116_v17 }
 0x251   : > { %v1119_v31 = vpop.xlane.xlu1 %1118 }
 0x252   : > { %v1211_v39 = vmul.f32 0.00390625, %v1119_v31  ;;  %v1434_v36 = vmul.f32 %v1210_v5, %v1210_v5 }
 0x253   : > { %v1308_v0 = vpop.xlane.xlu0 %1307 }
 0x254   : > { %v1402_v2 = vmul.f32 0.00390625, %v1308_v0  ;;  %v1435_v30 = vmul.f32 %v1211_v39, %v1211_v39 }
 0x255   : > { %v1311_v1 = vpop.xlane.xlu1 %1310 }
 0x256   : > { %v1466_v16 = vsub.f32 %v1402_v2, %v1434_v36  ;;  %v1403_v33 = vmul.f32 0.00390625, %v1311_v1 }
 0x257   : > { %v1122_v54 = vpop.xlane.xlu0 %1121 }
 0x258   : > { %v1498_v41 = vmax.f32 %v1466_v16, 0.0  ;;  %v1467_v38 = vsub.f32 %v1403_v33, %v1435_v30  ;;  %v1112_v30 = vld [vmem:[%s6940_s3] sm:$0x3]  ;;  %v5394_v36 = vmul.f32 0.00390625, %v1122_v54  ;;  %v1530_v54 = vsub.f32 %v4994_v18, %v1210_v5 }
 0x259   : > { %v1125_v23 = vpop.xlane.xlu1 %1124  ;;  %v1113_v16 = vld [vmem:[%s6941_s4] sm:$0x3]  ;;  %v5392_v0 = vrot.slane %v1112_v30, %v4980_v10 }
 0x25a   : > { %v1594_v63 = vadd.f32 1e-05, %v1498_v41  ;;  %v1499_v43 = vmax.f32 %v1467_v38, 0.0  ;;  %v5377_v59 = vmul.f32 0.00390625, %v1125_v23  ;;  %v1436_v18 = vmul.f32 %v5394_v36, %v5394_v36 }
 0x25c   : > { %4276 = vrsqrt.f32 %v1594_v63  ;;  %v1595_v13 = vadd.f32 1e-05, %v1499_v43  ;;  %v1437_v27 = vmul.f32 %v5377_v59, %v5377_v59 }
 0x25d   : > { %v1317_v14 = vpop.xlane.xlu1 %1316 }
 0x25e   : > { %4278 = vrsqrt.f32 %v1595_v13  ;;  %v1405_v61 = vmul.f32 0.00390625, %v1317_v14  ;;  %v5399_v13 = vrot.slane %v1112_v30, %v4985_v12  ;;  %v1531_v14 = vsub.f32 %v4997_v20, %v1210_v5 }
 0x25f   : > { %v1128_v17 = vpop.xlane.xlu0 %1127  ;;  %v1533_v30 = vsub.f32 %v5003_v24, %v1211_v39 }
 0x260   : > { %v1469_v2 = vsub.f32 %v1405_v61, %v1437_v27  ;;  %v5381_v31 = vmul.f32 0.00390625, %v1128_v17  ;;  %v5403_v17 = vrot.slane %v1113_v16, %v4980_v10 }
 0x261   : > { %v1320_v38 = vpop.xlane.xlu1 %1319 }
 0x262   : > { %v1501_v41 = vmax.f32 %v1469_v2, 0.0  ;;  %v1406_v33 = vmul.f32 0.00390625, %v1320_v38  ;;  %v1438_v1 = vmul.f32 %v5381_v31, %v5381_v31  ;;  %v5406_v2 = vrot.slane %v1113_v16, %v4985_v12 }
 0x263   : > { %v1131_v23 = vpop.xlane.xlu0 %1130 }
 0x264   : > { %v1597_v63 = vadd.f32 1e-05, %v1501_v41  ;;  %v5396_v43 = vmul.f32 0.00390625, %v1131_v23  ;;  %v1470_v27 = vsub.f32 %v1406_v33, %v1438_v1  ;;  %v1532_v41 = vsub.f32 %v5000_v22, %v1211_v39 }
 0x265   : > { %v1323_v61 = vpop.xlane.xlu1 %1322 }
 0x266   : > { %v4277_v38 = vpop.eup %4276  ;;  %4280 = vrsqrt.f32 %v1597_v63  ;;  %v1407_v23 = vmul.f32 0.00390625, %v1323_v61  ;;  %v1502_v47 = vmax.f32 %v1470_v27, 0.0  ;;  %v1439_v20 = vmul.f32 %v5396_v43, %v5396_v43 }
 0x267   : > { %v1314_v33 = vpop.xlane.xlu0 %1313  ;;  %v1659_v1 = vmul.f32 %v4277_v38, %v1531_v14  ;;  %v1658_v46 = vmul.f32 %v4277_v38, %v1530_v54  ;;  %v1536_v14 = vsub.f32 %v5024_v40, %v5377_v59 }
 0x268   : > { %v4279_v10 = vpop.eup %4278  ;;  %v1404_v5 = vmul.f32 0.00390625, %v1314_v33  ;;  %v1598_v16 = vadd.f32 1e-05, %v1502_v47  ;;  %v1471_v63 = vsub.f32 %v1407_v23, %v1439_v20 }
 0x269   : > { %v1660_v22 = vmul.f32 %v4279_v10, %v1532_v41  ;;  %v1137_v61 = vpop.xlane.xlu1 %1136  ;;  %v1661_v24 = vmul.f32 %v4279_v10, %v1533_v30  ;;  %v1734_v38 = vmul.f32 %v5399_v13, %v1659_v1  ;;  %v1733_v30 = vmul.f32 %v5392_v0, %v1658_v46 }
 0x26a   : > { %v1468_v27 = vsub.f32 %v1404_v5, %v1436_v18  ;;  %4282 = vrsqrt.f32 %v1598_v16  ;;  %v1503_v54 = vmax.f32 %v1471_v63, 0.0  ;;  %v5422_v12 = vmul.f32 0.00390625, %v1137_v61 }
 0x26b   : > { %v1134_v62 = vpop.xlane.xlu0 %1133  ;;  %v1736_v41 = vmul.f32 %v5399_v13, %v1661_v24  ;;  %v1735_v20 = vmul.f32 %v5392_v0, %v1660_v22  ;;  %v1809_v1 = vadd.f32 %v5406_v2, %v1734_v38  ;;  %v1537_v5 = vsub.f32 %v5027_v42, %v5377_v59 }
 0x26c   : > { %v1500_v47 = vmax.f32 %v1468_v27, 0.0  ;;  %v5425_v23 = vmul.f32 0.00390625, %v1134_v62  ;;  %v1599_v33 = vadd.f32 1e-05, %v1503_v54  ;;  %v1441_v40 = vmul.f32 %v5422_v12, %v5422_v12 }
 0x26d   : > { %v1329_v10 = vpop.xlane.xlu1 %1328  ;;  %v1811_v18 = vadd.f32 %v5406_v2, %v1736_v41  ;;  %v1538_v62 = vsub.f32 %v5038_v48, %v5381_v31  ;;  %v1873_v61 = vmax.f32 %v1809_v1, 0.0  ;;  %v1808_v41 = vadd.f32 %v5403_v17, %v1733_v30 }
 0x26e   : > { %v1596_v16 = vadd.f32 1e-05, %v1500_v47  ;;  %v1409_v63 = vmul.f32 0.00390625, %v1329_v10  ;;  %4284 = vrsqrt.f32 %v1599_v33  ;;  %v1440_v46 = vmul.f32 %v5425_v23, %v5425_v23 }
 0x26f   : > { %v1326_v22 = vpop.xlane.xlu0 %1325  ;;  %v1875_v24 = vmax.f32 %v1811_v18, 0.0  ;;  %v1539_v42 = vsub.f32 %v5041_v50, %v5381_v31  ;;  %v1810_v47 = vadd.f32 %v5403_v17, %v1735_v20  ;;  %v1540_v10 = vsub.f32 %v5044_v53, %v5396_v43 }
 0x270   : > { %v4281_v27 = vpop.eup %4280  ;;  %4286 = vrsqrt.f32 %v1596_v16  ;;  %v1473_v38 = vsub.f32 %v1409_v63, %v1441_v40  ;;  %v1408_v54 = vmul.f32 0.00390625, %v1326_v22  ;;  %v1872_v16 = vmax.f32 %v1808_v41, 0.0 }
 0x271   : > { %v1143_v59 = vpop.xlane.xlu1 %1142  ;;  %v1937_v48 = vpack.c.bf16 %v1875_v24, %v1873_v61  ;;  %v1665_v33 = vmul.f32 %v4281_v27, %v1537_v5  ;;  %v1664_v18 = vmul.f32 %v4281_v27, %v1536_v14  ;;  %v1874_v30 = vmax.f32 %v1810_v47, 0.0 }
 0x272   : > { %v1505_v39 = vmax.f32 %v1473_v38, 0.0  ;;  %v1472_v1 = vsub.f32 %v1408_v54, %v1440_v46  ;;  %v5445_v60 = vmul.f32 0.00390625, %v1143_v59  ;;  %v1541_v50 = vsub.f32 %v5049_v56, %v5396_v43 }
 0x273   : > { %2135 = vmatprep.mubr.bf16.mxu0 %v1937_v48  ;;  %v1140_v40 = vpop.xlane.xlu0 %1139  ;;  %v1740_v63 = vmul.f32 %v5399_v13, %v1665_v33  ;;  %v1936_v22 = vpack.c.bf16 %v1874_v30, %v1872_v16  ;;  %v1739_v48 = vmul.f32 %v5392_v0, %v1664_v18 }
 0x274   : > { %v1504_v20 = vmax.f32 %v1472_v1, 0.0  ;;  %v4283_v5 = vpop.eup %4282  ;;  %v1601_v14 = vadd.f32 1e-05, %v1505_v39  ;;  %v5454_v46 = vmul.f32 0.00390625, %v1140_v40  ;;  %v1443_v61 = vmul.f32 %v5445_v60, %v5445_v60 }
 0x275   : > { %v1335_v24 = vpop.xlane.xlu1 %1334  ;;  %v1667_v38 = vmul.f32 %v4283_v5, %v1539_v42  ;;  %2136 = vmatmul.mubr.bf16.vlgmr.msra.gmra.mrb[64].mxu0 %v1936_v22  ;;  %v1666_v41 = vmul.f32 %v4283_v5, %v1538_v62  ;;  %v5465_v59 = vadd.f32 %v5406_v2, %v1740_v63  ;;  %v7067_v62 = vsub.f32 %v5021_v37, %v5394_v36 }
 0x276   : > { %v1411_v43 = vmul.f32 0.00390625, %v1335_v24  ;;  %v1442_v54 = vmul.f32 %v5454_v46, %v5454_v46  ;;  %v1600_v47 = vadd.f32 1e-05, %v1504_v20  ;;  %4288 = vrsqrt.f32 %v1601_v14 }
 0x277   : > { %v1332_v39 = vpop.xlane.xlu0 %1331  ;;  %v1742_v40 = vmul.f32 %v5399_v13, %v1667_v38  ;;  %v7068_v37 = vsub.f32 %v5018_v35, %v5394_v36 }
 0x278   : > { %v1475_v33 = vsub.f32 %v1411_v43, %v1443_v61  ;;  %v1410_v1 = vmul.f32 0.00390625, %v1332_v39  ;;  %v4285_v16 = vpop.eup %4284  ;;  %v1741_v61 = vmul.f32 %v5392_v0, %v1666_v41  ;;  %4290 = vrsqrt.f32 %v1600_v47 }
 0x279   : > { %v1149_v63 = vpop.xlane.xlu1 %1148  ;;  %v1669_v20 = vmul.f32 %v4285_v16, %v1541_v50  ;;  %v1817_v38 = vadd.f32 %v5406_v2, %v1742_v40  ;;  %v1668_v39 = vmul.f32 %v4285_v16, %v1540_v10  ;;  %v1814_v40 = vadd.f32 %v5403_v17, %v1739_v48 }
 0x27a   : > { %v4287_v5 = vpop.eup %4286  ;;  %v1507_v22 = vmax.f32 %v1475_v33, 0.0  ;;  %v1474_v18 = vsub.f32 %v1410_v1, %v1442_v54  ;;  %v5478_v14 = vmul.f32 0.00390625, %v1149_v63  ;;  %v1879_v54 = vmax.f32 %v5465_v59, 0.0 }
 0x27b   : > { %v1146_v43 = vpop.xlane.xlu0 %1145  ;;  %v1663_v30 = vmul.f32 %v4287_v5, %v7067_v62  ;;  %v1744_v63 = vmul.f32 %v5399_v13, %v1669_v20  ;;  %v1743_v10 = vmul.f32 %v5392_v0, %v1668_v39  ;;  %v1816_v47 = vadd.f32 %v5403_v17, %v1741_v61 }
 0x27c   : > { %v1506_v42 = vmax.f32 %v1474_v18, 0.0  ;;  %v1603_v50 = vadd.f32 1e-05, %v1507_v22  ;;  %v5485_v33 = vmul.f32 0.00390625, %v1146_v43  ;;  %v1445_v41 = vmul.f32 %v5478_v14, %v5478_v14 }
 0x27d   : > { %v1341_v1 = vpop.xlane.xlu1 %1340  ;;  %v1819_v62 = vadd.f32 %v5406_v2, %v1744_v63  ;;  %v1881_v22 = vmax.f32 %v1817_v38, 0.0  ;;  %v1738_v48 = vmul.f32 %v5399_v13, %v1663_v30  ;;  %v1662_v31 = vmul.f32 %v4287_v5, %v7068_v37 }
 0x27e   : > { %v1413_v24 = vmul.f32 0.00390625, %v1341_v1  ;;  %v1444_v59 = vmul.f32 %v5485_v33, %v5485_v33  ;;  %v1602_v18 = vadd.f32 1e-05, %v1506_v42  ;;  %v1818_v1 = vadd.f32 %v5403_v17, %v1743_v10 }
 0x27f   : > { %v1338_v16 = vpop.xlane.xlu0 %1337  ;;  %4292 = vrsqrt.f32 %v1603_v50  ;;  %v1883_v61 = vmax.f32 %v1819_v62, 0.0  ;;  %v1880_v56 = vmax.f32 %v1816_v47, 0.0  ;;  %v1737_v50 = vmul.f32 %v5392_v0, %v1662_v31 }
 0x280   : > { %v1477_v43 = vsub.f32 %v1413_v24, %v1445_v41  ;;  %v1412_v20 = vmul.f32 0.00390625, %v1338_v16  ;;  %v1882_v55 = vmax.f32 %v1818_v1, 0.0  ;;  %v4289_v63 = vpop.eup %4288  ;;  %v1813_v41 = vadd.f32 %v5406_v2, %v1738_v48 }
 0x281   : > { %v1155_v39 = vpop.xlane.xlu1 %1154  ;;  %v1941_v42 = vpack.c.bf16 %v1883_v61, %v1881_v22  ;;  %4294 = vrsqrt.f32 %v1602_v18  ;;  %v1553_v30 = vsub.f32 %v5123_v58, %v5478_v14  ;;  %v1550_v35 = vsub.f32 %v5114_v49, %v5485_v33 }
 0x282   : > { %v1509_v27 = vmax.f32 %v1477_v43, 0.0  ;;  %v1476_v53 = vsub.f32 %v1412_v20, %v1444_v59  ;;  %v5503_v38 = vmul.f32 0.00390625, %v1155_v39  ;;  %v1940_v10 = vpack.c.bf16 %v1882_v55, %v1880_v56  ;;  %v4291_v16 = vpop.eup %4290 }
 0x283   : > { %v1152_v24 = vpop.xlane.xlu0 %1151  ;;  %2151 = vmatprep.mubr.bf16.mxu1 %v1941_v42  ;;  %v1877_v59 = vmax.f32 %v1813_v41, 0.0  ;;  %v1551_v31 = vsub.f32 %v5117_v51, %v5485_v33  ;;  %v1812_v22 = vadd.f32 %v5403_v17, %v1737_v50  ;;  %v1878_v18 = vmax.f32 %v1814_v40, 0.0 }
 0x284   : > { %v1508_v36 = vmax.f32 %v1476_v53, 0.0  ;;  %v5511_v5 = vmul.f32 0.00390625, %v1152_v24  ;;  %v1447_v47 = vmul.f32 %v5503_v38, %v5503_v38  ;;  %v1605_v43 = vadd.f32 1e-05, %v1509_v27  ;;  %2152 = vmatmul.mubr.bf16.vlgmr.msra.gmra.mrb[0].mxu1 %v1940_v10 }
 0x285   : > { %v1347_v37 = vpop.xlane.xlu1 %1346  ;;  %v1556_v53 = vsub.f32 %v5144_v19, %v5503_v38  ;;  %v1939_v20 = vpack.c.bf16 %v1879_v54, %v1877_v59  ;;  %v1876_v61 = vmax.f32 %v1812_v22, 0.0  ;;  %v7069_v24 = vsub.f32 %v5069_v4, %v5425_v23 }
 0x286   : > { %v1415_v62 = vmul.f32 0.00390625, %v1347_v37  ;;  %v1446_v55 = vmul.f32 %v5511_v5, %v5511_v5  ;;  %v1604_v1 = vadd.f32 1e-05, %v1508_v36  ;;  %v7070_v27 = vsub.f32 %v5075_v9, %v5422_v12 }
 0x287   : > { %v1344_v56 = vpop.xlane.xlu0 %1343  ;;  %2143 = vmatprep.mubr.bf16.mxu0 %v1939_v20  ;;  %v1671_v40 = vmul.f32 %v4291_v16, %v7069_v24  ;;  %v7071_v54 = vsub.f32 %v5066_v3, %v5425_v23  ;;  %v7072_v36 = vsub.f32 %v5072_v7, %v5422_v12  ;;  %v1938_v59 = vpack.c.bf16 %v1878_v18, %v1876_v61 }
 0x288   : > { %v1479_v39 = vsub.f32 %v1415_v62, %v1447_v47  ;;  %v1414_v48 = vmul.f32 0.00390625, %v1344_v56  ;;  %v1673_v41 = vmul.f32 %v4289_v63, %v7070_v27  ;;  %v1557_v47 = vsub.f32 %v5147_v25, %v5503_v38 }
 0x289   : > { %v1161_v42 = vpop.xlane.xlu1 %1160  ;;  %v1670_v50 = vmul.f32 %v4291_v16, %v7071_v54  ;;  %v1672_v10 = vmul.f32 %v4289_v63, %v7072_v36  ;;  %v4293_v4 = vpop.eup %4292  ;;  %v1746_v9 = vmul.f32 %v5399_v13, %v1671_v40  ;;  %4296 = vrsqrt.f32 %v1605_v43  ;;  %2144 = vmatmul.mubr.bf16.gmra.mrb[68].mxu0 %v1938_v59 }
 0x28a   : > { %v1511_v37 = vmax.f32 %v1479_v39, 0.0  ;;  %v1478_v62 = vsub.f32 %v1414_v48, %v1446_v55  ;;  %v5536_v22 = vmul.f32 0.00390625, %v1161_v42  ;;  %v1748_v56 = vmul.f32 %v5399_v13, %v1673_v41 }
 0x28b   : > { %v1158_v20 = vpop.xlane.xlu0 %1157  ;;  %v1745_v3 = vmul.f32 %v5392_v0, %v1670_v50  ;;  %v1554_v7 = vsub.f32 %v5138_v8, %v5511_v5  ;;  %v1555_v12 = vsub.f32 %v5141_v15, %v5511_v5  ;;  %v1747_v23 = vmul.f32 %v5392_v0, %v1672_v10  ;;  %v4295_v39 = vpop.eup %4294 }
 0x28c   : > { %4298 = vrsqrt.f32 %v1604_v1  ;;  %v1449_v63 = vmul.f32 %v5536_v22, %v5536_v22  ;;  %v1821_v18 = vadd.f32 %v5406_v2, %v1746_v9  ;;  %v1823_v55 = vadd.f32 %v5406_v2, %v1748_v56 }
 0x28d   : > { %v1353_v16 = vpop.xlane.xlu1 %1352  ;;  %v1607_v43 = vadd.f32 1e-05, %v1511_v37  ;;  %v1510_v61 = vmax.f32 %v1478_v62, 0.0  ;;  %v1820_v42 = vadd.f32 %v5403_v17, %v1745_v3  ;;  %v1560_v24 = vsub.f32 %v5168_v52, %v5536_v22 }
 0x28e   : > { %v1417_v48 = vmul.f32 0.00390625, %v1353_v16  ;;  %v5553_v40 = vmul.f32 0.00390625, %v1158_v20  ;;  %v1885_v1 = vmax.f32 %v1821_v18, 0.0  ;;  %v1887_v27 = vmax.f32 %v1823_v55, 0.0 }
 0x28f   : > { %v1350_v41 = vpop.xlane.xlu0 %1349  ;;  %v1561_v54 = vsub.f32 %v5171_v57, %v5536_v22  ;;  %v1822_v36 = vadd.f32 %v5403_v17, %v1747_v23  ;;  %v1884_v10 = vmax.f32 %v1820_v42, 0.0  ;;  %v7073_v20 = vsub.f32 %v5093_v29, %v5454_v46 }
 0x290   : > { %v1481_v50 = vsub.f32 %v1417_v48, %v1449_v63  ;;  %v1943_v37 = vpack.c.bf16 %v1887_v27, %v1885_v1  ;;  %v1448_v59 = vmul.f32 %v5553_v40, %v5553_v40  ;;  %v1416_v62 = vmul.f32 0.00390625, %v1350_v41 }
 0x291   : > { %v1167_v9 = vpop.xlane.xlu1 %1166  ;;  %v1675_v56 = vmul.f32 %v4295_v39, %v7073_v20  ;;  %v1606_v3 = vadd.f32 1e-05, %v1510_v61  ;;  %v1886_v18 = vmax.f32 %v1822_v36, 0.0  ;;  %v7074_v55 = vsub.f32 %v5099_v34, %v5445_v60 }
 0x292   : > { %v1513_v16 = vmax.f32 %v1481_v50, 0.0  ;;  %2159 = vmatprep.mubr.bf16.mxu1 %v1943_v37  ;;  %v1480_v23 = vsub.f32 %v1416_v62, %v1448_v59  ;;  %v5566_v48 = vmul.f32 0.00390625, %v1167_v9  ;;  %v7075_v27 = vsub.f32 %v5090_v28, %v5454_v46 }
 0x293   : > { %v1677_v63 = vmul.f32 %v4293_v4, %v7074_v55  ;;  %v1164_v42 = vpop.xlane.xlu0 %1163  ;;  %v1750_v1 = vmul.f32 %v5399_v13, %v1675_v56  ;;  %4300 = vrsqrt.f32 %v1607_v43  ;;  %v1558_v29 = vsub.f32 %v5162_v44, %v5553_v40  ;;  %v4297_v46 = vpop.eup %4296 }
 0x294   : > { %v1674_v41 = vmul.f32 %v4295_v39, %v7075_v27  ;;  %v1942_v61 = vpack.c.bf16 %v1886_v18, %v1884_v10  ;;  %v7076_v34 = vsub.f32 %v5096_v32, %v5445_v60  ;;  %v1559_v36 = vsub.f32 %v5165_v45, %v5553_v40  ;;  %v7091_v45 = vld [vmem:[#allocation35_spill] sm:$0xff] }
 0x295   : > { %v1512_v37 = vmax.f32 %v1480_v23, 0.0  ;;  %v1451_v59 = vmul.f32 %v5566_v48, %v5566_v48  ;;  %v1359_v62 = vpop.xlane.xlu1 %1358  ;;  %v1752_v28 = vmul.f32 %v5399_v13, %v1677_v63  ;;  %4302 = vrsqrt.f32 %v1606_v3 }
 0x296   : > { %v1676_v50 = vmul.f32 %v4293_v4, %v7076_v34  ;;  %2160 = vmatmul.mubr.bf16.gmra.mrb[4].mxu1 %v1942_v61  ;;  %v1419_v39 = vmul.f32 0.00390625, %v1359_v62  ;;  %v1825_v43 = vadd.f32 %v5406_v2, %v1750_v1  ;;  %v1749_v10 = vmul.f32 %v5392_v0, %v1674_v41  ;;  %v4299_v32 = vpop.eup %4298 }
 0x297   : > { %v1609_v60 = vadd.f32 1e-05, %v1513_v16  ;;  %v5586_v9 = vmul.f32 0.00390625, %v1164_v42  ;;  %v1827_v20 = vadd.f32 %v5406_v2, %v1752_v28  ;;  %v1356_v56 = vpop.xlane.xlu0 %1355  ;;  %v1608_v23 = vadd.f32 1e-05, %v1512_v37 }
 0x298   : > { %v1483_v18 = vsub.f32 %v1419_v39, %v1451_v59  ;;  %v1889_v55 = vmax.f32 %v1825_v43, 0.0  ;;  %v1751_v3 = vmul.f32 %v5392_v0, %v1676_v50  ;;  %v1824_v63 = vadd.f32 %v5403_v17, %v1749_v10 }
 0x299   : > { %v1891_v1 = vmax.f32 %v1827_v20, 0.0  ;;  %v1450_v27 = vmul.f32 %v5586_v9, %v5586_v9  ;;  %v1418_v16 = vmul.f32 0.00390625, %v1356_v56  ;;  %v1173_v41 = vpop.xlane.xlu1 %1172  ;;  %v1679_v50 = vmul.f32 %v4299_v32, %v1551_v31 }
 0x29a   : > { %v1515_v61 = vmax.f32 %v1483_v18, 0.0  ;;  %v1826_v42 = vadd.f32 %v5403_v17, %v1751_v3  ;;  %v1888_v34 = vmax.f32 %v1824_v63, 0.0  ;;  %v5594_v62 = vmul.f32 0.00390625, %v1173_v41 }
 0x29b   : > { %v1945_v28 = vpack.c.bf16 %v1891_v1, %v1889_v55  ;;  %v1482_v59 = vsub.f32 %v1418_v16, %v1450_v27  ;;  %v1170_v39 = vpop.xlane.xlu0 %1169  ;;  %v1681_v37 = vmul.f32 %v4297_v46, %v1553_v30  ;;  %4304 = vrsqrt.f32 %v1609_v60  ;;  %v7077_v1 = vld [vmem:[#allocation23_spill] sm:$0xff] }
 0x29c   : > { %v1565_v43 = vsub.f32 %v5195_v26, %v5566_v48  ;;  %v1562_v10 = vsub.f32 %v5186_v6, %v5586_v9  ;;  %v1890_v20 = vmax.f32 %v1826_v42, 0.0  ;;  %v1563_v56 = vsub.f32 %v5189_v11, %v5586_v9 }
 0x29d   : > { %2167 = vmatprep.mubr.bf16.mxu1 %v1945_v28  ;;  %v1514_v18 = vmax.f32 %v1482_v59, 0.0  ;;  %v1453_v51 = vmul.f32 %v5594_v62, %v5594_v62  ;;  %v1365_v31 = vpop.xlane.xlu1 %1364  ;;  %v1754_v58 = vmul.f32 %v5399_v13, %v1679_v50  ;;  %v4301_v30 = vpop.eup %4300  ;;  %4306 = vrsqrt.f32 %v1608_v23 }
 0x29e   : > { %v1944_v60 = vpack.c.bf16 %v1890_v20, %v1888_v34  ;;  %v1421_v55 = vmul.f32 0.00390625, %v1365_v31  ;;  %v1756_v3 = vmul.f32 %v5399_v13, %v1681_v37  ;;  %v1611_v63 = vadd.f32 1e-05, %v1515_v61  ;;  %v7078_v34 = vld [vmem:[#allocation20_spill] sm:$0xff] }
 0x29f   : > { %v5614_v16 = vmul.f32 0.00390625, %v1170_v39  ;;  %v1829_v41 = vadd.f32 %v5406_v2, %v1754_v58  ;;  %v1362_v42 = vpop.xlane.xlu0 %1361  ;;  %v4303_v28 = vpop.eup %4302  ;;  %v1678_v23 = vmul.f32 %v4299_v32, %v1550_v35  ;;  %v7079_v61 = vsub.f32 %v7078_v34, %v5478_v14 }
 0x2a0   : > { %2168 = vmatmul.mubr.bf16.gmra.mrb[8].mxu1 %v1944_v60  ;;  %v1485_v59 = vsub.f32 %v1421_v55, %v1453_v51  ;;  %v1831_v50 = vadd.f32 %v5406_v2, %v1756_v3  ;;  %v1610_v20 = vadd.f32 1e-05, %v1514_v18  ;;  %v1420_v58 = vmul.f32 0.00390625, %v1362_v42 }
 0x2a1   : > { %v1680_v37 = vmul.f32 %v4297_v46, %v7079_v61  ;;  %v1893_v31 = vmax.f32 %v1829_v41, 0.0  ;;  %v1452_v39 = vmul.f32 %v5614_v16, %v5614_v16  ;;  %v1179_v27 = vpop.xlane.xlu1 %1178  ;;  %v1753_v51 = vmul.f32 %v5392_v0, %v1678_v23 }
 0x2a2   : > { %v1517_v4 = vmax.f32 %v1485_v59, 0.0  ;;  %v1895_v60 = vmax.f32 %v1831_v50, 0.0  ;;  %4308 = vrsqrt.f32 %v1611_v63  ;;  %v5628_v33 = vmul.f32 0.00390625, %v1179_v27  ;;  %v7080_v63 = vld [vmem:[#allocation24_spill] sm:$0xff]  ;;  %v7081_v27 = vld [vmem:[#allocation21_spill] sm:$0xff]  ;;  %v7082_v59 = vld [vmem:[#allocation22_spill] sm:$0xff] }
 0x2a3   : > { %v1755_v55 = vmul.f32 %v5392_v0, %v1680_v37  ;;  %v1484_v49 = vsub.f32 %v1420_v58, %v1452_v39  ;;  %v1176_v35 = vpop.xlane.xlu0 %1175  ;;  %v1683_v14 = vmul.f32 %v4303_v28, %v1555_v12  ;;  %v1828_v32 = vadd.f32 %v5403_v17, %v1753_v51  ;;  %v7083_v37 = vld [vmem:[#allocation27_spill] sm:$0xff] }
 0x2a4   : > { %v1947_v46 = vpack.c.bf16 %v1895_v60, %v1893_v31  ;;  %v1685_v3 = vmul.f32 %v4301_v30, %v1557_v47  ;;  %4310 = vrsqrt.f32 %v1610_v20  ;;  %v1569_v41 = vsub.f32 %v7080_v63, %v5594_v62 }
 0x2a5   : > { %v1830_v18 = vadd.f32 %v5403_v17, %v1755_v55  ;;  %v1566_v42 = vsub.f32 %v7081_v27, %v5614_v16  ;;  %v1567_v15 = vsub.f32 %v7082_v59, %v5614_v16  ;;  %v1371_v12 = vpop.xlane.xlu1 %1370  ;;  %v5644_v50 = vpop.eup %4304  ;;  %v1613_v23 = vadd.f32 1e-05, %v1517_v4 }
 0x2a6   : > { %2175 = vmatprep.mubr.bf16.mxu1 %v1947_v46  ;;  %v1892_v34 = vmax.f32 %v1828_v32, 0.0  ;;  %v1455_v25 = vmul.f32 %v5628_v33, %v5628_v33  ;;  %v1516_v47 = vmax.f32 %v1484_v49, 0.0  ;;  %v5650_v31 = vmul.f32 0.00390625, %v1176_v35  ;;  %v7084_v32 = vld [vmem:[#allocation28_spill] sm:$0xff] }
 0x2a7   : > { %v1894_v61 = vmax.f32 %v1830_v18, 0.0  ;;  %v1423_v39 = vmul.f32 0.00390625, %v1371_v12  ;;  %v1368_v58 = vpop.xlane.xlu0 %1367  ;;  %v4307_v60 = vpop.eup %4306  ;;  %v1758_v55 = vmul.f32 %v5399_v13, %v1683_v14  ;;  %v1760_v4 = vmul.f32 %v5399_v13, %v1685_v3 }
 0x2a8   : > { %v1682_v46 = vmul.f32 %v4303_v28, %v1554_v7  ;;  %v1573_v49 = vsub.f32 %v7084_v32, %v5628_v33  ;;  %v1684_v35 = vmul.f32 %v4301_v30, %v1556_v53  ;;  %v1454_v12 = vmul.f32 %v5650_v31, %v5650_v31 }
 0x2a9   : > { %v1946_v51 = vpack.c.bf16 %v1894_v61, %v1892_v34  ;;  %v1487_v18 = vsub.f32 %v1423_v39, %v1455_v25  ;;  %v1185_v34 = vpop.xlane.xlu1 %1184  ;;  %v1833_v14 = vadd.f32 %v5406_v2, %v1758_v55  ;;  %v1835_v3 = vadd.f32 %v5406_v2, %v1760_v4  ;;  %v7085_v55 = vld [vmem:[#allocation25_spill] sm:$0xff]  ;;  %v7087_v4 = vld [vmem:[#allocation31_spill] sm:$0xff] }
 0x2aa   : > { %v1757_v8 = vmul.f32 %v5392_v0, %v1682_v46  ;;  %v1422_v5 = vmul.f32 0.00390625, %v1368_v58  ;;  %v1612_v7 = vadd.f32 1e-05, %v1516_v47  ;;  %v1759_v61 = vmul.f32 %v5392_v0, %v1684_v35 }
 0x2ab   : > { %2176 = vmatmul.mubr.bf16.gmra.mrb[12].mxu1 %v1946_v51  ;;  %v1519_v28 = vmax.f32 %v1487_v18, 0.0  ;;  %v5668_v25 = vmul.f32 0.00390625, %v1185_v34  ;;  %v1182_v19 = vpop.xlane.xlu0 %1181  ;;  %v1897_v38 = vmax.f32 %v1833_v14, 0.0  ;;  %v1899_v53 = vmax.f32 %v1835_v3, 0.0  ;;  %v7086_v18 = vld [vmem:[#allocation26_spill] sm:$0xff] }
 0x2ac   : > { %v1832_v30 = vadd.f32 %v5403_v17, %v1757_v8  ;;  %v1486_v39 = vsub.f32 %v1422_v5, %v1454_v12  ;;  %v5671_v51 = vpop.eup %4308  ;;  %4312 = vrsqrt.f32 %v1613_v23  ;;  %v1834_v58 = vadd.f32 %v5403_v17, %v1759_v61 }
 0x2ad   : > { %v1377_v47 = vpop.xlane.xlu1 %1376  ;;  %v1687_v46 = vmul.f32 %v4307_v60, %v1559_v36  ;;  %v1571_v35 = vsub.f32 %v7086_v18, %v5650_v31  ;;  %v1949_v34 = vpack.c.bf16 %v1899_v53, %v1897_v38  ;;  %4314 = vrsqrt.f32 %v1612_v7 }
 0x2ae   : > { %v1896_v14 = vmax.f32 %v1832_v30, 0.0  ;;  %v1518_v3 = vmax.f32 %v1486_v39, 0.0  ;;  %v4311_v12 = vpop.eup %4310  ;;  %v1898_v8 = vmax.f32 %v1834_v58, 0.0  ;;  %v1457_v23 = vmul.f32 %v5668_v25, %v5668_v25 }
 0x2af   : > { %v1425_v5 = vmul.f32 0.00390625, %v1377_v47  ;;  %v1374_v20 = vpop.xlane.xlu0 %1373  ;;  %v1615_v61 = vadd.f32 1e-05, %v1519_v28  ;;  %2183 = vmatprep.mubr.bf16.mxu1 %v1949_v34  ;;  %v5685_v36 = vmul.f32 0.00390625, %v1182_v19  ;;  %v1689_v38 = vmul.f32 %v5644_v50, %v1561_v54 }
 0x2b0   : > { %v1948_v53 = vpack.c.bf16 %v1898_v8, %v1896_v14  ;;  %v1762_v30 = vmul.f32 %v5399_v13, %v1687_v46  ;;  %v1686_v39 = vmul.f32 %v4307_v60, %v1558_v29  ;;  %v1614_v58 = vadd.f32 1e-05, %v1518_v3  ;;  %v7088_v29 = vld [vmem:[#allocation32_spill] sm:$0xff] }
 0x2b1   : > { %v1489_v7 = vsub.f32 %v1425_v5, %v1457_v23  ;;  %v1191_v28 = vpop.xlane.xlu1 %1190  ;;  %v1764_v47 = vmul.f32 %v5399_v13, %v1689_v38  ;;  %v1688_v19 = vmul.f32 %v5644_v50, %v1560_v24  ;;  %v1456_v57 = vmul.f32 %v5685_v36, %v5685_v36  ;;  %v7089_v23 = vld [vmem:[#allocation29_spill] sm:$0xff] }
 0x2b2   : > { %v1837_v46 = vadd.f32 %v5406_v2, %v1762_v30  ;;  %v1761_v34 = vmul.f32 %v5392_v0, %v1686_v39  ;;  %v1424_v44 = vmul.f32 0.00390625, %v1374_v20  ;;  %4316 = vrsqrt.f32 %v1615_v61  ;;  %v7090_v20 = vld [vmem:[#allocation30_spill] sm:$0xff] }
 0x2b3   : > { %2184 = vmatmul.mubr.bf16.gmra.mrb[16].mxu1 %v1948_v53  ;;  %v1521_v54 = vmax.f32 %v1489_v7, 0.0  ;;  %v1188_v40 = vpop.xlane.xlu0 %1187  ;;  %v1577_v60 = vsub.f32 %v7088_v29, %v5668_v25  ;;  %v1839_v14 = vadd.f32 %v5406_v2, %v1764_v47  ;;  %v1763_v52 = vmul.f32 %v5392_v0, %v1688_v19 }
 0x2b4   : > { %v1901_v22 = vmax.f32 %v1837_v46, 0.0  ;;  %v1836_v24 = vadd.f32 %v5403_v17, %v1761_v34  ;;  %v1488_v50 = vsub.f32 %v1424_v44, %v1456_v57  ;;  %v5709_v3 = vmul.f32 0.00390625, %v1191_v28 }
 0x2b5   : > { %v1383_v8 = vpop.xlane.xlu1 %1382  ;;  %v1575_v61 = vsub.f32 %v7090_v20, %v5685_v36  ;;  %v1903_v38 = vmax.f32 %v1839_v14, 0.0  ;;  %v1838_v53 = vadd.f32 %v5403_v17, %v1763_v52  ;;  %4318 = vrsqrt.f32 %v1614_v58 }
 0x2b6   : > { %v5716_v7 = vpop.eup %4312  ;;  %v1617_v30 = vadd.f32 1e-05, %v1521_v54  ;;  %v1900_v39 = vmax.f32 %v1836_v24, 0.0  ;;  %v5718_v47 = vmul.f32 0.00390625, %v1188_v40  ;;  %v1520_v46 = vmax.f32 %v1488_v50, 0.0 }
 0x2b7   : > { %v1380_v19 = vpop.xlane.xlu0 %1379  ;;  %v1951_v28 = vpack.c.bf16 %v1903_v38, %v1901_v22  ;;  %v1902_v57 = vmax.f32 %v1838_v53, 0.0  ;;  %v1459_v34 = vmul.f32 %v5709_v3, %v5709_v3  ;;  %v4315_v44 = vpop.eup %4314  ;;  %v1427_v5 = vmul.f32 0.00390625, %v1383_v8 }
 0x2b8   : > { %v1691_v58 = vmul.f32 %v4311_v12, %v1563_v56  ;;  %v1693_v54 = vmul.f32 %v5671_v51, %v1565_v43  ;;  %v1690_v22 = vmul.f32 %v4311_v12, %v1562_v10  ;;  %v7092_v24 = vsub.f32 %v5192_v21, %v5566_v48  ;;  %v7093_v56 = vld [vmem:[#allocation36_spill] sm:$0xff] }
 0x2b9   : > { %v1197_v40 = vpop.xlane.xlu1 %1196  ;;  %2191 = vmatprep.mubr.bf16.mxu1 %v1951_v28  ;;  %v1950_v52 = vpack.c.bf16 %v1902_v57, %v1900_v39  ;;  %v1458_v11 = vmul.f32 %v5718_v47, %v5718_v47  ;;  %v1491_v8 = vsub.f32 %v1427_v5, %v1459_v34  ;;  %v1616_v6 = vadd.f32 1e-05, %v1520_v46 }
 0x2ba   : > { %v1692_v50 = vmul.f32 %v5671_v51, %v7092_v24  ;;  %v1766_v43 = vmul.f32 %v5399_v13, %v1691_v58  ;;  %v1768_v38 = vmul.f32 %v5399_v13, %v1693_v54  ;;  %v1765_v9 = vmul.f32 %v5392_v0, %v1690_v22  ;;  %v7094_v58 = vld [vmem:[#allocation33_spill] sm:$0xff] }
 0x2bb   : > { %v1194_v53 = vpop.xlane.xlu0 %1193  ;;  %2192 = vmatmul.mubr.bf16.gmra.mrb[20].mxu1 %v1950_v52  ;;  %v1426_v48 = vmul.f32 0.00390625, %v1380_v19  ;;  %4320 = vrsqrt.f32 %v1617_v30  ;;  %v5748_v12 = vmul.f32 0.00390625, %v1197_v40  ;;  %v1523_v28 = vmax.f32 %v1491_v8, 0.0  ;;  %v7095_v30 = vld [vmem:[#allocation34_spill] sm:$0xff] }
 0x2bc   : > { %v1767_v21 = vmul.f32 %v5392_v0, %v1692_v50  ;;  %v1841_v10 = vadd.f32 %v5406_v2, %v1766_v43  ;;  %v1843_v51 = vadd.f32 %v5406_v2, %v1768_v38  ;;  %v5750_v39 = vpop.eup %4316  ;;  %v1840_v57 = vadd.f32 %v5403_v17, %v1765_v9 }
 0x2bd   : > { %v1389_v5 = vpop.xlane.xlu1 %1388  ;;  %v1490_v34 = vsub.f32 %v1426_v48, %v1458_v11  ;;  %v1579_v19 = vsub.f32 %v7095_v30, %v5718_v47  ;;  %4322 = vrsqrt.f32 %v1616_v6  ;;  %v5758_v43 = vmul.f32 0.00390625, %v1194_v53 }
 0x2be   : > { %v1842_v46 = vadd.f32 %v5403_v17, %v1767_v21  ;;  %v1905_v52 = vmax.f32 %v1841_v10, 0.0  ;;  %v1907_v22 = vmax.f32 %v1843_v51, 0.0  ;;  %v1904_v40 = vmax.f32 %v1840_v57, 0.0  ;;  %v7096_v21 = vld [vmem:[#allocation39_spill] sm:$0xff] }
 0x2bf   : > { %v1386_v24 = vpop.xlane.xlu0 %1385  ;;  %v4319_v8 = vpop.eup %4318  ;;  %v1522_v9 = vmax.f32 %v1490_v34, 0.0  ;;  %v1461_v48 = vmul.f32 %v5748_v12, %v5748_v12  ;;  %v1619_v54 = vadd.f32 1e-05, %v1523_v28  ;;  %v1429_v10 = vmul.f32 0.00390625, %v1389_v5 }
 0x2c0   : > { %v1906_v50 = vmax.f32 %v1842_v46, 0.0  ;;  %v1953_v38 = vpack.c.bf16 %v1907_v22, %v1905_v52  ;;  %v1695_v6 = vmul.f32 %v4315_v44, %v1567_v15  ;;  %v1697_v53 = vmul.f32 %v5716_v7, %v1569_v41  ;;  %v7098_v15 = vld [vmem:[#allocation40_spill] sm:$0xff] }
 0x2c1   : > { %v1203_v14 = vpop.xlane.xlu1 %1202  ;;  %v1694_v51 = vmul.f32 %v4315_v44, %v1566_v42  ;;  %v7097_v57 = vsub.f32 %v7077_v1, %v5594_v62  ;;  %v1460_v5 = vmul.f32 %v5758_v43, %v5758_v43  ;;  %v1585_v46 = vsub.f32 %v7098_v15, %v5748_v12 }
 0x2c2   : > { %v1952_v26 = vpack.c.bf16 %v1906_v50, %v1904_v40  ;;  %2199 = vmatprep.mubr.bf16.mxu1 %v1953_v38  ;;  %v1493_v63 = vsub.f32 %v1429_v10, %v1461_v48  ;;  %v1770_v41 = vmul.f32 %v5399_v13, %v1695_v6  ;;  %v1428_v34 = vmul.f32 0.00390625, %v1386_v24  ;;  %v7099_v40 = vld [vmem:[#allocation37_spill] sm:$0xff]  ;;  %v7100_v10 = vld [vmem:[#allocation38_spill] sm:$0xff] }
 0x2c3   : > { %v1696_v28 = vmul.f32 %v5716_v7, %v7097_v57  ;;  %v1200_v59 = vpop.xlane.xlu0 %1199  ;;  %v1618_v52 = vadd.f32 1e-05, %v1522_v9  ;;  %v1772_v16 = vmul.f32 %v5399_v13, %v1697_v53  ;;  %v1769_v27 = vmul.f32 %v5392_v0, %v1694_v51 }
 0x2c4   : > { %2200 = vmatmul.mubr.bf16.gmra.mrb[24].mxu1 %v1952_v26  ;;  %v1525_v42 = vmax.f32 %v1493_v63, 0.0  ;;  %v1845_v7 = vadd.f32 %v5406_v2, %v1770_v41  ;;  %v1492_v44 = vsub.f32 %v1428_v34, %v1460_v5  ;;  %v5787_v26 = vmul.f32 0.00390625, %v1203_v14  ;;  %v7101_v41 = vld [vmem:[#allocation44_spill] sm:$0xff] }
 0x2c5   : > { %v1771_v62 = vmul.f32 %v5392_v0, %v1696_v28  ;;  %v1395_v1 = vpop.xlane.xlu1 %1394  ;;  %v5789_v22 = vpop.eup %4320  ;;  %v1582_v50 = vsub.f32 %v7099_v40, %v5758_v43  ;;  %v1847_v24 = vadd.f32 %v5406_v2, %v1772_v16  ;;  %v1844_v38 = vadd.f32 %v5403_v17, %v1769_v27 }
 0x2c6   : > { %4324 = vrsqrt.f32 %v1619_v54  ;;  %v1583_v6 = vsub.f32 %v7100_v10, %v5758_v43  ;;  %v1909_v53 = vmax.f32 %v1845_v7, 0.0  ;;  %v1524_v51 = vmax.f32 %v1492_v44, 0.0 }
 0x2c7   : > { %v1846_v9 = vadd.f32 %v5403_v17, %v1771_v62  ;;  %v1392_v48 = vpop.xlane.xlu0 %1391  ;;  %4326 = vrsqrt.f32 %v1618_v52  ;;  %v1911_v14 = vmax.f32 %v1847_v24, 0.0  ;;  %v1908_v57 = vmax.f32 %v1844_v38, 0.0  ;;  %v4323_v5 = vpop.eup %4322 }
 0x2c8   : > { %v1621_v63 = vadd.f32 1e-05, %v1525_v42  ;;  %v1589_v34 = vsub.f32 %v7101_v41, %v5787_v26  ;;  %v5800_v16 = vmul.f32 0.00390625, %v1200_v59  ;;  %v1463_v27 = vmul.f32 %v5787_v26, %v5787_v26  ;;  %v7113_v41 = vld [vmem:[#allocation48_spill] sm:$0xff] }
 0x2c9   : > { %v1910_v28 = vmax.f32 %v1846_v9, 0.0  ;;  %v1955_v54 = vpack.c.bf16 %v1911_v14, %v1909_v53  ;;  %v1431_v11 = vmul.f32 0.00390625, %v1395_v1  ;;  %v1699_v52 = vmul.f32 %v4319_v8, %v1571_v35  ;;  %v1209_v7 = vpop.xlane.xlu1 %1208 }
 0x2ca   : > { %v1620_v44 = vadd.f32 1e-05, %v1524_v51  ;;  %v1701_v42 = vmul.f32 %v5750_v39, %v1573_v49  ;;  %v7102_v59 = vsub.f32 %v7085_v55, %v5650_v31  ;;  %v7103_v38 = vsub.f32 %v7083_v37, %v5628_v33  ;;  %v7104_v49 = vld [vmem:[#allocation41_spill] sm:$0xff] }
 0x2cb   : > { %v1954_v62 = vpack.c.bf16 %v1910_v28, %v1908_v57  ;;  %2207 = vmatprep.mubr.bf16.mxu1 %v1955_v54  ;;  %v1495_v9 = vsub.f32 %v1431_v11, %v1463_v27  ;;  %v1774_v18 = vmul.f32 %v5399_v13, %v1699_v52  ;;  %v1462_v35 = vmul.f32 %v5800_v16, %v5800_v16  ;;  %v1206_v32 = vpop.xlane.xlu0 %1205 }
 0x2cc   : > { %v1698_v24 = vmul.f32 %v4319_v8, %v7102_v59  ;;  %v1700_v1 = vmul.f32 %v5750_v39, %v7103_v38  ;;  %v1430_v53 = vmul.f32 0.00390625, %v1392_v48  ;;  %v1586_v51 = vsub.f32 %v7104_v49, %v5800_v16 }
 0x2cd   : > { %2208 = vmatmul.mubr.bf16.gmra.mrb[28].mxu1 %v1954_v62  ;;  %v1776_v31 = vmul.f32 %v5399_v13, %v1701_v42  ;;  %4328 = vrsqrt.f32 %v1621_v63  ;;  %v1527_v37 = vmax.f32 %v1495_v9, 0.0  ;;  %v1849_v39 = vadd.f32 %v5406_v2, %v1774_v18  ;;  %v1401_v62 = vpop.xlane.xlu1 %1400  ;;  %v7105_v63 = vld [vmem:[#allocation42_spill] sm:$0xff] }
 0x2ce   : > { %v1773_v55 = vmul.f32 %v5392_v0, %v1698_v24  ;;  %v1775_v33 = vmul.f32 %v5392_v0, %v1700_v1  ;;  %v1494_v8 = vsub.f32 %v1430_v53, %v1462_v35  ;;  %4330 = vrsqrt.f32 %v1620_v44 }
 0x2cf   : > { %v1851_v11 = vadd.f32 %v5406_v2, %v1776_v31  ;;  %v1623_v57 = vadd.f32 1e-05, %v1527_v37  ;;  %v1913_v28 = vmax.f32 %v1849_v39, 0.0  ;;  %v5830_v54 = vmul.f32 0.00390625, %v1209_v7  ;;  %v1398_v35 = vpop.xlane.xlu0 %1397 }
 0x2d0   : > { %v1848_v48 = vadd.f32 %v5403_v17, %v1773_v55  ;;  %v1850_v14 = vadd.f32 %v5403_v17, %v1775_v33  ;;  %v1526_v27 = vmax.f32 %v1494_v8, 0.0  ;;  %v4325_v52 = vpop.eup %4324  ;;  %v1587_v42 = vsub.f32 %v7105_v63, %v5800_v16  ;;  %v7112_v63 = vld [vmem:[#allocation43_spill] sm:$0xff] }
 0x2d1   : > { %v1915_v59 = vmax.f32 %v1851_v11, 0.0  ;;  %v4327_v44 = vpop.eup %4326  ;;  %4332 = vrsqrt.f32 %v1623_v57  ;;  %v5834_v9 = vmul.f32 0.00390625, %v1206_v32  ;;  %v1465_v18 = vmul.f32 %v5830_v54, %v5830_v54 }
 0x2d2   : > { %v1912_v24 = vmax.f32 %v1848_v48, 0.0  ;;  %v1914_v38 = vmax.f32 %v1850_v14, 0.0  ;;  %v1622_v1 = vadd.f32 1e-05, %v1526_v27  ;;  %v1433_v31 = vmul.f32 0.00390625, %v1401_v62 }
 0x2d3   : > { %v1957_v53 = vpack.c.bf16 %v1915_v59, %v1913_v28  ;;  %v1703_v55 = vmul.f32 %v4323_v5, %v1575_v61  ;;  %v1705_v33 = vmul.f32 %v5789_v22, %v1577_v60  ;;  %v7106_v32 = vsub.f32 %v7089_v23, %v5685_v36 }
 0x2d4   : > { %v1956_v7 = vpack.c.bf16 %v1914_v38, %v1912_v24  ;;  %4334 = vrsqrt.f32 %v1622_v1  ;;  %v7107_v39 = vsub.f32 %v7087_v4, %v5668_v25  ;;  %v1497_v11 = vsub.f32 %v1433_v31, %v1465_v18 }
 0x2d5   : > { %v1702_v37 = vmul.f32 %v4323_v5, %v7106_v32  ;;  %2215 = vmatprep.mubr.bf16.mxu1 %v1957_v53  ;;  %v1778_v20 = vmul.f32 %v5399_v13, %v1703_v55  ;;  %v1464_v61 = vmul.f32 %v5834_v9, %v5834_v9  ;;  %v1432_v48 = vmul.f32 0.00390625, %v1398_v35 }
 0x2d6   : > { %v1704_v8 = vmul.f32 %v5789_v22, %v7107_v39  ;;  %2216 = vmatmul.mubr.bf16.gmra.mrb[32].mxu1 %v1956_v7  ;;  %v1780_v29 = vmul.f32 %v5399_v13, %v1705_v33  ;;  %v1707_v25 = vmul.f32 %v4327_v44, %v1579_v19  ;;  %v1529_v4 = vmax.f32 %v1497_v11, 0.0 }
 0x2d7   : > { %v1777_v60 = vmul.f32 %v5392_v0, %v1702_v37  ;;  %v1853_v23 = vadd.f32 %v5406_v2, %v1778_v20  ;;  %v1496_v22 = vsub.f32 %v1432_v48, %v1464_v61  ;;  %v7108_v5 = vsub.f32 %v7093_v56, %v5709_v3  ;;  %v4329_v57 = vpop.eup %4328 }
 0x2d8   : > { %v1779_v36 = vmul.f32 %v5392_v0, %v1704_v8  ;;  %v1855_v28 = vadd.f32 %v5406_v2, %v1780_v29  ;;  %v1782_v59 = vmul.f32 %v5399_v13, %v1707_v25  ;;  %v4331_v24 = vpop.eup %4330  ;;  %v1625_v30 = vadd.f32 1e-05, %v1529_v4 }
 0x2d9   : > { %v1709_v14 = vmul.f32 %v4325_v52, %v7108_v5  ;;  %v1852_v27 = vadd.f32 %v5403_v17, %v1777_v60  ;;  %v1917_v19 = vmax.f32 %v1853_v23, 0.0  ;;  %v1528_v38 = vmax.f32 %v1496_v22, 0.0 }
 0x2da   : > { %v1854_v62 = vadd.f32 %v5403_v17, %v1779_v36  ;;  %v1919_v18 = vmax.f32 %v1855_v28, 0.0  ;;  %v1857_v56 = vadd.f32 %v5406_v2, %v1782_v59  ;;  %4336 = vrsqrt.f32 %v1625_v30  ;;  %v7114_v30 = vld [vmem:[#allocation46_spill] sm:$0xff] }
 0x2db   : > { %v1784_v1 = vmul.f32 %v5399_v13, %v1709_v14  ;;  %v1916_v35 = vmax.f32 %v1852_v27, 0.0  ;;  %v1624_v7 = vadd.f32 1e-05, %v1528_v38  ;;  %v7109_v55 = vsub.f32 %v7094_v58, %v5718_v47  ;;  %v4333_v32 = vpop.eup %4332 }
 0x2dc   : > { %v1918_v53 = vmax.f32 %v1854_v62, 0.0  ;;  %v1959_v37 = vpack.c.bf16 %v1919_v18, %v1917_v19  ;;  %v1921_v8 = vmax.f32 %v1857_v56, 0.0  ;;  %v7110_v11 = vsub.f32 %v7091_v45, %v5709_v3  ;;  %v7115_v56 = vld [vmem:[#allocation45_spill] sm:$0xff] }
 0x2dd   : > { %v1859_v31 = vadd.f32 %v5406_v2, %v1784_v1  ;;  %v1706_v33 = vmul.f32 %v4327_v44, %v7109_v55  ;;  %4338 = vrsqrt.f32 %v1624_v7  ;;  %v1711_v29 = vmul.f32 %v4331_v24, %v1583_v6 }
 0x2de   : > { %v1958_v39 = vpack.c.bf16 %v1918_v53, %v1916_v35  ;;  %v1708_v20 = vmul.f32 %v4325_v52, %v7110_v11  ;;  %v4335_v60 = vpop.eup %4334  ;;  %2223 = vmatprep.mubr.bf16.mxu1 %v1959_v37  ;;  %v1713_v58 = vmul.f32 %v4329_v57, %v1585_v46  ;;  %v1710_v45 = vmul.f32 %v4331_v24, %v1582_v50 }
 0x2df   : > { %v1923_v61 = vmax.f32 %v1859_v31, 0.0  ;;  %v1781_v48 = vmul.f32 %v5392_v0, %v1706_v33  ;;  %v7111_v3 = vsub.f32 %v7096_v21, %v5748_v12  ;;  %v1786_v6 = vmul.f32 %v5399_v13, %v1711_v29 }
 0x2e0   : > { %v1783_v47 = vmul.f32 %v5392_v0, %v1708_v20  ;;  %2224 = vmatmul.mubr.bf16.gmra.mrb[36].mxu1 %v1958_v39  ;;  %v1715_v36 = vmul.f32 %v4335_v60, %v1587_v42  ;;  %v1788_v46 = vmul.f32 %v5399_v13, %v1713_v58  ;;  %v1785_v43 = vmul.f32 %v5392_v0, %v1710_v45  ;;  %v7116_v39 = vld [vmem:[#allocation47_spill] sm:$0xff] }
 0x2e1   : > { %v1712_v52 = vmul.f32 %v4329_v57, %v7111_v3  ;;  %v1961_v44 = vpack.c.bf16 %v1923_v61, %v1921_v8  ;;  %v1856_v10 = vadd.f32 %v5403_v17, %v1781_v48  ;;  %v1861_v21 = vadd.f32 %v5406_v2, %v1786_v6 }
 0x2e2   : > { %v1858_v15 = vadd.f32 %v5403_v17, %v1783_v47  ;;  %v1717_v50 = vmul.f32 %v4333_v32, %v1589_v34  ;;  %v1790_v25 = vmul.f32 %v5399_v13, %v1715_v36  ;;  %v1588_v42 = vsub.f32 %v7112_v63, %v5787_v26 }
 0x2e3   : > { %v1787_v40 = vmul.f32 %v5392_v0, %v1712_v52  ;;  %2231 = vmatprep.mubr.bf16.mxu1 %v1961_v44  ;;  %v1920_v12 = vmax.f32 %v1856_v10, 0.0  ;;  %v1863_v23 = vadd.f32 %v5406_v2, %v1788_v46  ;;  %v1925_v22 = vmax.f32 %v1861_v21, 0.0 }
 0x2e4   : > { %v1922_v4 = vmax.f32 %v1858_v15, 0.0  ;;  %v1860_v5 = vadd.f32 %v5403_v17, %v1785_v43  ;;  %v1792_v14 = vmul.f32 %v5399_v13, %v1717_v50  ;;  %v1714_v57 = vmul.f32 %v4335_v60, %v1586_v51  ;;  %v4337_v26 = vpop.eup %4336  ;;  %v4268_v43 = vld [vmem:[#allocation8] sm:$0xff]  }
 0x2e5   : > { %v1593_v34 = vsub.f32 %v7113_v41, %v5830_v54  ;;  %v1927_v27 = vmax.f32 %v1863_v23, 0.0  ;;  %v1865_v62 = vadd.f32 %v5406_v2, %v1790_v25  ;;  %v1862_v59 = vadd.f32 %v5403_v17, %v1787_v40  ;;  %4014 = vmatprep.subr.bf16.mxu1 %v4268_v43  ;;  %v4269_v40 = vld [vmem:[#allocation8 + $0x8] sm:$0xff]  }
 0x2e6   : > { %v1960_v28 = vpack.c.bf16 %v1922_v4, %v1920_v12  ;;  %v1716_v24 = vmul.f32 %v4333_v32, %v1588_v42  ;;  %v1591_v19 = vsub.f32 %v7114_v30, %v5834_v9  ;;  %v1867_v1 = vadd.f32 %v5406_v2, %v1792_v14  ;;  %4015 = vmatpush3.bf16.msra.mxu1 %v4268_v43  ;;  %v5940_v12 = vld [vmem:[%s6943_s6] ss:$0 sm:$0xff]  ;;  %v4270_v4 = vld [vmem:[#allocation8 + $0x10] sm:$0xff]   ;;  %v4271_v14 = vld [vmem:[#allocation8 + $0x18] sm:$0xff]  }
 0x2e7   : > { %v1963_v38 = vpack.c.bf16 %v1927_v27, %v1925_v22  ;;  %v1721_v18 = vmul.f32 %v4337_v26, %v1593_v34  ;;  %v4339_v16 = vpop.eup %4338  ;;  %v1924_v49 = vmax.f32 %v1860_v5, 0.0  ;;  %v1789_v51 = vmul.f32 %v5392_v0, %v1714_v57  ;;  %4016 = vmatprep.subr.bf16.mxu1 %v4269_v40 }
 0x2e8   : > { %2232 = vmatmul.mubr.bf16.gmra.mrb[40].mxu1 %v1960_v28  ;;  %v1929_v35 = vmax.f32 %v1865_v62, 0.0  ;;  %v1719_v53 = vmul.f32 %v4339_v16, %v1591_v19  ;;  %v1590_v7 = vsub.f32 %v7115_v56, %v5834_v9  ;;  %v1926_v31 = vmax.f32 %v1862_v59, 0.0  ;;  %v4272_v59 = vld [vmem:[#allocation8 + $0x20] sm:$0xff]  }
 0x2e9   : > { %2239 = vmatprep.mubr.bf16.mxu1 %v1963_v38  ;;  %v1791_v55 = vmul.f32 %v5392_v0, %v1716_v24  ;;  %v1931_v33 = vmax.f32 %v1867_v1, 0.0  ;;  %v1796_v37 = vmul.f32 %v5399_v13, %v1721_v18  ;;  %v1592_v8 = vsub.f32 %v7116_v39, %v5830_v54 }
 0x2ea   : > { %v1794_v32 = vmul.f32 %v5399_v13, %v1719_v53  ;;  %v1962_v11 = vpack.c.bf16 %v1926_v31, %v1924_v49  ;;  %v1864_v20 = vadd.f32 %v5403_v17, %v1789_v51  ;;  %v1718_v61 = vmul.f32 %v4339_v16, %v1590_v7  ;;  %4017 = vmatpush3.bf16.msra.mxu1 %v4269_v40 }
 0x2eb   : > { %v1965_v48 = vpack.c.bf16 %v1931_v33, %v1929_v35  ;;  %v1866_v9 = vadd.f32 %v5403_v17, %v1791_v55  ;;  %v1720_v60 = vmul.f32 %v4337_v26, %v1592_v8  ;;  %v1871_v47 = vadd.f32 %v5406_v2, %v1796_v37  ;;  %4018 = vmatprep.subr.bf16.mxu1 %v4270_v4  ;;  %v4273_v33 = vld [vmem:[#allocation8 + $0x28] sm:$0xff]  }
 0x2ec   : > { %v1869_v29 = vadd.f32 %v5406_v2, %v1794_v32  ;;  %v1928_v58 = vmax.f32 %v1864_v20, 0.0  ;;  %v1793_v45 = vmul.f32 %v5392_v0, %v1718_v61 }
 0x2ed   : > { %v1930_v3 = vmax.f32 %v1866_v9, 0.0  ;;  %v1795_v54 = vmul.f32 %v5392_v0, %v1720_v60  ;;  %v1935_v52 = vmax.f32 %v1871_v47, 0.0 }
 0x2ee   : > { %v1933_v13 = vmax.f32 %v1869_v29, 0.0  ;;  %v1868_v10 = vadd.f32 %v5403_v17, %v1793_v45  ;;  %4019 = vmatpush3.bf16.msra.mxu1 %v4270_v4 }
 0x2ef   : > { %v1964_v44 = vpack.c.bf16 %v1930_v3, %v1928_v58  ;;  %v1870_v36 = vadd.f32 %v5403_v17, %v1795_v54  ;;  %4020 = vmatprep.subr.bf16.mxu1 %v4271_v14 }
 0x2f0   : > { %2240 = vmatmul.mubr.bf16.gmra.mrb[44].mxu1 %v1962_v11  ;;  %v1967_v6 = vpack.c.bf16 %v1935_v52, %v1933_v13  ;;  %v1932_v15 = vmax.f32 %v1868_v10, 0.0 }
 0x2f1   : > { %2247 = vmatprep.mubr.bf16.mxu1 %v1965_v48  ;;  %v1934_v2 = vmax.f32 %v1870_v36, 0.0 }
 0x2f2   : > { %4021 = vmatpush3.bf16.msra.mxu1 %v4271_v14 }
 0x2f3   : > { %v1966_v46 = vpack.c.bf16 %v1934_v2, %v1932_v15  ;;  %4022 = vmatprep.subr.bf16.mxu1 %v4272_v59 }
 0x2f6   : > { %4023 = vmatpush3.bf16.msra.mxu1 %v4272_v59 }
 0x2f7   : > { %4024 = vmatprep.subr.bf16.mxu1 %v4273_v33 }
 0x2f8   : > { %2248 = vmatmul.mubr.bf16.gmra.mrb[48].mxu1 %v1964_v44 }
 0x2f9   : > { %2255 = vmatprep.mubr.bf16.mxu1 %v1967_v6 }
 0x2fa   : > { %4025 = vmatpush3.bf16.msra.mxu1 %v4273_v33 }
 0x300   : > { %2256 = vmatmul.mubr.bf16.gmra.mrb[52].mxu1 %v1966_v46 }
 0x348   : > { %v3894_v0 = vpop.f32.mrb[64].mxu0 }
 0x349   : > { %v3895_v21 = vpop.f32.mrb[65].mxu0 }
 0x34a   : > { %v3896_v17 = vadd.f32 %v3895_v21, %v3894_v0  ;;  %v3897_v50 = vpop.f32.mrb[66].mxu0 }
 0x34b   : > { %v3898_v25 = vpop.f32.mrb[67].mxu0 }
 0x34c   : > { %v5943_v63 = vadd.f32 %v3896_v17, %v5940_v12  ;;  %v3899_v42 = vadd.f32 %v3898_v25, %v3897_v50 }
 0x34e   : > { %v5946_v23 = vadd.f32 %v3899_v42, %v5940_v12  ;;  %2266 = vadd.xlane.f32.xlu0 %v5943_v63  ;;  %v2362_v22 = vmul.f32 %v5943_v63, %v5943_v63 }
 0x350   : > { %2268 = vadd.xlane.f32.xlu1 %v5946_v23  ;;  %v2363_v5 = vmul.f32 %v5946_v23, %v5946_v23 }
 0x352   : > { %2394 = vadd.xlane.f32.xlu0 %v2362_v22 }
 0x354   : > { %2396 = vadd.xlane.f32.xlu1 %v2363_v5  ;;  %v4274_v5 = vld [vmem:[#allocation8 + $0x30] sm:$0xff]  }
 0x355   : > { %4026 = vmatprep.subr.bf16.mxu1 %v4274_v5 }
 0x356   : > { %4027 = vmatpush3.bf16.msra.mxu1 %v4274_v5 }
 0x357   : > { %v3906_v57 = vpop.f32.mrb[0].mxu1 }
 0x358   : > { %v3907_v41 = vpop.f32.mrb[1].mxu1 }
 0x359   : > { %v3908_v34 = vadd.f32 %v3907_v41, %v3906_v57  ;;  %v3909_v28 = vpop.f32.mrb[2].mxu1 }
 0x35a   : > { %v3910_v27 = vpop.f32.mrb[3].mxu1 }
 0x35b   : > { %v3911_v62 = vadd.f32 %v3910_v27, %v3909_v28  ;;  %v5967_v56 = vadd.f32 %v3908_v34, %v5940_v12  ;;  %v4275_v34 = vld [vmem:[#allocation8 + $0x38] sm:$0xff]  }
 0x35c   : > { %v3900_v26 = vpop.f32.mrb[68].mxu0  ;;  %4028 = vmatprep.subr.bf16.mxu1 %v4275_v34 }
 0x35d   : > { %v3901_v24 = vpop.f32.mrb[69].mxu0  ;;  %v5970_v32 = vadd.f32 %v3911_v62, %v5940_v12  ;;  %v2366_v39 = vmul.f32 %v5967_v56, %v5967_v56  ;;  %4029 = vmatpush3.bf16.msra.mxu1 %v4275_v34 }
 0x35e   : > { %v3902_v30 = vadd.f32 %v3901_v24, %v3900_v26  ;;  %v3903_v19 = vpop.f32.mrb[70].mxu0 }
 0x35f   : > { %v3904_v38 = vpop.f32.mrb[71].mxu0  ;;  %v2367_v8 = vmul.f32 %v5970_v32, %v5970_v32 }
 0x360   : > { %v5955_v1 = vadd.f32 %v3902_v30, %v5940_v12  ;;  %v3905_v18 = vadd.f32 %v3904_v38, %v3903_v19 }
 0x362   : > { %v5958_v16 = vadd.f32 %v3905_v18, %v5940_v12  ;;  %2270 = vadd.xlane.f32.xlu0 %v5955_v1  ;;  %v2364_v49 = vmul.f32 %v5955_v1, %v5955_v1 }
 0x364   : > { %2272 = vadd.xlane.f32.xlu1 %v5958_v16  ;;  %v2365_v35 = vmul.f32 %v5958_v16, %v5958_v16 }
 0x366   : > { %2398 = vadd.xlane.f32.xlu0 %v2364_v49 }
 0x368   : > { %2400 = vadd.xlane.f32.xlu1 %v2365_v35 }
 0x369   : > { %v3912_v51 = vpop.f32.mrb[4].mxu1 }
 0x36a   : > { %v3913_v53 = vpop.f32.mrb[5].mxu1  ;;  %2274 = vadd.xlane.f32.xlu0 %v5967_v56 }
 0x36b   : > { %v3914_v7 = vadd.f32 %v3913_v53, %v3912_v51  ;;  %v3915_v31 = vpop.f32.mrb[6].mxu1 }
 0x36c   : > { %v3916_v55 = vpop.f32.mrb[7].mxu1  ;;  %2276 = vadd.xlane.f32.xlu1 %v5970_v32 }
 0x36d   : > { %v3917_v37 = vadd.f32 %v3916_v55, %v3915_v31  ;;  %v5979_v11 = vadd.f32 %v3914_v7, %v5940_v12 }
 0x36e   : > { %2402 = vadd.xlane.f32.xlu0 %v2366_v39 }
 0x36f   : > { %v5982_v48 = vadd.f32 %v3917_v37, %v5940_v12  ;;  %v2368_v58 = vmul.f32 %v5979_v11, %v5979_v11 }
 0x370   : > { %2404 = vadd.xlane.f32.xlu1 %v2367_v8 }
 0x371   : > { %v2369_v45 = vmul.f32 %v5982_v48, %v5982_v48 }
 0x372   : > { %2278 = vadd.xlane.f32.xlu0 %v5979_v11 }
 0x373   : > { %v3918_v20 = vpop.f32.mrb[8].mxu1 }
 0x374   : > { %v3919_v61 = vpop.f32.mrb[9].mxu1  ;;  %2280 = vadd.xlane.f32.xlu1 %v5982_v48 }
 0x375   : > { %v3920_v29 = vadd.f32 %v3919_v61, %v3918_v20  ;;  %v3921_v9 = vpop.f32.mrb[10].mxu1 }
 0x376   : > { %v3922_v60 = vpop.f32.mrb[11].mxu1  ;;  %2406 = vadd.xlane.f32.xlu0 %v2368_v58 }
 0x377   : > { %v3923_v47 = vadd.f32 %v3922_v60, %v3921_v9  ;;  %v5991_v13 = vadd.f32 %v3920_v29, %v5940_v12 }
 0x378   : > { %2408 = vadd.xlane.f32.xlu1 %v2369_v45 }
 0x379   : > { %v5994_v3 = vadd.f32 %v3923_v47, %v5940_v12  ;;  %v2370_v6 = vmul.f32 %v5991_v13, %v5991_v13 }
 0x37a   : > { %2282 = vadd.xlane.f32.xlu0 %v5991_v13 }
 0x37b   : > { %v2371_v2 = vmul.f32 %v5994_v3, %v5994_v3 }
 0x37c   : > { %2284 = vadd.xlane.f32.xlu1 %v5994_v3 }
 0x37e   : > { %v3924_v54 = vpop.f32.mrb[12].mxu1  ;;  %2410 = vadd.xlane.f32.xlu0 %v2370_v6 }
 0x37f   : > { %v3925_v52 = vpop.f32.mrb[13].mxu1 }
 0x380   : > { %v3926_v44 = vadd.f32 %v3925_v52, %v3924_v54  ;;  %v3927_v10 = vpop.f32.mrb[14].mxu1  ;;  %2412 = vadd.xlane.f32.xlu1 %v2371_v2 }
 0x381   : > { %v3928_v36 = vpop.f32.mrb[15].mxu1 }
 0x382   : > { %v3929_v15 = vadd.f32 %v3928_v36, %v3927_v10  ;;  %v6003_v46 = vadd.f32 %v3926_v44, %v5940_v12 }
 0x384   : > { %v6006_v43 = vadd.f32 %v3929_v15, %v5940_v12  ;;  %2286 = vadd.xlane.f32.xlu0 %v6003_v46  ;;  %v2372_v21 = vmul.f32 %v6003_v46, %v6003_v46 }
 0x386   : > { %v3930_v40 = vpop.f32.mrb[16].mxu1  ;;  %2288 = vadd.xlane.f32.xlu1 %v6006_v43  ;;  %v2373_v42 = vmul.f32 %v6006_v43, %v6006_v43 }
 0x387   : > { %v3931_v0 = vpop.f32.mrb[17].mxu1 }
 0x388   : > { %v3932_v17 = vadd.f32 %v3931_v0, %v3930_v40  ;;  %v3933_v50 = vpop.f32.mrb[18].mxu1  ;;  %2414 = vadd.xlane.f32.xlu0 %v2372_v21 }
 0x389   : > { %v3934_v25 = vpop.f32.mrb[19].mxu1 }
 0x38a   : > { %v3935_v4 = vadd.f32 %v3934_v25, %v3933_v50  ;;  %v6015_v22 = vadd.f32 %v3932_v17, %v5940_v12  ;;  %2416 = vadd.xlane.f32.xlu1 %v2373_v42 }
 0x38c   : > { %v6018_v14 = vadd.f32 %v3935_v4, %v5940_v12  ;;  %2290 = vadd.xlane.f32.xlu0 %v6015_v22  ;;  %v2374_v41 = vmul.f32 %v6015_v22, %v6015_v22 }
 0x38e   : > { %v3936_v57 = vpop.f32.mrb[20].mxu1  ;;  %2292 = vadd.xlane.f32.xlu1 %v6018_v14  ;;  %v2375_v26 = vmul.f32 %v6018_v14, %v6018_v14 }
 0x38f   : > { %v3937_v28 = vpop.f32.mrb[21].mxu1 }
 0x390   : > { %v3938_v27 = vadd.f32 %v3937_v28, %v3936_v57  ;;  %v3939_v62 = vpop.f32.mrb[22].mxu1  ;;  %2418 = vadd.xlane.f32.xlu0 %v2374_v41 }
 0x391   : > { %v3940_v59 = vpop.f32.mrb[23].mxu1 }
 0x392   : > { %v6027_v24 = vadd.f32 %v3938_v27, %v5940_v12  ;;  %v3941_v30 = vadd.f32 %v3940_v59, %v3939_v62  ;;  %2420 = vadd.xlane.f32.xlu1 %v2375_v26 }
 0x394   : > { %v6030_v19 = vadd.f32 %v3941_v30, %v5940_v12  ;;  %2294 = vadd.xlane.f32.xlu0 %v6027_v24  ;;  %v2376_v18 = vmul.f32 %v6027_v24, %v6027_v24 }
 0x396   : > { %2296 = vadd.xlane.f32.xlu1 %v6030_v19  ;;  %v2377_v53 = vmul.f32 %v6030_v19, %v6030_v19 }
 0x397   : > { %v3942_v38 = vpop.f32.mrb[24].mxu1 }
 0x398   : > { %v3943_v49 = vpop.f32.mrb[25].mxu1  ;;  %2422 = vadd.xlane.f32.xlu0 %v2376_v18 }
 0x399   : > { %v3944_v51 = vadd.f32 %v3943_v49, %v3942_v38  ;;  %v3945_v35 = vpop.f32.mrb[26].mxu1 }
 0x39a   : > { %v3946_v7 = vpop.f32.mrb[27].mxu1  ;;  %2424 = vadd.xlane.f32.xlu1 %v2377_v53 }
 0x39b   : > { %v6039_v31 = vadd.f32 %v3944_v51, %v5940_v12  ;;  %v3947_v55 = vadd.f32 %v3946_v7, %v3945_v35 }
 0x39d   : > { %v6042_v33 = vadd.f32 %v3947_v55, %v5940_v12  ;;  %2298 = vadd.xlane.f32.xlu0 %v6039_v31  ;;  %v2378_v37 = vmul.f32 %v6039_v31, %v6039_v31 }
 0x39f   : > { %2300 = vadd.xlane.f32.xlu1 %v6042_v33  ;;  %v2379_v8 = vmul.f32 %v6042_v33, %v6042_v33 }
 0x3a0   : > { %v3948_v39 = vpop.f32.mrb[28].mxu1 }
 0x3a1   : > { %2426 = vadd.xlane.f32.xlu0 %v2378_v37  ;;  %v3949_v20 = vpop.f32.mrb[29].mxu1 }
 0x3a2   : > { %v3950_v61 = vadd.f32 %v3949_v20, %v3948_v39  ;;  %v3951_v29 = vpop.f32.mrb[30].mxu1 }
 0x3a3   : > { %2428 = vadd.xlane.f32.xlu1 %v2379_v8  ;;  %v3952_v9 = vpop.f32.mrb[31].mxu1 }
 0x3a4   : > { %v6051_v60 = vadd.f32 %v3950_v61, %v5940_v12  ;;  %v3953_v47 = vadd.f32 %v3952_v9, %v3951_v29 }
 0x3a6   : > { %v6054_v58 = vadd.f32 %v3953_v47, %v5940_v12  ;;  %2302 = vadd.xlane.f32.xlu0 %v6051_v60  ;;  %v2380_v45 = vmul.f32 %v6051_v60, %v6051_v60 }
 0x3a8   : > { %2304 = vadd.xlane.f32.xlu1 %v6054_v58  ;;  %v2381_v44 = vmul.f32 %v6054_v58, %v6054_v58 }
 0x3a9   : > { %v3954_v54 = vpop.f32.mrb[32].mxu1 }
 0x3aa   : > { %v3955_v52 = vpop.f32.mrb[33].mxu1  ;;  %2430 = vadd.xlane.f32.xlu0 %v2380_v45 }
 0x3ab   : > { %v3956_v10 = vadd.f32 %v3955_v52, %v3954_v54  ;;  %v3957_v6 = vpop.f32.mrb[34].mxu1 }
 0x3ac   : > { %v3958_v36 = vpop.f32.mrb[35].mxu1  ;;  %2432 = vadd.xlane.f32.xlu1 %v2381_v44 }
 0x3ad   : > { %v6063_v15 = vadd.f32 %v3956_v10, %v5940_v12  ;;  %v3959_v2 = vadd.f32 %v3958_v36, %v3957_v6 }
 0x3af   : > { %v6066_v40 = vadd.f32 %v3959_v2, %v5940_v12  ;;  %2306 = vadd.xlane.f32.xlu0 %v6063_v15  ;;  %v2382_v0 = vmul.f32 %v6063_v15, %v6063_v15 }
 0x3b1   : > { %2308 = vadd.xlane.f32.xlu1 %v6066_v40  ;;  %v2383_v50 = vmul.f32 %v6066_v40, %v6066_v40 }
 0x3b3   : > { %v3960_v21 = vpop.f32.mrb[36].mxu1  ;;  %2434 = vadd.xlane.f32.xlu0 %v2382_v0 }
 0x3b4   : > { %v3961_v17 = vpop.f32.mrb[37].mxu1 }
 0x3b5   : > { %v3962_v25 = vadd.f32 %v3961_v17, %v3960_v21  ;;  %v3963_v42 = vpop.f32.mrb[38].mxu1  ;;  %2436 = vadd.xlane.f32.xlu1 %v2383_v50 }
 0x3b6   : > { %v3964_v4 = vpop.f32.mrb[39].mxu1 }
 0x3b7   : > { %v6075_v5 = vadd.f32 %v3962_v25, %v5940_v12  ;;  %v3965_v57 = vadd.f32 %v3964_v4, %v3963_v42 }
 0x3b9   : > { %v6078_v41 = vadd.f32 %v3965_v57, %v5940_v12  ;;  %2310 = vadd.xlane.f32.xlu0 %v6075_v5  ;;  %v2384_v28 = vmul.f32 %v6075_v5, %v6075_v5 }
 0x3bb   : > { %v3966_v34 = vpop.f32.mrb[40].mxu1  ;;  %2312 = vadd.xlane.f32.xlu1 %v6078_v41  ;;  %v2385_v59 = vmul.f32 %v6078_v41, %v6078_v41 }
 0x3bc   : > { %v3967_v27 = vpop.f32.mrb[41].mxu1 }
 0x3bd   : > { %v3968_v62 = vadd.f32 %v3967_v27, %v3966_v34  ;;  %v3969_v26 = vpop.f32.mrb[42].mxu1  ;;  %2438 = vadd.xlane.f32.xlu0 %v2384_v28 }
 0x3be   : > { %v3970_v30 = vpop.f32.mrb[43].mxu1 }
 0x3bf   : > { %v6087_v38 = vadd.f32 %v3968_v62, %v5940_v12  ;;  %v3971_v18 = vadd.f32 %v3970_v30, %v3969_v26  ;;  %2440 = vadd.xlane.f32.xlu1 %v2385_v59 }
 0x3c1   : > { %v6090_v49 = vadd.f32 %v3971_v18, %v5940_v12  ;;  %2314 = vadd.xlane.f32.xlu0 %v6087_v38  ;;  %v2386_v35 = vmul.f32 %v6087_v38, %v6087_v38 }
 0x3c3   : > { %v3972_v51 = vpop.f32.mrb[44].mxu1  ;;  %2316 = vadd.xlane.f32.xlu1 %v6090_v49  ;;  %v2387_v37 = vmul.f32 %v6090_v49, %v6090_v49 }
 0x3c4   : > { %v3973_v53 = vpop.f32.mrb[45].mxu1 }
 0x3c5   : > { %v3974_v7 = vadd.f32 %v3973_v53, %v3972_v51  ;;  %v3975_v55 = vpop.f32.mrb[46].mxu1  ;;  %2442 = vadd.xlane.f32.xlu0 %v2386_v35 }
 0x3c6   : > { %v3976_v39 = vpop.f32.mrb[47].mxu1 }
 0x3c7   : > { %v6099_v8 = vadd.f32 %v3974_v7, %v5940_v12  ;;  %v3977_v20 = vadd.f32 %v3976_v39, %v3975_v55  ;;  %2444 = vadd.xlane.f32.xlu1 %v2387_v37 }
 0x3c9   : > { %v6102_v61 = vadd.f32 %v3977_v20, %v5940_v12  ;;  %2318 = vadd.xlane.f32.xlu0 %v6099_v8  ;;  %v2388_v9 = vmul.f32 %v6099_v8, %v6099_v8 }
 0x3cb   : > { %v3978_v29 = vpop.f32.mrb[48].mxu1  ;;  %2320 = vadd.xlane.f32.xlu1 %v6102_v61  ;;  %v2389_v52 = vmul.f32 %v6102_v61, %v6102_v61 }
 0x3cc   : > { %v3979_v47 = vpop.f32.mrb[49].mxu1 }
 0x3cd   : > { %v3980_v45 = vadd.f32 %v3979_v47, %v3978_v29  ;;  %v3981_v54 = vpop.f32.mrb[50].mxu1  ;;  %2446 = vadd.xlane.f32.xlu0 %v2388_v9 }
 0x3ce   : > { %v3982_v44 = vpop.f32.mrb[51].mxu1 }
 0x3cf   : > { %v6111_v10 = vadd.f32 %v3980_v45, %v5940_v12  ;;  %v3983_v6 = vadd.f32 %v3982_v44, %v3981_v54  ;;  %2448 = vadd.xlane.f32.xlu1 %v2389_v52 }
 0x3d1   : > { %v6114_v36 = vadd.f32 %v3983_v6, %v5940_v12  ;;  %2322 = vadd.xlane.f32.xlu0 %v6111_v10  ;;  %v2390_v0 = vmul.f32 %v6111_v10, %v6111_v10 }
 0x3d3   : > { %v3984_v2 = vpop.f32.mrb[52].mxu1  ;;  %2324 = vadd.xlane.f32.xlu1 %v6114_v36  ;;  %v2391_v25 = vmul.f32 %v6114_v36, %v6114_v36 }
 0x3d4   : > { %v3985_v21 = vpop.f32.mrb[53].mxu1 }
 0x3d5   : > { %v3986_v17 = vadd.f32 %v3985_v21, %v3984_v2  ;;  %v3987_v50 = vpop.f32.mrb[54].mxu1  ;;  %2450 = vadd.xlane.f32.xlu0 %v2390_v0  ;;  %v6143_v0 = vld [vmem:[%s6944_s7] ss:$0 sm:$0xff] }
 0x3d6   : > { %v3988_v42 = vpop.f32.mrb[55].mxu1 }
 0x3d7   : > { %v6123_v4 = vadd.f32 %v3986_v17, %v5940_v12  ;;  %v3989_v57 = vadd.f32 %v3988_v42, %v3987_v50  ;;  %2452 = vadd.xlane.f32.xlu1 %v2391_v25  ;;  %v6150_v42 = vld [vmem:[%s7117_s25] ss:$0 sm:$0xff] }
 0x3d9   : > { %v6126_v34 = vadd.f32 %v3989_v57, %v5940_v12  ;;  %2326 = vadd.xlane.f32.xlu0 %v6123_v4  ;;  %v2392_v28 = vmul.f32 %v6123_v4, %v6123_v4 }
 0x3db   : > { %2328 = vadd.xlane.f32.xlu1 %v6126_v34  ;;  %v2393_v27 = vmul.f32 %v6126_v34, %v6126_v34  ;;  %v2267_v62 = vpop.xlane.xlu0 %2266 }
 0x3dc   : > { %v2330_v26 = vmul.f32 0.0078125, %v2267_v62 }
 0x3dd   : > { %2454 = vadd.xlane.f32.xlu0 %v2392_v28  ;;  %v2269_v59 = vpop.xlane.xlu1 %2268 }
 0x3de   : > { %v2331_v30 = vmul.f32 0.0078125, %v2269_v59  ;;  %v2490_v51 = vmul.f32 %v2330_v26, %v2330_v26  ;;  %v2586_v45 = vsub.f32 %v5943_v63, %v2330_v26 }
 0x3df   : > { %2456 = vadd.xlane.f32.xlu1 %v2393_v27  ;;  %v2395_v18 = vpop.xlane.xlu0 %2394 }
 0x3e0   : > { %v2458_v12 = vmul.f32 0.0078125, %v2395_v18  ;;  %v2491_v53 = vmul.f32 %v2331_v30, %v2331_v30  ;;  %v2587_v6 = vsub.f32 %v5946_v23, %v2331_v30 }
 0x3e1   : > { %v2397_v35 = vpop.xlane.xlu1 %2396 }
 0x3e2   : > { %v2522_v7 = vsub.f32 %v2458_v12, %v2490_v51  ;;  %v2459_v55 = vmul.f32 0.0078125, %v2397_v35 }
 0x3e4   : > { %v2554_v37 = vmax.f32 %v2522_v7, 0.0  ;;  %v2523_v39 = vsub.f32 %v2459_v55, %v2491_v53 }
 0x3e6   : > { %v2618_v20 = vadd.f32 1e-05, %v2554_v37  ;;  %v2555_v29 = vmax.f32 %v2523_v39, 0.0 }
 0x3e8   : > { %4340 = vrsqrt.f32 %v2618_v20  ;;  %v2619_v9 = vadd.f32 1e-05, %v2555_v29 }
 0x3ea   : > { %4342 = vrsqrt.f32 %v2619_v9 }
 0x3ef   : > { %v2271_v47 = vpop.xlane.xlu0 %2270 }
 0x3f0   : > { %v6135_v54 = vmul.f32 0.0078125, %v2271_v47 }
 0x3f1   : > { %v2273_v44 = vpop.xlane.xlu1 %2272 }
 0x3f2   : > { %v4341_v52 = vpop.eup %4340  ;;  %v6138_v2 = vmul.f32 0.0078125, %v2273_v44  ;;  %v2492_v25 = vmul.f32 %v6135_v54, %v6135_v54 }
 0x3f3   : > { %v2682_v21 = vmul.f32 %v4341_v52, %v2586_v45  ;;  %v2399_v50 = vpop.xlane.xlu0 %2398 }
 0x3f4   : > { %v4343_v17 = vpop.eup %4342  ;;  %v2460_v63 = vmul.f32 0.0078125, %v2399_v50  ;;  %v2493_v27 = vmul.f32 %v6138_v2, %v6138_v2 }
 0x3f5   : > { %v2683_v23 = vmul.f32 %v4343_v17, %v2587_v6  ;;  %v2401_v57 = vpop.xlane.xlu1 %2400  ;;  %v2720_v28 = vmul.f32 %v6143_v0, %v2682_v21 }
 0x3f6   : > { %v2524_v62 = vsub.f32 %v2460_v63, %v2492_v25  ;;  %v2461_v26 = vmul.f32 0.0078125, %v2401_v57 }
 0x3f7   : > { %v2721_v59 = vmul.f32 %v6143_v0, %v2683_v23  ;;  %v2275_v30 = vpop.xlane.xlu0 %2274  ;;  %v2758_v18 = vadd.f32 %v6150_v42, %v2720_v28 }
 0x3f8   : > { %v2556_v51 = vmax.f32 %v2524_v62, 0.0  ;;  %v2525_v12 = vsub.f32 %v2461_v26, %v2493_v27  ;;  %v6157_v35 = vmul.f32 0.0078125, %v2275_v30 }
 0x3f9   : > { %v2759_v53 = vadd.f32 %v6150_v42, %v2721_v59  ;;  %v2277_v7 = vpop.xlane.xlu1 %2276  ;;  %v2790_v29 = vmax.f32 %v2758_v18, 0.0 }
 0x3fa   : > { %v2620_v55 = vadd.f32 1e-05, %v2556_v51  ;;  %v2557_v37 = vmax.f32 %v2525_v12, 0.0  ;;  %v6160_v39 = vmul.f32 0.0078125, %v2277_v7  ;;  %v2494_v45 = vmul.f32 %v6157_v35, %v6157_v35 }
 0x3fb   : > { %v2403_v20 = vpop.xlane.xlu0 %2402  ;;  %v2791_v9 = vmax.f32 %v2759_v53, 0.0  ;;  %v2588_v12 = vsub.f32 %v5955_v1, %v6135_v54 }
 0x3fc   : > { %4344 = vrsqrt.f32 %v2620_v55  ;;  %v2621_v47 = vadd.f32 1e-05, %v2557_v37  ;;  %v2462_v52 = vmul.f32 0.0078125, %v2403_v20  ;;  %v2495_v21 = vmul.f32 %v6160_v39, %v6160_v39 }
 0x3fd   : > { %v2405_v44 = vpop.xlane.xlu1 %2404  ;;  %v2822_v6 = vpack.c.bf16 %v2791_v9, %v2790_v29  ;;  %v2589_v29 = vsub.f32 %v5958_v16, %v6138_v2 }
 0x3fe   : > { %4346 = vrsqrt.f32 %v2621_v47  ;;  %v2526_v17 = vsub.f32 %v2462_v52, %v2494_v45  ;;  %v2463_v50 = vmul.f32 0.0078125, %v2405_v44 }
 0x3ff   : > { %v2279_v25 = vpop.xlane.xlu0 %2278  ;;  %4030 = vmatprep.mubr.bf16.mxu1 %v2822_v6 }
 0x400   : > { %v2558_v63 = vmax.f32 %v2526_v17, 0.0  ;;  %v2527_v23 = vsub.f32 %v2463_v50, %v2495_v21  ;;  %v6166_v57 = vmul.f32 0.0078125, %v2279_v25 }
 0x401   : > { %v2281_v28 = vpop.xlane.xlu1 %2280 }
 0x402   : > { %v2622_v27 = vadd.f32 1e-05, %v2558_v63  ;;  %v2559_v62 = vmax.f32 %v2527_v23, 0.0  ;;  %v6168_v26 = vmul.f32 0.0078125, %v2281_v28  ;;  %v2496_v18 = vmul.f32 %v6166_v57, %v6166_v57 }
 0x403   : > { %v2407_v59 = vpop.xlane.xlu0 %2406 }
 0x404   : > { %4348 = vrsqrt.f32 %v2622_v27  ;;  %v2623_v30 = vadd.f32 1e-05, %v2559_v62  ;;  %v2464_v51 = vmul.f32 0.0078125, %v2407_v59  ;;  %v2497_v55 = vmul.f32 %v6168_v26, %v6168_v26 }
 0x405   : > { %v2409_v53 = vpop.xlane.xlu1 %2408  ;;  %v2590_v62 = vsub.f32 %v5967_v56, %v6157_v35 }
 0x406   : > { %v4345_v7 = vpop.eup %4344  ;;  %4350 = vrsqrt.f32 %v2623_v30  ;;  %v2528_v37 = vsub.f32 %v2464_v51, %v2496_v18  ;;  %v2465_v20 = vmul.f32 0.0078125, %v2409_v53 }
 0x407   : > { %v2684_v9 = vmul.f32 %v4345_v7, %v2588_v12  ;;  %v2283_v47 = vpop.xlane.xlu0 %2282  ;;  %v2591_v7 = vsub.f32 %v5970_v32, %v6160_v39 }
 0x408   : > { %v4347_v45 = vpop.eup %4346  ;;  %v2560_v52 = vmax.f32 %v2528_v37, 0.0  ;;  %v2529_v44 = vsub.f32 %v2465_v20, %v2497_v55  ;;  %v6178_v6 = vmul.f32 0.0078125, %v2283_v47 }
 0x409   : > { %v2685_v21 = vmul.f32 %v4347_v45, %v2589_v29  ;;  %v2285_v1 = vpop.xlane.xlu1 %2284  ;;  %v2722_v54 = vmul.f32 %v6143_v0, %v2684_v9 }
 0x40a   : > { %v2624_v17 = vadd.f32 1e-05, %v2560_v52  ;;  %v2561_v50 = vmax.f32 %v2529_v44, 0.0  ;;  %v6181_v25 = vmul.f32 0.0078125, %v2285_v1  ;;  %v2498_v28 = vmul.f32 %v6178_v6, %v6178_v6 }
 0x40b   : > { %v2411_v63 = vpop.xlane.xlu0 %2410  ;;  %v2723_v23 = vmul.f32 %v6143_v0, %v2685_v21  ;;  %v2760_v16 = vadd.f32 %v6150_v42, %v2722_v54 }
 0x40c   : > { %4352 = vrsqrt.f32 %v2624_v17  ;;  %v2625_v2 = vadd.f32 1e-05, %v2561_v50  ;;  %v2466_v27 = vmul.f32 0.0078125, %v2411_v63  ;;  %v2499_v51 = vmul.f32 %v6181_v25, %v6181_v25 }
 0x40d   : > { %v2413_v59 = vpop.xlane.xlu1 %2412  ;;  %v2761_v30 = vadd.f32 %v6150_v42, %v2723_v23  ;;  %v2792_v37 = vmax.f32 %v2760_v16, 0.0 }
 0x40e   : > { %v4349_v18 = vpop.eup %4348  ;;  %4354 = vrsqrt.f32 %v2625_v2  ;;  %v2530_v12 = vsub.f32 %v2466_v27, %v2498_v28  ;;  %v2467_v53 = vmul.f32 0.0078125, %v2413_v59  ;;  %v2592_v2 = vsub.f32 %v5979_v11, %v6166_v57 }
 0x40f   : > { %v2793_v20 = vmax.f32 %v2761_v30, 0.0  ;;  %v2686_v29 = vmul.f32 %v4349_v18, %v2590_v62 }
 0x410   : > { %v4351_v9 = vpop.eup %4350  ;;  %v2562_v47 = vmax.f32 %v2530_v12, 0.0  ;;  %v2531_v56 = vsub.f32 %v2467_v53, %v2499_v51  ;;  %v2593_v51 = vsub.f32 %v5982_v48, %v6168_v26 }
 0x411   : > { %v2287_v55 = vpop.xlane.xlu0 %2286  ;;  %v2823_v52 = vpack.c.bf16 %v2793_v20, %v2792_v37  ;;  %v2687_v44 = vmul.f32 %v4351_v9, %v2591_v7  ;;  %v2724_v21 = vmul.f32 %v6143_v0, %v2686_v29 }
 0x412   : > { %v6194_v35 = vmul.f32 0.0078125, %v2287_v55  ;;  %v2626_v1 = vadd.f32 1e-05, %v2562_v47  ;;  %v2563_v54 = vmax.f32 %v2531_v56, 0.0 }
 0x413   : > { %v2289_v45 = vpop.xlane.xlu1 %2288  ;;  %4031 = vmatmul.mubr.bf16.vlgmr.msra.gmra.mrb[56].mxu1 %v2823_v52  ;;  %v2725_v39 = vmul.f32 %v6143_v0, %v2687_v44  ;;  %v2762_v50 = vadd.f32 %v6150_v42, %v2724_v21 }
 0x414   : > { %v6197_v17 = vmul.f32 0.0078125, %v2289_v45  ;;  %4356 = vrsqrt.f32 %v2626_v1  ;;  %v2627_v63 = vadd.f32 1e-05, %v2563_v54  ;;  %v2500_v23 = vmul.f32 %v6194_v35, %v6194_v35 }
 0x415   : > { %v2415_v32 = vpop.xlane.xlu0 %2414  ;;  %v2763_v27 = vadd.f32 %v6150_v42, %v2725_v39  ;;  %v2794_v53 = vmax.f32 %v2762_v50, 0.0  ;;  %v2594_v39 = vsub.f32 %v5991_v13, %v6178_v6 }
 0x416   : > { %v2468_v16 = vmul.f32 0.0078125, %v2415_v32  ;;  %v4353_v62 = vpop.eup %4352  ;;  %4358 = vrsqrt.f32 %v2627_v63  ;;  %v2501_v59 = vmul.f32 %v6197_v17, %v6197_v17 }
 0x417   : > { %v2417_v28 = vpop.xlane.xlu1 %2416  ;;  %v2795_v7 = vmax.f32 %v2763_v27, 0.0  ;;  %v2688_v55 = vmul.f32 %v4353_v62, %v2592_v2  ;;  %v2595_v27 = vsub.f32 %v5994_v3, %v6181_v25 }
 0x418   : > { %v2532_v30 = vsub.f32 %v2468_v16, %v2500_v23  ;;  %v2469_v18 = vmul.f32 0.0078125, %v2417_v28  ;;  %v4355_v37 = vpop.eup %4354 }
 0x419   : > { %v2291_v12 = vpop.xlane.xlu0 %2290  ;;  %v2824_v9 = vpack.c.bf16 %v2795_v7, %v2794_v53  ;;  %v2689_v47 = vmul.f32 %v4355_v37, %v2593_v51  ;;  %v2726_v56 = vmul.f32 %v6143_v0, %v2688_v55 }
 0x41a   : > { %v2564_v20 = vmax.f32 %v2532_v30, 0.0  ;;  %v2533_v11 = vsub.f32 %v2469_v18, %v2501_v59  ;;  %v6210_v57 = vmul.f32 0.0078125, %v2291_v12 }
 0x41b   : > { %v2293_v29 = vpop.xlane.xlu1 %2292  ;;  %4034 = vmatprep.mubr.bf16.mxu1 %v2824_v9  ;;  %v2727_v26 = vmul.f32 %v6143_v0, %v2689_v47  ;;  %v2764_v21 = vadd.f32 %v6150_v42, %v2726_v56 }
 0x41c   : > { %v2628_v45 = vadd.f32 1e-05, %v2564_v20  ;;  %v2565_v52 = vmax.f32 %v2533_v11, 0.0  ;;  %v6213_v44 = vmul.f32 0.0078125, %v2293_v29  ;;  %v2502_v54 = vmul.f32 %v6210_v57, %v6210_v57 }
 0x41d   : > { %v2419_v48 = vpop.xlane.xlu0 %2418  ;;  %v2765_v63 = vadd.f32 %v6150_v42, %v2727_v26  ;;  %v2796_v59 = vmax.f32 %v2764_v21, 0.0 }
 0x41e   : > { %4360 = vrsqrt.f32 %v2628_v45  ;;  %v2629_v1 = vadd.f32 1e-05, %v2565_v52  ;;  %v2470_v32 = vmul.f32 0.0078125, %v2419_v48  ;;  %v4357_v23 = vpop.eup %4356  ;;  %v2503_v16 = vmul.f32 %v6213_v44, %v6213_v44 }
 0x41f   : > { %v2421_v50 = vpop.xlane.xlu1 %2420  ;;  %v2797_v30 = vmax.f32 %v2765_v63, 0.0  ;;  %v2690_v18 = vmul.f32 %v4357_v23, %v2594_v39  ;;  %v2596_v52 = vsub.f32 %v6003_v46, %v6194_v35  ;;  %v2597_v39 = vsub.f32 %v6006_v43, %v6197_v17 }
 0x420   : > { %4362 = vrsqrt.f32 %v2629_v1  ;;  %v2534_v2 = vsub.f32 %v2470_v32, %v2502_v54  ;;  %v2471_v28 = vmul.f32 0.0078125, %v2421_v50  ;;  %v4359_v51 = vpop.eup %4358 }
 0x421   : > { %v2295_v62 = vpop.xlane.xlu0 %2294  ;;  %v2825_v7 = vpack.c.bf16 %v2797_v30, %v2796_v59  ;;  %v2691_v55 = vmul.f32 %v4359_v51, %v2595_v27  ;;  %v2728_v37 = vmul.f32 %v6143_v0, %v2690_v18 }
 0x422   : > { %v2566_v12 = vmax.f32 %v2534_v2, 0.0  ;;  %v2535_v13 = vsub.f32 %v2471_v28, %v2503_v16  ;;  %v6226_v6 = vmul.f32 0.0078125, %v2295_v62 }
 0x423   : > { %v2297_v53 = vpop.xlane.xlu1 %2296  ;;  %4035 = vmatmul.mubr.bf16.gmra.mrb[60].mxu1 %v2825_v7  ;;  %v2729_v25 = vmul.f32 %v6143_v0, %v2691_v55  ;;  %v2766_v9 = vadd.f32 %v6150_v42, %v2728_v37  ;;  %v2598_v37 = vsub.f32 %v6015_v22, %v6210_v57 }
 0x424   : > { %v2630_v20 = vadd.f32 1e-05, %v2566_v12  ;;  %v2567_v11 = vmax.f32 %v2535_v13, 0.0  ;;  %v6229_v29 = vmul.f32 0.0078125, %v2297_v53  ;;  %v2504_v56 = vmul.f32 %v6226_v6, %v6226_v6 }
 0x425   : > { %v2423_v3 = vpop.xlane.xlu0 %2422  ;;  %v2767_v26 = vadd.f32 %v6150_v42, %v2729_v25  ;;  %v2798_v63 = vmax.f32 %v2766_v9, 0.0 }
 0x426   : > { %4364 = vrsqrt.f32 %v2630_v20  ;;  %v2631_v47 = vadd.f32 1e-05, %v2567_v11  ;;  %v2472_v45 = vmul.f32 0.0078125, %v2423_v3  ;;  %v2505_v1 = vmul.f32 %v6229_v29, %v6229_v29 }
 0x427   : > { %v2425_v48 = vpop.xlane.xlu1 %2424  ;;  %v2799_v23 = vmax.f32 %v2767_v26, 0.0 }
 0x428   : > { %v4361_v21 = vpop.eup %4360  ;;  %4366 = vrsqrt.f32 %v2631_v47  ;;  %v2536_v54 = vsub.f32 %v2472_v45, %v2504_v56  ;;  %v2473_v32 = vmul.f32 0.0078125, %v2425_v48  ;;  %v2599_v56 = vsub.f32 %v6018_v14, %v6213_v44 }
 0x429   : > { %v2692_v16 = vmul.f32 %v4361_v21, %v2596_v52  ;;  %v2826_v62 = vpack.c.bf16 %v2799_v23, %v2798_v63 }
 0x42a   : > { %v2299_v50 = vpop.xlane.xlu0 %2298  ;;  %v4363_v2 = vpop.eup %4362  ;;  %v2568_v28 = vmax.f32 %v2536_v54, 0.0  ;;  %v2537_v46 = vsub.f32 %v2473_v32, %v2505_v1 }
 0x42b   : > { %v6242_v35 = vmul.f32 0.0078125, %v2299_v50  ;;  %v2693_v59 = vmul.f32 %v4363_v2, %v2597_v39  ;;  %v2730_v30 = vmul.f32 %v6143_v0, %v2692_v16  ;;  %4038 = vmatprep.mubr.bf16.mxu1 %v2826_v62  ;;  %v2600_v2 = vsub.f32 %v6027_v24, %v6226_v6 }
 0x42c   : > { %v2301_v27 = vpop.xlane.xlu1 %2300  ;;  %v2632_v18 = vadd.f32 1e-05, %v2568_v28  ;;  %v2569_v51 = vmax.f32 %v2537_v46, 0.0 }
 0x42d   : > { %v6245_v12 = vmul.f32 0.0078125, %v2301_v27  ;;  %v2731_v17 = vmul.f32 %v6143_v0, %v2693_v59  ;;  %v2768_v13 = vadd.f32 %v6150_v42, %v2730_v30  ;;  %v2506_v7 = vmul.f32 %v6242_v35, %v6242_v35 }
 0x42e   : > { %v2427_v43 = vpop.xlane.xlu0 %2426  ;;  %4368 = vrsqrt.f32 %v2632_v18  ;;  %v2633_v53 = vadd.f32 1e-05, %v2569_v51  ;;  %v2601_v18 = vsub.f32 %v6030_v19, %v6229_v29 }
 0x42f   : > { %v2474_v55 = vmul.f32 0.0078125, %v2427_v43  ;;  %v2769_v11 = vadd.f32 %v6150_v42, %v2731_v17  ;;  %v2507_v25 = vmul.f32 %v6245_v12, %v6245_v12  ;;  %v2800_v45 = vmax.f32 %v2768_v13, 0.0 }
 0x430   : > { %v2429_v20 = vpop.xlane.xlu1 %2428  ;;  %v4365_v3 = vpop.eup %4364  ;;  %4370 = vrsqrt.f32 %v2633_v53 }
 0x431   : > { %v2538_v9 = vsub.f32 %v2474_v55, %v2506_v7  ;;  %v2475_v47 = vmul.f32 0.0078125, %v2429_v20  ;;  %v2801_v52 = vmax.f32 %v2769_v11, 0.0  ;;  %v2694_v48 = vmul.f32 %v4365_v3, %v2598_v37 }
 0x432   : > { %v4367_v26 = vpop.eup %4366 }
 0x433   : > { %v2570_v21 = vmax.f32 %v2538_v9, 0.0  ;;  %v2539_v1 = vsub.f32 %v2475_v47, %v2507_v25  ;;  %v2303_v22 = vpop.xlane.xlu0 %2302  ;;  %v2827_v57 = vpack.c.bf16 %v2801_v52, %v2800_v45  ;;  %v2695_v54 = vmul.f32 %v4367_v26, %v2599_v56 }
 0x434   : > { %v2732_v32 = vmul.f32 %v6143_v0, %v2694_v48  ;;  %v6259_v63 = vmul.f32 0.0078125, %v2303_v22 }
 0x435   : > { %v2634_v39 = vadd.f32 1e-05, %v2570_v21  ;;  %v2571_v50 = vmax.f32 %v2539_v1, 0.0  ;;  %v2305_v23 = vpop.xlane.xlu1 %2304  ;;  %4039 = vmatmul.mubr.bf16.gmra.mrb[64].mxu1 %v2827_v57  ;;  %v2733_v16 = vmul.f32 %v6143_v0, %v2695_v54  ;;  %v2602_v21 = vsub.f32 %v6039_v31, %v6242_v35 }
 0x436   : > { %v2770_v14 = vadd.f32 %v6150_v42, %v2732_v32  ;;  %v6265_v28 = vmul.f32 0.0078125, %v2305_v23  ;;  %v2508_v59 = vmul.f32 %v6259_v63, %v6259_v63  ;;  %v2603_v1 = vsub.f32 %v6042_v33, %v6245_v12 }
 0x437   : > { %4372 = vrsqrt.f32 %v2634_v39  ;;  %v2635_v44 = vadd.f32 1e-05, %v2571_v50  ;;  %v2431_v46 = vpop.xlane.xlu0 %2430  ;;  %v2771_v27 = vadd.f32 %v6150_v42, %v2733_v16 }
 0x438   : > { %v4369_v62 = vpop.eup %4368  ;;  %v2476_v30 = vmul.f32 0.0078125, %v2431_v46  ;;  %v2802_v43 = vmax.f32 %v2770_v14, 0.0  ;;  %v2509_v24 = vmul.f32 %v6265_v28, %v6265_v28 }
 0x439   : > { %4374 = vrsqrt.f32 %v2635_v44  ;;  %v2433_v51 = vpop.xlane.xlu1 %2432  ;;  %v2803_v17 = vmax.f32 %v2771_v27, 0.0  ;;  %v2696_v13 = vmul.f32 %v4369_v62, %v2600_v2 }
 0x43a   : > { %v4371_v53 = vpop.eup %4370  ;;  %v2540_v6 = vsub.f32 %v2476_v30, %v2508_v59  ;;  %v2477_v7 = vmul.f32 0.0078125, %v2433_v51 }
 0x43b   : > { %v2828_v55 = vpack.c.bf16 %v2803_v17, %v2802_v43  ;;  %v2697_v37 = vmul.f32 %v4371_v53, %v2601_v18  ;;  %v2734_v20 = vmul.f32 %v6143_v0, %v2696_v13  ;;  %v2604_v53 = vsub.f32 %v6051_v60, %v6259_v63 }
 0x43c   : > { %v2572_v11 = vmax.f32 %v2540_v6, 0.0  ;;  %v2541_v3 = vsub.f32 %v2477_v7, %v2509_v24  ;;  %v2307_v25 = vpop.xlane.xlu0 %2306 }
 0x43d   : > { %v6275_v9 = vmul.f32 0.0078125, %v2307_v25  ;;  %4042 = vmatprep.mubr.bf16.mxu1 %v2828_v55  ;;  %v2735_v19 = vmul.f32 %v6143_v0, %v2697_v37  ;;  %v2772_v29 = vadd.f32 %v6150_v42, %v2734_v20  ;;  %v2605_v25 = vsub.f32 %v6054_v58, %v6265_v28 }
 0x43e   : > { %v2636_v47 = vadd.f32 1e-05, %v2572_v11  ;;  %v2573_v56 = vmax.f32 %v2541_v3, 0.0  ;;  %v2309_v45 = vpop.xlane.xlu1 %2308 }
 0x43f   : > { %v6279_v52 = vmul.f32 0.0078125, %v2309_v45  ;;  %v2773_v48 = vadd.f32 %v6150_v42, %v2735_v19  ;;  %v2510_v54 = vmul.f32 %v6275_v9, %v6275_v9  ;;  %v2804_v39 = vmax.f32 %v2772_v29, 0.0 }
 0x440   : > { %4376 = vrsqrt.f32 %v2636_v47  ;;  %v2637_v22 = vadd.f32 1e-05, %v2573_v56  ;;  %v2435_v57 = vpop.xlane.xlu0 %2434 }
 0x441   : > { %v4373_v26 = vpop.eup %4372  ;;  %v2478_v32 = vmul.f32 0.0078125, %v2435_v57  ;;  %v2805_v50 = vmax.f32 %v2773_v48, 0.0  ;;  %v2511_v16 = vmul.f32 %v6279_v52, %v6279_v52 }
 0x442   : > { %4378 = vrsqrt.f32 %v2637_v22  ;;  %v2437_v14 = vpop.xlane.xlu1 %2436  ;;  %v2698_v44 = vmul.f32 %v4373_v26, %v2602_v21 }
 0x443   : > { %v4375_v23 = vpop.eup %4374  ;;  %v2542_v31 = vsub.f32 %v2478_v32, %v2510_v54  ;;  %v2479_v35 = vmul.f32 0.0078125, %v2437_v14  ;;  %v2829_v2 = vpack.c.bf16 %v2805_v50, %v2804_v39  ;;  %v2606_v50 = vsub.f32 %v6063_v15, %v6275_v9 }
 0x444   : > { %v2699_v33 = vmul.f32 %v4375_v23, %v2603_v1  ;;  %v2736_v12 = vmul.f32 %v6143_v0, %v2698_v44 }
 0x445   : > { %v2574_v46 = vmax.f32 %v2542_v31, 0.0  ;;  %v2543_v27 = vsub.f32 %v2479_v35, %v2511_v16  ;;  %4043 = vmatmul.mubr.bf16.gmra.mrb[68].mxu1 %v2829_v2 }
 0x446   : > { %v2311_v62 = vpop.xlane.xlu0 %2310  ;;  %v2737_v59 = vmul.f32 %v6143_v0, %v2699_v33  ;;  %v2774_v18 = vadd.f32 %v6150_v42, %v2736_v12  ;;  %v2607_v33 = vsub.f32 %v6066_v40, %v6279_v52 }
 0x447   : > { %v6292_v30 = vmul.f32 0.0078125, %v2311_v62  ;;  %v2638_v51 = vadd.f32 1e-05, %v2574_v46  ;;  %v2575_v43 = vmax.f32 %v2543_v27, 0.0 }
 0x448   : > { %v2313_v17 = vpop.xlane.xlu1 %2312  ;;  %v2775_v13 = vadd.f32 %v6150_v42, %v2737_v59  ;;  %v2806_v55 = vmax.f32 %v2774_v18, 0.0 }
 0x449   : > { %v6298_v24 = vmul.f32 0.0078125, %v2313_v17  ;;  %4380 = vrsqrt.f32 %v2638_v51  ;;  %v2639_v6 = vadd.f32 1e-05, %v2575_v43  ;;  %v2512_v11 = vmul.f32 %v6292_v30, %v6292_v30 }
 0x44a   : > { %v2439_v7 = vpop.xlane.xlu0 %2438  ;;  %v2807_v37 = vmax.f32 %v2775_v13, 0.0  ;;  %v4377_v20 = vpop.eup %4376 }
 0x44b   : > { %v2480_v3 = vmul.f32 0.0078125, %v2439_v7  ;;  %4382 = vrsqrt.f32 %v2639_v6  ;;  %v2700_v47 = vmul.f32 %v4377_v20, %v2604_v53  ;;  %v2513_v63 = vmul.f32 %v6298_v24, %v6298_v24 }
 0x44c   : > { %v2441_v19 = vpop.xlane.xlu1 %2440  ;;  %v2830_v29 = vpack.c.bf16 %v2807_v37, %v2806_v55  ;;  %v4379_v60 = vpop.eup %4378 }
 0x44d   : > { %v2544_v56 = vsub.f32 %v2480_v3, %v2512_v11  ;;  %v2481_v45 = vmul.f32 0.0078125, %v2441_v19  ;;  %v2701_v26 = vmul.f32 %v4379_v60, %v2605_v25  ;;  %v2738_v21 = vmul.f32 %v6143_v0, %v2700_v47 }
 0x44e   : > { %v2315_v48 = vpop.xlane.xlu0 %2314  ;;  %4046 = vmatprep.mubr.bf16.mxu1 %v2830_v29  ;;  %v2608_v47 = vsub.f32 %v6075_v5, %v6292_v30 }
 0x44f   : > { %v2576_v1 = vmax.f32 %v2544_v56, 0.0  ;;  %v2545_v22 = vsub.f32 %v2481_v45, %v2513_v63  ;;  %v6307_v57 = vmul.f32 0.0078125, %v2315_v48  ;;  %v2739_v28 = vmul.f32 %v6143_v0, %v2701_v26 }
 0x450   : > { %v2317_v58 = vpop.xlane.xlu1 %2316  ;;  %v2776_v54 = vadd.f32 %v6150_v42, %v2738_v21  ;;  %v2609_v21 = vsub.f32 %v6078_v41, %v6298_v24 }
 0x451   : > { %v2640_v32 = vadd.f32 1e-05, %v2576_v1  ;;  %v2577_v39 = vmax.f32 %v2545_v22, 0.0  ;;  %v6313_v23 = vmul.f32 0.0078125, %v2317_v58  ;;  %v2777_v14 = vadd.f32 %v6150_v42, %v2739_v28 }
 0x452   : > { %v2443_v16 = vpop.xlane.xlu0 %2442  ;;  %v2514_v31 = vmul.f32 %v6307_v57, %v6307_v57  ;;  %v2808_v15 = vmax.f32 %v2776_v54, 0.0 }
 0x453   : > { %4384 = vrsqrt.f32 %v2640_v32  ;;  %v2641_v44 = vadd.f32 1e-05, %v2577_v39  ;;  %v2482_v35 = vmul.f32 0.0078125, %v2443_v16  ;;  %v4381_v2 = vpop.eup %4380  ;;  %v2515_v12 = vmul.f32 %v6313_v23, %v6313_v23 }
 0x454   : > { %v2445_v46 = vpop.xlane.xlu1 %2444  ;;  %v2809_v9 = vmax.f32 %v2777_v14, 0.0  ;;  %v2702_v59 = vmul.f32 %v4381_v2, %v2606_v50 }
 0x455   : > { %4386 = vrsqrt.f32 %v2641_v44  ;;  %v2546_v27 = vsub.f32 %v2482_v35, %v2514_v31  ;;  %v2483_v62 = vmul.f32 0.0078125, %v2445_v46  ;;  %v4383_v18 = vpop.eup %4382 }
 0x456   : > { %v2319_v51 = vpop.xlane.xlu0 %2318  ;;  %v2831_v43 = vpack.c.bf16 %v2809_v9, %v2808_v15  ;;  %v2703_v6 = vmul.f32 %v4383_v18, %v2607_v33  ;;  %v2740_v40 = vmul.f32 %v6143_v0, %v2702_v59  ;;  %v2610_v15 = vsub.f32 %v6087_v38, %v6307_v57 }
 0x457   : > { %v2578_v17 = vmax.f32 %v2546_v27, 0.0  ;;  %v2547_v13 = vsub.f32 %v2483_v62, %v2515_v12  ;;  %v6322_v53 = vmul.f32 0.0078125, %v2319_v51 }
 0x458   : > { %v2321_v7 = vpop.xlane.xlu1 %2320  ;;  %4047 = vmatmul.mubr.bf16.gmra.mrb[72].mxu1 %v2831_v43  ;;  %v2741_v11 = vmul.f32 %v6143_v0, %v2703_v6  ;;  %v2778_v3 = vadd.f32 %v6150_v42, %v2740_v40  ;;  %v2611_v43 = vsub.f32 %v6090_v49, %v6313_v23 }
 0x459   : > { %v2642_v52 = vadd.f32 1e-05, %v2578_v17  ;;  %v2579_v55 = vmax.f32 %v2547_v13, 0.0  ;;  %v6325_v37 = vmul.f32 0.0078125, %v2321_v7  ;;  %v2516_v19 = vmul.f32 %v6322_v53, %v6322_v53 }
 0x45a   : > { %v2447_v20 = vpop.xlane.xlu0 %2446  ;;  %v2779_v63 = vadd.f32 %v6150_v42, %v2741_v11  ;;  %v2810_v22 = vmax.f32 %v2778_v3, 0.0 }
 0x45b   : > { %4388 = vrsqrt.f32 %v2642_v52  ;;  %v2643_v25 = vadd.f32 1e-05, %v2579_v55  ;;  %v2484_v29 = vmul.f32 0.0078125, %v2447_v20  ;;  %v2517_v45 = vmul.f32 %v6325_v37, %v6325_v37 }
 0x45c   : > { %v2449_v60 = vpop.xlane.xlu1 %2448  ;;  %v2811_v58 = vmax.f32 %v2779_v63, 0.0 }
 0x45d   : > { %v4385_v56 = vpop.eup %4384  ;;  %4390 = vrsqrt.f32 %v2643_v25  ;;  %v2548_v48 = vsub.f32 %v2484_v29, %v2516_v19  ;;  %v2485_v26 = vmul.f32 0.0078125, %v2449_v60 }
 0x45e   : > { %v2323_v1 = vpop.xlane.xlu0 %2322  ;;  %v2704_v28 = vmul.f32 %v4385_v56, %v2608_v47  ;;  %v2832_v50 = vpack.c.bf16 %v2811_v58, %v2810_v22 }
 0x45f   : > { %v4387_v54 = vpop.eup %4386  ;;  %v2580_v32 = vmax.f32 %v2548_v48, 0.0  ;;  %v2549_v5 = vsub.f32 %v2485_v26, %v2517_v45  ;;  %v6338_v30 = vmul.f32 0.0078125, %v2323_v1  ;;  %v2612_v45 = vsub.f32 %v6099_v8, %v6322_v53 }
 0x460   : > { %v2325_v39 = vpop.xlane.xlu1 %2324  ;;  %v2705_v16 = vmul.f32 %v4387_v54, %v2609_v21  ;;  %v2742_v14 = vmul.f32 %v6143_v0, %v2704_v28  ;;  %4050 = vmatprep.mubr.bf16.mxu1 %v2832_v50  ;;  %v2613_v28 = vsub.f32 %v6102_v61, %v6325_v37 }
 0x461   : > { %v2644_v44 = vadd.f32 1e-05, %v2580_v32  ;;  %v2581_v31 = vmax.f32 %v2549_v5, 0.0  ;;  %v6341_v35 = vmul.f32 0.0078125, %v2325_v39  ;;  %v2518_v12 = vmul.f32 %v6338_v30, %v6338_v30 }
 0x462   : > { %v2451_v41 = vpop.xlane.xlu0 %2450  ;;  %v2743_v24 = vmul.f32 %v6143_v0, %v2705_v16  ;;  %v2780_v2 = vadd.f32 %v6150_v42, %v2742_v14  ;;  %v2614_v61 = vsub.f32 %v6111_v10, %v6338_v30 }
 0x463   : > { %4392 = vrsqrt.f32 %v2644_v44  ;;  %v2645_v33 = vadd.f32 1e-05, %v2581_v31  ;;  %v2486_v46 = vmul.f32 0.0078125, %v2451_v41  ;;  %v2519_v59 = vmul.f32 %v6341_v35, %v6341_v35 }
 0x464   : > { %v2453_v9 = vpop.xlane.xlu1 %2452  ;;  %v2781_v27 = vadd.f32 %v6150_v42, %v2743_v24  ;;  %v2812_v13 = vmax.f32 %v2780_v2, 0.0 }
 0x465   : > { %v4389_v62 = vpop.eup %4388  ;;  %4394 = vrsqrt.f32 %v2645_v33  ;;  %v2550_v18 = vsub.f32 %v2486_v46, %v2518_v12  ;;  %v2487_v51 = vmul.f32 0.0078125, %v2453_v9  ;;  %v2615_v12 = vsub.f32 %v6114_v36, %v6341_v35 }
 0x466   : > { %v2327_v17 = vpop.xlane.xlu0 %2326  ;;  %v2813_v6 = vmax.f32 %v2781_v27, 0.0  ;;  %v2706_v7 = vmul.f32 %v4389_v62, %v2610_v15 }
 0x467   : > { %v4391_v40 = vpop.eup %4390  ;;  %v2582_v52 = vmax.f32 %v2550_v18, 0.0  ;;  %v2551_v38 = vsub.f32 %v2487_v51, %v2519_v59  ;;  %v6354_v57 = vmul.f32 0.0078125, %v2327_v17 }
 0x468   : > { %v2329_v55 = vpop.xlane.xlu1 %2328  ;;  %v2833_v20 = vpack.c.bf16 %v2813_v6, %v2812_v13  ;;  %v2707_v11 = vmul.f32 %v4391_v40, %v2611_v43  ;;  %v2744_v3 = vmul.f32 %v6143_v0, %v2706_v7 }
 0x469   : > { %v2646_v25 = vadd.f32 1e-05, %v2582_v52  ;;  %v2583_v19 = vmax.f32 %v2551_v38, 0.0  ;;  %v2361_v29 = vmul.f32 0.0078125, %v2329_v55  ;;  %v2520_v63 = vmul.f32 %v6354_v57, %v6354_v57 }
 0x46a   : > { %4051 = vmatmul.mubr.bf16.gmra.mrb[76].mxu1 %v2833_v20  ;;  %v2455_v47 = vpop.xlane.xlu0 %2454  ;;  %v2745_v49 = vmul.f32 %v6143_v0, %v2707_v11  ;;  %v2782_v23 = vadd.f32 %v6150_v42, %v2744_v3  ;;  %v2616_v30 = vsub.f32 %v6123_v4, %v6354_v57 }
 0x46b   : > { %4396 = vrsqrt.f32 %v2646_v25  ;;  %v2647_v60 = vadd.f32 1e-05, %v2583_v19  ;;  %v2488_v56 = vmul.f32 0.0078125, %v2455_v47  ;;  %v2521_v1 = vmul.f32 %v2361_v29, %v2361_v29 }
 0x46c   : > { %v2457_v48 = vpop.xlane.xlu1 %2456  ;;  %v2783_v26 = vadd.f32 %v6150_v42, %v2745_v49  ;;  %v2814_v54 = vmax.f32 %v2782_v23, 0.0  ;;  %v2617_v36 = vsub.f32 %v6126_v34, %v2361_v29  ;;  %v6388_v34 = vld [vmem:[%s7118_s16] ss:$0 sm:$0xff] }
 0x46d   : > { %v4393_v21 = vpop.eup %4392  ;;  %4398 = vrsqrt.f32 %v2647_v60  ;;  %v2552_v22 = vsub.f32 %v2488_v56, %v2520_v63  ;;  %v2489_v58 = vmul.f32 0.0078125, %v2457_v48 }
 0x46e   : > { %v2815_v32 = vmax.f32 %v2783_v26, 0.0  ;;  %v2708_v5 = vmul.f32 %v4393_v21, %v2612_v45 }
 0x46f   : > { %v4395_v39 = vpop.eup %4394  ;;  %v2584_v50 = vmax.f32 %v2552_v22, 0.0  ;;  %v2553_v16 = vsub.f32 %v2489_v58, %v2521_v1 }
 0x470   : > { %v2834_v14 = vpack.c.bf16 %v2815_v32, %v2814_v54  ;;  %v2709_v44 = vmul.f32 %v4395_v39, %v2613_v28  ;;  %v2746_v8 = vmul.f32 %v6143_v0, %v2708_v5 }
 0x471   : > { %v2648_v53 = vadd.f32 1e-05, %v2584_v50  ;;  %v2585_v31 = vmax.f32 %v2553_v16, 0.0 }
 0x472   : > { %4054 = vmatprep.mubr.bf16.mxu1 %v2834_v14  ;;  %v2747_v41 = vmul.f32 %v6143_v0, %v2709_v44  ;;  %v2784_v24 = vadd.f32 %v6150_v42, %v2746_v8 }
 0x473   : > { %4400 = vrsqrt.f32 %v2648_v53  ;;  %v2649_v2 = vadd.f32 1e-05, %v2585_v31 }
 0x474   : > { %v2785_v37 = vadd.f32 %v6150_v42, %v2747_v41  ;;  %v2816_v46 = vmax.f32 %v2784_v24, 0.0 }
 0x475   : > { %v4397_v33 = vpop.eup %4396  ;;  %4402 = vrsqrt.f32 %v2649_v2 }
 0x476   : > { %v2817_v15 = vmax.f32 %v2785_v37, 0.0  ;;  %v2710_v9 = vmul.f32 %v4397_v33, %v2614_v61 }
 0x477   : > { %v4399_v27 = vpop.eup %4398 }
 0x478   : > { %v2835_v62 = vpack.c.bf16 %v2817_v15, %v2816_v46  ;;  %v2711_v59 = vmul.f32 %v4399_v27, %v2615_v12  ;;  %v2748_v18 = vmul.f32 %v6143_v0, %v2710_v9 }
 0x47a   : > { %4055 = vmatmul.mubr.bf16.gmra.mrb[80].mxu1 %v2835_v62  ;;  %v2749_v51 = vmul.f32 %v6143_v0, %v2711_v59  ;;  %v2786_v10 = vadd.f32 %v6150_v42, %v2748_v18 }
 0x47c   : > { %v2787_v43 = vadd.f32 %v6150_v42, %v2749_v51  ;;  %v2818_v35 = vmax.f32 %v2786_v10, 0.0 }
 0x47d   : > { %v4401_v17 = vpop.eup %4400 }
 0x47e   : > { %v2819_v13 = vmax.f32 %v2787_v43, 0.0  ;;  %v2712_v6 = vmul.f32 %v4401_v17, %v2616_v30 }
 0x47f   : > { %v4403_v7 = vpop.eup %4402 }
 0x480   : > { %v2836_v40 = vpack.c.bf16 %v2819_v13, %v2818_v35  ;;  %v2713_v52 = vmul.f32 %v4403_v7, %v2617_v36  ;;  %v2750_v38 = vmul.f32 %v6143_v0, %v2712_v6 }
 0x482   : > { %4058 = vmatprep.mubr.bf16.mxu1 %v2836_v40  ;;  %v2751_v55 = vmul.f32 %v6143_v0, %v2713_v52  ;;  %v2788_v20 = vadd.f32 %v6150_v42, %v2750_v38 }
 0x484   : > { %v2789_v4 = vadd.f32 %v6150_v42, %v2751_v55  ;;  %v2820_v57 = vmax.f32 %v2788_v20, 0.0 }
 0x486   : > { %v2821_v11 = vmax.f32 %v2789_v4, 0.0 }
 0x488   : > { %v2837_v3 = vpack.c.bf16 %v2821_v11, %v2820_v57 }
 0x48a   : > { %4059 = vmatmul.mubr.bf16.gmra.mrb[84].mxu1 %v2837_v3 }
 0x4e6   : > { %v4032_v25 = vpop.f32.mrb[56].mxu1 }
 0x4e7   : > { %v6391_v19 = vadd.f32 %v4032_v25, %v6388_v34  ;;  %v2943_v29 = vpop.f32.mrb[57].mxu1 }
 0x4e8   : > { %v4033_v47 = vpop.f32.mrb[58].mxu1  ;;  %v6398_v49 = vadd.f32 %v6388_v34, %v2943_v29 }
 0x4e9   : > { %v6394_v0 = vadd.f32 %v4033_v47, %v6388_v34  ;;  %3076 = vadd.xlane.f32.xlu0 %v6391_v19  ;;  %v2946_v42 = vpop.f32.mrb[59].mxu1  ;;  %v3170_v60 = vmul.f32 %v6391_v19, %v6391_v19 }
 0x4ea   : > { %v6402_v23 = vadd.f32 %v6388_v34, %v2946_v42  ;;  %v3168_v56 = vmul.f32 %v6398_v49, %v6398_v49 }
 0x4eb   : > { %3078 = vadd.xlane.f32.xlu1 %v6394_v0  ;;  %v3171_v63 = vmul.f32 %v6394_v0, %v6394_v0 }
 0x4ec   : > { %v3169_v45 = vmul.f32 %v6402_v23, %v6402_v23 }
 0x4ed   : > { %3072 = vadd.xlane.f32.xlu0 %v6398_v49 }
 0x4ef   : > { %3074 = vadd.xlane.f32.xlu1 %v6402_v23 }
 0x4f1   : > { %3204 = vadd.xlane.f32.xlu0 %v3170_v60 }
 0x4f3   : > { %3206 = vadd.xlane.f32.xlu1 %v3171_v63 }
 0x4f5   : > { %3200 = vadd.xlane.f32.xlu0 %v3168_v56 }
 0x4f6   : > { %v4036_v48 = vpop.f32.mrb[60].mxu1 }
 0x4f7   : > { %v6415_v26 = vadd.f32 %v4036_v48, %v6388_v34  ;;  %3202 = vadd.xlane.f32.xlu1 %v3169_v45  ;;  %v2959_v21 = vpop.f32.mrb[61].mxu1 }
 0x4f8   : > { %v4037_v1 = vpop.f32.mrb[62].mxu1  ;;  %v6422_v28 = vadd.f32 %v6388_v34, %v2959_v21 }
 0x4f9   : > { %v6418_v22 = vadd.f32 %v4037_v1, %v6388_v34  ;;  %3084 = vadd.xlane.f32.xlu0 %v6415_v26  ;;  %v2962_v58 = vpop.f32.mrb[63].mxu1  ;;  %v3174_v32 = vmul.f32 %v6415_v26, %v6415_v26 }
 0x4fa   : > { %v6426_v54 = vadd.f32 %v6388_v34, %v2962_v58  ;;  %v3172_v39 = vmul.f32 %v6422_v28, %v6422_v28 }
 0x4fb   : > { %3086 = vadd.xlane.f32.xlu1 %v6418_v22  ;;  %v3175_v5 = vmul.f32 %v6418_v22, %v6418_v22 }
 0x4fc   : > { %v3173_v50 = vmul.f32 %v6426_v54, %v6426_v54 }
 0x4fd   : > { %3080 = vadd.xlane.f32.xlu0 %v6422_v28 }
 0x4ff   : > { %3082 = vadd.xlane.f32.xlu1 %v6426_v54 }
 0x501   : > { %3212 = vadd.xlane.f32.xlu0 %v3174_v32 }
 0x503   : > { %3214 = vadd.xlane.f32.xlu1 %v3175_v5 }
 0x505   : > { %3208 = vadd.xlane.f32.xlu0 %v3172_v39 }
 0x507   : > { %3210 = vadd.xlane.f32.xlu1 %v3173_v50 }
 0x508   : > { %v4040_v16 = vpop.f32.mrb[64].mxu1 }
 0x509   : > { %v6439_v14 = vadd.f32 %v4040_v16, %v6388_v34  ;;  %v2975_v44 = vpop.f32.mrb[65].mxu1 }
 0x50a   : > { %v4041_v8 = vpop.f32.mrb[66].mxu1  ;;  %v6446_v41 = vadd.f32 %v6388_v34, %v2975_v44 }
 0x50b   : > { %v6442_v53 = vadd.f32 %v4041_v8, %v6388_v34  ;;  %3092 = vadd.xlane.f32.xlu0 %v6439_v14  ;;  %v2978_v31 = vpop.f32.mrb[67].mxu1  ;;  %v3178_v2 = vmul.f32 %v6439_v14, %v6439_v14 }
 0x50c   : > { %v6450_v24 = vadd.f32 %v6388_v34, %v2978_v31  ;;  %v3176_v37 = vmul.f32 %v6446_v41, %v6446_v41 }
 0x50d   : > { %3094 = vadd.xlane.f32.xlu1 %v6442_v53  ;;  %v3179_v61 = vmul.f32 %v6442_v53, %v6442_v53 }
 0x50e   : > { %v3177_v33 = vmul.f32 %v6450_v24, %v6450_v24 }
 0x50f   : > { %3088 = vadd.xlane.f32.xlu0 %v6446_v41 }
 0x511   : > { %3090 = vadd.xlane.f32.xlu1 %v6450_v24 }
 0x513   : > { %3220 = vadd.xlane.f32.xlu0 %v3178_v2 }
 0x515   : > { %3222 = vadd.xlane.f32.xlu1 %v3179_v61 }
 0x517   : > { %3216 = vadd.xlane.f32.xlu0 %v3176_v37 }
 0x518   : > { %v4044_v12 = vpop.f32.mrb[68].mxu1 }
 0x519   : > { %v6463_v46 = vadd.f32 %v4044_v12, %v6388_v34  ;;  %3218 = vadd.xlane.f32.xlu1 %v3177_v33  ;;  %v2991_v15 = vpop.f32.mrb[69].mxu1 }
 0x51a   : > { %v4045_v9 = vpop.f32.mrb[70].mxu1  ;;  %v6470_v59 = vadd.f32 %v6388_v34, %v2991_v15 }
 0x51b   : > { %v6466_v27 = vadd.f32 %v4045_v9, %v6388_v34  ;;  %3100 = vadd.xlane.f32.xlu0 %v6463_v46  ;;  %v2994_v62 = vpop.f32.mrb[71].mxu1  ;;  %v3182_v51 = vmul.f32 %v6463_v46, %v6463_v46 }
 0x51c   : > { %v6474_v18 = vadd.f32 %v6388_v34, %v2994_v62  ;;  %v3180_v30 = vmul.f32 %v6470_v59, %v6470_v59 }
 0x51d   : > { %3102 = vadd.xlane.f32.xlu1 %v6466_v27  ;;  %v3183_v10 = vmul.f32 %v6466_v27, %v6466_v27 }
 0x51e   : > { %v3181_v43 = vmul.f32 %v6474_v18, %v6474_v18 }
 0x51f   : > { %3096 = vadd.xlane.f32.xlu0 %v6470_v59 }
 0x521   : > { %3098 = vadd.xlane.f32.xlu1 %v6474_v18 }
 0x523   : > { %3228 = vadd.xlane.f32.xlu0 %v3182_v51 }
 0x525   : > { %3230 = vadd.xlane.f32.xlu1 %v3183_v10 }
 0x527   : > { %3224 = vadd.xlane.f32.xlu0 %v3180_v30 }
 0x529   : > { %3226 = vadd.xlane.f32.xlu1 %v3181_v43 }
 0x52b   : > { %v4048_v17 = vpop.f32.mrb[72].mxu1 }
 0x52c   : > { %v6487_v36 = vadd.f32 %v4048_v17, %v6388_v34  ;;  %v3007_v35 = vpop.f32.mrb[73].mxu1 }
 0x52d   : > { %v4049_v13 = vpop.f32.mrb[74].mxu1  ;;  %v6494_v40 = vadd.f32 %v6388_v34, %v3007_v35 }
 0x52e   : > { %v6490_v6 = vadd.f32 %v4049_v13, %v6388_v34  ;;  %3108 = vadd.xlane.f32.xlu0 %v6487_v36  ;;  %v3010_v7 = vpop.f32.mrb[75].mxu1  ;;  %v3186_v38 = vmul.f32 %v6487_v36, %v6487_v36 }
 0x52f   : > { %v6498_v52 = vadd.f32 %v6388_v34, %v3010_v7  ;;  %v3184_v20 = vmul.f32 %v6494_v40, %v6494_v40 }
 0x530   : > { %3110 = vadd.xlane.f32.xlu1 %v6490_v6  ;;  %v3187_v55 = vmul.f32 %v6490_v6, %v6490_v6 }
 0x531   : > { %v3185_v4 = vmul.f32 %v6498_v52, %v6498_v52 }
 0x532   : > { %3104 = vadd.xlane.f32.xlu0 %v6494_v40 }
 0x534   : > { %3106 = vadd.xlane.f32.xlu1 %v6498_v52 }
 0x536   : > { %3236 = vadd.xlane.f32.xlu0 %v3186_v38 }
 0x538   : > { %3238 = vadd.xlane.f32.xlu1 %v3187_v55 }
 0x53a   : > { %3232 = vadd.xlane.f32.xlu0 %v3184_v20 }
 0x53c   : > { %3234 = vadd.xlane.f32.xlu1 %v3185_v4 }
 0x53d   : > { %v4052_v57 = vpop.f32.mrb[76].mxu1 }
 0x53e   : > { %v6511_v11 = vadd.f32 %v4052_v57, %v6388_v34  ;;  %v3023_v3 = vpop.f32.mrb[77].mxu1 }
 0x53f   : > { %v4053_v25 = vpop.f32.mrb[78].mxu1  ;;  %v6518_v42 = vadd.f32 %v6388_v34, %v3023_v3 }
 0x540   : > { %v6514_v29 = vadd.f32 %v4053_v25, %v6388_v34  ;;  %3116 = vadd.xlane.f32.xlu0 %v6511_v11  ;;  %v3026_v47 = vpop.f32.mrb[79].mxu1  ;;  %v3190_v63 = vmul.f32 %v6511_v11, %v6511_v11 }
 0x541   : > { %v6522_v60 = vadd.f32 %v6388_v34, %v3026_v47  ;;  %v3188_v45 = vmul.f32 %v6518_v42, %v6518_v42 }
 0x542   : > { %3118 = vadd.xlane.f32.xlu1 %v6514_v29  ;;  %v3191_v56 = vmul.f32 %v6514_v29, %v6514_v29 }
 0x543   : > { %v3189_v48 = vmul.f32 %v6522_v60, %v6522_v60 }
 0x544   : > { %3112 = vadd.xlane.f32.xlu0 %v6518_v42 }
 0x546   : > { %3114 = vadd.xlane.f32.xlu1 %v6522_v60 }
 0x548   : > { %3244 = vadd.xlane.f32.xlu0 %v3190_v63 }
 0x54a   : > { %3246 = vadd.xlane.f32.xlu1 %v3191_v56 }
 0x54c   : > { %3240 = vadd.xlane.f32.xlu0 %v3188_v45 }
 0x54d   : > { %v4056_v21 = vpop.f32.mrb[80].mxu1 }
 0x54e   : > { %v6535_v1 = vadd.f32 %v4056_v21, %v6388_v34  ;;  %3242 = vadd.xlane.f32.xlu1 %v3189_v48  ;;  %v3039_v58 = vpop.f32.mrb[81].mxu1 }
 0x54f   : > { %v4057_v32 = vpop.f32.mrb[82].mxu1  ;;  %v6542_v50 = vadd.f32 %v6388_v34, %v3039_v58 }
 0x550   : > { %v6538_v5 = vadd.f32 %v4057_v32, %v6388_v34  ;;  %3124 = vadd.xlane.f32.xlu0 %v6535_v1  ;;  %v3042_v39 = vpop.f32.mrb[83].mxu1  ;;  %v3194_v44 = vmul.f32 %v6535_v1, %v6535_v1 }
 0x551   : > { %v6546_v16 = vadd.f32 %v6388_v34, %v3042_v39  ;;  %v3192_v31 = vmul.f32 %v6542_v50, %v6542_v50 }
 0x552   : > { %3126 = vadd.xlane.f32.xlu1 %v6538_v5  ;;  %v3195_v8 = vmul.f32 %v6538_v5, %v6538_v5 }
 0x553   : > { %v3193_v2 = vmul.f32 %v6546_v16, %v6546_v16 }
 0x554   : > { %3120 = vadd.xlane.f32.xlu0 %v6542_v50 }
 0x556   : > { %3122 = vadd.xlane.f32.xlu1 %v6546_v16 }
 0x558   : > { %3252 = vadd.xlane.f32.xlu0 %v3194_v44 }
 0x55a   : > { %3254 = vadd.xlane.f32.xlu1 %v3195_v8 }
 0x55c   : > { %3248 = vadd.xlane.f32.xlu0 %v3192_v31 }
 0x55d   : > { %v4060_v61 = vpop.f32.mrb[84].mxu1 }
 0x55e   : > { %v6559_v37 = vadd.f32 %v4060_v61, %v6388_v34  ;;  %3250 = vadd.xlane.f32.xlu1 %v3193_v2  ;;  %v3055_v33 = vpop.f32.mrb[85].mxu1 }
 0x55f   : > { %v4061_v12 = vpop.f32.mrb[86].mxu1  ;;  %v6566_v62 = vadd.f32 %v6388_v34, %v3055_v33 }
 0x560   : > { %v6562_v15 = vadd.f32 %v4061_v12, %v6388_v34  ;;  %3132 = vadd.xlane.f32.xlu0 %v6559_v37  ;;  %v3058_v9 = vpop.f32.mrb[87].mxu1  ;;  %v3198_v43 = vmul.f32 %v6559_v37, %v6559_v37 }
 0x561   : > { %v6570_v51 = vadd.f32 %v6388_v34, %v3058_v9  ;;  %v3196_v10 = vmul.f32 %v6566_v62, %v6566_v62 }
 0x562   : > { %3134 = vadd.xlane.f32.xlu1 %v6562_v15  ;;  %v3199_v34 = vmul.f32 %v6562_v15, %v6562_v15 }
 0x563   : > { %v3197_v30 = vmul.f32 %v6570_v51, %v6570_v51 }
 0x564   : > { %3128 = vadd.xlane.f32.xlu0 %v6566_v62 }
 0x566   : > { %3130 = vadd.xlane.f32.xlu1 %v6570_v51 }
 0x568   : > { %3256 = vadd.xlane.f32.xlu0 %v3196_v10 }
 0x56a   : > { %3258 = vadd.xlane.f32.xlu1 %v3197_v30 }
 0x56c   : > { %3260 = vadd.xlane.f32.xlu0 %v3198_v43 }
 0x56e   : > { %3262 = vadd.xlane.f32.xlu1 %v3199_v34 }
 0x576   : > { %v3077_v17 = vpop.xlane.xlu0 %3076 }
 0x577   : > { %v3138_v7 = vmul.f32 0.0078125, %v3077_v17 }
 0x578   : > { %v3079_v35 = vpop.xlane.xlu1 %3078 }
 0x579   : > { %v3139_v55 = vmul.f32 0.0078125, %v3079_v35  ;;  %v3298_v4 = vmul.f32 %v3138_v7, %v3138_v7 }
 0x57a   : > { %v3073_v13 = vpop.xlane.xlu0 %3072 }
 0x57b   : > { %v6582_v57 = vmul.f32 0.0078125, %v3073_v13  ;;  %v3299_v63 = vmul.f32 %v3139_v55, %v3139_v55 }
 0x57c   : > { %v3075_v38 = vpop.xlane.xlu1 %3074 }
 0x57d   : > { %v6584_v25 = vmul.f32 0.0078125, %v3075_v38  ;;  %v3296_v21 = vmul.f32 %v6582_v57, %v6582_v57 }
 0x57e   : > { %v3205_v20 = vpop.xlane.xlu0 %3204 }
 0x57f   : > { %v3266_v3 = vmul.f32 0.0078125, %v3205_v20  ;;  %v3297_v44 = vmul.f32 %v6584_v25, %v6584_v25 }
 0x580   : > { %v3207_v47 = vpop.xlane.xlu1 %3206 }
 0x581   : > { %v3330_v56 = vsub.f32 %v3266_v3, %v3298_v4  ;;  %v3267_v45 = vmul.f32 0.0078125, %v3207_v47 }
 0x582   : > { %v3201_v48 = vpop.xlane.xlu0 %3200 }
 0x583   : > { %v3362_v58 = vmax.f32 %v3330_v56, 0.0  ;;  %v3331_v32 = vsub.f32 %v3267_v45, %v3299_v63  ;;  %v3264_v39 = vmul.f32 0.0078125, %v3201_v48  ;;  %v3394_v45 = vsub.f32 %v6391_v19, %v3138_v7  ;;  %v6612_v19 = vld [vmem:[%s7120_s15] ss:$0 sm:$0xff] }
 0x584   : > { %v3203_v8 = vpop.xlane.xlu1 %3202 }
 0x585   : > { %v3426_v31 = vadd.f32 1e-05, %v3362_v58  ;;  %v3363_v2 = vmax.f32 %v3331_v32, 0.0  ;;  %v3328_v61 = vsub.f32 %v3264_v39, %v3296_v21  ;;  %v3265_v33 = vmul.f32 0.0078125, %v3203_v8  ;;  %v6604_v32 = vld [vmem:[%s7119_s22] ss:$0 sm:$0xff] }
 0x586   : > { %v3085_v12 = vpop.xlane.xlu0 %3084 }
 0x587   : > { %4404 = vrsqrt.f32 %v3426_v31  ;;  %v3427_v9 = vadd.f32 1e-05, %v3363_v2  ;;  %v3360_v10 = vmax.f32 %v3328_v61, 0.0  ;;  %v3329_v30 = vsub.f32 %v3265_v33, %v3297_v44 }
 0x588   : > { %v3087_v43 = vpop.xlane.xlu1 %3086  ;;  %v6590_v38 = vmul.f32 0.0078125, %v3085_v12  ;;  %v3395_v31 = vsub.f32 %v6394_v0, %v3139_v55 }
 0x589   : > { %4406 = vrsqrt.f32 %v3427_v9  ;;  %v3424_v34 = vadd.f32 1e-05, %v3360_v10  ;;  %v3361_v17 = vmax.f32 %v3329_v30, 0.0  ;;  %v6592_v4 = vmul.f32 0.0078125, %v3087_v43 }
 0x58a   : > { %v3081_v35 = vpop.xlane.xlu0 %3080  ;;  %v3302_v47 = vmul.f32 %v6590_v38, %v6590_v38  ;;  %v3392_v30 = vsub.f32 %v6398_v49, %v6582_v57 }
 0x58b   : > { %4408 = vrsqrt.f32 %v3424_v34  ;;  %v3425_v13 = vadd.f32 1e-05, %v3361_v17  ;;  %v6596_v63 = vmul.f32 0.0078125, %v3081_v35  ;;  %v3303_v39 = vmul.f32 %v6592_v4, %v6592_v4 }
 0x58c   : > { %v3083_v20 = vpop.xlane.xlu1 %3082 }
 0x58d   : > { %4410 = vrsqrt.f32 %v3425_v13  ;;  %v6599_v48 = vmul.f32 0.0078125, %v3083_v20  ;;  %v3300_v7 = vmul.f32 %v6596_v63, %v6596_v63 }
 0x58e   : > { %v3213_v3 = vpop.xlane.xlu0 %3212 }
 0x58f   : > { %v3270_v56 = vmul.f32 0.0078125, %v3213_v3  ;;  %v3301_v55 = vmul.f32 %v6599_v48, %v6599_v48 }
 0x590   : > { %v3215_v21 = vpop.xlane.xlu1 %3214 }
 0x591   : > { %v4405_v58 = vpop.eup %4404  ;;  %v3334_v44 = vsub.f32 %v3270_v56, %v3302_v47  ;;  %v3271_v8 = vmul.f32 0.0078125, %v3215_v21  ;;  %v3393_v47 = vsub.f32 %v6402_v23, %v6584_v25 }
 0x592   : > { %v3490_v2 = vmul.f32 %v4405_v58, %v3394_v45  ;;  %v3209_v61 = vpop.xlane.xlu0 %3208 }
 0x593   : > { %v4407_v33 = vpop.eup %4406  ;;  %v3366_v12 = vmax.f32 %v3334_v44, 0.0  ;;  %v3335_v9 = vsub.f32 %v3271_v8, %v3303_v39  ;;  %v3268_v10 = vmul.f32 0.0078125, %v3209_v61 }
 0x594   : > { %v3528_v43 = vmul.f32 %v6604_v32, %v3490_v2  ;;  %v3491_v0 = vmul.f32 %v4407_v33, %v3395_v31  ;;  %v3211_v34 = vpop.xlane.xlu1 %3210 }
 0x595   : > { %v4409_v17 = vpop.eup %4408  ;;  %v3430_v35 = vadd.f32 1e-05, %v3366_v12  ;;  %v3367_v13 = vmax.f32 %v3335_v9, 0.0  ;;  %v3332_v20 = vsub.f32 %v3268_v10, %v3300_v7  ;;  %v3269_v3 = vmul.f32 0.0078125, %v3211_v34 }
 0x596   : > { %v3566_v56 = vadd.f32 %v6612_v19, %v3528_v43  ;;  %v3529_v49 = vmul.f32 %v6604_v32, %v3491_v0  ;;  %v3488_v57 = vmul.f32 %v4409_v17, %v3392_v30 }
 0x597   : > { %v4411_v21 = vpop.eup %4410  ;;  %4412 = vrsqrt.f32 %v3430_v35  ;;  %v3431_v58 = vadd.f32 1e-05, %v3367_v13  ;;  %v3364_v39 = vmax.f32 %v3332_v20, 0.0  ;;  %v3333_v44 = vsub.f32 %v3269_v3, %v3301_v55 }
 0x598   : > { %v3093_v45 = vpop.xlane.xlu0 %3092  ;;  %3598 = vst [vmem:[%s6627_s14 + $0x10] sm:$0xff] %v3566_v56  ;;  %v3567_v23 = vadd.f32 %v6612_v19, %v3529_v49  ;;  %v3526_v25 = vmul.f32 %v6604_v32, %v3488_v57  ;;  %v3489_v8 = vmul.f32 %v4411_v21, %v3393_v47  ;;  %v3398_v13 = vsub.f32 %v6415_v26, %v6590_v38 }
 0x599   : > { %4414 = vrsqrt.f32 %v3431_v58  ;;  %v3428_v2 = vadd.f32 1e-05, %v3364_v39  ;;  %v3365_v61 = vmax.f32 %v3333_v44, 0.0  ;;  %v6635_v10 = vmul.f32 0.0078125, %v3093_v45 }
 0x59a   : > { %v3095_v31 = vpop.xlane.xlu1 %3094  ;;  %3599 = vst [vmem:[%s6627_s14 + $0x18] sm:$0xff] %v3567_v23  ;;  %v3564_v33 = vadd.f32 %v6612_v19, %v3526_v25  ;;  %v3527_v7 = vmul.f32 %v6604_v32, %v3489_v8  ;;  %v3399_v45 = vsub.f32 %v6418_v22, %v6592_v4  ;;  %v3396_v25 = vsub.f32 %v6422_v28, %v6596_v63 }
 0x59b   : > { %4416 = vrsqrt.f32 %v3428_v2  ;;  %v3429_v9 = vadd.f32 1e-05, %v3365_v61  ;;  %v6639_v0 = vmul.f32 0.0078125, %v3095_v31  ;;  %v3306_v34 = vmul.f32 %v6635_v10, %v6635_v10 }
 0x59c   : > { %v3089_v12 = vpop.xlane.xlu0 %3088  ;;  %3596 = vst [vmem:[%s6627_s14] sm:$0xff] %v3564_v33  ;;  %v3565_v30 = vadd.f32 %v6612_v19, %v3527_v7 }
 0x59d   : > { %4418 = vrsqrt.f32 %v3429_v9  ;;  %v6644_v17 = vmul.f32 0.0078125, %v3089_v12  ;;  %v3307_v56 = vmul.f32 %v6639_v0, %v6639_v0  ;;  %v3397_v9 = vsub.f32 %v6426_v54, %v6599_v48 }
 0x59e   : > { %v3091_v43 = vpop.xlane.xlu1 %3090  ;;  %3597 = vst [vmem:[%s6627_s14 + $0x8] sm:$0xff] %v3565_v30 }
 0x59f   : > { %v6648_v20 = vmul.f32 0.0078125, %v3091_v43  ;;  %v3304_v44 = vmul.f32 %v6644_v17, %v6644_v17 }
 0x5a0   : > { %v3221_v55 = vpop.xlane.xlu0 %3220 }
 0x5a1   : > { %v3274_v35 = vmul.f32 0.0078125, %v3221_v55  ;;  %v4413_v47 = vpop.eup %4412  ;;  %v3305_v2 = vmul.f32 %v6648_v20, %v6648_v20 }
 0x5a2   : > { %v3223_v3 = vpop.xlane.xlu1 %3222  ;;  %v3494_v21 = vmul.f32 %v4413_v47, %v3398_v13 }
 0x5a3   : > { %v3338_v49 = vsub.f32 %v3274_v35, %v3306_v34  ;;  %v3275_v57 = vmul.f32 0.0078125, %v3223_v3  ;;  %v4415_v39 = vpop.eup %4414 }
 0x5a4   : > { %v3217_v58 = vpop.xlane.xlu0 %3216  ;;  %v3532_v8 = vmul.f32 %v6604_v32, %v3494_v21  ;;  %v3495_v31 = vmul.f32 %v4415_v39, %v3399_v45 }
 0x5a5   : > { %v3370_v23 = vmax.f32 %v3338_v49, 0.0  ;;  %v3339_v26 = vsub.f32 %v3275_v57, %v3307_v56  ;;  %v3272_v38 = vmul.f32 0.0078125, %v3217_v58  ;;  %v4417_v22 = vpop.eup %4416 }
 0x5a6   : > { %v3219_v61 = vpop.xlane.xlu1 %3218  ;;  %v3570_v30 = vadd.f32 %v6612_v19, %v3532_v8  ;;  %v3533_v28 = vmul.f32 %v6604_v32, %v3495_v31  ;;  %v3492_v63 = vmul.f32 %v4417_v22, %v3396_v25 }
 0x5a7   : > { %v3434_v4 = vadd.f32 1e-05, %v3370_v23  ;;  %v3371_v33 = vmax.f32 %v3339_v26, 0.0  ;;  %v3336_v7 = vsub.f32 %v3272_v38, %v3304_v44  ;;  %v3273_v12 = vmul.f32 0.0078125, %v3219_v61  ;;  %v4419_v55 = vpop.eup %4418 }
 0x5a8   : > { %v3101_v43 = vpop.xlane.xlu0 %3100  ;;  %3602 = vst [vmem:[%s6627_s14 + $0x30] sm:$0xff] %v3570_v30  ;;  %v3571_v3 = vadd.f32 %v6612_v19, %v3533_v28  ;;  %v3530_v47 = vmul.f32 %v6604_v32, %v3492_v63  ;;  %v3493_v56 = vmul.f32 %v4419_v55, %v3397_v9  ;;  %v3403_v9 = vsub.f32 %v6442_v53, %v6639_v0 }
 0x5a9   : > { %4420 = vrsqrt.f32 %v3434_v4  ;;  %v3435_v34 = vadd.f32 1e-05, %v3371_v33  ;;  %v3368_v35 = vmax.f32 %v3336_v7, 0.0  ;;  %v3337_v13 = vsub.f32 %v3273_v12, %v3305_v2 }
 0x5aa   : > { %v3103_v54 = vpop.xlane.xlu1 %3102  ;;  %3603 = vst [vmem:[%s6627_s14 + $0x38] sm:$0xff] %v3571_v3  ;;  %v3568_v57 = vadd.f32 %v6612_v19, %v3530_v47  ;;  %v3531_v45 = vmul.f32 %v6604_v32, %v3493_v56  ;;  %v6671_v39 = vmul.f32 0.0078125, %v3101_v43  ;;  %v3402_v2 = vsub.f32 %v6439_v14, %v6635_v10 }
 0x5ab   : > { %4422 = vrsqrt.f32 %v3435_v34  ;;  %v3432_v48 = vadd.f32 1e-05, %v3368_v35  ;;  %v3369_v49 = vmax.f32 %v3337_v13, 0.0  ;;  %v6675_v26 = vmul.f32 0.0078125, %v3103_v54 }
 0x5ac   : > { %v3097_v21 = vpop.xlane.xlu0 %3096  ;;  %3600 = vst [vmem:[%s6627_s14 + $0x20] sm:$0xff] %v3568_v57  ;;  %v3569_v44 = vadd.f32 %v6612_v19, %v3531_v45  ;;  %v3310_v25 = vmul.f32 %v6671_v39, %v6671_v39  ;;  %v3400_v34 = vsub.f32 %v6446_v41, %v6644_v17 }
 0x5ad   : > { %4424 = vrsqrt.f32 %v3432_v48  ;;  %v3433_v58 = vadd.f32 1e-05, %v3369_v49  ;;  %v6680_v8 = vmul.f32 0.0078125, %v3097_v21  ;;  %v3311_v33 = vmul.f32 %v6675_v26, %v6675_v26 }
 0x5ae   : > { %v3099_v23 = vpop.xlane.xlu1 %3098  ;;  %3601 = vst [vmem:[%s6627_s14 + $0x28] sm:$0xff] %v3569_v44  ;;  %v3401_v49 = vsub.f32 %v6450_v24, %v6648_v20 }
 0x5af   : > { %4426 = vrsqrt.f32 %v3433_v58  ;;  %v6684_v61 = vmul.f32 0.0078125, %v3099_v23  ;;  %v3308_v43 = vmul.f32 %v6680_v8, %v6680_v8 }
 0x5b0   : > { %v3229_v38 = vpop.xlane.xlu0 %3228 }
 0x5b1   : > { %v3278_v31 = vmul.f32 0.0078125, %v3229_v38  ;;  %v3309_v3 = vmul.f32 %v6684_v61, %v6684_v61 }
 0x5b2   : > { %v3231_v22 = vpop.xlane.xlu1 %3230 }
 0x5b3   : > { %v4421_v4 = vpop.eup %4420  ;;  %v3342_v7 = vsub.f32 %v3278_v31, %v3310_v25  ;;  %v3279_v12 = vmul.f32 0.0078125, %v3231_v22 }
 0x5b4   : > { %v3498_v30 = vmul.f32 %v4421_v4, %v3402_v2  ;;  %v3225_v28 = vpop.xlane.xlu0 %3224 }
 0x5b5   : > { %v4423_v63 = vpop.eup %4422  ;;  %v3374_v55 = vmax.f32 %v3342_v7, 0.0  ;;  %v3343_v14 = vsub.f32 %v3279_v12, %v3311_v33  ;;  %v3276_v10 = vmul.f32 0.0078125, %v3225_v28 }
 0x5b6   : > { %v3536_v35 = vmul.f32 %v6604_v32, %v3498_v30  ;;  %v3499_v13 = vmul.f32 %v4423_v63, %v3403_v9  ;;  %v3227_v53 = vpop.xlane.xlu1 %3226  ;;  %v3406_v63 = vsub.f32 %v6463_v46, %v6671_v39 }
 0x5b7   : > { %v4425_v0 = vpop.eup %4424  ;;  %v3438_v47 = vadd.f32 1e-05, %v3374_v55  ;;  %v3375_v56 = vmax.f32 %v3343_v14, 0.0  ;;  %v3340_v54 = vsub.f32 %v3276_v10, %v3308_v43  ;;  %v3277_v48 = vmul.f32 0.0078125, %v3227_v53 }
 0x5b8   : > { %v3574_v57 = vadd.f32 %v6612_v19, %v3536_v35  ;;  %v3537_v41 = vmul.f32 %v6604_v32, %v3499_v13  ;;  %v3496_v17 = vmul.f32 %v4425_v0, %v3400_v34  ;;  %v3407_v35 = vsub.f32 %v6466_v27, %v6675_v26 }
 0x5b9   : > { %v4427_v45 = vpop.eup %4426  ;;  %4428 = vrsqrt.f32 %v3438_v47  ;;  %v3439_v21 = vadd.f32 1e-05, %v3375_v56  ;;  %v3372_v58 = vmax.f32 %v3340_v54, 0.0  ;;  %v3341_v44 = vsub.f32 %v3277_v48, %v3309_v3 }
 0x5ba   : > { %3606 = vst [vmem:[%s6627_s14 + $0x50] sm:$0xff] %v3574_v57  ;;  %v3575_v23 = vadd.f32 %v6612_v19, %v3537_v41  ;;  %v3534_v38 = vmul.f32 %v6604_v32, %v3496_v17  ;;  %v3497_v25 = vmul.f32 %v4427_v45, %v3401_v49  ;;  %v3404_v56 = vsub.f32 %v6470_v59, %v6680_v8 }
 0x5bb   : > { %v3109_v24 = vpop.xlane.xlu0 %3108  ;;  %4430 = vrsqrt.f32 %v3439_v21  ;;  %v3436_v20 = vadd.f32 1e-05, %v3372_v58  ;;  %v3373_v31 = vmax.f32 %v3341_v44, 0.0  ;;  %v3405_v54 = vsub.f32 %v6474_v18, %v6684_v61 }
 0x5bc   : > { %3607 = vst [vmem:[%s6627_s14 + $0x58] sm:$0xff] %v3575_v23  ;;  %v3572_v2 = vadd.f32 %v6612_v19, %v3534_v38  ;;  %v3535_v22 = vmul.f32 %v6604_v32, %v3497_v25  ;;  %v6709_v9 = vmul.f32 0.0078125, %v3109_v24 }
 0x5bd   : > { %v3111_v4 = vpop.xlane.xlu1 %3110  ;;  %4432 = vrsqrt.f32 %v3436_v20  ;;  %v3437_v33 = vadd.f32 1e-05, %v3373_v31 }
 0x5be   : > { %3604 = vst [vmem:[%s6627_s14 + $0x40] sm:$0xff] %v3572_v2  ;;  %v3573_v7 = vadd.f32 %v6612_v19, %v3535_v22  ;;  %v6712_v28 = vmul.f32 0.0078125, %v3111_v4  ;;  %v3314_v14 = vmul.f32 %v6709_v9, %v6709_v9 }
 0x5bf   : > { %v3105_v12 = vpop.xlane.xlu0 %3104  ;;  %4434 = vrsqrt.f32 %v3437_v33 }
 0x5c0   : > { %3605 = vst [vmem:[%s6627_s14 + $0x48] sm:$0xff] %v3573_v7  ;;  %v6718_v10 = vmul.f32 0.0078125, %v3105_v12  ;;  %v3315_v47 = vmul.f32 %v6712_v28, %v6712_v28 }
 0x5c1   : > { %v3107_v30 = vpop.xlane.xlu1 %3106 }
 0x5c2   : > { %v6722_v3 = vmul.f32 0.0078125, %v3107_v30  ;;  %v3312_v57 = vmul.f32 %v6718_v10, %v6718_v10 }
 0x5c3   : > { %v3237_v43 = vpop.xlane.xlu0 %3236  ;;  %v4429_v55 = vpop.eup %4428 }
 0x5c4   : > { %v3282_v34 = vmul.f32 0.0078125, %v3237_v43  ;;  %v3502_v13 = vmul.f32 %v4429_v55, %v3406_v63  ;;  %v3313_v18 = vmul.f32 %v6722_v3, %v6722_v3 }
 0x5c5   : > { %v3239_v53 = vpop.xlane.xlu1 %3238  ;;  %v4431_v0 = vpop.eup %4430 }
 0x5c6   : > { %v3346_v46 = vsub.f32 %v3282_v34, %v3314_v14  ;;  %v3283_v39 = vmul.f32 0.0078125, %v3239_v53  ;;  %v3540_v48 = vmul.f32 %v6604_v32, %v3502_v13  ;;  %v3503_v49 = vmul.f32 %v4431_v0, %v3407_v35 }
 0x5c7   : > { %v3233_v27 = vpop.xlane.xlu0 %3232  ;;  %v4433_v26 = vpop.eup %4432  ;;  %v3410_v0 = vsub.f32 %v6487_v36, %v6709_v9 }
 0x5c8   : > { %v3378_v41 = vmax.f32 %v3346_v46, 0.0  ;;  %v3347_v17 = vsub.f32 %v3283_v39, %v3315_v47  ;;  %v3280_v45 = vmul.f32 0.0078125, %v3233_v27  ;;  %v3578_v21 = vadd.f32 %v6612_v19, %v3540_v48 }
 0x5c9   : > { %v3541_v58 = vmul.f32 %v6604_v32, %v3503_v49  ;;  %v3500_v59 = vmul.f32 %v4433_v26, %v3404_v56  ;;  %v3235_v8 = vpop.xlane.xlu1 %3234  ;;  %v4435_v61 = vpop.eup %4434  ;;  %v3411_v48 = vsub.f32 %v6490_v6, %v6712_v28 }
 0x5ca   : > { %v3442_v44 = vadd.f32 1e-05, %v3378_v41  ;;  %v3379_v23 = vmax.f32 %v3347_v17, 0.0  ;;  %v3344_v38 = vsub.f32 %v3280_v45, %v3312_v57  ;;  %v3281_v25 = vmul.f32 0.0078125, %v3235_v8  ;;  %3610 = vst [vmem:[%s6627_s14 + $0x70] sm:$0xff] %v3578_v21 }
 0x5cb   : > { %v3579_v24 = vadd.f32 %v6612_v19, %v3541_v58  ;;  %v3538_v20 = vmul.f32 %v6604_v32, %v3500_v59  ;;  %v3501_v31 = vmul.f32 %v4435_v61, %v3405_v54  ;;  %v3408_v17 = vsub.f32 %v6494_v40, %v6718_v10 }
 0x5cc   : > { %4436 = vrsqrt.f32 %v3442_v44  ;;  %v3443_v2 = vadd.f32 1e-05, %v3379_v23  ;;  %v3376_v22 = vmax.f32 %v3344_v38, 0.0  ;;  %v3345_v4 = vsub.f32 %v3281_v25, %v3313_v18 }
 0x5cd   : > { %3611 = vst [vmem:[%s6627_s14 + $0x78] sm:$0xff] %v3579_v24  ;;  %v3576_v33 = vadd.f32 %v6612_v19, %v3538_v20  ;;  %v3539_v7 = vmul.f32 %v6604_v32, %v3501_v31  ;;  %v3117_v12 = vpop.xlane.xlu0 %3116  ;;  %v3409_v45 = vsub.f32 %v6498_v52, %v6722_v3 }
 0x5ce   : > { %4438 = vrsqrt.f32 %v3443_v2  ;;  %v3440_v30 = vadd.f32 1e-05, %v3376_v22  ;;  %v3377_v63 = vmax.f32 %v3345_v4, 0.0  ;;  %v6746_v35 = vmul.f32 0.0078125, %v3117_v12 }
 0x5cf   : > { %3608 = vst [vmem:[%s6627_s14 + $0x60] sm:$0xff] %v3576_v33  ;;  %v3577_v43 = vadd.f32 %v6612_v19, %v3539_v7  ;;  %v3119_v55 = vpop.xlane.xlu1 %3118 }
 0x5d0   : > { %4440 = vrsqrt.f32 %v3440_v30  ;;  %v3441_v14 = vadd.f32 1e-05, %v3377_v63  ;;  %v6748_v53 = vmul.f32 0.0078125, %v3119_v55  ;;  %v3318_v39 = vmul.f32 %v6746_v35, %v6746_v35 }
 0x5d1   : > { %3609 = vst [vmem:[%s6627_s14 + $0x68] sm:$0xff] %v3577_v43  ;;  %v3113_v34 = vpop.xlane.xlu0 %3112 }
 0x5d2   : > { %4442 = vrsqrt.f32 %v3441_v14  ;;  %v6754_v56 = vmul.f32 0.0078125, %v3113_v34  ;;  %v3319_v41 = vmul.f32 %v6748_v53, %v6748_v53 }
 0x5d3   : > { %v3115_v13 = vpop.xlane.xlu1 %3114 }
 0x5d4   : > { %v6758_v27 = vmul.f32 0.0078125, %v3115_v13  ;;  %v3316_v59 = vmul.f32 %v6754_v56, %v6754_v56 }
 0x5d5   : > { %v3245_v47 = vpop.xlane.xlu0 %3244 }
 0x5d6   : > { %v4437_v46 = vpop.eup %4436  ;;  %v3286_v54 = vmul.f32 0.0078125, %v3245_v47  ;;  %v3317_v52 = vmul.f32 %v6758_v27, %v6758_v27 }
 0x5d7   : > { %v3506_v49 = vmul.f32 %v4437_v46, %v3410_v0  ;;  %v3247_v26 = vpop.xlane.xlu1 %3246 }
 0x5d8   : > { %v4439_v57 = vpop.eup %4438  ;;  %v3350_v36 = vsub.f32 %v3286_v54, %v3318_v39  ;;  %v3287_v9 = vmul.f32 0.0078125, %v3247_v26 }
 0x5d9   : > { %v3544_v21 = vmul.f32 %v6604_v32, %v3506_v49  ;;  %v3507_v58 = vmul.f32 %v4439_v57, %v3411_v48  ;;  %v3241_v6 = vpop.xlane.xlu0 %3240  ;;  %v3414_v57 = vsub.f32 %v6511_v11, %v6746_v35 }
 0x5da   : > { %v4441_v28 = vpop.eup %4440  ;;  %v3382_v18 = vmax.f32 %v3350_v36, 0.0  ;;  %v3351_v8 = vsub.f32 %v3287_v9, %v3319_v41  ;;  %v3284_v61 = vmul.f32 0.0078125, %v3241_v6 }
 0x5db   : > { %v3582_v44 = vadd.f32 %v6612_v19, %v3544_v21  ;;  %v3545_v23 = vmul.f32 %v6604_v32, %v3507_v58  ;;  %v3504_v40 = vmul.f32 %v4441_v28, %v3408_v17  ;;  %v3243_v10 = vpop.xlane.xlu1 %3242  ;;  %v3415_v58 = vsub.f32 %v6514_v29, %v6748_v53 }
 0x5dc   : > { %v4443_v3 = vpop.eup %4442  ;;  %v3446_v38 = vadd.f32 1e-05, %v3382_v18  ;;  %v3383_v25 = vmax.f32 %v3351_v8, 0.0  ;;  %v3348_v24 = vsub.f32 %v3284_v61, %v3316_v59  ;;  %v3285_v20 = vmul.f32 0.0078125, %v3243_v10 }
 0x5dd   : > { %3614 = vst [vmem:[%s6627_s14 + $0x90] sm:$0xff] %v3582_v44  ;;  %v3583_v31 = vadd.f32 %v6612_v19, %v3545_v23  ;;  %v3542_v2 = vmul.f32 %v6604_v32, %v3504_v40  ;;  %v3505_v22 = vmul.f32 %v4443_v3, %v3409_v45  ;;  %v3125_v4 = vpop.xlane.xlu0 %3124  ;;  %v3412_v61 = vsub.f32 %v6518_v42, %v6754_v56 }
 0x5de   : > { %4444 = vrsqrt.f32 %v3446_v38  ;;  %v3447_v33 = vadd.f32 1e-05, %v3383_v25  ;;  %v3380_v7 = vmax.f32 %v3348_v24, 0.0  ;;  %v3349_v12 = vsub.f32 %v3285_v20, %v3317_v52 }
 0x5df   : > { %3615 = vst [vmem:[%s6627_s14 + $0x98] sm:$0xff] %v3583_v31  ;;  %v3580_v30 = vadd.f32 %v6612_v19, %v3542_v2  ;;  %v3543_v63 = vmul.f32 %v6604_v32, %v3505_v22  ;;  %v3127_v43 = vpop.xlane.xlu1 %3126  ;;  %v6781_v47 = vmul.f32 0.0078125, %v3125_v4  ;;  %v3413_v25 = vsub.f32 %v6522_v60, %v6758_v27 }
 0x5e0   : > { %4446 = vrsqrt.f32 %v3447_v33  ;;  %v3444_v55 = vadd.f32 1e-05, %v3380_v7  ;;  %v3381_v14 = vmax.f32 %v3349_v12, 0.0  ;;  %v6784_v39 = vmul.f32 0.0078125, %v3127_v43 }
 0x5e1   : > { %3612 = vst [vmem:[%s6627_s14 + $0x80] sm:$0xff] %v3580_v30  ;;  %v3581_v34 = vadd.f32 %v6612_v19, %v3543_v63  ;;  %v3121_v13 = vpop.xlane.xlu0 %3120  ;;  %v3322_v48 = vmul.f32 %v6781_v47, %v6781_v47 }
 0x5e2   : > { %4448 = vrsqrt.f32 %v3444_v55  ;;  %v3445_v0 = vadd.f32 1e-05, %v3381_v14  ;;  %v6788_v49 = vmul.f32 0.0078125, %v3121_v13  ;;  %v3323_v17 = vmul.f32 %v6784_v39, %v6784_v39 }
 0x5e3   : > { %3613 = vst [vmem:[%s6627_s14 + $0x88] sm:$0xff] %v3581_v34  ;;  %v3123_v46 = vpop.xlane.xlu1 %3122 }
 0x5e4   : > { %4450 = vrsqrt.f32 %v3445_v0  ;;  %v6792_v41 = vmul.f32 0.0078125, %v3123_v46  ;;  %v3320_v18 = vmul.f32 %v6788_v49, %v6788_v49 }
 0x5e5   : > { %v3253_v54 = vpop.xlane.xlu0 %3252 }
 0x5e6   : > { %v3290_v26 = vmul.f32 0.0078125, %v3253_v54  ;;  %v3321_v40 = vmul.f32 %v6792_v41, %v6792_v41 }
 0x5e7   : > { %v3255_v36 = vpop.xlane.xlu1 %3254 }
 0x5e8   : > { %v4445_v9 = vpop.eup %4444  ;;  %v3354_v45 = vsub.f32 %v3290_v26, %v3322_v48  ;;  %v3291_v21 = vmul.f32 0.0078125, %v3255_v36  ;;  %v3418_v36 = vsub.f32 %v6535_v1, %v6781_v47 }
 0x5e9   : > { %v3510_v6 = vmul.f32 %v4445_v9, %v3414_v57  ;;  %v3249_v28 = vpop.xlane.xlu0 %3248 }
 0x5ea   : > { %v4447_v59 = vpop.eup %4446  ;;  %v3386_v8 = vmax.f32 %v3354_v45, 0.0  ;;  %v3355_v11 = vsub.f32 %v3291_v21, %v3323_v17  ;;  %v3288_v35 = vmul.f32 0.0078125, %v3249_v28  ;;  %v3419_v28 = vsub.f32 %v6538_v5, %v6784_v39 }
 0x5eb   : > { %v3548_v44 = vmul.f32 %v6604_v32, %v3510_v6  ;;  %v3511_v23 = vmul.f32 %v4447_v59, %v3415_v58  ;;  %v3251_v52 = vpop.xlane.xlu1 %3250 }
 0x5ec   : > { %v4449_v29 = vpop.eup %4448  ;;  %v3450_v53 = vadd.f32 1e-05, %v3386_v8  ;;  %v3387_v10 = vmax.f32 %v3355_v11, 0.0  ;;  %v3352_v3 = vsub.f32 %v3288_v35, %v3320_v18  ;;  %v3289_v38 = vmul.f32 0.0078125, %v3251_v52 }
 0x5ed   : > { %v3586_v24 = vadd.f32 %v6612_v19, %v3548_v44  ;;  %v3549_v42 = vmul.f32 %v6604_v32, %v3511_v23  ;;  %v3508_v56 = vmul.f32 %v4449_v29, %v3412_v61  ;;  %v3133_v20 = vpop.xlane.xlu0 %3132  ;;  %v3416_v61 = vsub.f32 %v6542_v50, %v6788_v49 }
 0x5ee   : > { %v4451_v31 = vpop.eup %4450  ;;  %4452 = vrsqrt.f32 %v3450_v53  ;;  %v3451_v2 = vadd.f32 1e-05, %v3387_v10  ;;  %v3384_v22 = vmax.f32 %v3352_v3, 0.0  ;;  %v3353_v4 = vsub.f32 %v3289_v38, %v3321_v40 }
 0x5ef   : > { %3618 = vst [vmem:[%s6627_s14 + $0xb0] sm:$0xff] %v3586_v24  ;;  %v3587_v33 = vadd.f32 %v6612_v19, %v3549_v42  ;;  %v3546_v7 = vmul.f32 %v6604_v32, %v3508_v56  ;;  %v3509_v12 = vmul.f32 %v4451_v31, %v3413_v25  ;;  %v3135_v60 = vpop.xlane.xlu1 %3134  ;;  %v6822_v48 = vmul.f32 0.0078125, %v3133_v20 }
 0x5f0   : > { %4454 = vrsqrt.f32 %v3451_v2  ;;  %v3448_v27 = vadd.f32 1e-05, %v3384_v22  ;;  %v3385_v30 = vmax.f32 %v3353_v4, 0.0  ;;  %v6828_v9 = vmul.f32 0.0078125, %v3135_v60 }
 0x5f1   : > { %3619 = vst [vmem:[%s6627_s14 + $0xb8] sm:$0xff] %v3587_v33  ;;  %v3584_v63 = vadd.f32 %v6612_v19, %v3546_v7  ;;  %v3547_v43 = vmul.f32 %v6604_v32, %v3509_v12  ;;  %v3129_v55 = vpop.xlane.xlu0 %3128  ;;  %v3326_v11 = vmul.f32 %v6822_v48, %v6822_v48  ;;  %v3417_v3 = vsub.f32 %v6546_v16, %v6792_v41 }
 0x5f2   : > { %4456 = vrsqrt.f32 %v3448_v27  ;;  %v3449_v14 = vadd.f32 1e-05, %v3385_v30  ;;  %v6817_v13 = vmul.f32 0.0078125, %v3129_v55  ;;  %v3327_v40 = vmul.f32 %v6828_v9, %v6828_v9 }
 0x5f3   : > { %3616 = vst [vmem:[%s6627_s14 + $0xa0] sm:$0xff] %v3584_v63  ;;  %v3585_v34 = vadd.f32 %v6612_v19, %v3547_v43  ;;  %v3131_v0 = vpop.xlane.xlu1 %3130  ;;  %v3422_v43 = vsub.f32 %v6559_v37, %v6822_v48 }
 0x5f4   : > { %4458 = vrsqrt.f32 %v3449_v14  ;;  %v6819_v46 = vmul.f32 0.0078125, %v3131_v0  ;;  %v3324_v26 = vmul.f32 %v6817_v13, %v6817_v13  ;;  %v3420_v12 = vsub.f32 %v6566_v62, %v6817_v13 }
 0x5f5   : > { %3617 = vst [vmem:[%s6627_s14 + $0xa8] sm:$0xff] %v3585_v34  ;;  %v3257_v54 = vpop.xlane.xlu0 %3256  ;;  %v3423_v62 = vsub.f32 %v6562_v15, %v6828_v9 }
 0x5f6   : > { %v3292_v57 = vmul.f32 0.0078125, %v3257_v54  ;;  %v3325_v21 = vmul.f32 %v6819_v46, %v6819_v46  ;;  %v3421_v27 = vsub.f32 %v6570_v51, %v6819_v46 }
 0x5f7   : > { %v3259_v17 = vpop.xlane.xlu1 %3258 }
 0x5f8   : > { %v4453_v45 = vpop.eup %4452  ;;  %v3356_v58 = vsub.f32 %v3292_v57, %v3324_v26  ;;  %v3293_v6 = vmul.f32 0.0078125, %v3259_v17 }
 0x5f9   : > { %v3514_v59 = vmul.f32 %v4453_v45, %v3418_v36  ;;  %v3261_v18 = vpop.xlane.xlu0 %3260 }
 0x5fa   : > { %v4455_v8 = vpop.eup %4454  ;;  %v3388_v35 = vmax.f32 %v3356_v58, 0.0  ;;  %v3357_v1 = vsub.f32 %v3293_v6, %v3325_v21  ;;  %v3294_v47 = vmul.f32 0.0078125, %v3261_v18 }
 0x5fb   : > { %v3552_v44 = vmul.f32 %v6604_v32, %v3514_v59  ;;  %v3515_v23 = vmul.f32 %v4455_v8, %v3419_v28  ;;  %v3263_v5 = vpop.xlane.xlu1 %3262 }
 0x5fc   : > { %v4457_v39 = vpop.eup %4456  ;;  %v3452_v52 = vadd.f32 1e-05, %v3388_v35  ;;  %v3389_v29 = vmax.f32 %v3357_v1, 0.0  ;;  %v3358_v53 = vsub.f32 %v3294_v47, %v3326_v11  ;;  %v3295_v10 = vmul.f32 0.0078125, %v3263_v5 }
 0x5fd   : > { %v3590_v38 = vadd.f32 %v6612_v19, %v3552_v44  ;;  %v3553_v50 = vmul.f32 %v6604_v32, %v3515_v23  ;;  %v3512_v49 = vmul.f32 %v4457_v39, %v3416_v61 }
 0x5fe   : > { %v4459_v25 = vpop.eup %4458  ;;  %4460 = vrsqrt.f32 %v3452_v52  ;;  %v3453_v24 = vadd.f32 1e-05, %v3389_v29  ;;  %v3390_v42 = vmax.f32 %v3358_v53, 0.0  ;;  %v3359_v56 = vsub.f32 %v3295_v10, %v3327_v40 }
 0x5ff   : > { %3622 = vst [vmem:[%s6627_s14 + $0xd0] sm:$0xff] %v3590_v38  ;;  %v3591_v20 = vadd.f32 %v6612_v19, %v3553_v50  ;;  %v3550_v31 = vmul.f32 %v6604_v32, %v3512_v49  ;;  %v3513_v2 = vmul.f32 %v4459_v25, %v3417_v3 }
 0x600   : > { %4462 = vrsqrt.f32 %v3453_v24  ;;  %v3454_v16 = vadd.f32 1e-05, %v3390_v42  ;;  %v3391_v41 = vmax.f32 %v3359_v56, 0.0 }
 0x601   : > { %3623 = vst [vmem:[%s6627_s14 + $0xd8] sm:$0xff] %v3591_v20  ;;  %v3588_v22 = vadd.f32 %v6612_v19, %v3550_v31  ;;  %v3551_v4 = vmul.f32 %v6604_v32, %v3513_v2 }
 0x602   : > { %4464 = vrsqrt.f32 %v3454_v16  ;;  %v3455_v33 = vadd.f32 1e-05, %v3391_v41 }
 0x603   : > { %3620 = vst [vmem:[%s6627_s14 + $0xc0] sm:$0xff] %v3588_v22  ;;  %v3589_v7 = vadd.f32 %v6612_v19, %v3551_v4 }
 0x604   : > { %4466 = vrsqrt.f32 %v3455_v33 }
 0x605   : > { %3621 = vst [vmem:[%s6627_s14 + $0xc8] sm:$0xff] %v3589_v7 }
 0x608   : > { %v4461_v60 = vpop.eup %4460 }
 0x609   : > { %v3516_v30 = vmul.f32 %v4461_v60, %v3420_v12 }
 0x60a   : > { %v4463_v63 = vpop.eup %4462 }
 0x60b   : > { %v3554_v55 = vmul.f32 %v6604_v32, %v3516_v30  ;;  %v3517_v14 = vmul.f32 %v4463_v63, %v3421_v27 }
 0x60c   : > { %v4465_v34 = vpop.eup %4464 }
 0x60d   : > { %v3592_v13 = vadd.f32 %v6612_v19, %v3554_v55  ;;  %v3555_v51 = vmul.f32 %v6604_v32, %v3517_v14  ;;  %v3518_v0 = vmul.f32 %v4465_v34, %v3422_v43 }
 0x60e   : > { %v4467_v46 = vpop.eup %4466 }
 0x60f   : > { %3624 = vst [vmem:[%s6627_s14 + $0xe0] sm:$0xff] %v3592_v13  ;;  %v3593_v54 = vadd.f32 %v6612_v19, %v3555_v51  ;;  %v3556_v37 = vmul.f32 %v6604_v32, %v3518_v0  ;;  %v3519_v48 = vmul.f32 %v4467_v46, %v3423_v62  ;;  %3635 = sbr.rel (!%p7122_p1) target bundleno = 1587 (0x633), region = 92 }
 0x611   : > { %3625 = vst [vmem:[%s6627_s14 + $0xe8] sm:$0xff] %v3593_v54  ;;  %v3594_v26 = vadd.f32 %v6612_v19, %v3556_v37  ;;  %v3557_v57 = vmul.f32 %v6604_v32, %v3519_v48 }
 0x613   : > { %3626 = vst [vmem:[%s6627_s14 + $0xf0] sm:$0xff] %v3594_v26  ;;  %v3595_v15 = vadd.f32 %v6612_v19, %v3557_v57 }
 0x615   : > { %3627 = vst [vmem:[%s6627_s14 + $0xf8] sm:$0xff] %v3595_v15 }
 0x616   : > { %s7135_s23 = smov (!%p3638_p6, %s3637_s23), 32 }
 0x617   : > { %s6878_s13 = sshll.u32 %s7135_s23, 7 }
 0x618   : > { %s3642_s17 = ssub.s32 4096, %s6878_s13 }
 0x619   : > { %3643 = vsyncadd %s3629_s24, %s3642_s17  ;;  %p3868_p3 = scmp.ne.s32.totalorder %s6878_s13, 0  ;;  %s3877_s10 = sshll.u32 %s4760_s29, 12 }
 0x61a   : > { %s7123_s20 = sld [smem:[#allocation54_spill]]  ;;  %s3648_s11 = sshll.u32 %s6627_s14, 4  ;;  %s6891_s11 = int_to_ptr.vmem [resolvable:$true] %s3648_s11 }
 0x61b   : > { %s4580_s19 = scalar_lea.vmem %s6891_s11, %s6878_s13  ;;  %s4666_s22 = smov [#allocation10]  }
 0x61c   : > { %p4581_p5 = scmp.ne.s32.totalorder %s6891_s11, %s4580_s19  ;;  %s4584_s30 = sshll.u32 %s4666_s22, 4  ;;  %s4585_s30 = int_to_ptr.vmem [resolvable:$false] %s4584_s30 }
 0x61d   : > { %s4586_s29 = scalar_lea.vmem %s4585_s30, 8192  ;;  %p4587_p0 = scmp.lt.s32.totalorder %s6891_s11, %s4585_s30 }
 0x61e   : > { %p4582_p11 = pnand %p4581_p5, %p3868_p3  ;;  %p4588_p12 = scmp.lt.s32.totalorder %s4586_s29, %s4580_s19 }
 0x620   : > { %s6888_s16 = scalar_lea.hbm %s7123_s20, %s3877_s10  ;;  %p4583_p13 = pneg %p4582_p11 }
 0x621   : > { %p4589_p7 = por %p4588_p12, %p4587_p0 }
 0x623   : > { %p4590_p2 = pnand %p4589_p7, %p4583_p13 }
 0x625   : > { %4593 = shalt.err (!%p4590_p2)
}
 0x626   : > { %s4594_s8 = scalar_lea.hbm %s6888_s16, %s6878_s13  ;;  %s4598_s12 = scalar_lea.hbm %s7123_s20, 6144 }
 0x627   : > { %p4595_p8 = scmp.ne.s32.totalorder %s6888_s16, %s4594_s8  ;;  %p4599_p1 = scmp.lt.u32.totalorder %s6888_s16, %s7123_s20 }
 0x628   : > { %p4600_p6 = scmp.lt.u32.totalorder %s4598_s12, %s4594_s8  ;;  %p4602_p11 = scmp.lt.u32.totalorder %s4594_s8, %s6888_s16 }
 0x629   : > { %p4596_p9 = pnand %p4595_p8, %p3868_p3 }
 0x62a   : > { %p4601_p5 = por %p4600_p6, %p4599_p1 }
 0x62b   : > { %p4597_p10 = pneg %p4596_p9 }
 0x62c   : > { %p4603_p13 = por %p4602_p11, %p4601_p5 }
 0x62e   : > { %p4604_p0 = pnand %p4603_p13, %p4597_p10 }
 0x630   : > { %4607 = shalt.err (!%p4604_p0)
}
 0x631   : > { %s4667_s17 = smov 128   ;;  %s4668_s10 = smov 8  }
 0x632   : > { %3654 = dma.vmem_to_hbm [thread:$0]  (%p3868_p3), %s6891_s11, %s6878_s13, %s6888_s16, %s3629_s24, %s4667_s17, %s4667_s17, %s4668_s10  }
 0x633 PF: > { %s7124_s25 = sld [smem:[#allocation15_spill]]  ;;  %s7125_s18 = sld [smem:[#allocation19_spill]] }
 0x639   : > { %s3663_s19 = sand.u32 1, %s7124_s25   ;;  %p7126_p12 = scmp.ne.s32.totalorder %s7125_s18, 0 }
 0x63a   : > { %s3664_s22 = scalar_lea.sflag [#allocation4], %s3663_s19 }
 0x63b   : > { %p4103_p7 = pnand %p3755_p4, %p7126_p12 }
 0x63d   : > { %4637 = dma.done.wait (!%p4103_p7), %s3664_s22, 4096  }
 0x63e   : > { %4639 = vsyncadd (!%p4103_p7), %s3664_s22, 4294963200  ;;  %s7127_s28 = sld [smem:[#allocation16_spill]]  ;;  %s7128_s30 = sld [smem:[#allocation17_spill]] }
 0x63f   : > { %s7129_s25 = smov %s4646_s26  ;;  %s7130_s26 = smov %s4650_s27 }
 0x644   : > { %p28_p2 = scmp.ge.s32.totalorder %s7127_s28, 4   ;;  %s7131_s27 = smov %s7128_s30 }
 0x646   :  { %30 = sbr.rel (!%p28_p2) target bundleno = 14 (0xe), region = 129 }
 0x64d   :  { %3669 = vsyncpa [#allocation3], 1 }
 0x64e   :  { %3671 = vsyncpa [#allocation3 + $0x1], 1 }
 0x64f   :  { %3672 = vsyncpa [#allocation6], 1 }
 0x650   :  { %3673 = vsyncpa [#allocation9], 1 }
 0x651   :  { %3674 = vsyncpa [#allocation4], 1 }
 0x652   :  { %3676 = vsyncpa [#allocation4 + $0x1], 1 }

// kernel: tpu_custom_call.1
= control target key start
LH: loop header
LB: loop body
LE: loop exit
PB: predicated region body
PF: predicated region fallthrough
CT: control target
= control target key end

     0   :  { %s6937_s0 = inlined_call_operand.hbm [shape: bf16[384,256], index: 0, kind: input, shape index: {}]   ;;  %s6938_s1 = inlined_call_operand.hbm [shape: bf16[256,256], index: 1, kind: input, shape index: {}]   ;;  %s6939_s2 = inlined_call_operand.vmem [shape: f32[1,256], index: 2, kind: input, shape index: {}]   ;;  %s6940_s3 = inlined_call_operand.vmem [shape: f32[1,256], index: 3, kind: input, shape index: {}]   ;;  %s6941_s4 = inlined_call_operand.vmem [shape: f32[1,256], index: 4, kind: input, shape index: {}]   ;;  %s6942_s5 = inlined_call_operand.hbm [shape: bf16[256,128], index: 5, kind: input, shape index: {}]   ;;  %s6943_s6 = inlined_call_operand.vmem [shape: f32[1,128], index: 6, kind: input, shape index: {}]   ;;  %s6944_s7 = inlined_call_operand.vmem [shape: f32[1,128], index: 7, kind: input, shape index: {}]   ;;  %s6945_s8 = inlined_call_operand.vmem [shape: f32[1,128], index: 8, kind: input, shape index: {}]   ;;  %s6946_s9 = inlined_call_operand.hbm [shape: bf16[128,128], index: 9, kind: input, shape index: {}]   ;;  %s6947_s10 = inlined_call_operand.vmem [shape: f32[1,128], index: 10, kind: input, shape index: {}]   ;;  %s6948_s11 = inlined_call_operand.vmem [shape: f32[1,128], index: 11, kind: input, shape index: {}]   ;;  %s6949_s12 = inlined_call_operand.vmem [shape: f32[1,128], index: 12, kind: input, shape index: {}]   ;;  %s6950_s13 = inlined_call_operand.hbm [shape: f32[384,128], index: 13, kind: output, shape index: {}]  }
   0x1   :  { %7012 = sst [smem:[#allocation49_spill]] %s6938_s1 }
   0x2   :  { %7013 = sst [smem:[#allocation50_spill]] %s6945_s8 }
   0x3   :  { %7014 = sst [smem:[#allocation51_spill]] %s6947_s10 }
   0x4   :  { %7015 = sst [smem:[#allocation52_spill]] %s6948_s11 }
   0x5   :  { %7016 = sst [smem:[#allocation53_spill]] %s6949_s12 }
   0x6   :  { %7017 = sst [smem:[#allocation54_spill]] %s6950_s13 }
   0x7   :  { %18 = vsyncpa [#allocation3], 0 }
   0x8   :  { %20 = vsyncpa [#allocation3 + $0x1], 0 }
   0x9   :  { %21 = vsyncpa [#allocation6], 0 }
   0xa   :  { %22 = vsyncpa [#allocation9], 0 }
   0xb   :  { %23 = vsyncpa [#allocation4], 0 }
   0xc   :  { %25 = vsyncpa [#allocation4 + $0x1], 0  ;;  %s4739_s25 = smov 0   ;;  %s4741_s26 = smov 0  }
   0xd   :  { %s4743_s27 = smov 0   ;;  %s4745_s28 = smov 0  }
   0xe LB: > { %7018 = sst [smem:[#allocation15_spill]] %s4642_s25  ;;  %s4760_s29 = sadd.s32 4294967295, %s4654_s28   ;;  %s4654_s28 = sphi %s4745_s28, %s7127_s28   ;;  %s4650_s27 = sphi %s4743_s27, %s7131_s27   ;;  %s4646_s26 = sphi %s4741_s26, %s7130_s26   ;;  %s4642_s25 = sphi %s4739_s25, %s7129_s25  }
   0xf   : > { %s3750_s30 = sadd.s32 4294967294, %s4654_s28   ;;  %s4764_s14 = sadd.s32 1, %s4654_s28  }
  0x10   : > { %7019 = sst [smem:[#allocation16_spill]] %s4764_s14  ;;  %s38_s15 = sadd.s32 1, %s4650_s27 }
  0x11   : > { %s35_s16 = ssub.s32 %s4654_s28, %s4764_s14  ;;  %p45_p0 = scmp.ne.s32.totalorder %s4650_s27, %s4646_s26 }
  0x12   : > { %p36_p1 = scmp.eq.s32.totalorder %s35_s16, 0  ;;  %p46_p2 = scmp.eq.s32.totalorder %s4654_s28, 0 }
  0x13   : > { %p51_p3 = scmp.ne.s32.totalorder %s4646_s26, %s4642_s25  ;;  %p6957_p4 = scmp.eq.s32.totalorder %s4760_s29, 0 }
  0x14   : > { %s4776_s17 = scalar_select %p36_p1, %s4650_s27, %s38_s15  }
  0x15   : > { %p4778_p5 = por %p46_p2, %p45_p0  ;;  %p4784_p6 = por %p6957_p4, %p51_p3 }
  0x16   : > { %7020 = sst [smem:[#allocation17_spill]] %s4776_s17  ;;  %p327_p7 = scmp.eq.s32.totalorder %s4760_s29, 1 }
  0x17   : > { %s7021_s18 = scalar_select %p4778_p5, 1, 0 }
  0x18   : > { %s7022_s19 = scalar_select %p4784_p6, 1, 0 }
  0x19   : > { %p333_p8 = scmp.eq.s32.totalorder %s3750_s30, 1  ;;  %p3751_p9 = scmp.ge.s32.totalorder %s4654_s28, 1 }
  0x1a   : > { %p340_p10 = scmp.lt.s32.totalorder %s4654_s28, 3  ;;  %p4791_p11 = por %p327_p7, %p45_p0 }
  0x1b   : > { %p4795_p12 = por %p333_p8, %p51_p3  ;;  %s4656_s23 = smov [#allocation5]  }
  0x1c   : > { %s7023_s20 = scalar_select %p4791_p11, 1, 0 }
  0x1d   : > { %s7025_s21 = scalar_select %p4795_p12, 1, 0 }
  0x1e   : > { %7024 = sst [smem:[#allocation18_spill]] %s7023_s20  ;;  %p4799_p13 = pnand %p3751_p9, %p340_p10 }
  0x1f   : > { %7026 = sst [smem:[#allocation19_spill]] %s7025_s21  ;;  %s352_s24 = sshll.u32 %s4656_s23, 4  ;;  %s353_s24 = int_to_ptr.vmem [resolvable:$true] %s352_s24 }
  0x20   : > { %s7027_s22 = scalar_select %p4799_p13, 1, 0 }
  0x21   : > { %p4092_p1 = pneg %p4799_p13  ;;  %s4657_s15 = smov [#allocation7]  }
  0x22   : > { %s374_s16 = sshll.u32 %s4657_s15, 4  ;;  %s7029_s1 = sld [smem:[#allocation49_spill]]  ;;  %s4811_s16 = int_to_ptr.vmem [resolvable:$true] %s374_s16 }
  0x23   : > { %p4807_p2 = pnand %p4092_p1, %p6957_p4 }
  0x25   : > { %p4821_p3 = pneg %p4807_p2 }
  0x28   : > { %s4468_s21 = scalar_lea.hbm %s7029_s1, 4096 }
  0x29   : > { %p4469_p0 = scmp.ne.s32.totalorder %s7029_s1, %s4468_s21  ;;  %p4475_p9 = scmp.lt.u32.totalorder %s4468_s21, %s7029_s1 }
  0x2b   : > { %p4471_p7 = pnand %p4821_p3, %p4469_p0 }
  0x2d   : > { %p4472_p8 = pneg %p4471_p7 }
  0x2f   : > { %p4477_p10 = pnand %p4475_p9, %p4472_p8 }
  0x31   : > { %4480 = shalt.err (!%p4477_p10)
}
  0x32   : > { %s4481_s14 = scalar_lea.vmem %s353_s24, 4096  ;;  %p4489_p11 = scmp.lt.s32.totalorder %s353_s24, %s353_s24 }
  0x33   : > { %p4482_p1 = scmp.ne.s32.totalorder %s353_s24, %s4481_s14  ;;  %p4490_p6 = scmp.lt.s32.totalorder %s4481_s14, %s4481_s14 }
  0x35   : > { %p4484_p4 = pnand %p4482_p1, %p4821_p3  ;;  %p4491_p13 = por %p4490_p6, %p4489_p11 }
  0x37   : > { %p4485_p12 = pneg %p4484_p4 }
  0x39   : > { %p4492_p5 = pnand %p4491_p13, %p4485_p12 }
  0x3b   : > { %4495 = shalt.err (!%p4492_p5)
}
  0x3c   : > { %s4658_s13 = smov 128   ;;  %s4659_s25 = smov 8  }
  0x3d   : > { %4095 = dma.hbm_to_vmem [thread:$0]  (!%p4807_p2), %s7029_s1, 4096, %s353_s24, [#allocation6], %s4658_s13, %s4658_s13, %s4659_s25  }
  0x3e   : > { %s4496_s12 = scalar_lea.hbm %s6942_s5, 2048 }
  0x3f   : > { %p4497_p4 = scmp.ne.s32.totalorder %s6942_s5, %s4496_s12  ;;  %p4503_p11 = scmp.lt.u32.totalorder %s4496_s12, %s6942_s5 }
  0x41   : > { %p4499_p6 = pnand %p4497_p4, %p4821_p3 }
  0x43   : > { %p4500_p5 = pneg %p4499_p6 }
  0x45   : > { %p4505_p12 = pnand %p4503_p11, %p4500_p5 }
  0x47   : > { %4508 = shalt.err (!%p4505_p12)
}
  0x48   : > { %s4509_s24 = scalar_lea.vmem %s4811_s16, 2048  ;;  %p4517_p8 = scmp.lt.s32.totalorder %s4811_s16, %s4811_s16 }
  0x49   : > { %p4510_p13 = scmp.ne.s32.totalorder %s4811_s16, %s4509_s24  ;;  %p4518_p9 = scmp.lt.s32.totalorder %s4509_s24, %s4509_s24 }
  0x4b   : > { %p4512_p0 = pnand %p4510_p13, %p4821_p3  ;;  %p4519_p10 = por %p4518_p9, %p4517_p8 }
  0x4d   : > { %p4513_p7 = pneg %p4512_p0 }
  0x4f   : > { %p4520_p1 = pnand %p4519_p10, %p4513_p7 }
  0x51   : > { %4523 = shalt.err (!%p4520_p1)
}
  0x52   : > { %s4660_s10 = smov 64   ;;  %s4661_s8 = smov 4  }
  0x53   : > { %4098 = dma.hbm_to_vmem [thread:$0]  (!%p4807_p2), %s6942_s5, 2048, %s4811_s16, [#allocation6], %s4660_s10, %s4660_s10, %s4661_s8  }
  0x54   : > { %s4662_s13 = smov [#allocation8]   ;;  %s4524_s21 = scalar_lea.hbm %s6946_s9, 1024 }
  0x55   : > { %s396_s25 = sshll.u32 %s4662_s13, 4  ;;  %p4525_p4 = scmp.ne.s32.totalorder %s6946_s9, %s4524_s21  ;;  %s397_s25 = int_to_ptr.vmem [resolvable:$true] %s396_s25 }
  0x56   : > { %p4531_p11 = scmp.lt.u32.totalorder %s4524_s21, %s6946_s9 }
  0x57   : > { %p4527_p6 = pnand %p4525_p4, %p4821_p3 }
  0x59   : > { %p4528_p5 = pneg %p4527_p6 }
  0x5b   : > { %p4533_p12 = pnand %p4531_p11, %p4528_p5 }
  0x5d   : > { %4536 = shalt.err (!%p4533_p12)
}
  0x5e   : > { %s4537_s16 = scalar_lea.vmem %s397_s25, 1024  ;;  %p4545_p8 = scmp.lt.s32.totalorder %s397_s25, %s397_s25 }
  0x5f   : > { %p4538_p13 = scmp.ne.s32.totalorder %s397_s25, %s4537_s16  ;;  %p4546_p9 = scmp.lt.s32.totalorder %s4537_s16, %s4537_s16 }
  0x61   : > { %p4540_p0 = pnand %p4538_p13, %p4821_p3  ;;  %p4547_p10 = por %p4546_p9, %p4545_p8 }
  0x63   : > { %p4541_p7 = pneg %p4540_p0 }
  0x65   : > { %p4548_p1 = pnand %p4547_p10, %p4541_p7 }
  0x67   : > { %4551 = shalt.err (!%p4548_p1)
}
  0x68   : > { %4101 = dma.hbm_to_vmem [thread:$0]  (!%p4807_p2), %s6946_s9, 1024, %s397_s25, [#allocation9], %s4660_s10, %s4660_s10, %s4661_s8  }
  0x69   : > { %p3755_p4 = scmp.ge.s32.totalorder %s4654_s28, 2 }
  0x6a   : > { %p7031_p6 = scmp.ne.s32.totalorder (!%p3755_p4), %s7021_s18, 0 }
  0x6b   : > { %415 = sbr.rel (%p3755_p4) target bundleno = 149 (0x95), region = 64 }
  0x72   : > { %418 = sbr.rel (!%p7031_p6) target bundleno = 149 (0x95), region = 68  ;;  %s419_s1 = sand.u32 (%p7031_p6), 1, %s4650_s27  }
  0x73   : > { %s3757_s23 = sshll.u32 (%p7031_p6), %s4654_s28, 5  ;;  %s3756_s13 = sshll.u32 (%p7031_p6), %s419_s1, 8 }
  0x74   : > { %s425_s17 = ssub.s32 (%p7031_p6), 48, %s3757_s23  ;;  %s4888_s8 = scalar_lea.sflag (%p7031_p6), [#allocation3], %s419_s1 }
  0x75   : > { %p426_p3 = scmp.lt.s32.totalorder (%p7031_p6), %s425_s17, 32  ;;  %s423_s25 = scalar_lea.vmem (%p7031_p6), [#allocation2], %s3756_s13 }
  0x79   : > { %s7133_s17 = smov (!%p426_p3, %s425_s17), 32 }
  0x7a   : > { %s4885_s30 = sshll.u32 %s7133_s17, 7 }
  0x7b   : > { %s431_s10 = ssub.s32 4096, %s4885_s30 }
  0x7c   : > { %432 = vsyncadd %s4888_s8, %s431_s10  ;;  %p3760_p2 = scmp.ne.s32.totalorder %s4885_s30, 0  ;;  %s3876_s18 = sshll.u32 %s4654_s28, 12 }
  0x7d   : > { %s4896_s15 = scalar_lea.hbm %s6937_s0, %s3876_s18  ;;  %s438_s14 = sshll.u32 %s423_s25, 4  ;;  %s4898_s14 = int_to_ptr.vmem [resolvable:$true] %s438_s14 }
  0x7e   : > { %s4552_s24 = scalar_lea.hbm %s4896_s15, %s4885_s30  ;;  %s4556_s12 = scalar_lea.hbm %s6937_s0, 6144 }
  0x7f   : > { %p4553_p5 = scmp.ne.s32.totalorder %s4896_s15, %s4552_s24  ;;  %p4557_p13 = scmp.lt.u32.totalorder %s4896_s15, %s6937_s0 }
  0x80   : > { %p4558_p0 = scmp.lt.u32.totalorder %s4556_s12, %s4552_s24  ;;  %p4560_p8 = scmp.lt.u32.totalorder %s4552_s24, %s4896_s15 }
  0x81   : > { %p4554_p11 = pnand %p4553_p5, %p3760_p2 }
  0x82   : > { %p4559_p7 = por %p4558_p0, %p4557_p13 }
  0x83   : > { %p4555_p12 = pneg %p4554_p11 }
  0x84   : > { %p4561_p9 = por %p4560_p8, %p4559_p7 }
  0x86   : > { %p4562_p10 = pnand %p4561_p9, %p4555_p12 }
  0x88   : > { %4565 = shalt.err (!%p4562_p10)
}
  0x89   : > { %s4566_s13 = scalar_lea.vmem %s4898_s14, %s4885_s30  ;;  %s4663_s17 = smov [#allocation2]  }
  0x8a   : > { %p4567_p1 = scmp.ne.s32.totalorder %s4898_s14, %s4566_s13  ;;  %s4570_s10 = sshll.u32 %s4663_s17, 4  ;;  %s4571_s10 = int_to_ptr.vmem [resolvable:$false] %s4570_s10 }
  0x8b   : > { %s4572_s25 = scalar_lea.vmem %s4571_s10, 8192  ;;  %p4573_p5 = scmp.lt.s32.totalorder %s4898_s14, %s4571_s10 }
  0x8c   : > { %p4568_p6 = pnand %p4567_p1, %p3760_p2  ;;  %p4574_p11 = scmp.lt.s32.totalorder %s4572_s25, %s4566_s13 }
  0x8e   : > { %p4569_p3 = pneg %p4568_p6  ;;  %p4575_p13 = por %p4574_p11, %p4573_p5 }
  0x90   : > { %p4576_p0 = pnand %p4575_p13, %p4569_p3 }
  0x92   : > { %4579 = shalt.err (!%p4576_p0)
}
  0x93   : > { %s4664_s18 = smov 128   ;;  %s4665_s20 = smov 8  }
  0x94   : > { %444 = dma.hbm_to_vmem [thread:$0]  (%p3760_p2), %s4896_s15, %s4885_s30, %s4898_s14, %s4888_s8, %s4664_s18, %s4664_s18, %s4665_s20  }
  0x95 PF: > { %p7032_p12 = scmp.ne.s32.totalorder %s7027_s22, 0 }
  0x97   : > { %450 = sbr.rel (%p7032_p12) target bundleno = 1587 (0x633), region = 72 }
  0x9e   : > { %s4928_s21 = sand.u32 1, %s4646_s26   ;;  %p7033_p7 = scmp.ne.s32.totalorder %s7022_s19, 0 }
  0x9f   : > { %s3766_s24 = sshll.u32 %s4928_s21, 8  ;;  %s453_s16 = scalar_lea.sflag [#allocation3], %s4928_s21 }
  0xa0   : > { %s4934_s11 = scalar_lea.vmem [#allocation2], %s3766_s24 }
  0xa1   : > { %4625 = dma.done.wait (%p7033_p7), %s453_s16, 4096  }
  0xa2   : > { %4627 = vsyncadd (%p7033_p7), %s453_s16, 4294963200  ;;  %p7034_p2 = scmp.eq.s32.totalorder %s4760_s29, 0 }
  0xa4   : > { %4629 = dma.done.wait (%p7034_p2), [#allocation6], 6144   ;;  %p7035_p8 = pmov %p7034_p2 }
  0xa5   : > { %p7036_p9 = pmov %p7034_p2 }
  0xa6   : > { %4631 = vsyncadd (%p7035_p8), [#allocation6], 4294961152 }
  0xa7   : > { %4633 = dma.done.wait (%p7036_p9), [#allocation9], 1024   ;;  %p7037_p10 = pmov %p7034_p2 }
  0xa8   : > { %v4156_v0 = vld [vmem:[#allocation5 + $0x4] ss:$8 sps:$4 sm:$0xff]   ;;  %v4158_v1 = vld [vmem:[#allocation5] ss:$8 sps:$4 sm:$0xff]   ;;  %v4159_v2 = vld [vmem:[#allocation5 + $0x14] ss:$8 sps:$4 sm:$0xff]  }
  0xa9   : > { %4635 = vsyncadd (%p7037_p10), [#allocation9], 4294966272  ;;  %919 = vmatprep.subr.bf16.mxu0 %v4156_v0  ;;  %v4161_v3 = vld [vmem:[#allocation5 + $0x10] ss:$8 sps:$4 sm:$0xff]   ;;  %v4162_v4 = vld [vmem:[#allocation5 + $0x24] ss:$8 sps:$4 sm:$0xff]  }
  0xaa   : > { %920 = vmatpush1.bf16.msra.mxu0 %v4158_v1  ;;  %v4164_v5 = vld [vmem:[#allocation5 + $0x20] ss:$8 sps:$4 sm:$0xff]   ;;  %v4165_v6 = vld [vmem:[#allocation5 + $0x34] ss:$8 sps:$4 sm:$0xff]   ;;  %v4167_v7 = vld [vmem:[#allocation5 + $0x30] ss:$8 sps:$4 sm:$0xff]  }
  0xab   : > { %921 = vmatprep.subr.bf16.mxu0 %v4159_v2  ;;  %v4168_v8 = vld [vmem:[#allocation5 + $0x44] ss:$8 sps:$4 sm:$0xff]   ;;  %v4170_v9 = vld [vmem:[#allocation5 + $0x40] ss:$8 sps:$4 sm:$0xff]   ;;  %v4171_v10 = vld [vmem:[#allocation5 + $0x54] ss:$8 sps:$4 sm:$0xff]  }
  0xac   : > { %v4173_v11 = vld [vmem:[#allocation5 + $0x50] ss:$8 sps:$4 sm:$0xff]   ;;  %v4174_v12 = vld [vmem:[#allocation5 + $0x64] ss:$8 sps:$4 sm:$0xff]   ;;  %v4176_v14 = vld [vmem:[#allocation5 + $0x60] ss:$8 sps:$4 sm:$0xff]  }
  0xad   : > { %v4206_v13 = vld [vmem:[%s4934_s11 + $0x4] ss:$8 sps:$4 sm:$0xff]   ;;  %v4177_v15 = vld [vmem:[#allocation5 + $0x74] ss:$8 sps:$4 sm:$0xff]   ;;  %v4179_v16 = vld [vmem:[#allocation5 + $0x70] ss:$8 sps:$4 sm:$0xff]  }
  0xae   : > { %922 = vmatpush1.bf16.msra.mxu0 %v4161_v3  ;;  %951 = vmatprep.mubr.bf16.mxu0 %v4206_v13  ;;  %v4180_v17 = vld [vmem:[#allocation5 + $0x84] ss:$8 sps:$4 sm:$0xff]   ;;  %v4182_v18 = vld [vmem:[#allocation5 + $0x80] ss:$8 sps:$4 sm:$0xff]   ;;  %v4183_v19 = vld [vmem:[#allocation5 + $0x94] ss:$8 sps:$4 sm:$0xff]  }
  0xaf   : > { %923 = vmatprep.subr.bf16.mxu0 %v4162_v4  ;;  %v4185_v20 = vld [vmem:[#allocation5 + $0x90] ss:$8 sps:$4 sm:$0xff]   ;;  %v4186_v21 = vld [vmem:[#allocation5 + $0xa4] ss:$8 sps:$4 sm:$0xff]   ;;  %v4188_v22 = vld [vmem:[#allocation5 + $0xa0] ss:$8 sps:$4 sm:$0xff]  }
  0xb0   : > { %v4189_v23 = vld [vmem:[#allocation5 + $0xb4] ss:$8 sps:$4 sm:$0xff]   ;;  %v4191_v24 = vld [vmem:[#allocation5 + $0xb0] ss:$8 sps:$4 sm:$0xff]   ;;  %v4192_v25 = vld [vmem:[#allocation5 + $0xc4] ss:$8 sps:$4 sm:$0xff]  }
  0xb1   : > { %v4194_v26 = vld [vmem:[#allocation5 + $0xc0] ss:$8 sps:$4 sm:$0xff]   ;;  %v4195_v27 = vld [vmem:[#allocation5 + $0xd4] ss:$8 sps:$4 sm:$0xff]   ;;  %v4197_v28 = vld [vmem:[#allocation5 + $0xd0] ss:$8 sps:$4 sm:$0xff]  }
  0xb2   : > { %924 = vmatpush1.bf16.msra.mxu0 %v4164_v5  ;;  %v4198_v29 = vld [vmem:[#allocation5 + $0xe4] ss:$8 sps:$4 sm:$0xff]   ;;  %v4200_v30 = vld [vmem:[#allocation5 + $0xe0] ss:$8 sps:$4 sm:$0xff]   ;;  %v4201_v31 = vld [vmem:[#allocation5 + $0xf4] ss:$8 sps:$4 sm:$0xff]  }
  0xb3   : > { %925 = vmatprep.subr.bf16.mxu0 %v4165_v6  ;;  %v4203_v32 = vld [vmem:[#allocation5 + $0xf0] ss:$8 sps:$4 sm:$0xff]   ;;  %v4204_v33 = vld [vmem:[%s4934_s11] ss:$8 sps:$4 sm:$0xff]   ;;  %v4207_v34 = vld [vmem:[%s4934_s11 + $0x14] ss:$8 sps:$4 sm:$0xff]   ;;  %v589_v6 = vlaneseq }
  0xb4   : > { %v4209_v35 = vld [vmem:[%s4934_s11 + $0x10] ss:$8 sps:$4 sm:$0xff]   ;;  %v4210_v36 = vld [vmem:[%s4934_s11 + $0x24] ss:$8 sps:$4 sm:$0xff]   ;;  %v4212_v37 = vld [vmem:[%s4934_s11 + $0x20] ss:$8 sps:$4 sm:$0xff]  }
  0xb5   : > { %v4213_v38 = vld [vmem:[%s4934_s11 + $0x34] ss:$8 sps:$4 sm:$0xff]   ;;  %v4215_v39 = vld [vmem:[%s4934_s11 + $0x30] ss:$8 sps:$4 sm:$0xff]   ;;  %v4216_v40 = vld [vmem:[%s4934_s11 + $0x44] ss:$8 sps:$4 sm:$0xff]  }
  0xb6   : > { %926 = vmatpush1.bf16.msra.mxu0 %v4167_v7  ;;  %v4218_v41 = vld [vmem:[%s4934_s11 + $0x40] ss:$8 sps:$4 sm:$0xff]   ;;  %v4219_v42 = vld [vmem:[%s4934_s11 + $0x54] ss:$8 sps:$4 sm:$0xff]   ;;  %v4221_v43 = vld [vmem:[%s4934_s11 + $0x50] ss:$8 sps:$4 sm:$0xff]  }
  0xb7   : > { %927 = vmatprep.subr.bf16.mxu0 %v4168_v8  ;;  %v4222_v44 = vld [vmem:[%s4934_s11 + $0x64] ss:$8 sps:$4 sm:$0xff]   ;;  %v4224_v45 = vld [vmem:[%s4934_s11 + $0x60] ss:$8 sps:$4 sm:$0xff]   ;;  %v4225_v46 = vld [vmem:[%s4934_s11 + $0x74] ss:$8 sps:$4 sm:$0xff]  }
  0xb8   : > { %v4227_v47 = vld [vmem:[%s4934_s11 + $0x70] ss:$8 sps:$4 sm:$0xff]   ;;  %v4228_v48 = vld [vmem:[%s4934_s11 + $0x84] ss:$8 sps:$4 sm:$0xff]   ;;  %v4230_v49 = vld [vmem:[%s4934_s11 + $0x80] ss:$8 sps:$4 sm:$0xff]  }
  0xb9   : > { %v4231_v50 = vld [vmem:[%s4934_s11 + $0x94] ss:$8 sps:$4 sm:$0xff]   ;;  %v4233_v51 = vld [vmem:[%s4934_s11 + $0x90] ss:$8 sps:$4 sm:$0xff]   ;;  %v4234_v52 = vld [vmem:[%s4934_s11 + $0xa4] ss:$8 sps:$4 sm:$0xff]  }
  0xba   : > { %928 = vmatpush1.bf16.msra.mxu0 %v4170_v9  ;;  %v4236_v53 = vld [vmem:[%s4934_s11 + $0xa0] ss:$8 sps:$4 sm:$0xff]   ;;  %v4237_v54 = vld [vmem:[%s4934_s11 + $0xb4] ss:$8 sps:$4 sm:$0xff]   ;;  %v4239_v55 = vld [vmem:[%s4934_s11 + $0xb0] ss:$8 sps:$4 sm:$0xff]  }
  0xbb   : > { %929 = vmatprep.subr.bf16.mxu0 %v4171_v10  ;;  %v4240_v56 = vld [vmem:[%s4934_s11 + $0xc4] ss:$8 sps:$4 sm:$0xff]   ;;  %v4242_v57 = vld [vmem:[%s4934_s11 + $0xc0] ss:$8 sps:$4 sm:$0xff]   ;;  %v4243_v58 = vld [vmem:[%s4934_s11 + $0xd4] ss:$8 sps:$4 sm:$0xff]  }
  0xbc   : > { %v4245_v59 = vld [vmem:[%s4934_s11 + $0xd0] ss:$8 sps:$4 sm:$0xff]   ;;  %v4246_v60 = vld [vmem:[%s4934_s11 + $0xe4] ss:$8 sps:$4 sm:$0xff]   ;;  %v4248_v61 = vld [vmem:[%s4934_s11 + $0xe0] ss:$8 sps:$4 sm:$0xff]  }
  0xbd   : > { %v4249_v62 = vld [vmem:[%s4934_s11 + $0xf4] ss:$8 sps:$4 sm:$0xff]   ;;  %v4251_v63 = vld [vmem:[%s4934_s11 + $0xf0] ss:$8 sps:$4 sm:$0xff]   ;;  %v4252_v0 = vld [vmem:[#allocation7 + $0x40] sm:$0xff]   ;;  %v590_v9 = vshrl.u32 %v589_v6, 7 }
  0xbe   : > { %930 = vmatpush1.bf16.msra.mxu0 %v4173_v11  ;;  %v4253_v1 = vld [vmem:[#allocation7] sm:$0xff]   ;;  %4062 = vmatprep.subr.bf16.mxu1 %v4252_v0  ;;  %v4254_v2 = vld [vmem:[#allocation7 + $0x48] sm:$0xff]   ;;  %v4256_v4 = vld [vmem:[#allocation7 + $0x50] sm:$0xff]   ;;  %s7117_s25 = sld [smem:[#allocation50_spill]]  ;;  %s7118_s16 = sld [smem:[#allocation51_spill]] }
  0xbf   : > { %931 = vmatprep.subr.bf16.mxu0 %v4174_v12  ;;  %4070 = vmatpush3.bf16.msra.mxu1 %v4253_v1  ;;  %v4255_v3 = vld [vmem:[#allocation7 + $0x8] sm:$0xff]   ;;  %v4257_v5 = vld [vmem:[#allocation7 + $0x10] sm:$0xff]   ;;  %v4258_v7 = vld [vmem:[#allocation7 + $0x58] sm:$0xff]   ;;  %v4980_v10 = vsub.s32 0, %v590_v9  ;;  %v4985_v12 = vsub.s32 1, %v590_v9  ;;  %s7119_s22 = sld [smem:[#allocation52_spill]] }
  0xc0   : > { %4063 = vmatprep.subr.bf16.mxu1 %v4254_v2  ;;  %v4259_v8 = vld [vmem:[#allocation7 + $0x18] sm:$0xff]   ;;  %v587_v11 = vld [vmem:[%s6939_s2] sm:$0x3]  ;;  %s7120_s15 = sld [smem:[#allocation53_spill]]  ;;  %s6627_s14 = scalar_lea.vmem [#allocation10], %s3766_s24 }
  0xc1   : > { %v4988_v13 = vrot.slane %v587_v11, %v4980_v10  ;;  %s3629_s24 = scalar_lea.sflag [#allocation4], %s4928_s21  ;;  %s7121_s12 = sld [smem:[#allocation18_spill]] }
  0xc2   : > { %932 = vmatpush1.bf16.msra.mxu0 %v4176_v14  ;;  %v4991_v14 = vrot.slane %v587_v11, %v4985_v12 }
  0xc3   : > { %933 = vmatprep.subr.bf16.mxu0 %v4177_v15  ;;  %4071 = vmatpush3.bf16.msra.mxu1 %v4255_v3 }
  0xc4   : > { %4064 = vmatprep.subr.bf16.mxu1 %v4256_v4 }
  0xc6   : > { %934 = vmatpush1.bf16.msra.mxu0 %v4179_v16  ;;  %v4260_v16 = vld [vmem:[#allocation7 + $0x60] sm:$0xff]  }
  0xc7   : > { %935 = vmatprep.subr.bf16.mxu0 %v4180_v17  ;;  %4072 = vmatpush3.bf16.msra.mxu1 %v4257_v5  ;;  %v4261_v17 = vld [vmem:[#allocation7 + $0x20] sm:$0xff]   ;;  %p7122_p1 = scmp.ne.s32.totalorder %s7121_s12, 0 }
  0xc8   : > { %4065 = vmatprep.subr.bf16.mxu1 %v4258_v7  ;;  %s3866_s1 = sshll.u32 (%p7122_p1), %s4760_s29, 5 }
  0xc9   : > { %s3637_s23 = ssub.s32 (%p7122_p1), 48, %s3866_s1 }
  0xca   : > { %936 = vmatpush1.bf16.msra.mxu0 %v4182_v18  ;;  %p3638_p6 = scmp.lt.s32.totalorder (%p7122_p1), %s3637_s23, 32 }
  0xcb   : > { %937 = vmatprep.subr.bf16.mxu0 %v4183_v19  ;;  %4073 = vmatpush3.bf16.msra.mxu1 %v4259_v8 }
  0xcc   : > { %4066 = vmatprep.subr.bf16.mxu1 %v4260_v16 }
  0xce   : > { %938 = vmatpush1.bf16.msra.mxu0 %v4185_v20 }
  0xcf   : > { %939 = vmatprep.subr.bf16.mxu0 %v4186_v21  ;;  %4074 = vmatpush3.bf16.msra.mxu1 %v4261_v17 }
  0xd2   : > { %940 = vmatpush1.bf16.msra.mxu0 %v4188_v22 }
  0xd3   : > { %941 = vmatprep.subr.bf16.mxu0 %v4189_v23 }
  0xd6   : > { %942 = vmatpush1.bf16.msra.mxu0 %v4191_v24 }
  0xd7   : > { %943 = vmatprep.subr.bf16.mxu0 %v4192_v25 }
  0xda   : > { %944 = vmatpush1.bf16.msra.mxu0 %v4194_v26 }
  0xdb   : > { %945 = vmatprep.subr.bf16.mxu0 %v4195_v27 }
  0xde   : > { %946 = vmatpush1.bf16.msra.mxu0 %v4197_v28 }
  0xdf   : > { %947 = vmatprep.subr.bf16.mxu0 %v4198_v29 }
  0xe2   : > { %948 = vmatpush1.bf16.msra.mxu0 %v4200_v30 }
  0xe3   : > { %949 = vmatprep.subr.bf16.mxu0 %v4201_v31  ;;  %v4262_v31 = vld [vmem:[#allocation7 + $0x68] sm:$0xff]  }
  0xe4   : > { %4067 = vmatprep.subr.bf16.mxu1 %v4262_v31 }
  0xe6   : > { %950 = vmatpush1.bf16.msra.mxu0 %v4203_v32  ;;  %v4263_v32 = vld [vmem:[#allocation7 + $0x28] sm:$0xff]  }
  0xe7   : > { %3878 = vmatprep.subr.bf16.mxu0 %v4252_v0  ;;  %4075 = vmatpush3.bf16.msra.mxu1 %v4263_v32 }
  0xe9   : > { %952 = vmatmul.mubr.bf16.vlgmr.msra.gmra.mrb[0].mxu0 %v4204_v33 }
  0xea   : > { %961 = vmatprep.mubr.bf16.mxu0 %v4207_v34  ;;  %3879 = vmatpush3.bf16.msra.mxu0 %v4253_v1 }
  0xeb   : > { %3880 = vmatprep.subr.bf16.mxu0 %v4254_v2 }
  0xee   : > { %3881 = vmatpush3.bf16.msra.mxu0 %v4255_v3 }
  0xef   : > { %3882 = vmatprep.subr.bf16.mxu0 %v4256_v4 }
  0xf1   : > { %962 = vmatmul.mubr.bf16.gmra.mrb[4].mxu0 %v4209_v35 }
  0xf2   : > { %971 = vmatprep.mubr.bf16.mxu0 %v4210_v36  ;;  %3883 = vmatpush3.bf16.msra.mxu0 %v4257_v5 }
  0xf3   : > { %3884 = vmatprep.subr.bf16.mxu0 %v4258_v7 }
  0xf6   : > { %3885 = vmatpush3.bf16.msra.mxu0 %v4259_v8 }
  0xf7   : > { %3886 = vmatprep.subr.bf16.mxu0 %v4260_v16 }
  0xf9   : > { %972 = vmatmul.mubr.bf16.gmra.mrb[8].mxu0 %v4212_v37 }
  0xfa   : > { %981 = vmatprep.mubr.bf16.mxu0 %v4213_v38  ;;  %3887 = vmatpush3.bf16.msra.mxu0 %v4261_v17 }
  0xfb   : > { %3888 = vmatprep.subr.bf16.mxu0 %v4262_v31 }
  0xfe   : > { %3889 = vmatpush3.bf16.msra.mxu0 %v4263_v32 }
 0x101   : > { %982 = vmatmul.mubr.bf16.gmra.mrb[12].mxu0 %v4215_v39 }
 0x102   : > { %991 = vmatprep.mubr.bf16.mxu0 %v4216_v40 }
 0x109   : > { %992 = vmatmul.mubr.bf16.gmra.mrb[16].mxu0 %v4218_v41 }
 0x10a   : > { %1001 = vmatprep.mubr.bf16.mxu0 %v4219_v42 }
 0x111   : > { %1002 = vmatmul.mubr.bf16.gmra.mrb[20].mxu0 %v4221_v43 }
 0x112   : > { %1011 = vmatprep.mubr.bf16.mxu0 %v4222_v44 }
 0x119   : > { %1012 = vmatmul.mubr.bf16.gmra.mrb[24].mxu0 %v4224_v45 }
 0x11a   : > { %1021 = vmatprep.mubr.bf16.mxu0 %v4225_v46 }
 0x121   : > { %1022 = vmatmul.mubr.bf16.gmra.mrb[28].mxu0 %v4227_v47 }
 0x122   : > { %1031 = vmatprep.mubr.bf16.mxu0 %v4228_v48 }
 0x129   : > { %1032 = vmatmul.mubr.bf16.gmra.mrb[32].mxu0 %v4230_v49 }
 0x12a   : > { %1041 = vmatprep.mubr.bf16.mxu0 %v4231_v50 }
 0x131   : > { %1042 = vmatmul.mubr.bf16.gmra.mrb[36].mxu0 %v4233_v51 }
 0x132   : > { %1051 = vmatprep.mubr.bf16.mxu0 %v4234_v52 }
 0x139   : > { %1052 = vmatmul.mubr.bf16.gmra.mrb[40].mxu0 %v4236_v53 }
 0x13a   : > { %1061 = vmatprep.mubr.bf16.mxu0 %v4237_v54 }
 0x141   : > { %1062 = vmatmul.mubr.bf16.gmra.mrb[44].mxu0 %v4239_v55 }
 0x142   : > { %1071 = vmatprep.mubr.bf16.mxu0 %v4240_v56 }
 0x149   : > { %1072 = vmatmul.mubr.bf16.gmra.mrb[48].mxu0 %v4242_v57 }
 0x14a   : > { %1081 = vmatprep.mubr.bf16.mxu0 %v4243_v58 }
 0x151   : > { %1082 = vmatmul.mubr.bf16.gmra.mrb[52].mxu0 %v4245_v59 }
 0x152   : > { %1091 = vmatprep.mubr.bf16.mxu0 %v4246_v60 }
 0x159   : > { %1092 = vmatmul.mubr.bf16.gmra.mrb[56].mxu0 %v4248_v61 }
 0x15a   : > { %1101 = vmatprep.mubr.bf16.mxu0 %v4249_v62 }
 0x161   : > { %1102 = vmatmul.mubr.bf16.gmra.mrb[60].mxu0 %v4251_v63 }
 0x1bc   : > { %v953_v15 = vpop.f32.mrb[0].mxu0 }
 0x1bd   : > { %v4994_v18 = vadd.f32 %v953_v15, %v4988_v13  ;;  %v955_v19 = vpop.f32.mrb[1].mxu0 }
 0x1be   : > { %v4997_v20 = vadd.f32 %v955_v19, %v4991_v14  ;;  %v957_v21 = vpop.f32.mrb[2].mxu0 }
 0x1bf   : > { %v5000_v22 = vadd.f32 %v957_v21, %v4988_v13  ;;  %v959_v23 = vpop.f32.mrb[3].mxu0  ;;  %v1242_v26 = vmul.f32 %v4994_v18, %v4994_v18 }
 0x1c0   : > { %v5003_v24 = vadd.f32 %v959_v23, %v4991_v14  ;;  %v1114_v25 = vadd.f32 %v4997_v20, %v4994_v18  ;;  %v1243_v27 = vmul.f32 %v4997_v20, %v4997_v20 }
 0x1c1   : > { %v1244_v29 = vmul.f32 %v5000_v22, %v5000_v22 }
 0x1c2   : > { %1115 = vadd.xlane.f32.xlu0 %v1114_v25  ;;  %v1117_v28 = vadd.f32 %v5003_v24, %v5000_v22  ;;  %v1245_v30 = vmul.f32 %v5003_v24, %v5003_v24  ;;  %v1306_v34 = vadd.f32 %v1243_v27, %v1242_v26 }
 0x1c4   : > { %v963_v33 = vpop.f32.mrb[4].mxu0  ;;  %1118 = vadd.xlane.f32.xlu1 %v1117_v28  ;;  %v1309_v39 = vadd.f32 %v1245_v30, %v1244_v29 }
 0x1c5   : > { %v5018_v35 = vadd.f32 %v963_v33, %v4988_v13  ;;  %v965_v36 = vpop.f32.mrb[5].mxu0 }
 0x1c6   : > { %v5021_v37 = vadd.f32 %v965_v36, %v4991_v14  ;;  %v967_v38 = vpop.f32.mrb[6].mxu0  ;;  %1307 = vadd.xlane.f32.xlu0 %v1306_v34 }
 0x1c7   : > { %v5024_v40 = vadd.f32 %v967_v38, %v4988_v13  ;;  %v969_v41 = vpop.f32.mrb[7].mxu0  ;;  %v1246_v0 = vmul.f32 %v5018_v35, %v5018_v35 }
 0x1c8   : > { %v5027_v42 = vadd.f32 %v969_v41, %v4991_v14  ;;  %1310 = vadd.xlane.f32.xlu1 %v1309_v39  ;;  %v1120_v43 = vadd.f32 %v5021_v37, %v5018_v35  ;;  %v1247_v1 = vmul.f32 %v5021_v37, %v5021_v37 }
 0x1c9   : > { %v1248_v45 = vmul.f32 %v5024_v40, %v5024_v40 }
 0x1ca   : > { %1121 = vadd.xlane.f32.xlu0 %v1120_v43  ;;  %v1123_v44 = vadd.f32 %v5027_v42, %v5024_v40  ;;  %v1249_v46 = vmul.f32 %v5027_v42, %v5027_v42  ;;  %v1312_v11 = vadd.f32 %v1247_v1, %v1246_v0 }
 0x1cc   : > { %v973_v47 = vpop.f32.mrb[8].mxu0  ;;  %1124 = vadd.xlane.f32.xlu1 %v1123_v44  ;;  %v1315_v52 = vadd.f32 %v1249_v46, %v1248_v45 }
 0x1cd   : > { %v5038_v48 = vadd.f32 %v973_v47, %v4988_v13  ;;  %v975_v49 = vpop.f32.mrb[9].mxu0 }
 0x1ce   : > { %v5041_v50 = vadd.f32 %v975_v49, %v4991_v14  ;;  %v977_v51 = vpop.f32.mrb[10].mxu0 }
 0x1cf   : > { %v5044_v53 = vadd.f32 %v977_v51, %v4988_v13  ;;  %v979_v54 = vpop.f32.mrb[11].mxu0  ;;  %v1250_v55 = vmul.f32 %v5038_v48, %v5038_v48 }
 0x1d0   : > { %v5049_v56 = vadd.f32 %v979_v54, %v4991_v14  ;;  %1316 = vadd.xlane.f32.xlu1 %v1315_v52  ;;  %v1126_v57 = vadd.f32 %v5041_v50, %v5038_v48  ;;  %v1251_v58 = vmul.f32 %v5041_v50, %v5041_v50 }
 0x1d1   : > { %v1252_v60 = vmul.f32 %v5044_v53, %v5044_v53 }
 0x1d2   : > { %1127 = vadd.xlane.f32.xlu0 %v1126_v57  ;;  %v1318_v59 = vadd.f32 %v1251_v58, %v1250_v55  ;;  %v1253_v61 = vmul.f32 %v5049_v56, %v5049_v56  ;;  %v1129_v63 = vadd.f32 %v5049_v56, %v5044_v53 }
 0x1d4   : > { %v983_v62 = vpop.f32.mrb[12].mxu0  ;;  %1319 = vadd.xlane.f32.xlu1 %v1318_v59  ;;  %v1321_v6 = vadd.f32 %v1253_v61, %v1252_v60  ;;  %v4264_v61 = vld [vmem:[#allocation7 + $0x70] sm:$0xff]  }
 0x1d5   : > { %v985_v2 = vpop.f32.mrb[13].mxu0  ;;  %v5066_v3 = vadd.f32 %v983_v62, %v4988_v13  ;;  %v4265_v62 = vld [vmem:[#allocation7 + $0x30] sm:$0xff]   ;;  %3890 = vmatprep.subr.bf16.mxu0 %v4264_v61  ;;  %4068 = vmatprep.subr.bf16.mxu1 %v4264_v61 }
 0x1d6   : > { %v5069_v4 = vadd.f32 %v985_v2, %v4991_v14  ;;  %v987_v5 = vpop.f32.mrb[14].mxu0  ;;  %1130 = vadd.xlane.f32.xlu0 %v1129_v63  ;;  %3891 = vmatpush3.bf16.msra.mxu0 %v4265_v62 }
 0x1d7   : > { %v5072_v7 = vadd.f32 %v987_v5, %v4988_v13  ;;  %v989_v8 = vpop.f32.mrb[15].mxu0  ;;  %v1254_v16 = vmul.f32 %v5066_v3, %v5066_v3  ;;  %4076 = vmatpush3.bf16.msra.mxu1 %v4265_v62 }
 0x1d8   : > { %v5075_v9 = vadd.f32 %v989_v8, %v4991_v14  ;;  %1322 = vadd.xlane.f32.xlu1 %v1321_v6  ;;  %v1132_v19 = vadd.f32 %v5069_v4, %v5066_v3  ;;  %v1255_v23 = vmul.f32 %v5069_v4, %v5069_v4 }
 0x1d9   : > { %v1256_v15 = vmul.f32 %v5072_v7, %v5072_v7 }
 0x1da   : > { %1313 = vadd.xlane.f32.xlu0 %v1312_v11  ;;  %v1135_v17 = vadd.f32 %v5075_v9, %v5072_v7  ;;  %v1257_v21 = vmul.f32 %v5075_v9, %v5075_v9  ;;  %v1324_v31 = vadd.f32 %v1255_v23, %v1254_v16  ;;  %v4266_v23 = vld [vmem:[#allocation7 + $0x78] sm:$0xff]  }
 0x1db   : > { %3892 = vmatprep.subr.bf16.mxu0 %v4266_v23  ;;  %4069 = vmatprep.subr.bf16.mxu1 %v4266_v23 }
 0x1dc   : > { %v993_v25 = vpop.f32.mrb[16].mxu0  ;;  %1136 = vadd.xlane.f32.xlu1 %v1135_v17  ;;  %v1327_v26 = vadd.f32 %v1257_v21, %v1256_v15 }
 0x1dd   : > { %v995_v27 = vpop.f32.mrb[17].mxu0  ;;  %v5090_v28 = vadd.f32 %v993_v25, %v4988_v13 }
 0x1de   : > { %v5093_v29 = vadd.f32 %v995_v27, %v4991_v14  ;;  %v997_v30 = vpop.f32.mrb[18].mxu0  ;;  %1133 = vadd.xlane.f32.xlu0 %v1132_v19 }
 0x1df   : > { %v5096_v32 = vadd.f32 %v997_v30, %v4988_v13  ;;  %v999_v33 = vpop.f32.mrb[19].mxu0  ;;  %v1258_v38 = vmul.f32 %v5090_v28, %v5090_v28 }
 0x1e0   : > { %v5099_v34 = vadd.f32 %v999_v33, %v4991_v14  ;;  %1328 = vadd.xlane.f32.xlu1 %v1327_v26  ;;  %v1138_v41 = vadd.f32 %v5093_v29, %v5090_v28  ;;  %v1259_v44 = vmul.f32 %v5093_v29, %v5093_v29  ;;  %v4267_v26 = vld [vmem:[#allocation7 + $0x38] sm:$0xff]  }
 0x1e1   : > { %v1260_v36 = vmul.f32 %v5096_v32, %v5096_v32  ;;  %3893 = vmatpush3.bf16.msra.mxu0 %v4267_v26  ;;  %4077 = vmatpush3.bf16.msra.mxu1 %v4267_v26 }
 0x1e2   : > { %1325 = vadd.xlane.f32.xlu0 %v1324_v31  ;;  %v1141_v39 = vadd.f32 %v5099_v34, %v5096_v32  ;;  %v1261_v43 = vmul.f32 %v5099_v34, %v5099_v34  ;;  %v1330_v54 = vadd.f32 %v1259_v44, %v1258_v38 }
 0x1e4   : > { %v1003_v45 = vpop.f32.mrb[20].mxu0  ;;  %1142 = vadd.xlane.f32.xlu1 %v1141_v39  ;;  %v1333_v46 = vadd.f32 %v1261_v43, %v1260_v36 }
 0x1e5   : > { %v1005_v47 = vpop.f32.mrb[21].mxu0  ;;  %v5114_v49 = vadd.f32 %v1003_v45, %v4988_v13 }
 0x1e6   : > { %v5117_v51 = vadd.f32 %v1005_v47, %v4991_v14  ;;  %v1007_v52 = vpop.f32.mrb[22].mxu0  ;;  %1139 = vadd.xlane.f32.xlu0 %v1138_v41 }
 0x1e7   : > { %v5120_v55 = vadd.f32 %v1007_v52, %v4988_v13  ;;  %v1009_v57 = vpop.f32.mrb[23].mxu0  ;;  %v1262_v60 = vmul.f32 %v5114_v49, %v5114_v49 }
 0x1e8   : > { %v5123_v58 = vadd.f32 %v1009_v57, %v4991_v14  ;;  %1334 = vadd.xlane.f32.xlu1 %v1333_v46  ;;  %v1144_v0 = vadd.f32 %v5117_v51, %v5114_v49  ;;  %v1263_v2 = vmul.f32 %v5117_v51, %v5117_v51 }
 0x1e9   : > { %7038 = vst [vmem:[#allocation20_spill] sm:$0xff] %v5120_v55  ;;  %v1264_v59 = vmul.f32 %v5120_v55, %v5120_v55 }
 0x1ea   : > { %1331 = vadd.xlane.f32.xlu0 %v1330_v54  ;;  %v1147_v63 = vadd.f32 %v5123_v58, %v5120_v55  ;;  %v1265_v1 = vmul.f32 %v5123_v58, %v5123_v58  ;;  %v1336_v17 = vadd.f32 %v1263_v2, %v1262_v60 }
 0x1ec   : > { %v1013_v5 = vpop.f32.mrb[24].mxu0  ;;  %1148 = vadd.xlane.f32.xlu1 %v1147_v63  ;;  %v1339_v6 = vadd.f32 %v1265_v1, %v1264_v59 }
 0x1ed   : > { %v5138_v8 = vadd.f32 %v1013_v5, %v4988_v13  ;;  %v1015_v11 = vpop.f32.mrb[25].mxu0 }
 0x1ee   : > { %v5141_v15 = vadd.f32 %v1015_v11, %v4991_v14  ;;  %v1017_v16 = vpop.f32.mrb[26].mxu0  ;;  %1145 = vadd.xlane.f32.xlu0 %v1144_v0 }
 0x1ef   : > { %v5144_v19 = vadd.f32 %v1017_v16, %v4988_v13  ;;  %v1019_v21 = vpop.f32.mrb[27].mxu0  ;;  %v1266_v31 = vmul.f32 %v5138_v8, %v5138_v8 }
 0x1f0   : > { %v5147_v25 = vadd.f32 %v1019_v21, %v4991_v14  ;;  %1340 = vadd.xlane.f32.xlu1 %v1339_v6  ;;  %v1150_v27 = vadd.f32 %v5141_v15, %v5138_v8  ;;  %v1267_v38 = vmul.f32 %v5141_v15, %v5141_v15 }
 0x1f1   : > { %v1268_v30 = vmul.f32 %v5144_v19, %v5144_v19 }
 0x1f2   : > { %1337 = vadd.xlane.f32.xlu0 %v1336_v17  ;;  %v1153_v33 = vadd.f32 %v5147_v25, %v5144_v19  ;;  %v1269_v36 = vmul.f32 %v5147_v25, %v5147_v25  ;;  %v1342_v47 = vadd.f32 %v1267_v38, %v1266_v31 }
 0x1f4   : > { %v1023_v39 = vpop.f32.mrb[28].mxu0  ;;  %1154 = vadd.xlane.f32.xlu1 %v1153_v33  ;;  %v1345_v41 = vadd.f32 %v1269_v36, %v1268_v30 }
 0x1f5   : > { %v1025_v43 = vpop.f32.mrb[29].mxu0  ;;  %v5162_v44 = vadd.f32 %v1023_v39, %v4988_v13 }
 0x1f6   : > { %v5165_v45 = vadd.f32 %v1025_v43, %v4991_v14  ;;  %v1027_v46 = vpop.f32.mrb[30].mxu0  ;;  %1151 = vadd.xlane.f32.xlu0 %v1150_v27 }
 0x1f7   : > { %v5168_v52 = vadd.f32 %v1027_v46, %v4988_v13  ;;  %v1029_v54 = vpop.f32.mrb[31].mxu0  ;;  %v1270_v60 = vmul.f32 %v5162_v44, %v5162_v44 }
 0x1f8   : > { %v5171_v57 = vadd.f32 %v1029_v54, %v4991_v14  ;;  %1346 = vadd.xlane.f32.xlu1 %v1345_v41  ;;  %v1156_v62 = vadd.f32 %v5165_v45, %v5162_v44  ;;  %v1271_v0 = vmul.f32 %v5165_v45, %v5165_v45 }
 0x1f9   : > { %v1272_v59 = vmul.f32 %v5168_v52, %v5168_v52 }
 0x1fa   : > { %1343 = vadd.xlane.f32.xlu0 %v1342_v47  ;;  %v1159_v61 = vadd.f32 %v5171_v57, %v5168_v52  ;;  %v1273_v63 = vmul.f32 %v5171_v57, %v5171_v57  ;;  %v1348_v17 = vadd.f32 %v1271_v0, %v1270_v60 }
 0x1fc   : > { %v1033_v1 = vpop.f32.mrb[32].mxu0  ;;  %1160 = vadd.xlane.f32.xlu1 %v1159_v61  ;;  %v1351_v2 = vadd.f32 %v1273_v63, %v1272_v59 }
 0x1fd   : > { %v1035_v5 = vpop.f32.mrb[33].mxu0  ;;  %v5186_v6 = vadd.f32 %v1033_v1, %v4988_v13 }
 0x1fe   : > { %v5189_v11 = vadd.f32 %v1035_v5, %v4991_v14  ;;  %v1037_v16 = vpop.f32.mrb[34].mxu0  ;;  %1157 = vadd.xlane.f32.xlu0 %v1156_v62 }
 0x1ff   : > { %v5192_v21 = vadd.f32 %v1037_v16, %v4988_v13  ;;  %v1039_v23 = vpop.f32.mrb[35].mxu0  ;;  %v1274_v30 = vmul.f32 %v5186_v6, %v5186_v6 }
 0x200   : > { %v5195_v26 = vadd.f32 %v1039_v23, %v4991_v14  ;;  %1352 = vadd.xlane.f32.xlu1 %v1351_v2  ;;  %v1162_v33 = vadd.f32 %v5189_v11, %v5186_v6  ;;  %v1275_v38 = vmul.f32 %v5189_v11, %v5189_v11 }
 0x201   : > { %v1276_v27 = vmul.f32 %v5192_v21, %v5192_v21 }
 0x202   : > { %1349 = vadd.xlane.f32.xlu0 %v1348_v17  ;;  %v1165_v31 = vadd.f32 %v5195_v26, %v5192_v21  ;;  %v1277_v36 = vmul.f32 %v5195_v26, %v5195_v26  ;;  %v1354_v59 = vadd.f32 %v1275_v38, %v1274_v30 }
 0x204   : > { %v1043_v39 = vpop.f32.mrb[36].mxu0  ;;  %1166 = vadd.xlane.f32.xlu1 %v1165_v31  ;;  %v1357_v41 = vadd.f32 %v1277_v36, %v1276_v27 }
 0x205   : > { %v1045_v43 = vpop.f32.mrb[37].mxu0  ;;  %v5210_v46 = vadd.f32 %v1043_v39, %v4988_v13 }
 0x206   : > { %v5213_v47 = vadd.f32 %v1045_v43, %v4991_v14  ;;  %v1047_v54 = vpop.f32.mrb[38].mxu0  ;;  %1163 = vadd.xlane.f32.xlu0 %v1162_v33 }
 0x207   : > { %7039 = vst [vmem:[#allocation21_spill] sm:$0xff] %v5210_v46  ;;  %v5216_v60 = vadd.f32 %v1047_v54, %v4988_v13  ;;  %v1049_v61 = vpop.f32.mrb[39].mxu0  ;;  %v1278_v0 = vmul.f32 %v5210_v46, %v5210_v46 }
 0x208   : > { %7040 = vst [vmem:[#allocation22_spill] sm:$0xff] %v5213_v47  ;;  %v5219_v62 = vadd.f32 %v1049_v61, %v4991_v14  ;;  %1358 = vadd.xlane.f32.xlu1 %v1357_v41  ;;  %v1168_v2 = vadd.f32 %v5213_v47, %v5210_v46  ;;  %v1279_v16 = vmul.f32 %v5213_v47, %v5213_v47 }
 0x209   : > { %7041 = vst [vmem:[#allocation23_spill] sm:$0xff] %v5216_v60  ;;  %v1280_v63 = vmul.f32 %v5216_v60, %v5216_v60 }
 0x20a   : > { %7042 = vst [vmem:[#allocation24_spill] sm:$0xff] %v5219_v62  ;;  %1355 = vadd.xlane.f32.xlu0 %v1354_v59  ;;  %v1171_v1 = vadd.f32 %v5219_v62, %v5216_v60  ;;  %v1281_v5 = vmul.f32 %v5219_v62, %v5219_v62  ;;  %v1360_v36 = vadd.f32 %v1279_v16, %v1278_v0 }
 0x20c   : > { %v1053_v17 = vpop.f32.mrb[40].mxu0  ;;  %1172 = vadd.xlane.f32.xlu1 %v1171_v1  ;;  %v1363_v23 = vadd.f32 %v1281_v5, %v1280_v63 }
 0x20d   : > { %v1055_v27 = vpop.f32.mrb[41].mxu0  ;;  %v5234_v30 = vadd.f32 %v1053_v17, %v4988_v13 }
 0x20e   : > { %v5237_v31 = vadd.f32 %v1055_v27, %v4991_v14  ;;  %v1057_v33 = vpop.f32.mrb[42].mxu0  ;;  %1169 = vadd.xlane.f32.xlu0 %v1168_v2 }
 0x20f   : > { %7043 = vst [vmem:[#allocation25_spill] sm:$0xff] %v5234_v30  ;;  %v5240_v38 = vadd.f32 %v1057_v33, %v4988_v13  ;;  %v1059_v39 = vpop.f32.mrb[43].mxu0  ;;  %v1282_v54 = vmul.f32 %v5234_v30, %v5234_v30 }
 0x210   : > { %7044 = vst [vmem:[#allocation26_spill] sm:$0xff] %v5237_v31  ;;  %v5243_v41 = vadd.f32 %v1059_v39, %v4991_v14  ;;  %1364 = vadd.xlane.f32.xlu1 %v1363_v23  ;;  %v1174_v61 = vadd.f32 %v5237_v31, %v5234_v30  ;;  %v1283_v0 = vmul.f32 %v5237_v31, %v5237_v31 }
 0x211   : > { %7045 = vst [vmem:[#allocation27_spill] sm:$0xff] %v5240_v38  ;;  %v1284_v43 = vmul.f32 %v5240_v38, %v5240_v38 }
 0x212   : > { %7046 = vst [vmem:[#allocation28_spill] sm:$0xff] %v5243_v41  ;;  %1361 = vadd.xlane.f32.xlu0 %v1360_v36  ;;  %v1177_v59 = vadd.f32 %v5243_v41, %v5240_v38  ;;  %v1285_v63 = vmul.f32 %v5243_v41, %v5243_v41  ;;  %v1366_v27 = vadd.f32 %v1283_v0, %v1282_v54 }
 0x214   : > { %v1063_v1 = vpop.f32.mrb[44].mxu0  ;;  %1178 = vadd.xlane.f32.xlu1 %v1177_v59  ;;  %v1369_v2 = vadd.f32 %v1285_v63, %v1284_v43 }
 0x215   : > { %v1065_v5 = vpop.f32.mrb[45].mxu0  ;;  %v5258_v16 = vadd.f32 %v1063_v1, %v4988_v13 }
 0x216   : > { %v5261_v17 = vadd.f32 %v1065_v5, %v4991_v14  ;;  %v1067_v23 = vpop.f32.mrb[46].mxu0  ;;  %1175 = vadd.xlane.f32.xlu0 %v1174_v61 }
 0x217   : > { %7047 = vst [vmem:[#allocation29_spill] sm:$0xff] %v5258_v16  ;;  %v5264_v33 = vadd.f32 %v1067_v23, %v4988_v13  ;;  %v1069_v36 = vpop.f32.mrb[47].mxu0  ;;  %v1286_v59 = vmul.f32 %v5258_v16, %v5258_v16 }
 0x218   : > { %7048 = vst [vmem:[#allocation30_spill] sm:$0xff] %v5261_v17  ;;  %v5267_v39 = vadd.f32 %v1069_v36, %v4991_v14  ;;  %1370 = vadd.xlane.f32.xlu1 %v1369_v2  ;;  %v1180_v54 = vadd.f32 %v5261_v17, %v5258_v16  ;;  %v1287_v0 = vmul.f32 %v5261_v17, %v5261_v17 }
 0x219   : > { %7049 = vst [vmem:[#allocation31_spill] sm:$0xff] %v5264_v33  ;;  %v1288_v43 = vmul.f32 %v5264_v33, %v5264_v33 }
 0x21a   : > { %7050 = vst [vmem:[#allocation32_spill] sm:$0xff] %v5267_v39  ;;  %1367 = vadd.xlane.f32.xlu0 %v1366_v27  ;;  %v1183_v63 = vadd.f32 %v5267_v39, %v5264_v33  ;;  %v1289_v61 = vmul.f32 %v5267_v39, %v5267_v39  ;;  %v1372_v33 = vadd.f32 %v1287_v0, %v1286_v59 }
 0x21c   : > { %v1073_v1 = vpop.f32.mrb[48].mxu0  ;;  %1184 = vadd.xlane.f32.xlu1 %v1183_v63  ;;  %v1375_v2 = vadd.f32 %v1289_v61, %v1288_v43 }
 0x21d   : > { %v1075_v5 = vpop.f32.mrb[49].mxu0  ;;  %v5282_v23 = vadd.f32 %v1073_v1, %v4988_v13 }
 0x21e   : > { %v5285_v27 = vadd.f32 %v1075_v5, %v4991_v14  ;;  %v1077_v36 = vpop.f32.mrb[50].mxu0  ;;  %1181 = vadd.xlane.f32.xlu0 %v1180_v54 }
 0x21f   : > { %7051 = vst [vmem:[#allocation33_spill] sm:$0xff] %v5282_v23  ;;  %v5288_v16 = vadd.f32 %v1077_v36, %v4988_v13  ;;  %v1079_v39 = vpop.f32.mrb[51].mxu0  ;;  %v1290_v63 = vmul.f32 %v5282_v23, %v5282_v23 }
 0x220   : > { %7052 = vst [vmem:[#allocation34_spill] sm:$0xff] %v5285_v27  ;;  %v5291_v31 = vadd.f32 %v1079_v39, %v4991_v14  ;;  %1376 = vadd.xlane.f32.xlu1 %v1375_v2  ;;  %v1186_v59 = vadd.f32 %v5285_v27, %v5282_v23  ;;  %v1291_v39 = vmul.f32 %v5285_v27, %v5285_v27 }
 0x221   : > { %7053 = vst [vmem:[#allocation35_spill] sm:$0xff] %v5288_v16  ;;  %v1292_v43 = vmul.f32 %v5288_v16, %v5288_v16 }
 0x222   : > { %7054 = vst [vmem:[#allocation36_spill] sm:$0xff] %v5291_v31  ;;  %1373 = vadd.xlane.f32.xlu0 %v1372_v33  ;;  %v1189_v61 = vadd.f32 %v5291_v31, %v5288_v16  ;;  %v1293_v54 = vmul.f32 %v5291_v31, %v5291_v31  ;;  %v1378_v16 = vadd.f32 %v1291_v39, %v1290_v63 }
 0x224   : > { %v1083_v0 = vpop.f32.mrb[52].mxu0  ;;  %1190 = vadd.xlane.f32.xlu1 %v1189_v61  ;;  %v1381_v1 = vadd.f32 %v1293_v54, %v1292_v43 }
 0x225   : > { %v1085_v2 = vpop.f32.mrb[53].mxu0  ;;  %v5306_v5 = vadd.f32 %v1083_v0, %v4988_v13 }
 0x226   : > { %v5309_v33 = vadd.f32 %v1085_v2, %v4991_v14  ;;  %v1087_v36 = vpop.f32.mrb[54].mxu0  ;;  %1187 = vadd.xlane.f32.xlu0 %v1186_v59 }
 0x227   : > { %7055 = vst [vmem:[#allocation37_spill] sm:$0xff] %v5306_v5  ;;  %v5312_v23 = vadd.f32 %v1087_v36, %v4988_v13  ;;  %v1089_v31 = vpop.f32.mrb[55].mxu0  ;;  %v1294_v61 = vmul.f32 %v5306_v5, %v5306_v5 }
 0x228   : > { %7056 = vst [vmem:[#allocation38_spill] sm:$0xff] %v5309_v33  ;;  %v5315_v17 = vadd.f32 %v1089_v31, %v4991_v14  ;;  %1382 = vadd.xlane.f32.xlu1 %v1381_v1  ;;  %v1192_v63 = vadd.f32 %v5309_v33, %v5306_v5  ;;  %v1295_v31 = vmul.f32 %v5309_v33, %v5309_v33 }
 0x229   : > { %7057 = vst [vmem:[#allocation39_spill] sm:$0xff] %v5312_v23  ;;  %v1296_v43 = vmul.f32 %v5312_v23, %v5312_v23 }
 0x22a   : > { %7058 = vst [vmem:[#allocation40_spill] sm:$0xff] %v5315_v17  ;;  %1379 = vadd.xlane.f32.xlu0 %v1378_v16  ;;  %v1195_v54 = vadd.f32 %v5315_v17, %v5312_v23  ;;  %v1297_v59 = vmul.f32 %v5315_v17, %v5315_v17  ;;  %v1384_v23 = vadd.f32 %v1295_v31, %v1294_v61 }
 0x22c   : > { %v1093_v39 = vpop.f32.mrb[56].mxu0  ;;  %1196 = vadd.xlane.f32.xlu1 %v1195_v54  ;;  %v1387_v0 = vadd.f32 %v1297_v59, %v1296_v43 }
 0x22d   : > { %v1095_v1 = vpop.f32.mrb[57].mxu0  ;;  %v5330_v2 = vadd.f32 %v1093_v39, %v4988_v13 }
 0x22e   : > { %v5333_v16 = vadd.f32 %v1095_v1, %v4991_v14  ;;  %v1097_v36 = vpop.f32.mrb[58].mxu0  ;;  %1193 = vadd.xlane.f32.xlu0 %v1192_v63 }
 0x22f   : > { %7059 = vst [vmem:[#allocation41_spill] sm:$0xff] %v5330_v2  ;;  %v5336_v5 = vadd.f32 %v1097_v36, %v4988_v13  ;;  %v1099_v17 = vpop.f32.mrb[59].mxu0  ;;  %v1298_v54 = vmul.f32 %v5330_v2, %v5330_v2 }
 0x230   : > { %7060 = vst [vmem:[#allocation42_spill] sm:$0xff] %v5333_v16  ;;  %v5339_v27 = vadd.f32 %v1099_v17, %v4991_v14  ;;  %1388 = vadd.xlane.f32.xlu1 %v1387_v0  ;;  %v1198_v61 = vadd.f32 %v5333_v16, %v5330_v2  ;;  %v1299_v17 = vmul.f32 %v5333_v16, %v5333_v16 }
 0x231   : > { %7061 = vst [vmem:[#allocation43_spill] sm:$0xff] %v5336_v5  ;;  %v1300_v43 = vmul.f32 %v5336_v5, %v5336_v5 }
 0x232   : > { %7062 = vst [vmem:[#allocation44_spill] sm:$0xff] %v5339_v27  ;;  %1385 = vadd.xlane.f32.xlu0 %v1384_v23  ;;  %v1201_v59 = vadd.f32 %v5339_v27, %v5336_v5  ;;  %v1301_v63 = vmul.f32 %v5339_v27, %v5339_v27  ;;  %v1390_v5 = vadd.f32 %v1299_v17, %v1298_v54 }
 0x234   : > { %v1103_v31 = vpop.f32.mrb[60].mxu0  ;;  %1202 = vadd.xlane.f32.xlu1 %v1201_v59  ;;  %v1393_v39 = vadd.f32 %v1301_v63, %v1300_v43 }
 0x235   : > { %v1105_v0 = vpop.f32.mrb[61].mxu0  ;;  %v5354_v1 = vadd.f32 %v1103_v31, %v4988_v13 }
 0x236   : > { %v5357_v23 = vadd.f32 %v1105_v0, %v4991_v14  ;;  %v1107_v36 = vpop.f32.mrb[62].mxu0  ;;  %1199 = vadd.xlane.f32.xlu0 %v1198_v61 }
 0x237   : > { %7063 = vst [vmem:[#allocation45_spill] sm:$0xff] %v5354_v1  ;;  %v5360_v2 = vadd.f32 %v1107_v36, %v4988_v13  ;;  %v1109_v27 = vpop.f32.mrb[63].mxu0  ;;  %v1302_v59 = vmul.f32 %v5354_v1, %v5354_v1 }
 0x238   : > { %7064 = vst [vmem:[#allocation46_spill] sm:$0xff] %v5357_v23  ;;  %v5363_v33 = vadd.f32 %v1109_v27, %v4991_v14  ;;  %1394 = vadd.xlane.f32.xlu1 %v1393_v39  ;;  %v1204_v54 = vadd.f32 %v5357_v23, %v5354_v1  ;;  %v1303_v14 = vmul.f32 %v5357_v23, %v5357_v23 }
 0x239   : > { %7065 = vst [vmem:[#allocation47_spill] sm:$0xff] %v5360_v2  ;;  %v1304_v43 = vmul.f32 %v5360_v2, %v5360_v2 }
 0x23a   : > { %7066 = vst [vmem:[#allocation48_spill] sm:$0xff] %v5363_v33  ;;  %1391 = vadd.xlane.f32.xlu0 %v1390_v5  ;;  %v1207_v63 = vadd.f32 %v5363_v33, %v5360_v2  ;;  %v1305_v13 = vmul.f32 %v5363_v33, %v5363_v33  ;;  %v1396_v61 = vadd.f32 %v1303_v14, %v1302_v59 }
 0x23c   : > { %1208 = vadd.xlane.f32.xlu1 %v1207_v63  ;;  %v1399_v27 = vadd.f32 %v1305_v13, %v1304_v43 }
 0x23e   : > { %1205 = vadd.xlane.f32.xlu0 %v1204_v54 }
 0x240   : > { %1400 = vadd.xlane.f32.xlu1 %v1399_v27 }
 0x242   : > { %1397 = vadd.xlane.f32.xlu0 %v1396_v61 }
 0x24f   : > { %v1116_v17 = vpop.xlane.xlu0 %1115 }
 0x250   : > { %v1210_v5 = vmul.f32 0.00390625, %v1116_v17 }
 0x251   : > { %v1119_v31 = vpop.xlane.xlu1 %1118 }
 0x252   : > { %v1211_v39 = vmul.f32 0.00390625, %v1119_v31  ;;  %v1434_v36 = vmul.f32 %v1210_v5, %v1210_v5 }
 0x253   : > { %v1308_v0 = vpop.xlane.xlu0 %1307 }
 0x254   : > { %v1402_v2 = vmul.f32 0.00390625, %v1308_v0  ;;  %v1435_v30 = vmul.f32 %v1211_v39, %v1211_v39 }
 0x255   : > { %v1311_v1 = vpop.xlane.xlu1 %1310 }
 0x256   : > { %v1466_v16 = vsub.f32 %v1402_v2, %v1434_v36  ;;  %v1403_v33 = vmul.f32 0.00390625, %v1311_v1 }
 0x257   : > { %v1122_v54 = vpop.xlane.xlu0 %1121 }
 0x258   : > { %v1498_v41 = vmax.f32 %v1466_v16, 0.0  ;;  %v1467_v38 = vsub.f32 %v1403_v33, %v1435_v30  ;;  %v1112_v30 = vld [vmem:[%s6940_s3] sm:$0x3]  ;;  %v5394_v36 = vmul.f32 0.00390625, %v1122_v54  ;;  %v1530_v54 = vsub.f32 %v4994_v18, %v1210_v5 }
 0x259   : > { %v1125_v23 = vpop.xlane.xlu1 %1124  ;;  %v1113_v16 = vld [vmem:[%s6941_s4] sm:$0x3]  ;;  %v5392_v0 = vrot.slane %v1112_v30, %v4980_v10 }
 0x25a   : > { %v1594_v63 = vadd.f32 1e-05, %v1498_v41  ;;  %v1499_v43 = vmax.f32 %v1467_v38, 0.0  ;;  %v5377_v59 = vmul.f32 0.00390625, %v1125_v23  ;;  %v1436_v18 = vmul.f32 %v5394_v36, %v5394_v36 }
 0x25c   : > { %4276 = vrsqrt.f32 %v1594_v63  ;;  %v1595_v13 = vadd.f32 1e-05, %v1499_v43  ;;  %v1437_v27 = vmul.f32 %v5377_v59, %v5377_v59 }
 0x25d   : > { %v1317_v14 = vpop.xlane.xlu1 %1316 }
 0x25e   : > { %4278 = vrsqrt.f32 %v1595_v13  ;;  %v1405_v61 = vmul.f32 0.00390625, %v1317_v14  ;;  %v5399_v13 = vrot.slane %v1112_v30, %v4985_v12  ;;  %v1531_v14 = vsub.f32 %v4997_v20, %v1210_v5 }
 0x25f   : > { %v1128_v17 = vpop.xlane.xlu0 %1127  ;;  %v1533_v30 = vsub.f32 %v5003_v24, %v1211_v39 }
 0x260   : > { %v1469_v2 = vsub.f32 %v1405_v61, %v1437_v27  ;;  %v5381_v31 = vmul.f32 0.00390625, %v1128_v17  ;;  %v5403_v17 = vrot.slane %v1113_v16, %v4980_v10 }
 0x261   : > { %v1320_v38 = vpop.xlane.xlu1 %1319 }
 0x262   : > { %v1501_v41 = vmax.f32 %v1469_v2, 0.0  ;;  %v1406_v33 = vmul.f32 0.00390625, %v1320_v38  ;;  %v1438_v1 = vmul.f32 %v5381_v31, %v5381_v31  ;;  %v5406_v2 = vrot.slane %v1113_v16, %v4985_v12 }
 0x263   : > { %v1131_v23 = vpop.xlane.xlu0 %1130 }
 0x264   : > { %v1597_v63 = vadd.f32 1e-05, %v1501_v41  ;;  %v5396_v43 = vmul.f32 0.00390625, %v1131_v23  ;;  %v1470_v27 = vsub.f32 %v1406_v33, %v1438_v1  ;;  %v1532_v41 = vsub.f32 %v5000_v22, %v1211_v39 }
 0x265   : > { %v1323_v61 = vpop.xlane.xlu1 %1322 }
 0x266   : > { %v4277_v38 = vpop.eup %4276  ;;  %4280 = vrsqrt.f32 %v1597_v63  ;;  %v1407_v23 = vmul.f32 0.00390625, %v1323_v61  ;;  %v1502_v47 = vmax.f32 %v1470_v27, 0.0  ;;  %v1439_v20 = vmul.f32 %v5396_v43, %v5396_v43 }
 0x267   : > { %v1314_v33 = vpop.xlane.xlu0 %1313  ;;  %v1659_v1 = vmul.f32 %v4277_v38, %v1531_v14  ;;  %v1658_v46 = vmul.f32 %v4277_v38, %v1530_v54  ;;  %v1536_v14 = vsub.f32 %v5024_v40, %v5377_v59 }
 0x268   : > { %v4279_v10 = vpop.eup %4278  ;;  %v1404_v5 = vmul.f32 0.00390625, %v1314_v33  ;;  %v1598_v16 = vadd.f32 1e-05, %v1502_v47  ;;  %v1471_v63 = vsub.f32 %v1407_v23, %v1439_v20 }
 0x269   : > { %v1660_v22 = vmul.f32 %v4279_v10, %v1532_v41  ;;  %v1137_v61 = vpop.xlane.xlu1 %1136  ;;  %v1661_v24 = vmul.f32 %v4279_v10, %v1533_v30  ;;  %v1734_v38 = vmul.f32 %v5399_v13, %v1659_v1  ;;  %v1733_v30 = vmul.f32 %v5392_v0, %v1658_v46 }
 0x26a   : > { %v1468_v27 = vsub.f32 %v1404_v5, %v1436_v18  ;;  %4282 = vrsqrt.f32 %v1598_v16  ;;  %v1503_v54 = vmax.f32 %v1471_v63, 0.0  ;;  %v5422_v12 = vmul.f32 0.00390625, %v1137_v61 }
 0x26b   : > { %v1134_v62 = vpop.xlane.xlu0 %1133  ;;  %v1736_v41 = vmul.f32 %v5399_v13, %v1661_v24  ;;  %v1735_v20 = vmul.f32 %v5392_v0, %v1660_v22  ;;  %v1809_v1 = vadd.f32 %v5406_v2, %v1734_v38  ;;  %v1537_v5 = vsub.f32 %v5027_v42, %v5377_v59 }
 0x26c   : > { %v1500_v47 = vmax.f32 %v1468_v27, 0.0  ;;  %v5425_v23 = vmul.f32 0.00390625, %v1134_v62  ;;  %v1599_v33 = vadd.f32 1e-05, %v1503_v54  ;;  %v1441_v40 = vmul.f32 %v5422_v12, %v5422_v12 }
 0x26d   : > { %v1329_v10 = vpop.xlane.xlu1 %1328  ;;  %v1811_v18 = vadd.f32 %v5406_v2, %v1736_v41  ;;  %v1538_v62 = vsub.f32 %v5038_v48, %v5381_v31  ;;  %v1873_v61 = vmax.f32 %v1809_v1, 0.0  ;;  %v1808_v41 = vadd.f32 %v5403_v17, %v1733_v30 }
 0x26e   : > { %v1596_v16 = vadd.f32 1e-05, %v1500_v47  ;;  %v1409_v63 = vmul.f32 0.00390625, %v1329_v10  ;;  %4284 = vrsqrt.f32 %v1599_v33  ;;  %v1440_v46 = vmul.f32 %v5425_v23, %v5425_v23 }
 0x26f   : > { %v1326_v22 = vpop.xlane.xlu0 %1325  ;;  %v1875_v24 = vmax.f32 %v1811_v18, 0.0  ;;  %v1539_v42 = vsub.f32 %v5041_v50, %v5381_v31  ;;  %v1810_v47 = vadd.f32 %v5403_v17, %v1735_v20  ;;  %v1540_v10 = vsub.f32 %v5044_v53, %v5396_v43 }
 0x270   : > { %v4281_v27 = vpop.eup %4280  ;;  %4286 = vrsqrt.f32 %v1596_v16  ;;  %v1473_v38 = vsub.f32 %v1409_v63, %v1441_v40  ;;  %v1408_v54 = vmul.f32 0.00390625, %v1326_v22  ;;  %v1872_v16 = vmax.f32 %v1808_v41, 0.0 }
 0x271   : > { %v1143_v59 = vpop.xlane.xlu1 %1142  ;;  %v1937_v48 = vpack.c.bf16 %v1875_v24, %v1873_v61  ;;  %v1665_v33 = vmul.f32 %v4281_v27, %v1537_v5  ;;  %v1664_v18 = vmul.f32 %v4281_v27, %v1536_v14  ;;  %v1874_v30 = vmax.f32 %v1810_v47, 0.0 }
 0x272   : > { %v1505_v39 = vmax.f32 %v1473_v38, 0.0  ;;  %v1472_v1 = vsub.f32 %v1408_v54, %v1440_v46  ;;  %v5445_v60 = vmul.f32 0.00390625, %v1143_v59  ;;  %v1541_v50 = vsub.f32 %v5049_v56, %v5396_v43 }
 0x273   : > { %2135 = vmatprep.mubr.bf16.mxu0 %v1937_v48  ;;  %v1140_v40 = vpop.xlane.xlu0 %1139  ;;  %v1740_v63 = vmul.f32 %v5399_v13, %v1665_v33  ;;  %v1936_v22 = vpack.c.bf16 %v1874_v30, %v1872_v16  ;;  %v1739_v48 = vmul.f32 %v5392_v0, %v1664_v18 }
 0x274   : > { %v1504_v20 = vmax.f32 %v1472_v1, 0.0  ;;  %v4283_v5 = vpop.eup %4282  ;;  %v1601_v14 = vadd.f32 1e-05, %v1505_v39  ;;  %v5454_v46 = vmul.f32 0.00390625, %v1140_v40  ;;  %v1443_v61 = vmul.f32 %v5445_v60, %v5445_v60 }
 0x275   : > { %v1335_v24 = vpop.xlane.xlu1 %1334  ;;  %v1667_v38 = vmul.f32 %v4283_v5, %v1539_v42  ;;  %2136 = vmatmul.mubr.bf16.vlgmr.msra.gmra.mrb[64].mxu0 %v1936_v22  ;;  %v1666_v41 = vmul.f32 %v4283_v5, %v1538_v62  ;;  %v5465_v59 = vadd.f32 %v5406_v2, %v1740_v63  ;;  %v7067_v62 = vsub.f32 %v5021_v37, %v5394_v36 }
 0x276   : > { %v1411_v43 = vmul.f32 0.00390625, %v1335_v24  ;;  %v1442_v54 = vmul.f32 %v5454_v46, %v5454_v46  ;;  %v1600_v47 = vadd.f32 1e-05, %v1504_v20  ;;  %4288 = vrsqrt.f32 %v1601_v14 }
 0x277   : > { %v1332_v39 = vpop.xlane.xlu0 %1331  ;;  %v1742_v40 = vmul.f32 %v5399_v13, %v1667_v38  ;;  %v7068_v37 = vsub.f32 %v5018_v35, %v5394_v36 }
 0x278   : > { %v1475_v33 = vsub.f32 %v1411_v43, %v1443_v61  ;;  %v1410_v1 = vmul.f32 0.00390625, %v1332_v39  ;;  %v4285_v16 = vpop.eup %4284  ;;  %v1741_v61 = vmul.f32 %v5392_v0, %v1666_v41  ;;  %4290 = vrsqrt.f32 %v1600_v47 }
 0x279   : > { %v1149_v63 = vpop.xlane.xlu1 %1148  ;;  %v1669_v20 = vmul.f32 %v4285_v16, %v1541_v50  ;;  %v1817_v38 = vadd.f32 %v5406_v2, %v1742_v40  ;;  %v1668_v39 = vmul.f32 %v4285_v16, %v1540_v10  ;;  %v1814_v40 = vadd.f32 %v5403_v17, %v1739_v48 }
 0x27a   : > { %v4287_v5 = vpop.eup %4286  ;;  %v1507_v22 = vmax.f32 %v1475_v33, 0.0  ;;  %v1474_v18 = vsub.f32 %v1410_v1, %v1442_v54  ;;  %v5478_v14 = vmul.f32 0.00390625, %v1149_v63  ;;  %v1879_v54 = vmax.f32 %v5465_v59, 0.0 }
 0x27b   : > { %v1146_v43 = vpop.xlane.xlu0 %1145  ;;  %v1663_v30 = vmul.f32 %v4287_v5, %v7067_v62  ;;  %v1744_v63 = vmul.f32 %v5399_v13, %v1669_v20  ;;  %v1743_v10 = vmul.f32 %v5392_v0, %v1668_v39  ;;  %v1816_v47 = vadd.f32 %v5403_v17, %v1741_v61 }
 0x27c   : > { %v1506_v42 = vmax.f32 %v1474_v18, 0.0  ;;  %v1603_v50 = vadd.f32 1e-05, %v1507_v22  ;;  %v5485_v33 = vmul.f32 0.00390625, %v1146_v43  ;;  %v1445_v41 = vmul.f32 %v5478_v14, %v5478_v14 }
 0x27d   : > { %v1341_v1 = vpop.xlane.xlu1 %1340  ;;  %v1819_v62 = vadd.f32 %v5406_v2, %v1744_v63  ;;  %v1881_v22 = vmax.f32 %v1817_v38, 0.0  ;;  %v1738_v48 = vmul.f32 %v5399_v13, %v1663_v30  ;;  %v1662_v31 = vmul.f32 %v4287_v5, %v7068_v37 }
 0x27e   : > { %v1413_v24 = vmul.f32 0.00390625, %v1341_v1  ;;  %v1444_v59 = vmul.f32 %v5485_v33, %v5485_v33  ;;  %v1602_v18 = vadd.f32 1e-05, %v1506_v42  ;;  %v1818_v1 = vadd.f32 %v5403_v17, %v1743_v10 }
 0x27f   : > { %v1338_v16 = vpop.xlane.xlu0 %1337  ;;  %4292 = vrsqrt.f32 %v1603_v50  ;;  %v1883_v61 = vmax.f32 %v1819_v62, 0.0  ;;  %v1880_v56 = vmax.f32 %v1816_v47, 0.0  ;;  %v1737_v50 = vmul.f32 %v5392_v0, %v1662_v31 }
 0x280   : > { %v1477_v43 = vsub.f32 %v1413_v24, %v1445_v41  ;;  %v1412_v20 = vmul.f32 0.00390625, %v1338_v16  ;;  %v1882_v55 = vmax.f32 %v1818_v1, 0.0  ;;  %v4289_v63 = vpop.eup %4288  ;;  %v1813_v41 = vadd.f32 %v5406_v2, %v1738_v48 }
 0x281   : > { %v1155_v39 = vpop.xlane.xlu1 %1154  ;;  %v1941_v42 = vpack.c.bf16 %v1883_v61, %v1881_v22  ;;  %4294 = vrsqrt.f32 %v1602_v18  ;;  %v1553_v30 = vsub.f32 %v5123_v58, %v5478_v14  ;;  %v1550_v35 = vsub.f32 %v5114_v49, %v5485_v33 }
 0x282   : > { %v1509_v27 = vmax.f32 %v1477_v43, 0.0  ;;  %v1476_v53 = vsub.f32 %v1412_v20, %v1444_v59  ;;  %v5503_v38 = vmul.f32 0.00390625, %v1155_v39  ;;  %v1940_v10 = vpack.c.bf16 %v1882_v55, %v1880_v56  ;;  %v4291_v16 = vpop.eup %4290 }
 0x283   : > { %v1152_v24 = vpop.xlane.xlu0 %1151  ;;  %2151 = vmatprep.mubr.bf16.mxu1 %v1941_v42  ;;  %v1877_v59 = vmax.f32 %v1813_v41, 0.0  ;;  %v1551_v31 = vsub.f32 %v5117_v51, %v5485_v33  ;;  %v1812_v22 = vadd.f32 %v5403_v17, %v1737_v50  ;;  %v1878_v18 = vmax.f32 %v1814_v40, 0.0 }
 0x284   : > { %v1508_v36 = vmax.f32 %v1476_v53, 0.0  ;;  %v5511_v5 = vmul.f32 0.00390625, %v1152_v24  ;;  %v1447_v47 = vmul.f32 %v5503_v38, %v5503_v38  ;;  %v1605_v43 = vadd.f32 1e-05, %v1509_v27  ;;  %2152 = vmatmul.mubr.bf16.vlgmr.msra.gmra.mrb[0].mxu1 %v1940_v10 }
 0x285   : > { %v1347_v37 = vpop.xlane.xlu1 %1346  ;;  %v1556_v53 = vsub.f32 %v5144_v19, %v5503_v38  ;;  %v1939_v20 = vpack.c.bf16 %v1879_v54, %v1877_v59  ;;  %v1876_v61 = vmax.f32 %v1812_v22, 0.0  ;;  %v7069_v24 = vsub.f32 %v5069_v4, %v5425_v23 }
 0x286   : > { %v1415_v62 = vmul.f32 0.00390625, %v1347_v37  ;;  %v1446_v55 = vmul.f32 %v5511_v5, %v5511_v5  ;;  %v1604_v1 = vadd.f32 1e-05, %v1508_v36  ;;  %v7070_v27 = vsub.f32 %v5075_v9, %v5422_v12 }
 0x287   : > { %v1344_v56 = vpop.xlane.xlu0 %1343  ;;  %2143 = vmatprep.mubr.bf16.mxu0 %v1939_v20  ;;  %v1671_v40 = vmul.f32 %v4291_v16, %v7069_v24  ;;  %v7071_v54 = vsub.f32 %v5066_v3, %v5425_v23  ;;  %v7072_v36 = vsub.f32 %v5072_v7, %v5422_v12  ;;  %v1938_v59 = vpack.c.bf16 %v1878_v18, %v1876_v61 }
 0x288   : > { %v1479_v39 = vsub.f32 %v1415_v62, %v1447_v47  ;;  %v1414_v48 = vmul.f32 0.00390625, %v1344_v56  ;;  %v1673_v41 = vmul.f32 %v4289_v63, %v7070_v27  ;;  %v1557_v47 = vsub.f32 %v5147_v25, %v5503_v38 }
 0x289   : > { %v1161_v42 = vpop.xlane.xlu1 %1160  ;;  %v1670_v50 = vmul.f32 %v4291_v16, %v7071_v54  ;;  %v1672_v10 = vmul.f32 %v4289_v63, %v7072_v36  ;;  %v4293_v4 = vpop.eup %4292  ;;  %v1746_v9 = vmul.f32 %v5399_v13, %v1671_v40  ;;  %4296 = vrsqrt.f32 %v1605_v43  ;;  %2144 = vmatmul.mubr.bf16.gmra.mrb[68].mxu0 %v1938_v59 }
 0x28a   : > { %v1511_v37 = vmax.f32 %v1479_v39, 0.0  ;;  %v1478_v62 = vsub.f32 %v1414_v48, %v1446_v55  ;;  %v5536_v22 = vmul.f32 0.00390625, %v1161_v42  ;;  %v1748_v56 = vmul.f32 %v5399_v13, %v1673_v41 }
 0x28b   : > { %v1158_v20 = vpop.xlane.xlu0 %1157  ;;  %v1745_v3 = vmul.f32 %v5392_v0, %v1670_v50  ;;  %v1554_v7 = vsub.f32 %v5138_v8, %v5511_v5  ;;  %v1555_v12 = vsub.f32 %v5141_v15, %v5511_v5  ;;  %v1747_v23 = vmul.f32 %v5392_v0, %v1672_v10  ;;  %v4295_v39 = vpop.eup %4294 }
 0x28c   : > { %4298 = vrsqrt.f32 %v1604_v1  ;;  %v1449_v63 = vmul.f32 %v5536_v22, %v5536_v22  ;;  %v1821_v18 = vadd.f32 %v5406_v2, %v1746_v9  ;;  %v1823_v55 = vadd.f32 %v5406_v2, %v1748_v56 }
 0x28d   : > { %v1353_v16 = vpop.xlane.xlu1 %1352  ;;  %v1607_v43 = vadd.f32 1e-05, %v1511_v37  ;;  %v1510_v61 = vmax.f32 %v1478_v62, 0.0  ;;  %v1820_v42 = vadd.f32 %v5403_v17, %v1745_v3  ;;  %v1560_v24 = vsub.f32 %v5168_v52, %v5536_v22 }
 0x28e   : > { %v1417_v48 = vmul.f32 0.00390625, %v1353_v16  ;;  %v5553_v40 = vmul.f32 0.00390625, %v1158_v20  ;;  %v1885_v1 = vmax.f32 %v1821_v18, 0.0  ;;  %v1887_v27 = vmax.f32 %v1823_v55, 0.0 }
 0x28f   : > { %v1350_v41 = vpop.xlane.xlu0 %1349  ;;  %v1561_v54 = vsub.f32 %v5171_v57, %v5536_v22  ;;  %v1822_v36 = vadd.f32 %v5403_v17, %v1747_v23  ;;  %v1884_v10 = vmax.f32 %v1820_v42, 0.0  ;;  %v7073_v20 = vsub.f32 %v5093_v29, %v5454_v46 }
 0x290   : > { %v1481_v50 = vsub.f32 %v1417_v48, %v1449_v63  ;;  %v1943_v37 = vpack.c.bf16 %v1887_v27, %v1885_v1  ;;  %v1448_v59 = vmul.f32 %v5553_v40, %v5553_v40  ;;  %v1416_v62 = vmul.f32 0.00390625, %v1350_v41 }
 0x291   : > { %v1167_v9 = vpop.xlane.xlu1 %1166  ;;  %v1675_v56 = vmul.f32 %v4295_v39, %v7073_v20  ;;  %v1606_v3 = vadd.f32 1e-05, %v1510_v61  ;;  %v1886_v18 = vmax.f32 %v1822_v36, 0.0  ;;  %v7074_v55 = vsub.f32 %v5099_v34, %v5445_v60 }
 0x292   : > { %v1513_v16 = vmax.f32 %v1481_v50, 0.0  ;;  %2159 = vmatprep.mubr.bf16.mxu1 %v1943_v37  ;;  %v1480_v23 = vsub.f32 %v1416_v62, %v1448_v59  ;;  %v5566_v48 = vmul.f32 0.00390625, %v1167_v9  ;;  %v7075_v27 = vsub.f32 %v5090_v28, %v5454_v46 }
 0x293   : > { %v1677_v63 = vmul.f32 %v4293_v4, %v7074_v55  ;;  %v1164_v42 = vpop.xlane.xlu0 %1163  ;;  %v1750_v1 = vmul.f32 %v5399_v13, %v1675_v56  ;;  %4300 = vrsqrt.f32 %v1607_v43  ;;  %v1558_v29 = vsub.f32 %v5162_v44, %v5553_v40  ;;  %v4297_v46 = vpop.eup %4296 }
 0x294   : > { %v1674_v41 = vmul.f32 %v4295_v39, %v7075_v27  ;;  %v1942_v61 = vpack.c.bf16 %v1886_v18, %v1884_v10  ;;  %v7076_v34 = vsub.f32 %v5096_v32, %v5445_v60  ;;  %v1559_v36 = vsub.f32 %v5165_v45, %v5553_v40  ;;  %v7091_v45 = vld [vmem:[#allocation35_spill] sm:$0xff] }
 0x295   : > { %v1512_v37 = vmax.f32 %v1480_v23, 0.0  ;;  %v1451_v59 = vmul.f32 %v5566_v48, %v5566_v48  ;;  %v1359_v62 = vpop.xlane.xlu1 %1358  ;;  %v1752_v28 = vmul.f32 %v5399_v13, %v1677_v63  ;;  %4302 = vrsqrt.f32 %v1606_v3 }
 0x296   : > { %v1676_v50 = vmul.f32 %v4293_v4, %v7076_v34  ;;  %2160 = vmatmul.mubr.bf16.gmra.mrb[4].mxu1 %v1942_v61  ;;  %v1419_v39 = vmul.f32 0.00390625, %v1359_v62  ;;  %v1825_v43 = vadd.f32 %v5406_v2, %v1750_v1  ;;  %v1749_v10 = vmul.f32 %v5392_v0, %v1674_v41  ;;  %v4299_v32 = vpop.eup %4298 }
 0x297   : > { %v1609_v60 = vadd.f32 1e-05, %v1513_v16  ;;  %v5586_v9 = vmul.f32 0.00390625, %v1164_v42  ;;  %v1827_v20 = vadd.f32 %v5406_v2, %v1752_v28  ;;  %v1356_v56 = vpop.xlane.xlu0 %1355  ;;  %v1608_v23 = vadd.f32 1e-05, %v1512_v37 }
 0x298   : > { %v1483_v18 = vsub.f32 %v1419_v39, %v1451_v59  ;;  %v1889_v55 = vmax.f32 %v1825_v43, 0.0  ;;  %v1751_v3 = vmul.f32 %v5392_v0, %v1676_v50  ;;  %v1824_v63 = vadd.f32 %v5403_v17, %v1749_v10 }
 0x299   : > { %v1891_v1 = vmax.f32 %v1827_v20, 0.0  ;;  %v1450_v27 = vmul.f32 %v5586_v9, %v5586_v9  ;;  %v1418_v16 = vmul.f32 0.00390625, %v1356_v56  ;;  %v1173_v41 = vpop.xlane.xlu1 %1172  ;;  %v1679_v50 = vmul.f32 %v4299_v32, %v1551_v31 }
 0x29a   : > { %v1515_v61 = vmax.f32 %v1483_v18, 0.0  ;;  %v1826_v42 = vadd.f32 %v5403_v17, %v1751_v3  ;;  %v1888_v34 = vmax.f32 %v1824_v63, 0.0  ;;  %v5594_v62 = vmul.f32 0.00390625, %v1173_v41 }
 0x29b   : > { %v1945_v28 = vpack.c.bf16 %v1891_v1, %v1889_v55  ;;  %v1482_v59 = vsub.f32 %v1418_v16, %v1450_v27  ;;  %v1170_v39 = vpop.xlane.xlu0 %1169  ;;  %v1681_v37 = vmul.f32 %v4297_v46, %v1553_v30  ;;  %4304 = vrsqrt.f32 %v1609_v60  ;;  %v7077_v1 = vld [vmem:[#allocation23_spill] sm:$0xff] }
 0x29c   : > { %v1565_v43 = vsub.f32 %v5195_v26, %v5566_v48  ;;  %v1562_v10 = vsub.f32 %v5186_v6, %v5586_v9  ;;  %v1890_v20 = vmax.f32 %v1826_v42, 0.0  ;;  %v1563_v56 = vsub.f32 %v5189_v11, %v5586_v9 }
 0x29d   : > { %2167 = vmatprep.mubr.bf16.mxu1 %v1945_v28  ;;  %v1514_v18 = vmax.f32 %v1482_v59, 0.0  ;;  %v1453_v51 = vmul.f32 %v5594_v62, %v5594_v62  ;;  %v1365_v31 = vpop.xlane.xlu1 %1364  ;;  %v1754_v58 = vmul.f32 %v5399_v13, %v1679_v50  ;;  %v4301_v30 = vpop.eup %4300  ;;  %4306 = vrsqrt.f32 %v1608_v23 }
 0x29e   : > { %v1944_v60 = vpack.c.bf16 %v1890_v20, %v1888_v34  ;;  %v1421_v55 = vmul.f32 0.00390625, %v1365_v31  ;;  %v1756_v3 = vmul.f32 %v5399_v13, %v1681_v37  ;;  %v1611_v63 = vadd.f32 1e-05, %v1515_v61  ;;  %v7078_v34 = vld [vmem:[#allocation20_spill] sm:$0xff] }
 0x29f   : > { %v5614_v16 = vmul.f32 0.00390625, %v1170_v39  ;;  %v1829_v41 = vadd.f32 %v5406_v2, %v1754_v58  ;;  %v1362_v42 = vpop.xlane.xlu0 %1361  ;;  %v4303_v28 = vpop.eup %4302  ;;  %v1678_v23 = vmul.f32 %v4299_v32, %v1550_v35  ;;  %v7079_v61 = vsub.f32 %v7078_v34, %v5478_v14 }
 0x2a0   : > { %2168 = vmatmul.mubr.bf16.gmra.mrb[8].mxu1 %v1944_v60  ;;  %v1485_v59 = vsub.f32 %v1421_v55, %v1453_v51  ;;  %v1831_v50 = vadd.f32 %v5406_v2, %v1756_v3  ;;  %v1610_v20 = vadd.f32 1e-05, %v1514_v18  ;;  %v1420_v58 = vmul.f32 0.00390625, %v1362_v42 }
 0x2a1   : > { %v1680_v37 = vmul.f32 %v4297_v46, %v7079_v61  ;;  %v1893_v31 = vmax.f32 %v1829_v41, 0.0  ;;  %v1452_v39 = vmul.f32 %v5614_v16, %v5614_v16  ;;  %v1179_v27 = vpop.xlane.xlu1 %1178  ;;  %v1753_v51 = vmul.f32 %v5392_v0, %v1678_v23 }
 0x2a2   : > { %v1517_v4 = vmax.f32 %v1485_v59, 0.0  ;;  %v1895_v60 = vmax.f32 %v1831_v50, 0.0  ;;  %4308 = vrsqrt.f32 %v1611_v63  ;;  %v5628_v33 = vmul.f32 0.00390625, %v1179_v27  ;;  %v7080_v63 = vld [vmem:[#allocation24_spill] sm:$0xff]  ;;  %v7081_v27 = vld [vmem:[#allocation21_spill] sm:$0xff]  ;;  %v7082_v59 = vld [vmem:[#allocation22_spill] sm:$0xff] }
 0x2a3   : > { %v1755_v55 = vmul.f32 %v5392_v0, %v1680_v37  ;;  %v1484_v49 = vsub.f32 %v1420_v58, %v1452_v39  ;;  %v1176_v35 = vpop.xlane.xlu0 %1175  ;;  %v1683_v14 = vmul.f32 %v4303_v28, %v1555_v12  ;;  %v1828_v32 = vadd.f32 %v5403_v17, %v1753_v51  ;;  %v7083_v37 = vld [vmem:[#allocation27_spill] sm:$0xff] }
 0x2a4   : > { %v1947_v46 = vpack.c.bf16 %v1895_v60, %v1893_v31  ;;  %v1685_v3 = vmul.f32 %v4301_v30, %v1557_v47  ;;  %4310 = vrsqrt.f32 %v1610_v20  ;;  %v1569_v41 = vsub.f32 %v7080_v63, %v5594_v62 }
 0x2a5   : > { %v1830_v18 = vadd.f32 %v5403_v17, %v1755_v55  ;;  %v1566_v42 = vsub.f32 %v7081_v27, %v5614_v16  ;;  %v1567_v15 = vsub.f32 %v7082_v59, %v5614_v16  ;;  %v1371_v12 = vpop.xlane.xlu1 %1370  ;;  %v5644_v50 = vpop.eup %4304  ;;  %v1613_v23 = vadd.f32 1e-05, %v1517_v4 }
 0x2a6   : > { %2175 = vmatprep.mubr.bf16.mxu1 %v1947_v46  ;;  %v1892_v34 = vmax.f32 %v1828_v32, 0.0  ;;  %v1455_v25 = vmul.f32 %v5628_v33, %v5628_v33  ;;  %v1516_v47 = vmax.f32 %v1484_v49, 0.0  ;;  %v5650_v31 = vmul.f32 0.00390625, %v1176_v35  ;;  %v7084_v32 = vld [vmem:[#allocation28_spill] sm:$0xff] }
 0x2a7   : > { %v1894_v61 = vmax.f32 %v1830_v18, 0.0  ;;  %v1423_v39 = vmul.f32 0.00390625, %v1371_v12  ;;  %v1368_v58 = vpop.xlane.xlu0 %1367  ;;  %v4307_v60 = vpop.eup %4306  ;;  %v1758_v55 = vmul.f32 %v5399_v13, %v1683_v14  ;;  %v1760_v4 = vmul.f32 %v5399_v13, %v1685_v3 }
 0x2a8   : > { %v1682_v46 = vmul.f32 %v4303_v28, %v1554_v7  ;;  %v1573_v49 = vsub.f32 %v7084_v32, %v5628_v33  ;;  %v1684_v35 = vmul.f32 %v4301_v30, %v1556_v53  ;;  %v1454_v12 = vmul.f32 %v5650_v31, %v5650_v31 }
 0x2a9   : > { %v1946_v51 = vpack.c.bf16 %v1894_v61, %v1892_v34  ;;  %v1487_v18 = vsub.f32 %v1423_v39, %v1455_v25  ;;  %v1185_v34 = vpop.xlane.xlu1 %1184  ;;  %v1833_v14 = vadd.f32 %v5406_v2, %v1758_v55  ;;  %v1835_v3 = vadd.f32 %v5406_v2, %v1760_v4  ;;  %v7085_v55 = vld [vmem:[#allocation25_spill] sm:$0xff]  ;;  %v7087_v4 = vld [vmem:[#allocation31_spill] sm:$0xff] }
 0x2aa   : > { %v1757_v8 = vmul.f32 %v5392_v0, %v1682_v46  ;;  %v1422_v5 = vmul.f32 0.00390625, %v1368_v58  ;;  %v1612_v7 = vadd.f32 1e-05, %v1516_v47  ;;  %v1759_v61 = vmul.f32 %v5392_v0, %v1684_v35 }
 0x2ab   : > { %2176 = vmatmul.mubr.bf16.gmra.mrb[12].mxu1 %v1946_v51  ;;  %v1519_v28 = vmax.f32 %v1487_v18, 0.0  ;;  %v5668_v25 = vmul.f32 0.00390625, %v1185_v34  ;;  %v1182_v19 = vpop.xlane.xlu0 %1181  ;;  %v1897_v38 = vmax.f32 %v1833_v14, 0.0  ;;  %v1899_v53 = vmax.f32 %v1835_v3, 0.0  ;;  %v7086_v18 = vld [vmem:[#allocation26_spill] sm:$0xff] }
 0x2ac   : > { %v1832_v30 = vadd.f32 %v5403_v17, %v1757_v8  ;;  %v1486_v39 = vsub.f32 %v1422_v5, %v1454_v12  ;;  %v5671_v51 = vpop.eup %4308  ;;  %4312 = vrsqrt.f32 %v1613_v23  ;;  %v1834_v58 = vadd.f32 %v5403_v17, %v1759_v61 }
 0x2ad   : > { %v1377_v47 = vpop.xlane.xlu1 %1376  ;;  %v1687_v46 = vmul.f32 %v4307_v60, %v1559_v36  ;;  %v1571_v35 = vsub.f32 %v7086_v18, %v5650_v31  ;;  %v1949_v34 = vpack.c.bf16 %v1899_v53, %v1897_v38  ;;  %4314 = vrsqrt.f32 %v1612_v7 }
 0x2ae   : > { %v1896_v14 = vmax.f32 %v1832_v30, 0.0  ;;  %v1518_v3 = vmax.f32 %v1486_v39, 0.0  ;;  %v4311_v12 = vpop.eup %4310  ;;  %v1898_v8 = vmax.f32 %v1834_v58, 0.0  ;;  %v1457_v23 = vmul.f32 %v5668_v25, %v5668_v25 }
 0x2af   : > { %v1425_v5 = vmul.f32 0.00390625, %v1377_v47  ;;  %v1374_v20 = vpop.xlane.xlu0 %1373  ;;  %v1615_v61 = vadd.f32 1e-05, %v1519_v28  ;;  %2183 = vmatprep.mubr.bf16.mxu1 %v1949_v34  ;;  %v5685_v36 = vmul.f32 0.00390625, %v1182_v19  ;;  %v1689_v38 = vmul.f32 %v5644_v50, %v1561_v54 }
 0x2b0   : > { %v1948_v53 = vpack.c.bf16 %v1898_v8, %v1896_v14  ;;  %v1762_v30 = vmul.f32 %v5399_v13, %v1687_v46  ;;  %v1686_v39 = vmul.f32 %v4307_v60, %v1558_v29  ;;  %v1614_v58 = vadd.f32 1e-05, %v1518_v3  ;;  %v7088_v29 = vld [vmem:[#allocation32_spill] sm:$0xff] }
 0x2b1   : > { %v1489_v7 = vsub.f32 %v1425_v5, %v1457_v23  ;;  %v1191_v28 = vpop.xlane.xlu1 %1190  ;;  %v1764_v47 = vmul.f32 %v5399_v13, %v1689_v38  ;;  %v1688_v19 = vmul.f32 %v5644_v50, %v1560_v24  ;;  %v1456_v57 = vmul.f32 %v5685_v36, %v5685_v36  ;;  %v7089_v23 = vld [vmem:[#allocation29_spill] sm:$0xff] }
 0x2b2   : > { %v1837_v46 = vadd.f32 %v5406_v2, %v1762_v30  ;;  %v1761_v34 = vmul.f32 %v5392_v0, %v1686_v39  ;;  %v1424_v44 = vmul.f32 0.00390625, %v1374_v20  ;;  %4316 = vrsqrt.f32 %v1615_v61  ;;  %v7090_v20 = vld [vmem:[#allocation30_spill] sm:$0xff] }
 0x2b3   : > { %2184 = vmatmul.mubr.bf16.gmra.mrb[16].mxu1 %v1948_v53  ;;  %v1521_v54 = vmax.f32 %v1489_v7, 0.0  ;;  %v1188_v40 = vpop.xlane.xlu0 %1187  ;;  %v1577_v60 = vsub.f32 %v7088_v29, %v5668_v25  ;;  %v1839_v14 = vadd.f32 %v5406_v2, %v1764_v47  ;;  %v1763_v52 = vmul.f32 %v5392_v0, %v1688_v19 }
 0x2b4   : > { %v1901_v22 = vmax.f32 %v1837_v46, 0.0  ;;  %v1836_v24 = vadd.f32 %v5403_v17, %v1761_v34  ;;  %v1488_v50 = vsub.f32 %v1424_v44, %v1456_v57  ;;  %v5709_v3 = vmul.f32 0.00390625, %v1191_v28 }
 0x2b5   : > { %v1383_v8 = vpop.xlane.xlu1 %1382  ;;  %v1575_v61 = vsub.f32 %v7090_v20, %v5685_v36  ;;  %v1903_v38 = vmax.f32 %v1839_v14, 0.0  ;;  %v1838_v53 = vadd.f32 %v5403_v17, %v1763_v52  ;;  %4318 = vrsqrt.f32 %v1614_v58 }
 0x2b6   : > { %v5716_v7 = vpop.eup %4312  ;;  %v1617_v30 = vadd.f32 1e-05, %v1521_v54  ;;  %v1900_v39 = vmax.f32 %v1836_v24, 0.0  ;;  %v5718_v47 = vmul.f32 0.00390625, %v1188_v40  ;;  %v1520_v46 = vmax.f32 %v1488_v50, 0.0 }
 0x2b7   : > { %v1380_v19 = vpop.xlane.xlu0 %1379  ;;  %v1951_v28 = vpack.c.bf16 %v1903_v38, %v1901_v22  ;;  %v1902_v57 = vmax.f32 %v1838_v53, 0.0  ;;  %v1459_v34 = vmul.f32 %v5709_v3, %v5709_v3  ;;  %v4315_v44 = vpop.eup %4314  ;;  %v1427_v5 = vmul.f32 0.00390625, %v1383_v8 }
 0x2b8   : > { %v1691_v58 = vmul.f32 %v4311_v12, %v1563_v56  ;;  %v1693_v54 = vmul.f32 %v5671_v51, %v1565_v43  ;;  %v1690_v22 = vmul.f32 %v4311_v12, %v1562_v10  ;;  %v7092_v24 = vsub.f32 %v5192_v21, %v5566_v48  ;;  %v7093_v56 = vld [vmem:[#allocation36_spill] sm:$0xff] }
 0x2b9   : > { %v1197_v40 = vpop.xlane.xlu1 %1196  ;;  %2191 = vmatprep.mubr.bf16.mxu1 %v1951_v28  ;;  %v1950_v52 = vpack.c.bf16 %v1902_v57, %v1900_v39  ;;  %v1458_v11 = vmul.f32 %v5718_v47, %v5718_v47  ;;  %v1491_v8 = vsub.f32 %v1427_v5, %v1459_v34  ;;  %v1616_v6 = vadd.f32 1e-05, %v1520_v46 }
 0x2ba   : > { %v1692_v50 = vmul.f32 %v5671_v51, %v7092_v24  ;;  %v1766_v43 = vmul.f32 %v5399_v13, %v1691_v58  ;;  %v1768_v38 = vmul.f32 %v5399_v13, %v1693_v54  ;;  %v1765_v9 = vmul.f32 %v5392_v0, %v1690_v22  ;;  %v7094_v58 = vld [vmem:[#allocation33_spill] sm:$0xff] }
 0x2bb   : > { %v1194_v53 = vpop.xlane.xlu0 %1193  ;;  %2192 = vmatmul.mubr.bf16.gmra.mrb[20].mxu1 %v1950_v52  ;;  %v1426_v48 = vmul.f32 0.00390625, %v1380_v19  ;;  %4320 = vrsqrt.f32 %v1617_v30  ;;  %v5748_v12 = vmul.f32 0.00390625, %v1197_v40  ;;  %v1523_v28 = vmax.f32 %v1491_v8, 0.0  ;;  %v7095_v30 = vld [vmem:[#allocation34_spill] sm:$0xff] }
 0x2bc   : > { %v1767_v21 = vmul.f32 %v5392_v0, %v1692_v50  ;;  %v1841_v10 = vadd.f32 %v5406_v2, %v1766_v43  ;;  %v1843_v51 = vadd.f32 %v5406_v2, %v1768_v38  ;;  %v5750_v39 = vpop.eup %4316  ;;  %v1840_v57 = vadd.f32 %v5403_v17, %v1765_v9 }
 0x2bd   : > { %v1389_v5 = vpop.xlane.xlu1 %1388  ;;  %v1490_v34 = vsub.f32 %v1426_v48, %v1458_v11  ;;  %v1579_v19 = vsub.f32 %v7095_v30, %v5718_v47  ;;  %4322 = vrsqrt.f32 %v1616_v6  ;;  %v5758_v43 = vmul.f32 0.00390625, %v1194_v53 }
 0x2be   : > { %v1842_v46 = vadd.f32 %v5403_v17, %v1767_v21  ;;  %v1905_v52 = vmax.f32 %v1841_v10, 0.0  ;;  %v1907_v22 = vmax.f32 %v1843_v51, 0.0  ;;  %v1904_v40 = vmax.f32 %v1840_v57, 0.0  ;;  %v7096_v21 = vld [vmem:[#allocation39_spill] sm:$0xff] }
 0x2bf   : > { %v1386_v24 = vpop.xlane.xlu0 %1385  ;;  %v4319_v8 = vpop.eup %4318  ;;  %v1522_v9 = vmax.f32 %v1490_v34, 0.0  ;;  %v1461_v48 = vmul.f32 %v5748_v12, %v5748_v12  ;;  %v1619_v54 = vadd.f32 1e-05, %v1523_v28  ;;  %v1429_v10 = vmul.f32 0.00390625, %v1389_v5 }
 0x2c0   : > { %v1906_v50 = vmax.f32 %v1842_v46, 0.0  ;;  %v1953_v38 = vpack.c.bf16 %v1907_v22, %v1905_v52  ;;  %v1695_v6 = vmul.f32 %v4315_v44, %v1567_v15  ;;  %v1697_v53 = vmul.f32 %v5716_v7, %v1569_v41  ;;  %v7098_v15 = vld [vmem:[#allocation40_spill] sm:$0xff] }
 0x2c1   : > { %v1203_v14 = vpop.xlane.xlu1 %1202  ;;  %v1694_v51 = vmul.f32 %v4315_v44, %v1566_v42  ;;  %v7097_v57 = vsub.f32 %v7077_v1, %v5594_v62  ;;  %v1460_v5 = vmul.f32 %v5758_v43, %v5758_v43  ;;  %v1585_v46 = vsub.f32 %v7098_v15, %v5748_v12 }
 0x2c2   : > { %v1952_v26 = vpack.c.bf16 %v1906_v50, %v1904_v40  ;;  %2199 = vmatprep.mubr.bf16.mxu1 %v1953_v38  ;;  %v1493_v63 = vsub.f32 %v1429_v10, %v1461_v48  ;;  %v1770_v41 = vmul.f32 %v5399_v13, %v1695_v6  ;;  %v1428_v34 = vmul.f32 0.00390625, %v1386_v24  ;;  %v7099_v40 = vld [vmem:[#allocation37_spill] sm:$0xff]  ;;  %v7100_v10 = vld [vmem:[#allocation38_spill] sm:$0xff] }
 0x2c3   : > { %v1696_v28 = vmul.f32 %v5716_v7, %v7097_v57  ;;  %v1200_v59 = vpop.xlane.xlu0 %1199  ;;  %v1618_v52 = vadd.f32 1e-05, %v1522_v9  ;;  %v1772_v16 = vmul.f32 %v5399_v13, %v1697_v53  ;;  %v1769_v27 = vmul.f32 %v5392_v0, %v1694_v51 }
 0x2c4   : > { %2200 = vmatmul.mubr.bf16.gmra.mrb[24].mxu1 %v1952_v26  ;;  %v1525_v42 = vmax.f32 %v1493_v63, 0.0  ;;  %v1845_v7 = vadd.f32 %v5406_v2, %v1770_v41  ;;  %v1492_v44 = vsub.f32 %v1428_v34, %v1460_v5  ;;  %v5787_v26 = vmul.f32 0.00390625, %v1203_v14  ;;  %v7101_v41 = vld [vmem:[#allocation44_spill] sm:$0xff] }
 0x2c5   : > { %v1771_v62 = vmul.f32 %v5392_v0, %v1696_v28  ;;  %v1395_v1 = vpop.xlane.xlu1 %1394  ;;  %v5789_v22 = vpop.eup %4320  ;;  %v1582_v50 = vsub.f32 %v7099_v40, %v5758_v43  ;;  %v1847_v24 = vadd.f32 %v5406_v2, %v1772_v16  ;;  %v1844_v38 = vadd.f32 %v5403_v17, %v1769_v27 }
 0x2c6   : > { %4324 = vrsqrt.f32 %v1619_v54  ;;  %v1583_v6 = vsub.f32 %v7100_v10, %v5758_v43  ;;  %v1909_v53 = vmax.f32 %v1845_v7, 0.0  ;;  %v1524_v51 = vmax.f32 %v1492_v44, 0.0 }
 0x2c7   : > { %v1846_v9 = vadd.f32 %v5403_v17, %v1771_v62  ;;  %v1392_v48 = vpop.xlane.xlu0 %1391  ;;  %4326 = vrsqrt.f32 %v1618_v52  ;;  %v1911_v14 = vmax.f32 %v1847_v24, 0.0  ;;  %v1908_v57 = vmax.f32 %v1844_v38, 0.0  ;;  %v4323_v5 = vpop.eup %4322 }
 0x2c8   : > { %v1621_v63 = vadd.f32 1e-05, %v1525_v42  ;;  %v1589_v34 = vsub.f32 %v7101_v41, %v5787_v26  ;;  %v5800_v16 = vmul.f32 0.00390625, %v1200_v59  ;;  %v1463_v27 = vmul.f32 %v5787_v26, %v5787_v26  ;;  %v7113_v41 = vld [vmem:[#allocation48_spill] sm:$0xff] }
 0x2c9   : > { %v1910_v28 = vmax.f32 %v1846_v9, 0.0  ;;  %v1955_v54 = vpack.c.bf16 %v1911_v14, %v1909_v53  ;;  %v1431_v11 = vmul.f32 0.00390625, %v1395_v1  ;;  %v1699_v52 = vmul.f32 %v4319_v8, %v1571_v35  ;;  %v1209_v7 = vpop.xlane.xlu1 %1208 }
 0x2ca   : > { %v1620_v44 = vadd.f32 1e-05, %v1524_v51  ;;  %v1701_v42 = vmul.f32 %v5750_v39, %v1573_v49  ;;  %v7102_v59 = vsub.f32 %v7085_v55, %v5650_v31  ;;  %v7103_v38 = vsub.f32 %v7083_v37, %v5628_v33  ;;  %v7104_v49 = vld [vmem:[#allocation41_spill] sm:$0xff] }
 0x2cb   : > { %v1954_v62 = vpack.c.bf16 %v1910_v28, %v1908_v57  ;;  %2207 = vmatprep.mubr.bf16.mxu1 %v1955_v54  ;;  %v1495_v9 = vsub.f32 %v1431_v11, %v1463_v27  ;;  %v1774_v18 = vmul.f32 %v5399_v13, %v1699_v52  ;;  %v1462_v35 = vmul.f32 %v5800_v16, %v5800_v16  ;;  %v1206_v32 = vpop.xlane.xlu0 %1205 }
 0x2cc   : > { %v1698_v24 = vmul.f32 %v4319_v8, %v7102_v59  ;;  %v1700_v1 = vmul.f32 %v5750_v39, %v7103_v38  ;;  %v1430_v53 = vmul.f32 0.00390625, %v1392_v48  ;;  %v1586_v51 = vsub.f32 %v7104_v49, %v5800_v16 }
 0x2cd   : > { %2208 = vmatmul.mubr.bf16.gmra.mrb[28].mxu1 %v1954_v62  ;;  %v1776_v31 = vmul.f32 %v5399_v13, %v1701_v42  ;;  %4328 = vrsqrt.f32 %v1621_v63  ;;  %v1527_v37 = vmax.f32 %v1495_v9, 0.0  ;;  %v1849_v39 = vadd.f32 %v5406_v2, %v1774_v18  ;;  %v1401_v62 = vpop.xlane.xlu1 %1400  ;;  %v7105_v63 = vld [vmem:[#allocation42_spill] sm:$0xff] }
 0x2ce   : > { %v1773_v55 = vmul.f32 %v5392_v0, %v1698_v24  ;;  %v1775_v33 = vmul.f32 %v5392_v0, %v1700_v1  ;;  %v1494_v8 = vsub.f32 %v1430_v53, %v1462_v35  ;;  %4330 = vrsqrt.f32 %v1620_v44 }
 0x2cf   : > { %v1851_v11 = vadd.f32 %v5406_v2, %v1776_v31  ;;  %v1623_v57 = vadd.f32 1e-05, %v1527_v37  ;;  %v1913_v28 = vmax.f32 %v1849_v39, 0.0  ;;  %v5830_v54 = vmul.f32 0.00390625, %v1209_v7  ;;  %v1398_v35 = vpop.xlane.xlu0 %1397 }
 0x2d0   : > { %v1848_v48 = vadd.f32 %v5403_v17, %v1773_v55  ;;  %v1850_v14 = vadd.f32 %v5403_v17, %v1775_v33  ;;  %v1526_v27 = vmax.f32 %v1494_v8, 0.0  ;;  %v4325_v52 = vpop.eup %4324  ;;  %v1587_v42 = vsub.f32 %v7105_v63, %v5800_v16  ;;  %v7112_v63 = vld [vmem:[#allocation43_spill] sm:$0xff] }
 0x2d1   : > { %v1915_v59 = vmax.f32 %v1851_v11, 0.0  ;;  %v4327_v44 = vpop.eup %4326  ;;  %4332 = vrsqrt.f32 %v1623_v57  ;;  %v5834_v9 = vmul.f32 0.00390625, %v1206_v32  ;;  %v1465_v18 = vmul.f32 %v5830_v54, %v5830_v54 }
 0x2d2   : > { %v1912_v24 = vmax.f32 %v1848_v48, 0.0  ;;  %v1914_v38 = vmax.f32 %v1850_v14, 0.0  ;;  %v1622_v1 = vadd.f32 1e-05, %v1526_v27  ;;  %v1433_v31 = vmul.f32 0.00390625, %v1401_v62 }
 0x2d3   : > { %v1957_v53 = vpack.c.bf16 %v1915_v59, %v1913_v28  ;;  %v1703_v55 = vmul.f32 %v4323_v5, %v1575_v61  ;;  %v1705_v33 = vmul.f32 %v5789_v22, %v1577_v60  ;;  %v7106_v32 = vsub.f32 %v7089_v23, %v5685_v36 }
 0x2d4   : > { %v1956_v7 = vpack.c.bf16 %v1914_v38, %v1912_v24  ;;  %4334 = vrsqrt.f32 %v1622_v1  ;;  %v7107_v39 = vsub.f32 %v7087_v4, %v5668_v25  ;;  %v1497_v11 = vsub.f32 %v1433_v31, %v1465_v18 }
 0x2d5   : > { %v1702_v37 = vmul.f32 %v4323_v5, %v7106_v32  ;;  %2215 = vmatprep.mubr.bf16.mxu1 %v1957_v53  ;;  %v1778_v20 = vmul.f32 %v5399_v13, %v1703_v55  ;;  %v1464_v61 = vmul.f32 %v5834_v9, %v5834_v9  ;;  %v1432_v48 = vmul.f32 0.00390625, %v1398_v35 }
 0x2d6   : > { %v1704_v8 = vmul.f32 %v5789_v22, %v7107_v39  ;;  %2216 = vmatmul.mubr.bf16.gmra.mrb[32].mxu1 %v1956_v7  ;;  %v1780_v29 = vmul.f32 %v5399_v13, %v1705_v33  ;;  %v1707_v25 = vmul.f32 %v4327_v44, %v1579_v19  ;;  %v1529_v4 = vmax.f32 %v1497_v11, 0.0 }
 0x2d7   : > { %v1777_v60 = vmul.f32 %v5392_v0, %v1702_v37  ;;  %v1853_v23 = vadd.f32 %v5406_v2, %v1778_v20  ;;  %v1496_v22 = vsub.f32 %v1432_v48, %v1464_v61  ;;  %v7108_v5 = vsub.f32 %v7093_v56, %v5709_v3  ;;  %v4329_v57 = vpop.eup %4328 }
 0x2d8   : > { %v1779_v36 = vmul.f32 %v5392_v0, %v1704_v8  ;;  %v1855_v28 = vadd.f32 %v5406_v2, %v1780_v29  ;;  %v1782_v59 = vmul.f32 %v5399_v13, %v1707_v25  ;;  %v4331_v24 = vpop.eup %4330  ;;  %v1625_v30 = vadd.f32 1e-05, %v1529_v4 }
 0x2d9   : > { %v1709_v14 = vmul.f32 %v4325_v52, %v7108_v5  ;;  %v1852_v27 = vadd.f32 %v5403_v17, %v1777_v60  ;;  %v1917_v19 = vmax.f32 %v1853_v23, 0.0  ;;  %v1528_v38 = vmax.f32 %v1496_v22, 0.0 }
 0x2da   : > { %v1854_v62 = vadd.f32 %v5403_v17, %v1779_v36  ;;  %v1919_v18 = vmax.f32 %v1855_v28, 0.0  ;;  %v1857_v56 = vadd.f32 %v5406_v2, %v1782_v59  ;;  %4336 = vrsqrt.f32 %v1625_v30  ;;  %v7114_v30 = vld [vmem:[#allocation46_spill] sm:$0xff] }
 0x2db   : > { %v1784_v1 = vmul.f32 %v5399_v13, %v1709_v14  ;;  %v1916_v35 = vmax.f32 %v1852_v27, 0.0  ;;  %v1624_v7 = vadd.f32 1e-05, %v1528_v38  ;;  %v7109_v55 = vsub.f32 %v7094_v58, %v5718_v47  ;;  %v4333_v32 = vpop.eup %4332 }
 0x2dc   : > { %v1918_v53 = vmax.f32 %v1854_v62, 0.0  ;;  %v1959_v37 = vpack.c.bf16 %v1919_v18, %v1917_v19  ;;  %v1921_v8 = vmax.f32 %v1857_v56, 0.0  ;;  %v7110_v11 = vsub.f32 %v7091_v45, %v5709_v3  ;;  %v7115_v56 = vld [vmem:[#allocation45_spill] sm:$0xff] }
 0x2dd   : > { %v1859_v31 = vadd.f32 %v5406_v2, %v1784_v1  ;;  %v1706_v33 = vmul.f32 %v4327_v44, %v7109_v55  ;;  %4338 = vrsqrt.f32 %v1624_v7  ;;  %v1711_v29 = vmul.f32 %v4331_v24, %v1583_v6 }
 0x2de   : > { %v1958_v39 = vpack.c.bf16 %v1918_v53, %v1916_v35  ;;  %v1708_v20 = vmul.f32 %v4325_v52, %v7110_v11  ;;  %v4335_v60 = vpop.eup %4334  ;;  %2223 = vmatprep.mubr.bf16.mxu1 %v1959_v37  ;;  %v1713_v58 = vmul.f32 %v4329_v57, %v1585_v46  ;;  %v1710_v45 = vmul.f32 %v4331_v24, %v1582_v50 }
 0x2df   : > { %v1923_v61 = vmax.f32 %v1859_v31, 0.0  ;;  %v1781_v48 = vmul.f32 %v5392_v0, %v1706_v33  ;;  %v7111_v3 = vsub.f32 %v7096_v21, %v5748_v12  ;;  %v1786_v6 = vmul.f32 %v5399_v13, %v1711_v29 }
 0x2e0   : > { %v1783_v47 = vmul.f32 %v5392_v0, %v1708_v20  ;;  %2224 = vmatmul.mubr.bf16.gmra.mrb[36].mxu1 %v1958_v39  ;;  %v1715_v36 = vmul.f32 %v4335_v60, %v1587_v42  ;;  %v1788_v46 = vmul.f32 %v5399_v13, %v1713_v58  ;;  %v1785_v43 = vmul.f32 %v5392_v0, %v1710_v45  ;;  %v7116_v39 = vld [vmem:[#allocation47_spill] sm:$0xff] }
 0x2e1   : > { %v1712_v52 = vmul.f32 %v4329_v57, %v7111_v3  ;;  %v1961_v44 = vpack.c.bf16 %v1923_v61, %v1921_v8  ;;  %v1856_v10 = vadd.f32 %v5403_v17, %v1781_v48  ;;  %v1861_v21 = vadd.f32 %v5406_v2, %v1786_v6 }
 0x2e2   : > { %v1858_v15 = vadd.f32 %v5403_v17, %v1783_v47  ;;  %v1717_v50 = vmul.f32 %v4333_v32, %v1589_v34  ;;  %v1790_v25 = vmul.f32 %v5399_v13, %v1715_v36  ;;  %v1588_v42 = vsub.f32 %v7112_v63, %v5787_v26 }
 0x2e3   : > { %v1787_v40 = vmul.f32 %v5392_v0, %v1712_v52  ;;  %2231 = vmatprep.mubr.bf16.mxu1 %v1961_v44  ;;  %v1920_v12 = vmax.f32 %v1856_v10, 0.0  ;;  %v1863_v23 = vadd.f32 %v5406_v2, %v1788_v46  ;;  %v1925_v22 = vmax.f32 %v1861_v21, 0.0 }
 0x2e4   : > { %v1922_v4 = vmax.f32 %v1858_v15, 0.0  ;;  %v1860_v5 = vadd.f32 %v5403_v17, %v1785_v43  ;;  %v1792_v14 = vmul.f32 %v5399_v13, %v1717_v50  ;;  %v1714_v57 = vmul.f32 %v4335_v60, %v1586_v51  ;;  %v4337_v26 = vpop.eup %4336  ;;  %v4268_v43 = vld [vmem:[#allocation8] sm:$0xff]  }
 0x2e5   : > { %v1593_v34 = vsub.f32 %v7113_v41, %v5830_v54  ;;  %v1927_v27 = vmax.f32 %v1863_v23, 0.0  ;;  %v1865_v62 = vadd.f32 %v5406_v2, %v1790_v25  ;;  %v1862_v59 = vadd.f32 %v5403_v17, %v1787_v40  ;;  %4014 = vmatprep.subr.bf16.mxu1 %v4268_v43  ;;  %v4269_v40 = vld [vmem:[#allocation8 + $0x8] sm:$0xff]  }
 0x2e6   : > { %v1960_v28 = vpack.c.bf16 %v1922_v4, %v1920_v12  ;;  %v1716_v24 = vmul.f32 %v4333_v32, %v1588_v42  ;;  %v1591_v19 = vsub.f32 %v7114_v30, %v5834_v9  ;;  %v1867_v1 = vadd.f32 %v5406_v2, %v1792_v14  ;;  %4015 = vmatpush3.bf16.msra.mxu1 %v4268_v43  ;;  %v5940_v12 = vld [vmem:[%s6943_s6] ss:$0 sm:$0xff]  ;;  %v4270_v4 = vld [vmem:[#allocation8 + $0x10] sm:$0xff]   ;;  %v4271_v14 = vld [vmem:[#allocation8 + $0x18] sm:$0xff]  }
 0x2e7   : > { %v1963_v38 = vpack.c.bf16 %v1927_v27, %v1925_v22  ;;  %v1721_v18 = vmul.f32 %v4337_v26, %v1593_v34  ;;  %v4339_v16 = vpop.eup %4338  ;;  %v1924_v49 = vmax.f32 %v1860_v5, 0.0  ;;  %v1789_v51 = vmul.f32 %v5392_v0, %v1714_v57  ;;  %4016 = vmatprep.subr.bf16.mxu1 %v4269_v40 }
 0x2e8   : > { %2232 = vmatmul.mubr.bf16.gmra.mrb[40].mxu1 %v1960_v28  ;;  %v1929_v35 = vmax.f32 %v1865_v62, 0.0  ;;  %v1719_v53 = vmul.f32 %v4339_v16, %v1591_v19  ;;  %v1590_v7 = vsub.f32 %v7115_v56, %v5834_v9  ;;  %v1926_v31 = vmax.f32 %v1862_v59, 0.0  ;;  %v4272_v59 = vld [vmem:[#allocation8 + $0x20] sm:$0xff]  }
 0x2e9   : > { %2239 = vmatprep.mubr.bf16.mxu1 %v1963_v38  ;;  %v1791_v55 = vmul.f32 %v5392_v0, %v1716_v24  ;;  %v1931_v33 = vmax.f32 %v1867_v1, 0.0  ;;  %v1796_v37 = vmul.f32 %v5399_v13, %v1721_v18  ;;  %v1592_v8 = vsub.f32 %v7116_v39, %v5830_v54 }
 0x2ea   : > { %v1794_v32 = vmul.f32 %v5399_v13, %v1719_v53  ;;  %v1962_v11 = vpack.c.bf16 %v1926_v31, %v1924_v49  ;;  %v1864_v20 = vadd.f32 %v5403_v17, %v1789_v51  ;;  %v1718_v61 = vmul.f32 %v4339_v16, %v1590_v7  ;;  %4017 = vmatpush3.bf16.msra.mxu1 %v4269_v40 }
 0x2eb   : > { %v1965_v48 = vpack.c.bf16 %v1931_v33, %v1929_v35  ;;  %v1866_v9 = vadd.f32 %v5403_v17, %v1791_v55  ;;  %v1720_v60 = vmul.f32 %v4337_v26, %v1592_v8  ;;  %v1871_v47 = vadd.f32 %v5406_v2, %v1796_v37  ;;  %4018 = vmatprep.subr.bf16.mxu1 %v4270_v4  ;;  %v4273_v33 = vld [vmem:[#allocation8 + $0x28] sm:$0xff]  }
 0x2ec   : > { %v1869_v29 = vadd.f32 %v5406_v2, %v1794_v32  ;;  %v1928_v58 = vmax.f32 %v1864_v20, 0.0  ;;  %v1793_v45 = vmul.f32 %v5392_v0, %v1718_v61 }
 0x2ed   : > { %v1930_v3 = vmax.f32 %v1866_v9, 0.0  ;;  %v1795_v54 = vmul.f32 %v5392_v0, %v1720_v60  ;;  %v1935_v52 = vmax.f32 %v1871_v47, 0.0 }
 0x2ee   : > { %v1933_v13 = vmax.f32 %v1869_v29, 0.0  ;;  %v1868_v10 = vadd.f32 %v5403_v17, %v1793_v45  ;;  %4019 = vmatpush3.bf16.msra.mxu1 %v4270_v4 }
 0x2ef   : > { %v1964_v44 = vpack.c.bf16 %v1930_v3, %v1928_v58  ;;  %v1870_v36 = vadd.f32 %v5403_v17, %v1795_v54  ;;  %4020 = vmatprep.subr.bf16.mxu1 %v4271_v14 }
 0x2f0   : > { %2240 = vmatmul.mubr.bf16.gmra.mrb[44].mxu1 %v1962_v11  ;;  %v1967_v6 = vpack.c.bf16 %v1935_v52, %v1933_v13  ;;  %v1932_v15 = vmax.f32 %v1868_v10, 0.0 }
 0x2f1   : > { %2247 = vmatprep.mubr.bf16.mxu1 %v1965_v48  ;;  %v1934_v2 = vmax.f32 %v1870_v36, 0.0 }
 0x2f2   : > { %4021 = vmatpush3.bf16.msra.mxu1 %v4271_v14 }
 0x2f3   : > { %v1966_v46 = vpack.c.bf16 %v1934_v2, %v1932_v15  ;;  %4022 = vmatprep.subr.bf16.mxu1 %v4272_v59 }
 0x2f6   : > { %4023 = vmatpush3.bf16.msra.mxu1 %v4272_v59 }
 0x2f7   : > { %4024 = vmatprep.subr.bf16.mxu1 %v4273_v33 }
 0x2f8   : > { %2248 = vmatmul.mubr.bf16.gmra.mrb[48].mxu1 %v1964_v44 }
 0x2f9   : > { %2255 = vmatprep.mubr.bf16.mxu1 %v1967_v6 }
 0x2fa   : > { %4025 = vmatpush3.bf16.msra.mxu1 %v4273_v33 }
 0x300   : > { %2256 = vmatmul.mubr.bf16.gmra.mrb[52].mxu1 %v1966_v46 }
 0x348   : > { %v3894_v0 = vpop.f32.mrb[64].mxu0 }
 0x349   : > { %v3895_v21 = vpop.f32.mrb[65].mxu0 }
 0x34a   : > { %v3896_v17 = vadd.f32 %v3895_v21, %v3894_v0  ;;  %v3897_v50 = vpop.f32.mrb[66].mxu0 }
 0x34b   : > { %v3898_v25 = vpop.f32.mrb[67].mxu0 }
 0x34c   : > { %v5943_v63 = vadd.f32 %v3896_v17, %v5940_v12  ;;  %v3899_v42 = vadd.f32 %v3898_v25, %v3897_v50 }
 0x34e   : > { %v5946_v23 = vadd.f32 %v3899_v42, %v5940_v12  ;;  %2266 = vadd.xlane.f32.xlu0 %v5943_v63  ;;  %v2362_v22 = vmul.f32 %v5943_v63, %v5943_v63 }
 0x350   : > { %2268 = vadd.xlane.f32.xlu1 %v5946_v23  ;;  %v2363_v5 = vmul.f32 %v5946_v23, %v5946_v23 }
 0x352   : > { %2394 = vadd.xlane.f32.xlu0 %v2362_v22 }
 0x354   : > { %2396 = vadd.xlane.f32.xlu1 %v2363_v5  ;;  %v4274_v5 = vld [vmem:[#allocation8 + $0x30] sm:$0xff]  }
 0x355   : > { %4026 = vmatprep.subr.bf16.mxu1 %v4274_v5 }
 0x356   : > { %4027 = vmatpush3.bf16.msra.mxu1 %v4274_v5 }
 0x357   : > { %v3906_v57 = vpop.f32.mrb[0].mxu1 }
 0x358   : > { %v3907_v41 = vpop.f32.mrb[1].mxu1 }
 0x359   : > { %v3908_v34 = vadd.f32 %v3907_v41, %v3906_v57  ;;  %v3909_v28 = vpop.f32.mrb[2].mxu1 }
 0x35a   : > { %v3910_v27 = vpop.f32.mrb[3].mxu1 }
 0x35b   : > { %v3911_v62 = vadd.f32 %v3910_v27, %v3909_v28  ;;  %v5967_v56 = vadd.f32 %v3908_v34, %v5940_v12  ;;  %v4275_v34 = vld [vmem:[#allocation8 + $0x38] sm:$0xff]  }
 0x35c   : > { %v3900_v26 = vpop.f32.mrb[68].mxu0  ;;  %4028 = vmatprep.subr.bf16.mxu1 %v4275_v34 }
 0x35d   : > { %v3901_v24 = vpop.f32.mrb[69].mxu0  ;;  %v5970_v32 = vadd.f32 %v3911_v62, %v5940_v12  ;;  %v2366_v39 = vmul.f32 %v5967_v56, %v5967_v56  ;;  %4029 = vmatpush3.bf16.msra.mxu1 %v4275_v34 }
 0x35e   : > { %v3902_v30 = vadd.f32 %v3901_v24, %v3900_v26  ;;  %v3903_v19 = vpop.f32.mrb[70].mxu0 }
 0x35f   : > { %v3904_v38 = vpop.f32.mrb[71].mxu0  ;;  %v2367_v8 = vmul.f32 %v5970_v32, %v5970_v32 }
 0x360   : > { %v5955_v1 = vadd.f32 %v3902_v30, %v5940_v12  ;;  %v3905_v18 = vadd.f32 %v3904_v38, %v3903_v19 }
 0x362   : > { %v5958_v16 = vadd.f32 %v3905_v18, %v5940_v12  ;;  %2270 = vadd.xlane.f32.xlu0 %v5955_v1  ;;  %v2364_v49 = vmul.f32 %v5955_v1, %v5955_v1 }
 0x364   : > { %2272 = vadd.xlane.f32.xlu1 %v5958_v16  ;;  %v2365_v35 = vmul.f32 %v5958_v16, %v5958_v16 }
 0x366   : > { %2398 = vadd.xlane.f32.xlu0 %v2364_v49 }
 0x368   : > { %2400 = vadd.xlane.f32.xlu1 %v2365_v35 }
 0x369   : > { %v3912_v51 = vpop.f32.mrb[4].mxu1 }
 0x36a   : > { %v3913_v53 = vpop.f32.mrb[5].mxu1  ;;  %2274 = vadd.xlane.f32.xlu0 %v5967_v56 }
 0x36b   : > { %v3914_v7 = vadd.f32 %v3913_v53, %v3912_v51  ;;  %v3915_v31 = vpop.f32.mrb[6].mxu1 }
 0x36c   : > { %v3916_v55 = vpop.f32.mrb[7].mxu1  ;;  %2276 = vadd.xlane.f32.xlu1 %v5970_v32 }
 0x36d   : > { %v3917_v37 = vadd.f32 %v3916_v55, %v3915_v31  ;;  %v5979_v11 = vadd.f32 %v3914_v7, %v5940_v12 }
 0x36e   : > { %2402 = vadd.xlane.f32.xlu0 %v2366_v39 }
 0x36f   : > { %v5982_v48 = vadd.f32 %v3917_v37, %v5940_v12  ;;  %v2368_v58 = vmul.f32 %v5979_v11, %v5979_v11 }
 0x370   : > { %2404 = vadd.xlane.f32.xlu1 %v2367_v8 }
 0x371   : > { %v2369_v45 = vmul.f32 %v5982_v48, %v5982_v48 }
 0x372   : > { %2278 = vadd.xlane.f32.xlu0 %v5979_v11 }
 0x373   : > { %v3918_v20 = vpop.f32.mrb[8].mxu1 }
 0x374   : > { %v3919_v61 = vpop.f32.mrb[9].mxu1  ;;  %2280 = vadd.xlane.f32.xlu1 %v5982_v48 }
 0x375   : > { %v3920_v29 = vadd.f32 %v3919_v61, %v3918_v20  ;;  %v3921_v9 = vpop.f32.mrb[10].mxu1 }
 0x376   : > { %v3922_v60 = vpop.f32.mrb[11].mxu1  ;;  %2406 = vadd.xlane.f32.xlu0 %v2368_v58 }
 0x377   : > { %v3923_v47 = vadd.f32 %v3922_v60, %v3921_v9  ;;  %v5991_v13 = vadd.f32 %v3920_v29, %v5940_v12 }
 0x378   : > { %2408 = vadd.xlane.f32.xlu1 %v2369_v45 }
 0x379   : > { %v5994_v3 = vadd.f32 %v3923_v47, %v5940_v12  ;;  %v2370_v6 = vmul.f32 %v5991_v13, %v5991_v13 }
 0x37a   : > { %2282 = vadd.xlane.f32.xlu0 %v5991_v13 }
 0x37b   : > { %v2371_v2 = vmul.f32 %v5994_v3, %v5994_v3 }
 0x37c   : > { %2284 = vadd.xlane.f32.xlu1 %v5994_v3 }
 0x37e   : > { %v3924_v54 = vpop.f32.mrb[12].mxu1  ;;  %2410 = vadd.xlane.f32.xlu0 %v2370_v6 }
 0x37f   : > { %v3925_v52 = vpop.f32.mrb[13].mxu1 }
 0x380   : > { %v3926_v44 = vadd.f32 %v3925_v52, %v3924_v54  ;;  %v3927_v10 = vpop.f32.mrb[14].mxu1  ;;  %2412 = vadd.xlane.f32.xlu1 %v2371_v2 }
 0x381   : > { %v3928_v36 = vpop.f32.mrb[15].mxu1 }
 0x382   : > { %v3929_v15 = vadd.f32 %v3928_v36, %v3927_v10  ;;  %v6003_v46 = vadd.f32 %v3926_v44, %v5940_v12 }
 0x384   : > { %v6006_v43 = vadd.f32 %v3929_v15, %v5940_v12  ;;  %2286 = vadd.xlane.f32.xlu0 %v6003_v46  ;;  %v2372_v21 = vmul.f32 %v6003_v46, %v6003_v46 }
 0x386   : > { %v3930_v40 = vpop.f32.mrb[16].mxu1  ;;  %2288 = vadd.xlane.f32.xlu1 %v6006_v43  ;;  %v2373_v42 = vmul.f32 %v6006_v43, %v6006_v43 }
 0x387   : > { %v3931_v0 = vpop.f32.mrb[17].mxu1 }
 0x388   : > { %v3932_v17 = vadd.f32 %v3931_v0, %v3930_v40  ;;  %v3933_v50 = vpop.f32.mrb[18].mxu1  ;;  %2414 = vadd.xlane.f32.xlu0 %v2372_v21 }
 0x389   : > { %v3934_v25 = vpop.f32.mrb[19].mxu1 }
 0x38a   : > { %v3935_v4 = vadd.f32 %v3934_v25, %v3933_v50  ;;  %v6015_v22 = vadd.f32 %v3932_v17, %v5940_v12  ;;  %2416 = vadd.xlane.f32.xlu1 %v2373_v42 }
 0x38c   : > { %v6018_v14 = vadd.f32 %v3935_v4, %v5940_v12  ;;  %2290 = vadd.xlane.f32.xlu0 %v6015_v22  ;;  %v2374_v41 = vmul.f32 %v6015_v22, %v6015_v22 }
 0x38e   : > { %v3936_v57 = vpop.f32.mrb[20].mxu1  ;;  %2292 = vadd.xlane.f32.xlu1 %v6018_v14  ;;  %v2375_v26 = vmul.f32 %v6018_v14, %v6018_v14 }
 0x38f   : > { %v3937_v28 = vpop.f32.mrb[21].mxu1 }
 0x390   : > { %v3938_v27 = vadd.f32 %v3937_v28, %v3936_v57  ;;  %v3939_v62 = vpop.f32.mrb[22].mxu1  ;;  %2418 = vadd.xlane.f32.xlu0 %v2374_v41 }
 0x391   : > { %v3940_v59 = vpop.f32.mrb[23].mxu1 }
 0x392   : > { %v6027_v24 = vadd.f32 %v3938_v27, %v5940_v12  ;;  %v3941_v30 = vadd.f32 %v3940_v59, %v3939_v62  ;;  %2420 = vadd.xlane.f32.xlu1 %v2375_v26 }
 0x394   : > { %v6030_v19 = vadd.f32 %v3941_v30, %v5940_v12  ;;  %2294 = vadd.xlane.f32.xlu0 %v6027_v24  ;;  %v2376_v18 = vmul.f32 %v6027_v24, %v6027_v24 }
 0x396   : > { %2296 = vadd.xlane.f32.xlu1 %v6030_v19  ;;  %v2377_v53 = vmul.f32 %v6030_v19, %v6030_v19 }
 0x397   : > { %v3942_v38 = vpop.f32.mrb[24].mxu1 }
 0x398   : > { %v3943_v49 = vpop.f32.mrb[25].mxu1  ;;  %2422 = vadd.xlane.f32.xlu0 %v2376_v18 }
 0x399   : > { %v3944_v51 = vadd.f32 %v3943_v49, %v3942_v38  ;;  %v3945_v35 = vpop.f32.mrb[26].mxu1 }
 0x39a   : > { %v3946_v7 = vpop.f32.mrb[27].mxu1  ;;  %2424 = vadd.xlane.f32.xlu1 %v2377_v53 }
 0x39b   : > { %v6039_v31 = vadd.f32 %v3944_v51, %v5940_v12  ;;  %v3947_v55 = vadd.f32 %v3946_v7, %v3945_v35 }
 0x39d   : > { %v6042_v33 = vadd.f32 %v3947_v55, %v5940_v12  ;;  %2298 = vadd.xlane.f32.xlu0 %v6039_v31  ;;  %v2378_v37 = vmul.f32 %v6039_v31, %v6039_v31 }
 0x39f   : > { %2300 = vadd.xlane.f32.xlu1 %v6042_v33  ;;  %v2379_v8 = vmul.f32 %v6042_v33, %v6042_v33 }
 0x3a0   : > { %v3948_v39 = vpop.f32.mrb[28].mxu1 }
 0x3a1   : > { %2426 = vadd.xlane.f32.xlu0 %v2378_v37  ;;  %v3949_v20 = vpop.f32.mrb[29].mxu1 }
 0x3a2   : > { %v3950_v61 = vadd.f32 %v3949_v20, %v3948_v39  ;;  %v3951_v29 = vpop.f32.mrb[30].mxu1 }
 0x3a3   : > { %2428 = vadd.xlane.f32.xlu1 %v2379_v8  ;;  %v3952_v9 = vpop.f32.mrb[31].mxu1 }
 0x3a4   : > { %v6051_v60 = vadd.f32 %v3950_v61, %v5940_v12  ;;  %v3953_v47 = vadd.f32 %v3952_v9, %v3951_v29 }
 0x3a6   : > { %v6054_v58 = vadd.f32 %v3953_v47, %v5940_v12  ;;  %2302 = vadd.xlane.f32.xlu0 %v6051_v60  ;;  %v2380_v45 = vmul.f32 %v6051_v60, %v6051_v60 }
 0x3a8   : > { %2304 = vadd.xlane.f32.xlu1 %v6054_v58  ;;  %v2381_v44 = vmul.f32 %v6054_v58, %v6054_v58 }
 0x3a9   : > { %v3954_v54 = vpop.f32.mrb[32].mxu1 }
 0x3aa   : > { %v3955_v52 = vpop.f32.mrb[33].mxu1  ;;  %2430 = vadd.xlane.f32.xlu0 %v2380_v45 }
 0x3ab   : > { %v3956_v10 = vadd.f32 %v3955_v52, %v3954_v54  ;;  %v3957_v6 = vpop.f32.mrb[34].mxu1 }
 0x3ac   : > { %v3958_v36 = vpop.f32.mrb[35].mxu1  ;;  %2432 = vadd.xlane.f32.xlu1 %v2381_v44 }
 0x3ad   : > { %v6063_v15 = vadd.f32 %v3956_v10, %v5940_v12  ;;  %v3959_v2 = vadd.f32 %v3958_v36, %v3957_v6 }
 0x3af   : > { %v6066_v40 = vadd.f32 %v3959_v2, %v5940_v12  ;;  %2306 = vadd.xlane.f32.xlu0 %v6063_v15  ;;  %v2382_v0 = vmul.f32 %v6063_v15, %v6063_v15 }
 0x3b1   : > { %2308 = vadd.xlane.f32.xlu1 %v6066_v40  ;;  %v2383_v50 = vmul.f32 %v6066_v40, %v6066_v40 }
 0x3b3   : > { %v3960_v21 = vpop.f32.mrb[36].mxu1  ;;  %2434 = vadd.xlane.f32.xlu0 %v2382_v0 }
 0x3b4   : > { %v3961_v17 = vpop.f32.mrb[37].mxu1 }
 0x3b5   : > { %v3962_v25 = vadd.f32 %v3961_v17, %v3960_v21  ;;  %v3963_v42 = vpop.f32.mrb[38].mxu1  ;;  %2436 = vadd.xlane.f32.xlu1 %v2383_v50 }
 0x3b6   : > { %v3964_v4 = vpop.f32.mrb[39].mxu1 }
 0x3b7   : > { %v6075_v5 = vadd.f32 %v3962_v25, %v5940_v12  ;;  %v3965_v57 = vadd.f32 %v3964_v4, %v3963_v42 }
 0x3b9   : > { %v6078_v41 = vadd.f32 %v3965_v57, %v5940_v12  ;;  %2310 = vadd.xlane.f32.xlu0 %v6075_v5  ;;  %v2384_v28 = vmul.f32 %v6075_v5, %v6075_v5 }
 0x3bb   : > { %v3966_v34 = vpop.f32.mrb[40].mxu1  ;;  %2312 = vadd.xlane.f32.xlu1 %v6078_v41  ;;  %v2385_v59 = vmul.f32 %v6078_v41, %v6078_v41 }
 0x3bc   : > { %v3967_v27 = vpop.f32.mrb[41].mxu1 }
 0x3bd   : > { %v3968_v62 = vadd.f32 %v3967_v27, %v3966_v34  ;;  %v3969_v26 = vpop.f32.mrb[42].mxu1  ;;  %2438 = vadd.xlane.f32.xlu0 %v2384_v28 }
 0x3be   : > { %v3970_v30 = vpop.f32.mrb[43].mxu1 }
 0x3bf   : > { %v6087_v38 = vadd.f32 %v3968_v62, %v5940_v12  ;;  %v3971_v18 = vadd.f32 %v3970_v30, %v3969_v26  ;;  %2440 = vadd.xlane.f32.xlu1 %v2385_v59 }
 0x3c1   : > { %v6090_v49 = vadd.f32 %v3971_v18, %v5940_v12  ;;  %2314 = vadd.xlane.f32.xlu0 %v6087_v38  ;;  %v2386_v35 = vmul.f32 %v6087_v38, %v6087_v38 }
 0x3c3   : > { %v3972_v51 = vpop.f32.mrb[44].mxu1  ;;  %2316 = vadd.xlane.f32.xlu1 %v6090_v49  ;;  %v2387_v37 = vmul.f32 %v6090_v49, %v6090_v49 }
 0x3c4   : > { %v3973_v53 = vpop.f32.mrb[45].mxu1 }
 0x3c5   : > { %v3974_v7 = vadd.f32 %v3973_v53, %v3972_v51  ;;  %v3975_v55 = vpop.f32.mrb[46].mxu1  ;;  %2442 = vadd.xlane.f32.xlu0 %v2386_v35 }
 0x3c6   : > { %v3976_v39 = vpop.f32.mrb[47].mxu1 }
 0x3c7   : > { %v6099_v8 = vadd.f32 %v3974_v7, %v5940_v12  ;;  %v3977_v20 = vadd.f32 %v3976_v39, %v3975_v55  ;;  %2444 = vadd.xlane.f32.xlu1 %v2387_v37 }
 0x3c9   : > { %v6102_v61 = vadd.f32 %v3977_v20, %v5940_v12  ;;  %2318 = vadd.xlane.f32.xlu0 %v6099_v8  ;;  %v2388_v9 = vmul.f32 %v6099_v8, %v6099_v8 }
 0x3cb   : > { %v3978_v29 = vpop.f32.mrb[48].mxu1  ;;  %2320 = vadd.xlane.f32.xlu1 %v6102_v61  ;;  %v2389_v52 = vmul.f32 %v6102_v61, %v6102_v61 }
 0x3cc   : > { %v3979_v47 = vpop.f32.mrb[49].mxu1 }
 0x3cd   : > { %v3980_v45 = vadd.f32 %v3979_v47, %v3978_v29  ;;  %v3981_v54 = vpop.f32.mrb[50].mxu1  ;;  %2446 = vadd.xlane.f32.xlu0 %v2388_v9 }
 0x3ce   : > { %v3982_v44 = vpop.f32.mrb[51].mxu1 }
 0x3cf   : > { %v6111_v10 = vadd.f32 %v3980_v45, %v5940_v12  ;;  %v3983_v6 = vadd.f32 %v3982_v44, %v3981_v54  ;;  %2448 = vadd.xlane.f32.xlu1 %v2389_v52 }
 0x3d1   : > { %v6114_v36 = vadd.f32 %v3983_v6, %v5940_v12  ;;  %2322 = vadd.xlane.f32.xlu0 %v6111_v10  ;;  %v2390_v0 = vmul.f32 %v6111_v10, %v6111_v10 }
 0x3d3   : > { %v3984_v2 = vpop.f32.mrb[52].mxu1  ;;  %2324 = vadd.xlane.f32.xlu1 %v6114_v36  ;;  %v2391_v25 = vmul.f32 %v6114_v36, %v6114_v36 }
 0x3d4   : > { %v3985_v21 = vpop.f32.mrb[53].mxu1 }
 0x3d5   : > { %v3986_v17 = vadd.f32 %v3985_v21, %v3984_v2  ;;  %v3987_v50 = vpop.f32.mrb[54].mxu1  ;;  %2450 = vadd.xlane.f32.xlu0 %v2390_v0  ;;  %v6143_v0 = vld [vmem:[%s6944_s7] ss:$0 sm:$0xff] }
 0x3d6   : > { %v3988_v42 = vpop.f32.mrb[55].mxu1 }
 0x3d7   : > { %v6123_v4 = vadd.f32 %v3986_v17, %v5940_v12  ;;  %v3989_v57 = vadd.f32 %v3988_v42, %v3987_v50  ;;  %2452 = vadd.xlane.f32.xlu1 %v2391_v25  ;;  %v6150_v42 = vld [vmem:[%s7117_s25] ss:$0 sm:$0xff] }
 0x3d9   : > { %v6126_v34 = vadd.f32 %v3989_v57, %v5940_v12  ;;  %2326 = vadd.xlane.f32.xlu0 %v6123_v4  ;;  %v2392_v28 = vmul.f32 %v6123_v4, %v6123_v4 }
 0x3db   : > { %2328 = vadd.xlane.f32.xlu1 %v6126_v34  ;;  %v2393_v27 = vmul.f32 %v6126_v34, %v6126_v34  ;;  %v2267_v62 = vpop.xlane.xlu0 %2266 }
 0x3dc   : > { %v2330_v26 = vmul.f32 0.0078125, %v2267_v62 }
 0x3dd   : > { %2454 = vadd.xlane.f32.xlu0 %v2392_v28  ;;  %v2269_v59 = vpop.xlane.xlu1 %2268 }
 0x3de   : > { %v2331_v30 = vmul.f32 0.0078125, %v2269_v59  ;;  %v2490_v51 = vmul.f32 %v2330_v26, %v2330_v26  ;;  %v2586_v45 = vsub.f32 %v5943_v63, %v2330_v26 }
 0x3df   : > { %2456 = vadd.xlane.f32.xlu1 %v2393_v27  ;;  %v2395_v18 = vpop.xlane.xlu0 %2394 }
 0x3e0   : > { %v2458_v12 = vmul.f32 0.0078125, %v2395_v18  ;;  %v2491_v53 = vmul.f32 %v2331_v30, %v2331_v30  ;;  %v2587_v6 = vsub.f32 %v5946_v23, %v2331_v30 }
 0x3e1   : > { %v2397_v35 = vpop.xlane.xlu1 %2396 }
 0x3e2   : > { %v2522_v7 = vsub.f32 %v2458_v12, %v2490_v51  ;;  %v2459_v55 = vmul.f32 0.0078125, %v2397_v35 }
 0x3e4   : > { %v2554_v37 = vmax.f32 %v2522_v7, 0.0  ;;  %v2523_v39 = vsub.f32 %v2459_v55, %v2491_v53 }
 0x3e6   : > { %v2618_v20 = vadd.f32 1e-05, %v2554_v37  ;;  %v2555_v29 = vmax.f32 %v2523_v39, 0.0 }
 0x3e8   : > { %4340 = vrsqrt.f32 %v2618_v20  ;;  %v2619_v9 = vadd.f32 1e-05, %v2555_v29 }
 0x3ea   : > { %4342 = vrsqrt.f32 %v2619_v9 }
 0x3ef   : > { %v2271_v47 = vpop.xlane.xlu0 %2270 }
 0x3f0   : > { %v6135_v54 = vmul.f32 0.0078125, %v2271_v47 }
 0x3f1   : > { %v2273_v44 = vpop.xlane.xlu1 %2272 }
 0x3f2   : > { %v4341_v52 = vpop.eup %4340  ;;  %v6138_v2 = vmul.f32 0.0078125, %v2273_v44  ;;  %v2492_v25 = vmul.f32 %v6135_v54, %v6135_v54 }
 0x3f3   : > { %v2682_v21 = vmul.f32 %v4341_v52, %v2586_v45  ;;  %v2399_v50 = vpop.xlane.xlu0 %2398 }
 0x3f4   : > { %v4343_v17 = vpop.eup %4342  ;;  %v2460_v63 = vmul.f32 0.0078125, %v2399_v50  ;;  %v2493_v27 = vmul.f32 %v6138_v2, %v6138_v2 }
 0x3f5   : > { %v2683_v23 = vmul.f32 %v4343_v17, %v2587_v6  ;;  %v2401_v57 = vpop.xlane.xlu1 %2400  ;;  %v2720_v28 = vmul.f32 %v6143_v0, %v2682_v21 }
 0x3f6   : > { %v2524_v62 = vsub.f32 %v2460_v63, %v2492_v25  ;;  %v2461_v26 = vmul.f32 0.0078125, %v2401_v57 }
 0x3f7   : > { %v2721_v59 = vmul.f32 %v6143_v0, %v2683_v23  ;;  %v2275_v30 = vpop.xlane.xlu0 %2274  ;;  %v2758_v18 = vadd.f32 %v6150_v42, %v2720_v28 }
 0x3f8   : > { %v2556_v51 = vmax.f32 %v2524_v62, 0.0  ;;  %v2525_v12 = vsub.f32 %v2461_v26, %v2493_v27  ;;  %v6157_v35 = vmul.f32 0.0078125, %v2275_v30 }
 0x3f9   : > { %v2759_v53 = vadd.f32 %v6150_v42, %v2721_v59  ;;  %v2277_v7 = vpop.xlane.xlu1 %2276  ;;  %v2790_v29 = vmax.f32 %v2758_v18, 0.0 }
 0x3fa   : > { %v2620_v55 = vadd.f32 1e-05, %v2556_v51  ;;  %v2557_v37 = vmax.f32 %v2525_v12, 0.0  ;;  %v6160_v39 = vmul.f32 0.0078125, %v2277_v7  ;;  %v2494_v45 = vmul.f32 %v6157_v35, %v6157_v35 }
 0x3fb   : > { %v2403_v20 = vpop.xlane.xlu0 %2402  ;;  %v2791_v9 = vmax.f32 %v2759_v53, 0.0  ;;  %v2588_v12 = vsub.f32 %v5955_v1, %v6135_v54 }
 0x3fc   : > { %4344 = vrsqrt.f32 %v2620_v55  ;;  %v2621_v47 = vadd.f32 1e-05, %v2557_v37  ;;  %v2462_v52 = vmul.f32 0.0078125, %v2403_v20  ;;  %v2495_v21 = vmul.f32 %v6160_v39, %v6160_v39 }
 0x3fd   : > { %v2405_v44 = vpop.xlane.xlu1 %2404  ;;  %v2822_v6 = vpack.c.bf16 %v2791_v9, %v2790_v29  ;;  %v2589_v29 = vsub.f32 %v5958_v16, %v6138_v2 }
 0x3fe   : > { %4346 = vrsqrt.f32 %v2621_v47  ;;  %v2526_v17 = vsub.f32 %v2462_v52, %v2494_v45  ;;  %v2463_v50 = vmul.f32 0.0078125, %v2405_v44 }
 0x3ff   : > { %v2279_v25 = vpop.xlane.xlu0 %2278  ;;  %4030 = vmatprep.mubr.bf16.mxu1 %v2822_v6 }
 0x400   : > { %v2558_v63 = vmax.f32 %v2526_v17, 0.0  ;;  %v2527_v23 = vsub.f32 %v2463_v50, %v2495_v21  ;;  %v6166_v57 = vmul.f32 0.0078125, %v2279_v25 }
 0x401   : > { %v2281_v28 = vpop.xlane.xlu1 %2280 }
 0x402   : > { %v2622_v27 = vadd.f32 1e-05, %v2558_v63  ;;  %v2559_v62 = vmax.f32 %v2527_v23, 0.0  ;;  %v6168_v26 = vmul.f32 0.0078125, %v2281_v28  ;;  %v2496_v18 = vmul.f32 %v6166_v57, %v6166_v57 }
 0x403   : > { %v2407_v59 = vpop.xlane.xlu0 %2406 }
 0x404   : > { %4348 = vrsqrt.f32 %v2622_v27  ;;  %v2623_v30 = vadd.f32 1e-05, %v2559_v62  ;;  %v2464_v51 = vmul.f32 0.0078125, %v2407_v59  ;;  %v2497_v55 = vmul.f32 %v6168_v26, %v6168_v26 }
 0x405   : > { %v2409_v53 = vpop.xlane.xlu1 %2408  ;;  %v2590_v62 = vsub.f32 %v5967_v56, %v6157_v35 }
 0x406   : > { %v4345_v7 = vpop.eup %4344  ;;  %4350 = vrsqrt.f32 %v2623_v30  ;;  %v2528_v37 = vsub.f32 %v2464_v51, %v2496_v18  ;;  %v2465_v20 = vmul.f32 0.0078125, %v2409_v53 }
 0x407   : > { %v2684_v9 = vmul.f32 %v4345_v7, %v2588_v12  ;;  %v2283_v47 = vpop.xlane.xlu0 %2282  ;;  %v2591_v7 = vsub.f32 %v5970_v32, %v6160_v39 }
 0x408   : > { %v4347_v45 = vpop.eup %4346  ;;  %v2560_v52 = vmax.f32 %v2528_v37, 0.0  ;;  %v2529_v44 = vsub.f32 %v2465_v20, %v2497_v55  ;;  %v6178_v6 = vmul.f32 0.0078125, %v2283_v47 }
 0x409   : > { %v2685_v21 = vmul.f32 %v4347_v45, %v2589_v29  ;;  %v2285_v1 = vpop.xlane.xlu1 %2284  ;;  %v2722_v54 = vmul.f32 %v6143_v0, %v2684_v9 }
 0x40a   : > { %v2624_v17 = vadd.f32 1e-05, %v2560_v52  ;;  %v2561_v50 = vmax.f32 %v2529_v44, 0.0  ;;  %v6181_v25 = vmul.f32 0.0078125, %v2285_v1  ;;  %v2498_v28 = vmul.f32 %v6178_v6, %v6178_v6 }
 0x40b   : > { %v2411_v63 = vpop.xlane.xlu0 %2410  ;;  %v2723_v23 = vmul.f32 %v6143_v0, %v2685_v21  ;;  %v2760_v16 = vadd.f32 %v6150_v42, %v2722_v54 }
 0x40c   : > { %4352 = vrsqrt.f32 %v2624_v17  ;;  %v2625_v2 = vadd.f32 1e-05, %v2561_v50  ;;  %v2466_v27 = vmul.f32 0.0078125, %v2411_v63  ;;  %v2499_v51 = vmul.f32 %v6181_v25, %v6181_v25 }
 0x40d   : > { %v2413_v59 = vpop.xlane.xlu1 %2412  ;;  %v2761_v30 = vadd.f32 %v6150_v42, %v2723_v23  ;;  %v2792_v37 = vmax.f32 %v2760_v16, 0.0 }
 0x40e   : > { %v4349_v18 = vpop.eup %4348  ;;  %4354 = vrsqrt.f32 %v2625_v2  ;;  %v2530_v12 = vsub.f32 %v2466_v27, %v2498_v28  ;;  %v2467_v53 = vmul.f32 0.0078125, %v2413_v59  ;;  %v2592_v2 = vsub.f32 %v5979_v11, %v6166_v57 }
 0x40f   : > { %v2793_v20 = vmax.f32 %v2761_v30, 0.0  ;;  %v2686_v29 = vmul.f32 %v4349_v18, %v2590_v62 }
 0x410   : > { %v4351_v9 = vpop.eup %4350  ;;  %v2562_v47 = vmax.f32 %v2530_v12, 0.0  ;;  %v2531_v56 = vsub.f32 %v2467_v53, %v2499_v51  ;;  %v2593_v51 = vsub.f32 %v5982_v48, %v6168_v26 }
 0x411   : > { %v2287_v55 = vpop.xlane.xlu0 %2286  ;;  %v2823_v52 = vpack.c.bf16 %v2793_v20, %v2792_v37  ;;  %v2687_v44 = vmul.f32 %v4351_v9, %v2591_v7  ;;  %v2724_v21 = vmul.f32 %v6143_v0, %v2686_v29 }
 0x412   : > { %v6194_v35 = vmul.f32 0.0078125, %v2287_v55  ;;  %v2626_v1 = vadd.f32 1e-05, %v2562_v47  ;;  %v2563_v54 = vmax.f32 %v2531_v56, 0.0 }
 0x413   : > { %v2289_v45 = vpop.xlane.xlu1 %2288  ;;  %4031 = vmatmul.mubr.bf16.vlgmr.msra.gmra.mrb[56].mxu1 %v2823_v52  ;;  %v2725_v39 = vmul.f32 %v6143_v0, %v2687_v44  ;;  %v2762_v50 = vadd.f32 %v6150_v42, %v2724_v21 }
 0x414   : > { %v6197_v17 = vmul.f32 0.0078125, %v2289_v45  ;;  %4356 = vrsqrt.f32 %v2626_v1  ;;  %v2627_v63 = vadd.f32 1e-05, %v2563_v54  ;;  %v2500_v23 = vmul.f32 %v6194_v35, %v6194_v35 }
 0x415   : > { %v2415_v32 = vpop.xlane.xlu0 %2414  ;;  %v2763_v27 = vadd.f32 %v6150_v42, %v2725_v39  ;;  %v2794_v53 = vmax.f32 %v2762_v50, 0.0  ;;  %v2594_v39 = vsub.f32 %v5991_v13, %v6178_v6 }
 0x416   : > { %v2468_v16 = vmul.f32 0.0078125, %v2415_v32  ;;  %v4353_v62 = vpop.eup %4352  ;;  %4358 = vrsqrt.f32 %v2627_v63  ;;  %v2501_v59 = vmul.f32 %v6197_v17, %v6197_v17 }
 0x417   : > { %v2417_v28 = vpop.xlane.xlu1 %2416  ;;  %v2795_v7 = vmax.f32 %v2763_v27, 0.0  ;;  %v2688_v55 = vmul.f32 %v4353_v62, %v2592_v2  ;;  %v2595_v27 = vsub.f32 %v5994_v3, %v6181_v25 }
 0x418   : > { %v2532_v30 = vsub.f32 %v2468_v16, %v2500_v23  ;;  %v2469_v18 = vmul.f32 0.0078125, %v2417_v28  ;;  %v4355_v37 = vpop.eup %4354 }
 0x419   : > { %v2291_v12 = vpop.xlane.xlu0 %2290  ;;  %v2824_v9 = vpack.c.bf16 %v2795_v7, %v2794_v53  ;;  %v2689_v47 = vmul.f32 %v4355_v37, %v2593_v51  ;;  %v2726_v56 = vmul.f32 %v6143_v0, %v2688_v55 }
 0x41a   : > { %v2564_v20 = vmax.f32 %v2532_v30, 0.0  ;;  %v2533_v11 = vsub.f32 %v2469_v18, %v2501_v59  ;;  %v6210_v57 = vmul.f32 0.0078125, %v2291_v12 }
 0x41b   : > { %v2293_v29 = vpop.xlane.xlu1 %2292  ;;  %4034 = vmatprep.mubr.bf16.mxu1 %v2824_v9  ;;  %v2727_v26 = vmul.f32 %v6143_v0, %v2689_v47  ;;  %v2764_v21 = vadd.f32 %v6150_v42, %v2726_v56 }
 0x41c   : > { %v2628_v45 = vadd.f32 1e-05, %v2564_v20  ;;  %v2565_v52 = vmax.f32 %v2533_v11, 0.0  ;;  %v6213_v44 = vmul.f32 0.0078125, %v2293_v29  ;;  %v2502_v54 = vmul.f32 %v6210_v57, %v6210_v57 }
 0x41d   : > { %v2419_v48 = vpop.xlane.xlu0 %2418  ;;  %v2765_v63 = vadd.f32 %v6150_v42, %v2727_v26  ;;  %v2796_v59 = vmax.f32 %v2764_v21, 0.0 }
 0x41e   : > { %4360 = vrsqrt.f32 %v2628_v45  ;;  %v2629_v1 = vadd.f32 1e-05, %v2565_v52  ;;  %v2470_v32 = vmul.f32 0.0078125, %v2419_v48  ;;  %v4357_v23 = vpop.eup %4356  ;;  %v2503_v16 = vmul.f32 %v6213_v44, %v6213_v44 }
 0x41f   : > { %v2421_v50 = vpop.xlane.xlu1 %2420  ;;  %v2797_v30 = vmax.f32 %v2765_v63, 0.0  ;;  %v2690_v18 = vmul.f32 %v4357_v23, %v2594_v39  ;;  %v2596_v52 = vsub.f32 %v6003_v46, %v6194_v35  ;;  %v2597_v39 = vsub.f32 %v6006_v43, %v6197_v17 }
 0x420   : > { %4362 = vrsqrt.f32 %v2629_v1  ;;  %v2534_v2 = vsub.f32 %v2470_v32, %v2502_v54  ;;  %v2471_v28 = vmul.f32 0.0078125, %v2421_v50  ;;  %v4359_v51 = vpop.eup %4358 }
 0x421   : > { %v2295_v62 = vpop.xlane.xlu0 %2294  ;;  %v2825_v7 = vpack.c.bf16 %v2797_v30, %v2796_v59  ;;  %v2691_v55 = vmul.f32 %v4359_v51, %v2595_v27  ;;  %v2728_v37 = vmul.f32 %v6143_v0, %v2690_v18 }
 0x422   : > { %v2566_v12 = vmax.f32 %v2534_v2, 0.0  ;;  %v2535_v13 = vsub.f32 %v2471_v28, %v2503_v16  ;;  %v6226_v6 = vmul.f32 0.0078125, %v2295_v62 }
 0x423   : > { %v2297_v53 = vpop.xlane.xlu1 %2296  ;;  %4035 = vmatmul.mubr.bf16.gmra.mrb[60].mxu1 %v2825_v7  ;;  %v2729_v25 = vmul.f32 %v6143_v0, %v2691_v55  ;;  %v2766_v9 = vadd.f32 %v6150_v42, %v2728_v37  ;;  %v2598_v37 = vsub.f32 %v6015_v22, %v6210_v57 }
 0x424   : > { %v2630_v20 = vadd.f32 1e-05, %v2566_v12  ;;  %v2567_v11 = vmax.f32 %v2535_v13, 0.0  ;;  %v6229_v29 = vmul.f32 0.0078125, %v2297_v53  ;;  %v2504_v56 = vmul.f32 %v6226_v6, %v6226_v6 }
 0x425   : > { %v2423_v3 = vpop.xlane.xlu0 %2422  ;;  %v2767_v26 = vadd.f32 %v6150_v42, %v2729_v25  ;;  %v2798_v63 = vmax.f32 %v2766_v9, 0.0 }
 0x426   : > { %4364 = vrsqrt.f32 %v2630_v20  ;;  %v2631_v47 = vadd.f32 1e-05, %v2567_v11  ;;  %v2472_v45 = vmul.f32 0.0078125, %v2423_v3  ;;  %v2505_v1 = vmul.f32 %v6229_v29, %v6229_v29 }
 0x427   : > { %v2425_v48 = vpop.xlane.xlu1 %2424  ;;  %v2799_v23 = vmax.f32 %v2767_v26, 0.0 }
 0x428   : > { %v4361_v21 = vpop.eup %4360  ;;  %4366 = vrsqrt.f32 %v2631_v47  ;;  %v2536_v54 = vsub.f32 %v2472_v45, %v2504_v56  ;;  %v2473_v32 = vmul.f32 0.0078125, %v2425_v48  ;;  %v2599_v56 = vsub.f32 %v6018_v14, %v6213_v44 }
 0x429   : > { %v2692_v16 = vmul.f32 %v4361_v21, %v2596_v52  ;;  %v2826_v62 = vpack.c.bf16 %v2799_v23, %v2798_v63 }
 0x42a   : > { %v2299_v50 = vpop.xlane.xlu0 %2298  ;;  %v4363_v2 = vpop.eup %4362  ;;  %v2568_v28 = vmax.f32 %v2536_v54, 0.0  ;;  %v2537_v46 = vsub.f32 %v2473_v32, %v2505_v1 }
 0x42b   : > { %v6242_v35 = vmul.f32 0.0078125, %v2299_v50  ;;  %v2693_v59 = vmul.f32 %v4363_v2, %v2597_v39  ;;  %v2730_v30 = vmul.f32 %v6143_v0, %v2692_v16  ;;  %4038 = vmatprep.mubr.bf16.mxu1 %v2826_v62  ;;  %v2600_v2 = vsub.f32 %v6027_v24, %v6226_v6 }
 0x42c   : > { %v2301_v27 = vpop.xlane.xlu1 %2300  ;;  %v2632_v18 = vadd.f32 1e-05, %v2568_v28  ;;  %v2569_v51 = vmax.f32 %v2537_v46, 0.0 }
 0x42d   : > { %v6245_v12 = vmul.f32 0.0078125, %v2301_v27  ;;  %v2731_v17 = vmul.f32 %v6143_v0, %v2693_v59  ;;  %v2768_v13 = vadd.f32 %v6150_v42, %v2730_v30  ;;  %v2506_v7 = vmul.f32 %v6242_v35, %v6242_v35 }
 0x42e   : > { %v2427_v43 = vpop.xlane.xlu0 %2426  ;;  %4368 = vrsqrt.f32 %v2632_v18  ;;  %v2633_v53 = vadd.f32 1e-05, %v2569_v51  ;;  %v2601_v18 = vsub.f32 %v6030_v19, %v6229_v29 }
 0x42f   : > { %v2474_v55 = vmul.f32 0.0078125, %v2427_v43  ;;  %v2769_v11 = vadd.f32 %v6150_v42, %v2731_v17  ;;  %v2507_v25 = vmul.f32 %v6245_v12, %v6245_v12  ;;  %v2800_v45 = vmax.f32 %v2768_v13, 0.0 }
 0x430   : > { %v2429_v20 = vpop.xlane.xlu1 %2428  ;;  %v4365_v3 = vpop.eup %4364  ;;  %4370 = vrsqrt.f32 %v2633_v53 }
 0x431   : > { %v2538_v9 = vsub.f32 %v2474_v55, %v2506_v7  ;;  %v2475_v47 = vmul.f32 0.0078125, %v2429_v20  ;;  %v2801_v52 = vmax.f32 %v2769_v11, 0.0  ;;  %v2694_v48 = vmul.f32 %v4365_v3, %v2598_v37 }
 0x432   : > { %v4367_v26 = vpop.eup %4366 }
 0x433   : > { %v2570_v21 = vmax.f32 %v2538_v9, 0.0  ;;  %v2539_v1 = vsub.f32 %v2475_v47, %v2507_v25  ;;  %v2303_v22 = vpop.xlane.xlu0 %2302  ;;  %v2827_v57 = vpack.c.bf16 %v2801_v52, %v2800_v45  ;;  %v2695_v54 = vmul.f32 %v4367_v26, %v2599_v56 }
 0x434   : > { %v2732_v32 = vmul.f32 %v6143_v0, %v2694_v48  ;;  %v6259_v63 = vmul.f32 0.0078125, %v2303_v22 }
 0x435   : > { %v2634_v39 = vadd.f32 1e-05, %v2570_v21  ;;  %v2571_v50 = vmax.f32 %v2539_v1, 0.0  ;;  %v2305_v23 = vpop.xlane.xlu1 %2304  ;;  %4039 = vmatmul.mubr.bf16.gmra.mrb[64].mxu1 %v2827_v57  ;;  %v2733_v16 = vmul.f32 %v6143_v0, %v2695_v54  ;;  %v2602_v21 = vsub.f32 %v6039_v31, %v6242_v35 }
 0x436   : > { %v2770_v14 = vadd.f32 %v6150_v42, %v2732_v32  ;;  %v6265_v28 = vmul.f32 0.0078125, %v2305_v23  ;;  %v2508_v59 = vmul.f32 %v6259_v63, %v6259_v63  ;;  %v2603_v1 = vsub.f32 %v6042_v33, %v6245_v12 }
 0x437   : > { %4372 = vrsqrt.f32 %v2634_v39  ;;  %v2635_v44 = vadd.f32 1e-05, %v2571_v50  ;;  %v2431_v46 = vpop.xlane.xlu0 %2430  ;;  %v2771_v27 = vadd.f32 %v6150_v42, %v2733_v16 }
 0x438   : > { %v4369_v62 = vpop.eup %4368  ;;  %v2476_v30 = vmul.f32 0.0078125, %v2431_v46  ;;  %v2802_v43 = vmax.f32 %v2770_v14, 0.0  ;;  %v2509_v24 = vmul.f32 %v6265_v28, %v6265_v28 }
 0x439   : > { %4374 = vrsqrt.f32 %v2635_v44  ;;  %v2433_v51 = vpop.xlane.xlu1 %2432  ;;  %v2803_v17 = vmax.f32 %v2771_v27, 0.0  ;;  %v2696_v13 = vmul.f32 %v4369_v62, %v2600_v2 }
 0x43a   : > { %v4371_v53 = vpop.eup %4370  ;;  %v2540_v6 = vsub.f32 %v2476_v30, %v2508_v59  ;;  %v2477_v7 = vmul.f32 0.0078125, %v2433_v51 }
 0x43b   : > { %v2828_v55 = vpack.c.bf16 %v2803_v17, %v2802_v43  ;;  %v2697_v37 = vmul.f32 %v4371_v53, %v2601_v18  ;;  %v2734_v20 = vmul.f32 %v6143_v0, %v2696_v13  ;;  %v2604_v53 = vsub.f32 %v6051_v60, %v6259_v63 }
 0x43c   : > { %v2572_v11 = vmax.f32 %v2540_v6, 0.0  ;;  %v2541_v3 = vsub.f32 %v2477_v7, %v2509_v24  ;;  %v2307_v25 = vpop.xlane.xlu0 %2306 }
 0x43d   : > { %v6275_v9 = vmul.f32 0.0078125, %v2307_v25  ;;  %4042 = vmatprep.mubr.bf16.mxu1 %v2828_v55  ;;  %v2735_v19 = vmul.f32 %v6143_v0, %v2697_v37  ;;  %v2772_v29 = vadd.f32 %v6150_v42, %v2734_v20  ;;  %v2605_v25 = vsub.f32 %v6054_v58, %v6265_v28 }
 0x43e   : > { %v2636_v47 = vadd.f32 1e-05, %v2572_v11  ;;  %v2573_v56 = vmax.f32 %v2541_v3, 0.0  ;;  %v2309_v45 = vpop.xlane.xlu1 %2308 }
 0x43f   : > { %v6279_v52 = vmul.f32 0.0078125, %v2309_v45  ;;  %v2773_v48 = vadd.f32 %v6150_v42, %v2735_v19  ;;  %v2510_v54 = vmul.f32 %v6275_v9, %v6275_v9  ;;  %v2804_v39 = vmax.f32 %v2772_v29, 0.0 }
 0x440   : > { %4376 = vrsqrt.f32 %v2636_v47  ;;  %v2637_v22 = vadd.f32 1e-05, %v2573_v56  ;;  %v2435_v57 = vpop.xlane.xlu0 %2434 }
 0x441   : > { %v4373_v26 = vpop.eup %4372  ;;  %v2478_v32 = vmul.f32 0.0078125, %v2435_v57  ;;  %v2805_v50 = vmax.f32 %v2773_v48, 0.0  ;;  %v2511_v16 = vmul.f32 %v6279_v52, %v6279_v52 }
 0x442   : > { %4378 = vrsqrt.f32 %v2637_v22  ;;  %v2437_v14 = vpop.xlane.xlu1 %2436  ;;  %v2698_v44 = vmul.f32 %v4373_v26, %v2602_v21 }
 0x443   : > { %v4375_v23 = vpop.eup %4374  ;;  %v2542_v31 = vsub.f32 %v2478_v32, %v2510_v54  ;;  %v2479_v35 = vmul.f32 0.0078125, %v2437_v14  ;;  %v2829_v2 = vpack.c.bf16 %v2805_v50, %v2804_v39  ;;  %v2606_v50 = vsub.f32 %v6063_v15, %v6275_v9 }
 0x444   : > { %v2699_v33 = vmul.f32 %v4375_v23, %v2603_v1  ;;  %v2736_v12 = vmul.f32 %v6143_v0, %v2698_v44 }
 0x445   : > { %v2574_v46 = vmax.f32 %v2542_v31, 0.0  ;;  %v2543_v27 = vsub.f32 %v2479_v35, %v2511_v16  ;;  %4043 = vmatmul.mubr.bf16.gmra.mrb[68].mxu1 %v2829_v2 }
 0x446   : > { %v2311_v62 = vpop.xlane.xlu0 %2310  ;;  %v2737_v59 = vmul.f32 %v6143_v0, %v2699_v33  ;;  %v2774_v18 = vadd.f32 %v6150_v42, %v2736_v12  ;;  %v2607_v33 = vsub.f32 %v6066_v40, %v6279_v52 }
 0x447   : > { %v6292_v30 = vmul.f32 0.0078125, %v2311_v62  ;;  %v2638_v51 = vadd.f32 1e-05, %v2574_v46  ;;  %v2575_v43 = vmax.f32 %v2543_v27, 0.0 }
 0x448   : > { %v2313_v17 = vpop.xlane.xlu1 %2312  ;;  %v2775_v13 = vadd.f32 %v6150_v42, %v2737_v59  ;;  %v2806_v55 = vmax.f32 %v2774_v18, 0.0 }
 0x449   : > { %v6298_v24 = vmul.f32 0.0078125, %v2313_v17  ;;  %4380 = vrsqrt.f32 %v2638_v51  ;;  %v2639_v6 = vadd.f32 1e-05, %v2575_v43  ;;  %v2512_v11 = vmul.f32 %v6292_v30, %v6292_v30 }
 0x44a   : > { %v2439_v7 = vpop.xlane.xlu0 %2438  ;;  %v2807_v37 = vmax.f32 %v2775_v13, 0.0  ;;  %v4377_v20 = vpop.eup %4376 }
 0x44b   : > { %v2480_v3 = vmul.f32 0.0078125, %v2439_v7  ;;  %4382 = vrsqrt.f32 %v2639_v6  ;;  %v2700_v47 = vmul.f32 %v4377_v20, %v2604_v53  ;;  %v2513_v63 = vmul.f32 %v6298_v24, %v6298_v24 }
 0x44c   : > { %v2441_v19 = vpop.xlane.xlu1 %2440  ;;  %v2830_v29 = vpack.c.bf16 %v2807_v37, %v2806_v55  ;;  %v4379_v60 = vpop.eup %4378 }
 0x44d   : > { %v2544_v56 = vsub.f32 %v2480_v3, %v2512_v11  ;;  %v2481_v45 = vmul.f32 0.0078125, %v2441_v19  ;;  %v2701_v26 = vmul.f32 %v4379_v60, %v2605_v25  ;;  %v2738_v21 = vmul.f32 %v6143_v0, %v2700_v47 }
 0x44e   : > { %v2315_v48 = vpop.xlane.xlu0 %2314  ;;  %4046 = vmatprep.mubr.bf16.mxu1 %v2830_v29  ;;  %v2608_v47 = vsub.f32 %v6075_v5, %v6292_v30 }
 0x44f   : > { %v2576_v1 = vmax.f32 %v2544_v56, 0.0  ;;  %v2545_v22 = vsub.f32 %v2481_v45, %v2513_v63  ;;  %v6307_v57 = vmul.f32 0.0078125, %v2315_v48  ;;  %v2739_v28 = vmul.f32 %v6143_v0, %v2701_v26 }
 0x450   : > { %v2317_v58 = vpop.xlane.xlu1 %2316  ;;  %v2776_v54 = vadd.f32 %v6150_v42, %v2738_v21  ;;  %v2609_v21 = vsub.f32 %v6078_v41, %v6298_v24 }
 0x451   : > { %v2640_v32 = vadd.f32 1e-05, %v2576_v1  ;;  %v2577_v39 = vmax.f32 %v2545_v22, 0.0  ;;  %v6313_v23 = vmul.f32 0.0078125, %v2317_v58  ;;  %v2777_v14 = vadd.f32 %v6150_v42, %v2739_v28 }
 0x452   : > { %v2443_v16 = vpop.xlane.xlu0 %2442  ;;  %v2514_v31 = vmul.f32 %v6307_v57, %v6307_v57  ;;  %v2808_v15 = vmax.f32 %v2776_v54, 0.0 }
 0x453   : > { %4384 = vrsqrt.f32 %v2640_v32  ;;  %v2641_v44 = vadd.f32 1e-05, %v2577_v39  ;;  %v2482_v35 = vmul.f32 0.0078125, %v2443_v16  ;;  %v4381_v2 = vpop.eup %4380  ;;  %v2515_v12 = vmul.f32 %v6313_v23, %v6313_v23 }
 0x454   : > { %v2445_v46 = vpop.xlane.xlu1 %2444  ;;  %v2809_v9 = vmax.f32 %v2777_v14, 0.0  ;;  %v2702_v59 = vmul.f32 %v4381_v2, %v2606_v50 }
 0x455   : > { %4386 = vrsqrt.f32 %v2641_v44  ;;  %v2546_v27 = vsub.f32 %v2482_v35, %v2514_v31  ;;  %v2483_v62 = vmul.f32 0.0078125, %v2445_v46  ;;  %v4383_v18 = vpop.eup %4382 }
 0x456   : > { %v2319_v51 = vpop.xlane.xlu0 %2318  ;;  %v2831_v43 = vpack.c.bf16 %v2809_v9, %v2808_v15  ;;  %v2703_v6 = vmul.f32 %v4383_v18, %v2607_v33  ;;  %v2740_v40 = vmul.f32 %v6143_v0, %v2702_v59  ;;  %v2610_v15 = vsub.f32 %v6087_v38, %v6307_v57 }
 0x457   : > { %v2578_v17 = vmax.f32 %v2546_v27, 0.0  ;;  %v2547_v13 = vsub.f32 %v2483_v62, %v2515_v12  ;;  %v6322_v53 = vmul.f32 0.0078125, %v2319_v51 }
 0x458   : > { %v2321_v7 = vpop.xlane.xlu1 %2320  ;;  %4047 = vmatmul.mubr.bf16.gmra.mrb[72].mxu1 %v2831_v43  ;;  %v2741_v11 = vmul.f32 %v6143_v0, %v2703_v6  ;;  %v2778_v3 = vadd.f32 %v6150_v42, %v2740_v40  ;;  %v2611_v43 = vsub.f32 %v6090_v49, %v6313_v23 }
 0x459   : > { %v2642_v52 = vadd.f32 1e-05, %v2578_v17  ;;  %v2579_v55 = vmax.f32 %v2547_v13, 0.0  ;;  %v6325_v37 = vmul.f32 0.0078125, %v2321_v7  ;;  %v2516_v19 = vmul.f32 %v6322_v53, %v6322_v53 }
 0x45a   : > { %v2447_v20 = vpop.xlane.xlu0 %2446  ;;  %v2779_v63 = vadd.f32 %v6150_v42, %v2741_v11  ;;  %v2810_v22 = vmax.f32 %v2778_v3, 0.0 }
 0x45b   : > { %4388 = vrsqrt.f32 %v2642_v52  ;;  %v2643_v25 = vadd.f32 1e-05, %v2579_v55  ;;  %v2484_v29 = vmul.f32 0.0078125, %v2447_v20  ;;  %v2517_v45 = vmul.f32 %v6325_v37, %v6325_v37 }
 0x45c   : > { %v2449_v60 = vpop.xlane.xlu1 %2448  ;;  %v2811_v58 = vmax.f32 %v2779_v63, 0.0 }
 0x45d   : > { %v4385_v56 = vpop.eup %4384  ;;  %4390 = vrsqrt.f32 %v2643_v25  ;;  %v2548_v48 = vsub.f32 %v2484_v29, %v2516_v19  ;;  %v2485_v26 = vmul.f32 0.0078125, %v2449_v60 }
 0x45e   : > { %v2323_v1 = vpop.xlane.xlu0 %2322  ;;  %v2704_v28 = vmul.f32 %v4385_v56, %v2608_v47  ;;  %v2832_v50 = vpack.c.bf16 %v2811_v58, %v2810_v22 }
 0x45f   : > { %v4387_v54 = vpop.eup %4386  ;;  %v2580_v32 = vmax.f32 %v2548_v48, 0.0  ;;  %v2549_v5 = vsub.f32 %v2485_v26, %v2517_v45  ;;  %v6338_v30 = vmul.f32 0.0078125, %v2323_v1  ;;  %v2612_v45 = vsub.f32 %v6099_v8, %v6322_v53 }
 0x460   : > { %v2325_v39 = vpop.xlane.xlu1 %2324  ;;  %v2705_v16 = vmul.f32 %v4387_v54, %v2609_v21  ;;  %v2742_v14 = vmul.f32 %v6143_v0, %v2704_v28  ;;  %4050 = vmatprep.mubr.bf16.mxu1 %v2832_v50  ;;  %v2613_v28 = vsub.f32 %v6102_v61, %v6325_v37 }
 0x461   : > { %v2644_v44 = vadd.f32 1e-05, %v2580_v32  ;;  %v2581_v31 = vmax.f32 %v2549_v5, 0.0  ;;  %v6341_v35 = vmul.f32 0.0078125, %v2325_v39  ;;  %v2518_v12 = vmul.f32 %v6338_v30, %v6338_v30 }
 0x462   : > { %v2451_v41 = vpop.xlane.xlu0 %2450  ;;  %v2743_v24 = vmul.f32 %v6143_v0, %v2705_v16  ;;  %v2780_v2 = vadd.f32 %v6150_v42, %v2742_v14  ;;  %v2614_v61 = vsub.f32 %v6111_v10, %v6338_v30 }
 0x463   : > { %4392 = vrsqrt.f32 %v2644_v44  ;;  %v2645_v33 = vadd.f32 1e-05, %v2581_v31  ;;  %v2486_v46 = vmul.f32 0.0078125, %v2451_v41  ;;  %v2519_v59 = vmul.f32 %v6341_v35, %v6341_v35 }
 0x464   : > { %v2453_v9 = vpop.xlane.xlu1 %2452  ;;  %v2781_v27 = vadd.f32 %v6150_v42, %v2743_v24  ;;  %v2812_v13 = vmax.f32 %v2780_v2, 0.0 }
 0x465   : > { %v4389_v62 = vpop.eup %4388  ;;  %4394 = vrsqrt.f32 %v2645_v33  ;;  %v2550_v18 = vsub.f32 %v2486_v46, %v2518_v12  ;;  %v2487_v51 = vmul.f32 0.0078125, %v2453_v9  ;;  %v2615_v12 = vsub.f32 %v6114_v36, %v6341_v35 }
 0x466   : > { %v2327_v17 = vpop.xlane.xlu0 %2326  ;;  %v2813_v6 = vmax.f32 %v2781_v27, 0.0  ;;  %v2706_v7 = vmul.f32 %v4389_v62, %v2610_v15 }
 0x467   : > { %v4391_v40 = vpop.eup %4390  ;;  %v2582_v52 = vmax.f32 %v2550_v18, 0.0  ;;  %v2551_v38 = vsub.f32 %v2487_v51, %v2519_v59  ;;  %v6354_v57 = vmul.f32 0.0078125, %v2327_v17 }
 0x468   : > { %v2329_v55 = vpop.xlane.xlu1 %2328  ;;  %v2833_v20 = vpack.c.bf16 %v2813_v6, %v2812_v13  ;;  %v2707_v11 = vmul.f32 %v4391_v40, %v2611_v43  ;;  %v2744_v3 = vmul.f32 %v6143_v0, %v2706_v7 }
 0x469   : > { %v2646_v25 = vadd.f32 1e-05, %v2582_v52  ;;  %v2583_v19 = vmax.f32 %v2551_v38, 0.0  ;;  %v2361_v29 = vmul.f32 0.0078125, %v2329_v55  ;;  %v2520_v63 = vmul.f32 %v6354_v57, %v6354_v57 }
 0x46a   : > { %4051 = vmatmul.mubr.bf16.gmra.mrb[76].mxu1 %v2833_v20  ;;  %v2455_v47 = vpop.xlane.xlu0 %2454  ;;  %v2745_v49 = vmul.f32 %v6143_v0, %v2707_v11  ;;  %v2782_v23 = vadd.f32 %v6150_v42, %v2744_v3  ;;  %v2616_v30 = vsub.f32 %v6123_v4, %v6354_v57 }
 0x46b   : > { %4396 = vrsqrt.f32 %v2646_v25  ;;  %v2647_v60 = vadd.f32 1e-05, %v2583_v19  ;;  %v2488_v56 = vmul.f32 0.0078125, %v2455_v47  ;;  %v2521_v1 = vmul.f32 %v2361_v29, %v2361_v29 }
 0x46c   : > { %v2457_v48 = vpop.xlane.xlu1 %2456  ;;  %v2783_v26 = vadd.f32 %v6150_v42, %v2745_v49  ;;  %v2814_v54 = vmax.f32 %v2782_v23, 0.0  ;;  %v2617_v36 = vsub.f32 %v6126_v34, %v2361_v29  ;;  %v6388_v34 = vld [vmem:[%s7118_s16] ss:$0 sm:$0xff] }
 0x46d   : > { %v4393_v21 = vpop.eup %4392  ;;  %4398 = vrsqrt.f32 %v2647_v60  ;;  %v2552_v22 = vsub.f32 %v2488_v56, %v2520_v63  ;;  %v2489_v58 = vmul.f32 0.0078125, %v2457_v48 }
 0x46e   : > { %v2815_v32 = vmax.f32 %v2783_v26, 0.0  ;;  %v2708_v5 = vmul.f32 %v4393_v21, %v2612_v45 }
 0x46f   : > { %v4395_v39 = vpop.eup %4394  ;;  %v2584_v50 = vmax.f32 %v2552_v22, 0.0  ;;  %v2553_v16 = vsub.f32 %v2489_v58, %v2521_v1 }
 0x470   : > { %v2834_v14 = vpack.c.bf16 %v2815_v32, %v2814_v54  ;;  %v2709_v44 = vmul.f32 %v4395_v39, %v2613_v28  ;;  %v2746_v8 = vmul.f32 %v6143_v0, %v2708_v5 }
 0x471   : > { %v2648_v53 = vadd.f32 1e-05, %v2584_v50  ;;  %v2585_v31 = vmax.f32 %v2553_v16, 0.0 }
 0x472   : > { %4054 = vmatprep.mubr.bf16.mxu1 %v2834_v14  ;;  %v2747_v41 = vmul.f32 %v6143_v0, %v2709_v44  ;;  %v2784_v24 = vadd.f32 %v6150_v42, %v2746_v8 }
 0x473   : > { %4400 = vrsqrt.f32 %v2648_v53  ;;  %v2649_v2 = vadd.f32 1e-05, %v2585_v31 }
 0x474   : > { %v2785_v37 = vadd.f32 %v6150_v42, %v2747_v41  ;;  %v2816_v46 = vmax.f32 %v2784_v24, 0.0 }
 0x475   : > { %v4397_v33 = vpop.eup %4396  ;;  %4402 = vrsqrt.f32 %v2649_v2 }
 0x476   : > { %v2817_v15 = vmax.f32 %v2785_v37, 0.0  ;;  %v2710_v9 = vmul.f32 %v4397_v33, %v2614_v61 }
 0x477   : > { %v4399_v27 = vpop.eup %4398 }
 0x478   : > { %v2835_v62 = vpack.c.bf16 %v2817_v15, %v2816_v46  ;;  %v2711_v59 = vmul.f32 %v4399_v27, %v2615_v12  ;;  %v2748_v18 = vmul.f32 %v6143_v0, %v2710_v9 }
 0x47a   : > { %4055 = vmatmul.mubr.bf16.gmra.mrb[80].mxu1 %v2835_v62  ;;  %v2749_v51 = vmul.f32 %v6143_v0, %v2711_v59  ;;  %v2786_v10 = vadd.f32 %v6150_v42, %v2748_v18 }
 0x47c   : > { %v2787_v43 = vadd.f32 %v6150_v42, %v2749_v51  ;;  %v2818_v35 = vmax.f32 %v2786_v10, 0.0 }
 0x47d   : > { %v4401_v17 = vpop.eup %4400 }
 0x47e   : > { %v2819_v13 = vmax.f32 %v2787_v43, 0.0  ;;  %v2712_v6 = vmul.f32 %v4401_v17, %v2616_v30 }
 0x47f   : > { %v4403_v7 = vpop.eup %4402 }
 0x480   : > { %v2836_v40 = vpack.c.bf16 %v2819_v13, %v2818_v35  ;;  %v2713_v52 = vmul.f32 %v4403_v7, %v2617_v36  ;;  %v2750_v38 = vmul.f32 %v6143_v0, %v2712_v6 }
 0x482   : > { %4058 = vmatprep.mubr.bf16.mxu1 %v2836_v40  ;;  %v2751_v55 = vmul.f32 %v6143_v0, %v2713_v52  ;;  %v2788_v20 = vadd.f32 %v6150_v42, %v2750_v38 }
 0x484   : > { %v2789_v4 = vadd.f32 %v6150_v42, %v2751_v55  ;;  %v2820_v57 = vmax.f32 %v2788_v20, 0.0 }
 0x486   : > { %v2821_v11 = vmax.f32 %v2789_v4, 0.0 }
 0x488   : > { %v2837_v3 = vpack.c.bf16 %v2821_v11, %v2820_v57 }
 0x48a   : > { %4059 = vmatmul.mubr.bf16.gmra.mrb[84].mxu1 %v2837_v3 }
 0x4e6   : > { %v4032_v25 = vpop.f32.mrb[56].mxu1 }
 0x4e7   : > { %v6391_v19 = vadd.f32 %v4032_v25, %v6388_v34  ;;  %v2943_v29 = vpop.f32.mrb[57].mxu1 }
 0x4e8   : > { %v4033_v47 = vpop.f32.mrb[58].mxu1  ;;  %v6398_v49 = vadd.f32 %v6388_v34, %v2943_v29 }
 0x4e9   : > { %v6394_v0 = vadd.f32 %v4033_v47, %v6388_v34  ;;  %3076 = vadd.xlane.f32.xlu0 %v6391_v19  ;;  %v2946_v42 = vpop.f32.mrb[59].mxu1  ;;  %v3170_v60 = vmul.f32 %v6391_v19, %v6391_v19 }
 0x4ea   : > { %v6402_v23 = vadd.f32 %v6388_v34, %v2946_v42  ;;  %v3168_v56 = vmul.f32 %v6398_v49, %v6398_v49 }
 0x4eb   : > { %3078 = vadd.xlane.f32.xlu1 %v6394_v0  ;;  %v3171_v63 = vmul.f32 %v6394_v0, %v6394_v0 }
 0x4ec   : > { %v3169_v45 = vmul.f32 %v6402_v23, %v6402_v23 }
 0x4ed   : > { %3072 = vadd.xlane.f32.xlu0 %v6398_v49 }
 0x4ef   : > { %3074 = vadd.xlane.f32.xlu1 %v6402_v23 }
 0x4f1   : > { %3204 = vadd.xlane.f32.xlu0 %v3170_v60 }
 0x4f3   : > { %3206 = vadd.xlane.f32.xlu1 %v3171_v63 }
 0x4f5   : > { %3200 = vadd.xlane.f32.xlu0 %v3168_v56 }
 0x4f6   : > { %v4036_v48 = vpop.f32.mrb[60].mxu1 }
 0x4f7   : > { %v6415_v26 = vadd.f32 %v4036_v48, %v6388_v34  ;;  %3202 = vadd.xlane.f32.xlu1 %v3169_v45  ;;  %v2959_v21 = vpop.f32.mrb[61].mxu1 }
 0x4f8   : > { %v4037_v1 = vpop.f32.mrb[62].mxu1  ;;  %v6422_v28 = vadd.f32 %v6388_v34, %v2959_v21 }
 0x4f9   : > { %v6418_v22 = vadd.f32 %v4037_v1, %v6388_v34  ;;  %3084 = vadd.xlane.f32.xlu0 %v6415_v26  ;;  %v2962_v58 = vpop.f32.mrb[63].mxu1  ;;  %v3174_v32 = vmul.f32 %v6415_v26, %v6415_v26 }
 0x4fa   : > { %v6426_v54 = vadd.f32 %v6388_v34, %v2962_v58  ;;  %v3172_v39 = vmul.f32 %v6422_v28, %v6422_v28 }
 0x4fb   : > { %3086 = vadd.xlane.f32.xlu1 %v6418_v22  ;;  %v3175_v5 = vmul.f32 %v6418_v22, %v6418_v22 }
 0x4fc   : > { %v3173_v50 = vmul.f32 %v6426_v54, %v6426_v54 }
 0x4fd   : > { %3080 = vadd.xlane.f32.xlu0 %v6422_v28 }
 0x4ff   : > { %3082 = vadd.xlane.f32.xlu1 %v6426_v54 }
 0x501   : > { %3212 = vadd.xlane.f32.xlu0 %v3174_v32 }
 0x503   : > { %3214 = vadd.xlane.f32.xlu1 %v3175_v5 }
 0x505   : > { %3208 = vadd.xlane.f32.xlu0 %v3172_v39 }
 0x507   : > { %3210 = vadd.xlane.f32.xlu1 %v3173_v50 }
 0x508   : > { %v4040_v16 = vpop.f32.mrb[64].mxu1 }
 0x509   : > { %v6439_v14 = vadd.f32 %v4040_v16, %v6388_v34  ;;  %v2975_v44 = vpop.f32.mrb[65].mxu1 }
 0x50a   : > { %v4041_v8 = vpop.f32.mrb[66].mxu1  ;;  %v6446_v41 = vadd.f32 %v6388_v34, %v2975_v44 }
 0x50b   : > { %v6442_v53 = vadd.f32 %v4041_v8, %v6388_v34  ;;  %3092 = vadd.xlane.f32.xlu0 %v6439_v14  ;;  %v2978_v31 = vpop.f32.mrb[67].mxu1  ;;  %v3178_v2 = vmul.f32 %v6439_v14, %v6439_v14 }
 0x50c   : > { %v6450_v24 = vadd.f32 %v6388_v34, %v2978_v31  ;;  %v3176_v37 = vmul.f32 %v6446_v41, %v6446_v41 }
 0x50d   : > { %3094 = vadd.xlane.f32.xlu1 %v6442_v53  ;;  %v3179_v61 = vmul.f32 %v6442_v53, %v6442_v53 }
 0x50e   : > { %v3177_v33 = vmul.f32 %v6450_v24, %v6450_v24 }
 0x50f   : > { %3088 = vadd.xlane.f32.xlu0 %v6446_v41 }
 0x511   : > { %3090 = vadd.xlane.f32.xlu1 %v6450_v24 }
 0x513   : > { %3220 = vadd.xlane.f32.xlu0 %v3178_v2 }
 0x515   : > { %3222 = vadd.xlane.f32.xlu1 %v3179_v61 }
 0x517   : > { %3216 = vadd.xlane.f32.xlu0 %v3176_v37 }
 0x518   : > { %v4044_v12 = vpop.f32.mrb[68].mxu1 }
 0x519   : > { %v6463_v46 = vadd.f32 %v4044_v12, %v6388_v34  ;;  %3218 = vadd.xlane.f32.xlu1 %v3177_v33  ;;  %v2991_v15 = vpop.f32.mrb[69].mxu1 }
 0x51a   : > { %v4045_v9 = vpop.f32.mrb[70].mxu1  ;;  %v6470_v59 = vadd.f32 %v6388_v34, %v2991_v15 }
 0x51b   : > { %v6466_v27 = vadd.f32 %v4045_v9, %v6388_v34  ;;  %3100 = vadd.xlane.f32.xlu0 %v6463_v46  ;;  %v2994_v62 = vpop.f32.mrb[71].mxu1  ;;  %v3182_v51 = vmul.f32 %v6463_v46, %v6463_v46 }
 0x51c   : > { %v6474_v18 = vadd.f32 %v6388_v34, %v2994_v62  ;;  %v3180_v30 = vmul.f32 %v6470_v59, %v6470_v59 }
 0x51d   : > { %3102 = vadd.xlane.f32.xlu1 %v6466_v27  ;;  %v3183_v10 = vmul.f32 %v6466_v27, %v6466_v27 }
 0x51e   : > { %v3181_v43 = vmul.f32 %v6474_v18, %v6474_v18 }
 0x51f   : > { %3096 = vadd.xlane.f32.xlu0 %v6470_v59 }
 0x521   : > { %3098 = vadd.xlane.f32.xlu1 %v6474_v18 }
 0x523   : > { %3228 = vadd.xlane.f32.xlu0 %v3182_v51 }
 0x525   : > { %3230 = vadd.xlane.f32.xlu1 %v3183_v10 }
 0x527   : > { %3224 = vadd.xlane.f32.xlu0 %v3180_v30 }
 0x529   : > { %3226 = vadd.xlane.f32.xlu1 %v3181_v43 }
 0x52b   : > { %v4048_v17 = vpop.f32.mrb[72].mxu1 }
 0x52c   : > { %v6487_v36 = vadd.f32 %v4048_v17, %v6388_v34  ;;  %v3007_v35 = vpop.f32.mrb[73].mxu1 }
 0x52d   : > { %v4049_v13 = vpop.f32.mrb[74].mxu1  ;;  %v6494_v40 = vadd.f32 %v6388_v34, %v3007_v35 }
 0x52e   : > { %v6490_v6 = vadd.f32 %v4049_v13, %v6388_v34  ;;  %3108 = vadd.xlane.f32.xlu0 %v6487_v36  ;;  %v3010_v7 = vpop.f32.mrb[75].mxu1  ;;  %v3186_v38 = vmul.f32 %v6487_v36, %v6487_v36 }
 0x52f   : > { %v6498_v52 = vadd.f32 %v6388_v34, %v3010_v7  ;;  %v3184_v20 = vmul.f32 %v6494_v40, %v6494_v40 }
 0x530   : > { %3110 = vadd.xlane.f32.xlu1 %v6490_v6  ;;  %v3187_v55 = vmul.f32 %v6490_v6, %v6490_v6 }
 0x531   : > { %v3185_v4 = vmul.f32 %v6498_v52, %v6498_v52 }
 0x532   : > { %3104 = vadd.xlane.f32.xlu0 %v6494_v40 }
 0x534   : > { %3106 = vadd.xlane.f32.xlu1 %v6498_v52 }
 0x536   : > { %3236 = vadd.xlane.f32.xlu0 %v3186_v38 }
 0x538   : > { %3238 = vadd.xlane.f32.xlu1 %v3187_v55 }
 0x53a   : > { %3232 = vadd.xlane.f32.xlu0 %v3184_v20 }
 0x53c   : > { %3234 = vadd.xlane.f32.xlu1 %v3185_v4 }
 0x53d   : > { %v4052_v57 = vpop.f32.mrb[76].mxu1 }
 0x53e   : > { %v6511_v11 = vadd.f32 %v4052_v57, %v6388_v34  ;;  %v3023_v3 = vpop.f32.mrb[77].mxu1 }
 0x53f   : > { %v4053_v25 = vpop.f32.mrb[78].mxu1  ;;  %v6518_v42 = vadd.f32 %v6388_v34, %v3023_v3 }
 0x540   : > { %v6514_v29 = vadd.f32 %v4053_v25, %v6388_v34  ;;  %3116 = vadd.xlane.f32.xlu0 %v6511_v11  ;;  %v3026_v47 = vpop.f32.mrb[79].mxu1  ;;  %v3190_v63 = vmul.f32 %v6511_v11, %v6511_v11 }
 0x541   : > { %v6522_v60 = vadd.f32 %v6388_v34, %v3026_v47  ;;  %v3188_v45 = vmul.f32 %v6518_v42, %v6518_v42 }
 0x542   : > { %3118 = vadd.xlane.f32.xlu1 %v6514_v29  ;;  %v3191_v56 = vmul.f32 %v6514_v29, %v6514_v29 }
 0x543   : > { %v3189_v48 = vmul.f32 %v6522_v60, %v6522_v60 }
 0x544   : > { %3112 = vadd.xlane.f32.xlu0 %v6518_v42 }
 0x546   : > { %3114 = vadd.xlane.f32.xlu1 %v6522_v60 }
 0x548   : > { %3244 = vadd.xlane.f32.xlu0 %v3190_v63 }
 0x54a   : > { %3246 = vadd.xlane.f32.xlu1 %v3191_v56 }
 0x54c   : > { %3240 = vadd.xlane.f32.xlu0 %v3188_v45 }
 0x54d   : > { %v4056_v21 = vpop.f32.mrb[80].mxu1 }
 0x54e   : > { %v6535_v1 = vadd.f32 %v4056_v21, %v6388_v34  ;;  %3242 = vadd.xlane.f32.xlu1 %v3189_v48  ;;  %v3039_v58 = vpop.f32.mrb[81].mxu1 }
 0x54f   : > { %v4057_v32 = vpop.f32.mrb[82].mxu1  ;;  %v6542_v50 = vadd.f32 %v6388_v34, %v3039_v58 }
 0x550   : > { %v6538_v5 = vadd.f32 %v4057_v32, %v6388_v34  ;;  %3124 = vadd.xlane.f32.xlu0 %v6535_v1  ;;  %v3042_v39 = vpop.f32.mrb[83].mxu1  ;;  %v3194_v44 = vmul.f32 %v6535_v1, %v6535_v1 }
 0x551   : > { %v6546_v16 = vadd.f32 %v6388_v34, %v3042_v39  ;;  %v3192_v31 = vmul.f32 %v6542_v50, %v6542_v50 }
 0x552   : > { %3126 = vadd.xlane.f32.xlu1 %v6538_v5  ;;  %v3195_v8 = vmul.f32 %v6538_v5, %v6538_v5 }
 0x553   : > { %v3193_v2 = vmul.f32 %v6546_v16, %v6546_v16 }
 0x554   : > { %3120 = vadd.xlane.f32.xlu0 %v6542_v50 }
 0x556   : > { %3122 = vadd.xlane.f32.xlu1 %v6546_v16 }
 0x558   : > { %3252 = vadd.xlane.f32.xlu0 %v3194_v44 }
 0x55a   : > { %3254 = vadd.xlane.f32.xlu1 %v3195_v8 }
 0x55c   : > { %3248 = vadd.xlane.f32.xlu0 %v3192_v31 }
 0x55d   : > { %v4060_v61 = vpop.f32.mrb[84].mxu1 }
 0x55e   : > { %v6559_v37 = vadd.f32 %v4060_v61, %v6388_v34  ;;  %3250 = vadd.xlane.f32.xlu1 %v3193_v2  ;;  %v3055_v33 = vpop.f32.mrb[85].mxu1 }
 0x55f   : > { %v4061_v12 = vpop.f32.mrb[86].mxu1  ;;  %v6566_v62 = vadd.f32 %v6388_v34, %v3055_v33 }
 0x560   : > { %v6562_v15 = vadd.f32 %v4061_v12, %v6388_v34  ;;  %3132 = vadd.xlane.f32.xlu0 %v6559_v37  ;;  %v3058_v9 = vpop.f32.mrb[87].mxu1  ;;  %v3198_v43 = vmul.f32 %v6559_v37, %v6559_v37 }
 0x561   : > { %v6570_v51 = vadd.f32 %v6388_v34, %v3058_v9  ;;  %v3196_v10 = vmul.f32 %v6566_v62, %v6566_v62 }
 0x562   : > { %3134 = vadd.xlane.f32.xlu1 %v6562_v15  ;;  %v3199_v34 = vmul.f32 %v6562_v15, %v6562_v15 }
 0x563   : > { %v3197_v30 = vmul.f32 %v6570_v51, %v6570_v51 }
 0x564   : > { %3128 = vadd.xlane.f32.xlu0 %v6566_v62 }
 0x566   : > { %3130 = vadd.xlane.f32.xlu1 %v6570_v51 }
 0x568   : > { %3256 = vadd.xlane.f32.xlu0 %v3196_v10 }
 0x56a   : > { %3258 = vadd.xlane.f32.xlu1 %v3197_v30 }
 0x56c   : > { %3260 = vadd.xlane.f32.xlu0 %v3198_v43 }
 0x56e   : > { %3262 = vadd.xlane.f32.xlu1 %v3199_v34 }
 0x576   : > { %v3077_v17 = vpop.xlane.xlu0 %3076 }
 0x577   : > { %v3138_v7 = vmul.f32 0.0078125, %v3077_v17 }
 0x578   : > { %v3079_v35 = vpop.xlane.xlu1 %3078 }
 0x579   : > { %v3139_v55 = vmul.f32 0.0078125, %v3079_v35  ;;  %v3298_v4 = vmul.f32 %v3138_v7, %v3138_v7 }
 0x57a   : > { %v3073_v13 = vpop.xlane.xlu0 %3072 }
 0x57b   : > { %v6582_v57 = vmul.f32 0.0078125, %v3073_v13  ;;  %v3299_v63 = vmul.f32 %v3139_v55, %v3139_v55 }
 0x57c   : > { %v3075_v38 = vpop.xlane.xlu1 %3074 }
 0x57d   : > { %v6584_v25 = vmul.f32 0.0078125, %v3075_v38  ;;  %v3296_v21 = vmul.f32 %v6582_v57, %v6582_v57 }
 0x57e   : > { %v3205_v20 = vpop.xlane.xlu0 %3204 }
 0x57f   : > { %v3266_v3 = vmul.f32 0.0078125, %v3205_v20  ;;  %v3297_v44 = vmul.f32 %v6584_v25, %v6584_v25 }
 0x580   : > { %v3207_v47 = vpop.xlane.xlu1 %3206 }
 0x581   : > { %v3330_v56 = vsub.f32 %v3266_v3, %v3298_v4  ;;  %v3267_v45 = vmul.f32 0.0078125, %v3207_v47 }
 0x582   : > { %v3201_v48 = vpop.xlane.xlu0 %3200 }
 0x583   : > { %v3362_v58 = vmax.f32 %v3330_v56, 0.0  ;;  %v3331_v32 = vsub.f32 %v3267_v45, %v3299_v63  ;;  %v3264_v39 = vmul.f32 0.0078125, %v3201_v48  ;;  %v3394_v45 = vsub.f32 %v6391_v19, %v3138_v7  ;;  %v6612_v19 = vld [vmem:[%s7120_s15] ss:$0 sm:$0xff] }
 0x584   : > { %v3203_v8 = vpop.xlane.xlu1 %3202 }
 0x585   : > { %v3426_v31 = vadd.f32 1e-05, %v3362_v58  ;;  %v3363_v2 = vmax.f32 %v3331_v32, 0.0  ;;  %v3328_v61 = vsub.f32 %v3264_v39, %v3296_v21  ;;  %v3265_v33 = vmul.f32 0.0078125, %v3203_v8  ;;  %v6604_v32 = vld [vmem:[%s7119_s22] ss:$0 sm:$0xff] }
 0x586   : > { %v3085_v12 = vpop.xlane.xlu0 %3084 }
 0x587   : > { %4404 = vrsqrt.f32 %v3426_v31  ;;  %v3427_v9 = vadd.f32 1e-05, %v3363_v2  ;;  %v3360_v10 = vmax.f32 %v3328_v61, 0.0  ;;  %v3329_v30 = vsub.f32 %v3265_v33, %v3297_v44 }
 0x588   : > { %v3087_v43 = vpop.xlane.xlu1 %3086  ;;  %v6590_v38 = vmul.f32 0.0078125, %v3085_v12  ;;  %v3395_v31 = vsub.f32 %v6394_v0, %v3139_v55 }
 0x589   : > { %4406 = vrsqrt.f32 %v3427_v9  ;;  %v3424_v34 = vadd.f32 1e-05, %v3360_v10  ;;  %v3361_v17 = vmax.f32 %v3329_v30, 0.0  ;;  %v6592_v4 = vmul.f32 0.0078125, %v3087_v43 }
 0x58a   : > { %v3081_v35 = vpop.xlane.xlu0 %3080  ;;  %v3302_v47 = vmul.f32 %v6590_v38, %v6590_v38  ;;  %v3392_v30 = vsub.f32 %v6398_v49, %v6582_v57 }
 0x58b   : > { %4408 = vrsqrt.f32 %v3424_v34  ;;  %v3425_v13 = vadd.f32 1e-05, %v3361_v17  ;;  %v6596_v63 = vmul.f32 0.0078125, %v3081_v35  ;;  %v3303_v39 = vmul.f32 %v6592_v4, %v6592_v4 }
 0x58c   : > { %v3083_v20 = vpop.xlane.xlu1 %3082 }
 0x58d   : > { %4410 = vrsqrt.f32 %v3425_v13  ;;  %v6599_v48 = vmul.f32 0.0078125, %v3083_v20  ;;  %v3300_v7 = vmul.f32 %v6596_v63, %v6596_v63 }
 0x58e   : > { %v3213_v3 = vpop.xlane.xlu0 %3212 }
 0x58f   : > { %v3270_v56 = vmul.f32 0.0078125, %v3213_v3  ;;  %v3301_v55 = vmul.f32 %v6599_v48, %v6599_v48 }
 0x590   : > { %v3215_v21 = vpop.xlane.xlu1 %3214 }
 0x591   : > { %v4405_v58 = vpop.eup %4404  ;;  %v3334_v44 = vsub.f32 %v3270_v56, %v3302_v47  ;;  %v3271_v8 = vmul.f32 0.0078125, %v3215_v21  ;;  %v3393_v47 = vsub.f32 %v6402_v23, %v6584_v25 }
 0x592   : > { %v3490_v2 = vmul.f32 %v4405_v58, %v3394_v45  ;;  %v3209_v61 = vpop.xlane.xlu0 %3208 }
 0x593   : > { %v4407_v33 = vpop.eup %4406  ;;  %v3366_v12 = vmax.f32 %v3334_v44, 0.0  ;;  %v3335_v9 = vsub.f32 %v3271_v8, %v3303_v39  ;;  %v3268_v10 = vmul.f32 0.0078125, %v3209_v61 }
 0x594   : > { %v3528_v43 = vmul.f32 %v6604_v32, %v3490_v2  ;;  %v3491_v0 = vmul.f32 %v4407_v33, %v3395_v31  ;;  %v3211_v34 = vpop.xlane.xlu1 %3210 }
 0x595   : > { %v4409_v17 = vpop.eup %4408  ;;  %v3430_v35 = vadd.f32 1e-05, %v3366_v12  ;;  %v3367_v13 = vmax.f32 %v3335_v9, 0.0  ;;  %v3332_v20 = vsub.f32 %v3268_v10, %v3300_v7  ;;  %v3269_v3 = vmul.f32 0.0078125, %v3211_v34 }
 0x596   : > { %v3566_v56 = vadd.f32 %v6612_v19, %v3528_v43  ;;  %v3529_v49 = vmul.f32 %v6604_v32, %v3491_v0  ;;  %v3488_v57 = vmul.f32 %v4409_v17, %v3392_v30 }
 0x597   : > { %v4411_v21 = vpop.eup %4410  ;;  %4412 = vrsqrt.f32 %v3430_v35  ;;  %v3431_v58 = vadd.f32 1e-05, %v3367_v13  ;;  %v3364_v39 = vmax.f32 %v3332_v20, 0.0  ;;  %v3333_v44 = vsub.f32 %v3269_v3, %v3301_v55 }
 0x598   : > { %v3093_v45 = vpop.xlane.xlu0 %3092  ;;  %3598 = vst [vmem:[%s6627_s14 + $0x10] sm:$0xff] %v3566_v56  ;;  %v3567_v23 = vadd.f32 %v6612_v19, %v3529_v49  ;;  %v3526_v25 = vmul.f32 %v6604_v32, %v3488_v57  ;;  %v3489_v8 = vmul.f32 %v4411_v21, %v3393_v47  ;;  %v3398_v13 = vsub.f32 %v6415_v26, %v6590_v38 }
 0x599   : > { %4414 = vrsqrt.f32 %v3431_v58  ;;  %v3428_v2 = vadd.f32 1e-05, %v3364_v39  ;;  %v3365_v61 = vmax.f32 %v3333_v44, 0.0  ;;  %v6635_v10 = vmul.f32 0.0078125, %v3093_v45 }
 0x59a   : > { %v3095_v31 = vpop.xlane.xlu1 %3094  ;;  %3599 = vst [vmem:[%s6627_s14 + $0x18] sm:$0xff] %v3567_v23  ;;  %v3564_v33 = vadd.f32 %v6612_v19, %v3526_v25  ;;  %v3527_v7 = vmul.f32 %v6604_v32, %v3489_v8  ;;  %v3399_v45 = vsub.f32 %v6418_v22, %v6592_v4  ;;  %v3396_v25 = vsub.f32 %v6422_v28, %v6596_v63 }
 0x59b   : > { %4416 = vrsqrt.f32 %v3428_v2  ;;  %v3429_v9 = vadd.f32 1e-05, %v3365_v61  ;;  %v6639_v0 = vmul.f32 0.0078125, %v3095_v31  ;;  %v3306_v34 = vmul.f32 %v6635_v10, %v6635_v10 }
 0x59c   : > { %v3089_v12 = vpop.xlane.xlu0 %3088  ;;  %3596 = vst [vmem:[%s6627_s14] sm:$0xff] %v3564_v33  ;;  %v3565_v30 = vadd.f32 %v6612_v19, %v3527_v7 }
 0x59d   : > { %4418 = vrsqrt.f32 %v3429_v9  ;;  %v6644_v17 = vmul.f32 0.0078125, %v3089_v12  ;;  %v3307_v56 = vmul.f32 %v6639_v0, %v6639_v0  ;;  %v3397_v9 = vsub.f32 %v6426_v54, %v6599_v48 }
 0x59e   : > { %v3091_v43 = vpop.xlane.xlu1 %3090  ;;  %3597 = vst [vmem:[%s6627_s14 + $0x8] sm:$0xff] %v3565_v30 }
 0x59f   : > { %v6648_v20 = vmul.f32 0.0078125, %v3091_v43  ;;  %v3304_v44 = vmul.f32 %v6644_v17, %v6644_v17 }
 0x5a0   : > { %v3221_v55 = vpop.xlane.xlu0 %3220 }
 0x5a1   : > { %v3274_v35 = vmul.f32 0.0078125, %v3221_v55  ;;  %v4413_v47 = vpop.eup %4412  ;;  %v3305_v2 = vmul.f32 %v6648_v20, %v6648_v20 }
 0x5a2   : > { %v3223_v3 = vpop.xlane.xlu1 %3222  ;;  %v3494_v21 = vmul.f32 %v4413_v47, %v3398_v13 }
 0x5a3   : > { %v3338_v49 = vsub.f32 %v3274_v35, %v3306_v34  ;;  %v3275_v57 = vmul.f32 0.0078125, %v3223_v3  ;;  %v4415_v39 = vpop.eup %4414 }
 0x5a4   : > { %v3217_v58 = vpop.xlane.xlu0 %3216  ;;  %v3532_v8 = vmul.f32 %v6604_v32, %v3494_v21  ;;  %v3495_v31 = vmul.f32 %v4415_v39, %v3399_v45 }
 0x5a5   : > { %v3370_v23 = vmax.f32 %v3338_v49, 0.0  ;;  %v3339_v26 = vsub.f32 %v3275_v57, %v3307_v56  ;;  %v3272_v38 = vmul.f32 0.0078125, %v3217_v58  ;;  %v4417_v22 = vpop.eup %4416 }
 0x5a6   : > { %v3219_v61 = vpop.xlane.xlu1 %3218  ;;  %v3570_v30 = vadd.f32 %v6612_v19, %v3532_v8  ;;  %v3533_v28 = vmul.f32 %v6604_v32, %v3495_v31  ;;  %v3492_v63 = vmul.f32 %v4417_v22, %v3396_v25 }
 0x5a7   : > { %v3434_v4 = vadd.f32 1e-05, %v3370_v23  ;;  %v3371_v33 = vmax.f32 %v3339_v26, 0.0  ;;  %v3336_v7 = vsub.f32 %v3272_v38, %v3304_v44  ;;  %v3273_v12 = vmul.f32 0.0078125, %v3219_v61  ;;  %v4419_v55 = vpop.eup %4418 }
 0x5a8   : > { %v3101_v43 = vpop.xlane.xlu0 %3100  ;;  %3602 = vst [vmem:[%s6627_s14 + $0x30] sm:$0xff] %v3570_v30  ;;  %v3571_v3 = vadd.f32 %v6612_v19, %v3533_v28  ;;  %v3530_v47 = vmul.f32 %v6604_v32, %v3492_v63  ;;  %v3493_v56 = vmul.f32 %v4419_v55, %v3397_v9  ;;  %v3403_v9 = vsub.f32 %v6442_v53, %v6639_v0 }
 0x5a9   : > { %4420 = vrsqrt.f32 %v3434_v4  ;;  %v3435_v34 = vadd.f32 1e-05, %v3371_v33  ;;  %v3368_v35 = vmax.f32 %v3336_v7, 0.0  ;;  %v3337_v13 = vsub.f32 %v3273_v12, %v3305_v2 }
 0x5aa   : > { %v3103_v54 = vpop.xlane.xlu1 %3102  ;;  %3603 = vst [vmem:[%s6627_s14 + $0x38] sm:$0xff] %v3571_v3  ;;  %v3568_v57 = vadd.f32 %v6612_v19, %v3530_v47  ;;  %v3531_v45 = vmul.f32 %v6604_v32, %v3493_v56  ;;  %v6671_v39 = vmul.f32 0.0078125, %v3101_v43  ;;  %v3402_v2 = vsub.f32 %v6439_v14, %v6635_v10 }
 0x5ab   : > { %4422 = vrsqrt.f32 %v3435_v34  ;;  %v3432_v48 = vadd.f32 1e-05, %v3368_v35  ;;  %v3369_v49 = vmax.f32 %v3337_v13, 0.0  ;;  %v6675_v26 = vmul.f32 0.0078125, %v3103_v54 }
 0x5ac   : > { %v3097_v21 = vpop.xlane.xlu0 %3096  ;;  %3600 = vst [vmem:[%s6627_s14 + $0x20] sm:$0xff] %v3568_v57  ;;  %v3569_v44 = vadd.f32 %v6612_v19, %v3531_v45  ;;  %v3310_v25 = vmul.f32 %v6671_v39, %v6671_v39  ;;  %v3400_v34 = vsub.f32 %v6446_v41, %v6644_v17 }
 0x5ad   : > { %4424 = vrsqrt.f32 %v3432_v48  ;;  %v3433_v58 = vadd.f32 1e-05, %v3369_v49  ;;  %v6680_v8 = vmul.f32 0.0078125, %v3097_v21  ;;  %v3311_v33 = vmul.f32 %v6675_v26, %v6675_v26 }
 0x5ae   : > { %v3099_v23 = vpop.xlane.xlu1 %3098  ;;  %3601 = vst [vmem:[%s6627_s14 + $0x28] sm:$0xff] %v3569_v44  ;;  %v3401_v49 = vsub.f32 %v6450_v24, %v6648_v20 }
 0x5af   : > { %4426 = vrsqrt.f32 %v3433_v58  ;;  %v6684_v61 = vmul.f32 0.0078125, %v3099_v23  ;;  %v3308_v43 = vmul.f32 %v6680_v8, %v6680_v8 }
 0x5b0   : > { %v3229_v38 = vpop.xlane.xlu0 %3228 }
 0x5b1   : > { %v3278_v31 = vmul.f32 0.0078125, %v3229_v38  ;;  %v3309_v3 = vmul.f32 %v6684_v61, %v6684_v61 }
 0x5b2   : > { %v3231_v22 = vpop.xlane.xlu1 %3230 }
 0x5b3   : > { %v4421_v4 = vpop.eup %4420  ;;  %v3342_v7 = vsub.f32 %v3278_v31, %v3310_v25  ;;  %v3279_v12 = vmul.f32 0.0078125, %v3231_v22 }
 0x5b4   : > { %v3498_v30 = vmul.f32 %v4421_v4, %v3402_v2  ;;  %v3225_v28 = vpop.xlane.xlu0 %3224 }
 0x5b5   : > { %v4423_v63 = vpop.eup %4422  ;;  %v3374_v55 = vmax.f32 %v3342_v7, 0.0  ;;  %v3343_v14 = vsub.f32 %v3279_v12, %v3311_v33  ;;  %v3276_v10 = vmul.f32 0.0078125, %v3225_v28 }
 0x5b6   : > { %v3536_v35 = vmul.f32 %v6604_v32, %v3498_v30  ;;  %v3499_v13 = vmul.f32 %v4423_v63, %v3403_v9  ;;  %v3227_v53 = vpop.xlane.xlu1 %3226  ;;  %v3406_v63 = vsub.f32 %v6463_v46, %v6671_v39 }
 0x5b7   : > { %v4425_v0 = vpop.eup %4424  ;;  %v3438_v47 = vadd.f32 1e-05, %v3374_v55  ;;  %v3375_v56 = vmax.f32 %v3343_v14, 0.0  ;;  %v3340_v54 = vsub.f32 %v3276_v10, %v3308_v43  ;;  %v3277_v48 = vmul.f32 0.0078125, %v3227_v53 }
 0x5b8   : > { %v3574_v57 = vadd.f32 %v6612_v19, %v3536_v35  ;;  %v3537_v41 = vmul.f32 %v6604_v32, %v3499_v13  ;;  %v3496_v17 = vmul.f32 %v4425_v0, %v3400_v34  ;;  %v3407_v35 = vsub.f32 %v6466_v27, %v6675_v26 }
 0x5b9   : > { %v4427_v45 = vpop.eup %4426  ;;  %4428 = vrsqrt.f32 %v3438_v47  ;;  %v3439_v21 = vadd.f32 1e-05, %v3375_v56  ;;  %v3372_v58 = vmax.f32 %v3340_v54, 0.0  ;;  %v3341_v44 = vsub.f32 %v3277_v48, %v3309_v3 }
 0x5ba   : > { %3606 = vst [vmem:[%s6627_s14 + $0x50] sm:$0xff] %v3574_v57  ;;  %v3575_v23 = vadd.f32 %v6612_v19, %v3537_v41  ;;  %v3534_v38 = vmul.f32 %v6604_v32, %v3496_v17  ;;  %v3497_v25 = vmul.f32 %v4427_v45, %v3401_v49  ;;  %v3404_v56 = vsub.f32 %v6470_v59, %v6680_v8 }
 0x5bb   : > { %v3109_v24 = vpop.xlane.xlu0 %3108  ;;  %4430 = vrsqrt.f32 %v3439_v21  ;;  %v3436_v20 = vadd.f32 1e-05, %v3372_v58  ;;  %v3373_v31 = vmax.f32 %v3341_v44, 0.0  ;;  %v3405_v54 = vsub.f32 %v6474_v18, %v6684_v61 }
 0x5bc   : > { %3607 = vst [vmem:[%s6627_s14 + $0x58] sm:$0xff] %v3575_v23  ;;  %v3572_v2 = vadd.f32 %v6612_v19, %v3534_v38  ;;  %v3535_v22 = vmul.f32 %v6604_v32, %v3497_v25  ;;  %v6709_v9 = vmul.f32 0.0078125, %v3109_v24 }
 0x5bd   : > { %v3111_v4 = vpop.xlane.xlu1 %3110  ;;  %4432 = vrsqrt.f32 %v3436_v20  ;;  %v3437_v33 = vadd.f32 1e-05, %v3373_v31 }
 0x5be   : > { %3604 = vst [vmem:[%s6627_s14 + $0x40] sm:$0xff] %v3572_v2  ;;  %v3573_v7 = vadd.f32 %v6612_v19, %v3535_v22  ;;  %v6712_v28 = vmul.f32 0.0078125, %v3111_v4  ;;  %v3314_v14 = vmul.f32 %v6709_v9, %v6709_v9 }
 0x5bf   : > { %v3105_v12 = vpop.xlane.xlu0 %3104  ;;  %4434 = vrsqrt.f32 %v3437_v33 }
 0x5c0   : > { %3605 = vst [vmem:[%s6627_s14 + $0x48] sm:$0xff] %v3573_v7  ;;  %v6718_v10 = vmul.f32 0.0078125, %v3105_v12  ;;  %v3315_v47 = vmul.f32 %v6712_v28, %v6712_v28 }
 0x5c1   : > { %v3107_v30 = vpop.xlane.xlu1 %3106 }
 0x5c2   : > { %v6722_v3 = vmul.f32 0.0078125, %v3107_v30  ;;  %v3312_v57 = vmul.f32 %v6718_v10, %v6718_v10 }
 0x5c3   : > { %v3237_v43 = vpop.xlane.xlu0 %3236  ;;  %v4429_v55 = vpop.eup %4428 }
 0x5c4   : > { %v3282_v34 = vmul.f32 0.0078125, %v3237_v43  ;;  %v3502_v13 = vmul.f32 %v4429_v55, %v3406_v63  ;;  %v3313_v18 = vmul.f32 %v6722_v3, %v6722_v3 }
 0x5c5   : > { %v3239_v53 = vpop.xlane.xlu1 %3238  ;;  %v4431_v0 = vpop.eup %4430 }
 0x5c6   : > { %v3346_v46 = vsub.f32 %v3282_v34, %v3314_v14  ;;  %v3283_v39 = vmul.f32 0.0078125, %v3239_v53  ;;  %v3540_v48 = vmul.f32 %v6604_v32, %v3502_v13  ;;  %v3503_v49 = vmul.f32 %v4431_v0, %v3407_v35 }
 0x5c7   : > { %v3233_v27 = vpop.xlane.xlu0 %3232  ;;  %v4433_v26 = vpop.eup %4432  ;;  %v3410_v0 = vsub.f32 %v6487_v36, %v6709_v9 }
 0x5c8   : > { %v3378_v41 = vmax.f32 %v3346_v46, 0.0  ;;  %v3347_v17 = vsub.f32 %v3283_v39, %v3315_v47  ;;  %v3280_v45 = vmul.f32 0.0078125, %v3233_v27  ;;  %v3578_v21 = vadd.f32 %v6612_v19, %v3540_v48 }
 0x5c9   : > { %v3541_v58 = vmul.f32 %v6604_v32, %v3503_v49  ;;  %v3500_v59 = vmul.f32 %v4433_v26, %v3404_v56  ;;  %v3235_v8 = vpop.xlane.xlu1 %3234  ;;  %v4435_v61 = vpop.eup %4434  ;;  %v3411_v48 = vsub.f32 %v6490_v6, %v6712_v28 }
 0x5ca   : > { %v3442_v44 = vadd.f32 1e-05, %v3378_v41  ;;  %v3379_v23 = vmax.f32 %v3347_v17, 0.0  ;;  %v3344_v38 = vsub.f32 %v3280_v45, %v3312_v57  ;;  %v3281_v25 = vmul.f32 0.0078125, %v3235_v8  ;;  %3610 = vst [vmem:[%s6627_s14 + $0x70] sm:$0xff] %v3578_v21 }
 0x5cb   : > { %v3579_v24 = vadd.f32 %v6612_v19, %v3541_v58  ;;  %v3538_v20 = vmul.f32 %v6604_v32, %v3500_v59  ;;  %v3501_v31 = vmul.f32 %v4435_v61, %v3405_v54  ;;  %v3408_v17 = vsub.f32 %v6494_v40, %v6718_v10 }
 0x5cc   : > { %4436 = vrsqrt.f32 %v3442_v44  ;;  %v3443_v2 = vadd.f32 1e-05, %v3379_v23  ;;  %v3376_v22 = vmax.f32 %v3344_v38, 0.0  ;;  %v3345_v4 = vsub.f32 %v3281_v25, %v3313_v18 }
 0x5cd   : > { %3611 = vst [vmem:[%s6627_s14 + $0x78] sm:$0xff] %v3579_v24  ;;  %v3576_v33 = vadd.f32 %v6612_v19, %v3538_v20  ;;  %v3539_v7 = vmul.f32 %v6604_v32, %v3501_v31  ;;  %v3117_v12 = vpop.xlane.xlu0 %3116  ;;  %v3409_v45 = vsub.f32 %v6498_v52, %v6722_v3 }
 0x5ce   : > { %4438 = vrsqrt.f32 %v3443_v2  ;;  %v3440_v30 = vadd.f32 1e-05, %v3376_v22  ;;  %v3377_v63 = vmax.f32 %v3345_v4, 0.0  ;;  %v6746_v35 = vmul.f32 0.0078125, %v3117_v12 }
 0x5cf   : > { %3608 = vst [vmem:[%s6627_s14 + $0x60] sm:$0xff] %v3576_v33  ;;  %v3577_v43 = vadd.f32 %v6612_v19, %v3539_v7  ;;  %v3119_v55 = vpop.xlane.xlu1 %3118 }
 0x5d0   : > { %4440 = vrsqrt.f32 %v3440_v30  ;;  %v3441_v14 = vadd.f32 1e-05, %v3377_v63  ;;  %v6748_v53 = vmul.f32 0.0078125, %v3119_v55  ;;  %v3318_v39 = vmul.f32 %v6746_v35, %v6746_v35 }
 0x5d1   : > { %3609 = vst [vmem:[%s6627_s14 + $0x68] sm:$0xff] %v3577_v43  ;;  %v3113_v34 = vpop.xlane.xlu0 %3112 }
 0x5d2   : > { %4442 = vrsqrt.f32 %v3441_v14  ;;  %v6754_v56 = vmul.f32 0.0078125, %v3113_v34  ;;  %v3319_v41 = vmul.f32 %v6748_v53, %v6748_v53 }
 0x5d3   : > { %v3115_v13 = vpop.xlane.xlu1 %3114 }
 0x5d4   : > { %v6758_v27 = vmul.f32 0.0078125, %v3115_v13  ;;  %v3316_v59 = vmul.f32 %v6754_v56, %v6754_v56 }
 0x5d5   : > { %v3245_v47 = vpop.xlane.xlu0 %3244 }
 0x5d6   : > { %v4437_v46 = vpop.eup %4436  ;;  %v3286_v54 = vmul.f32 0.0078125, %v3245_v47  ;;  %v3317_v52 = vmul.f32 %v6758_v27, %v6758_v27 }
 0x5d7   : > { %v3506_v49 = vmul.f32 %v4437_v46, %v3410_v0  ;;  %v3247_v26 = vpop.xlane.xlu1 %3246 }
 0x5d8   : > { %v4439_v57 = vpop.eup %4438  ;;  %v3350_v36 = vsub.f32 %v3286_v54, %v3318_v39  ;;  %v3287_v9 = vmul.f32 0.0078125, %v3247_v26 }
 0x5d9   : > { %v3544_v21 = vmul.f32 %v6604_v32, %v3506_v49  ;;  %v3507_v58 = vmul.f32 %v4439_v57, %v3411_v48  ;;  %v3241_v6 = vpop.xlane.xlu0 %3240  ;;  %v3414_v57 = vsub.f32 %v6511_v11, %v6746_v35 }
 0x5da   : > { %v4441_v28 = vpop.eup %4440  ;;  %v3382_v18 = vmax.f32 %v3350_v36, 0.0  ;;  %v3351_v8 = vsub.f32 %v3287_v9, %v3319_v41  ;;  %v3284_v61 = vmul.f32 0.0078125, %v3241_v6 }
 0x5db   : > { %v3582_v44 = vadd.f32 %v6612_v19, %v3544_v21  ;;  %v3545_v23 = vmul.f32 %v6604_v32, %v3507_v58  ;;  %v3504_v40 = vmul.f32 %v4441_v28, %v3408_v17  ;;  %v3243_v10 = vpop.xlane.xlu1 %3242  ;;  %v3415_v58 = vsub.f32 %v6514_v29, %v6748_v53 }
 0x5dc   : > { %v4443_v3 = vpop.eup %4442  ;;  %v3446_v38 = vadd.f32 1e-05, %v3382_v18  ;;  %v3383_v25 = vmax.f32 %v3351_v8, 0.0  ;;  %v3348_v24 = vsub.f32 %v3284_v61, %v3316_v59  ;;  %v3285_v20 = vmul.f32 0.0078125, %v3243_v10 }
 0x5dd   : > { %3614 = vst [vmem:[%s6627_s14 + $0x90] sm:$0xff] %v3582_v44  ;;  %v3583_v31 = vadd.f32 %v6612_v19, %v3545_v23  ;;  %v3542_v2 = vmul.f32 %v6604_v32, %v3504_v40  ;;  %v3505_v22 = vmul.f32 %v4443_v3, %v3409_v45  ;;  %v3125_v4 = vpop.xlane.xlu0 %3124  ;;  %v3412_v61 = vsub.f32 %v6518_v42, %v6754_v56 }
 0x5de   : > { %4444 = vrsqrt.f32 %v3446_v38  ;;  %v3447_v33 = vadd.f32 1e-05, %v3383_v25  ;;  %v3380_v7 = vmax.f32 %v3348_v24, 0.0  ;;  %v3349_v12 = vsub.f32 %v3285_v20, %v3317_v52 }
 0x5df   : > { %3615 = vst [vmem:[%s6627_s14 + $0x98] sm:$0xff] %v3583_v31  ;;  %v3580_v30 = vadd.f32 %v6612_v19, %v3542_v2  ;;  %v3543_v63 = vmul.f32 %v6604_v32, %v3505_v22  ;;  %v3127_v43 = vpop.xlane.xlu1 %3126  ;;  %v6781_v47 = vmul.f32 0.0078125, %v3125_v4  ;;  %v3413_v25 = vsub.f32 %v6522_v60, %v6758_v27 }
 0x5e0   : > { %4446 = vrsqrt.f32 %v3447_v33  ;;  %v3444_v55 = vadd.f32 1e-05, %v3380_v7  ;;  %v3381_v14 = vmax.f32 %v3349_v12, 0.0  ;;  %v6784_v39 = vmul.f32 0.0078125, %v3127_v43 }
 0x5e1   : > { %3612 = vst [vmem:[%s6627_s14 + $0x80] sm:$0xff] %v3580_v30  ;;  %v3581_v34 = vadd.f32 %v6612_v19, %v3543_v63  ;;  %v3121_v13 = vpop.xlane.xlu0 %3120  ;;  %v3322_v48 = vmul.f32 %v6781_v47, %v6781_v47 }
 0x5e2   : > { %4448 = vrsqrt.f32 %v3444_v55  ;;  %v3445_v0 = vadd.f32 1e-05, %v3381_v14  ;;  %v6788_v49 = vmul.f32 0.0078125, %v3121_v13  ;;  %v3323_v17 = vmul.f32 %v6784_v39, %v6784_v39 }
 0x5e3   : > { %3613 = vst [vmem:[%s6627_s14 + $0x88] sm:$0xff] %v3581_v34  ;;  %v3123_v46 = vpop.xlane.xlu1 %3122 }
 0x5e4   : > { %4450 = vrsqrt.f32 %v3445_v0  ;;  %v6792_v41 = vmul.f32 0.0078125, %v3123_v46  ;;  %v3320_v18 = vmul.f32 %v6788_v49, %v6788_v49 }
 0x5e5   : > { %v3253_v54 = vpop.xlane.xlu0 %3252 }
 0x5e6   : > { %v3290_v26 = vmul.f32 0.0078125, %v3253_v54  ;;  %v3321_v40 = vmul.f32 %v6792_v41, %v6792_v41 }
 0x5e7   : > { %v3255_v36 = vpop.xlane.xlu1 %3254 }
 0x5e8   : > { %v4445_v9 = vpop.eup %4444  ;;  %v3354_v45 = vsub.f32 %v3290_v26, %v3322_v48  ;;  %v3291_v21 = vmul.f32 0.0078125, %v3255_v36  ;;  %v3418_v36 = vsub.f32 %v6535_v1, %v6781_v47 }
 0x5e9   : > { %v3510_v6 = vmul.f32 %v4445_v9, %v3414_v57  ;;  %v3249_v28 = vpop.xlane.xlu0 %3248 }
 0x5ea   : > { %v4447_v59 = vpop.eup %4446  ;;  %v3386_v8 = vmax.f32 %v3354_v45, 0.0  ;;  %v3355_v11 = vsub.f32 %v3291_v21, %v3323_v17  ;;  %v3288_v35 = vmul.f32 0.0078125, %v3249_v28  ;;  %v3419_v28 = vsub.f32 %v6538_v5, %v6784_v39 }
 0x5eb   : > { %v3548_v44 = vmul.f32 %v6604_v32, %v3510_v6  ;;  %v3511_v23 = vmul.f32 %v4447_v59, %v3415_v58  ;;  %v3251_v52 = vpop.xlane.xlu1 %3250 }
 0x5ec   : > { %v4449_v29 = vpop.eup %4448  ;;  %v3450_v53 = vadd.f32 1e-05, %v3386_v8  ;;  %v3387_v10 = vmax.f32 %v3355_v11, 0.0  ;;  %v3352_v3 = vsub.f32 %v3288_v35, %v3320_v18  ;;  %v3289_v38 = vmul.f32 0.0078125, %v3251_v52 }
 0x5ed   : > { %v3586_v24 = vadd.f32 %v6612_v19, %v3548_v44  ;;  %v3549_v42 = vmul.f32 %v6604_v32, %v3511_v23  ;;  %v3508_v56 = vmul.f32 %v4449_v29, %v3412_v61  ;;  %v3133_v20 = vpop.xlane.xlu0 %3132  ;;  %v3416_v61 = vsub.f32 %v6542_v50, %v6788_v49 }
 0x5ee   : > { %v4451_v31 = vpop.eup %4450  ;;  %4452 = vrsqrt.f32 %v3450_v53  ;;  %v3451_v2 = vadd.f32 1e-05, %v3387_v10  ;;  %v3384_v22 = vmax.f32 %v3352_v3, 0.0  ;;  %v3353_v4 = vsub.f32 %v3289_v38, %v3321_v40 }
 0x5ef   : > { %3618 = vst [vmem:[%s6627_s14 + $0xb0] sm:$0xff] %v3586_v24  ;;  %v3587_v33 = vadd.f32 %v6612_v19, %v3549_v42  ;;  %v3546_v7 = vmul.f32 %v6604_v32, %v3508_v56  ;;  %v3509_v12 = vmul.f32 %v4451_v31, %v3413_v25  ;;  %v3135_v60 = vpop.xlane.xlu1 %3134  ;;  %v6822_v48 = vmul.f32 0.0078125, %v3133_v20 }
 0x5f0   : > { %4454 = vrsqrt.f32 %v3451_v2  ;;  %v3448_v27 = vadd.f32 1e-05, %v3384_v22  ;;  %v3385_v30 = vmax.f32 %v3353_v4, 0.0  ;;  %v6828_v9 = vmul.f32 0.0078125, %v3135_v60 }
 0x5f1   : > { %3619 = vst [vmem:[%s6627_s14 + $0xb8] sm:$0xff] %v3587_v33  ;;  %v3584_v63 = vadd.f32 %v6612_v19, %v3546_v7  ;;  %v3547_v43 = vmul.f32 %v6604_v32, %v3509_v12  ;;  %v3129_v55 = vpop.xlane.xlu0 %3128  ;;  %v3326_v11 = vmul.f32 %v6822_v48, %v6822_v48  ;;  %v3417_v3 = vsub.f32 %v6546_v16, %v6792_v41 }
 0x5f2   : > { %4456 = vrsqrt.f32 %v3448_v27  ;;  %v3449_v14 = vadd.f32 1e-05, %v3385_v30  ;;  %v6817_v13 = vmul.f32 0.0078125, %v3129_v55  ;;  %v3327_v40 = vmul.f32 %v6828_v9, %v6828_v9 }
 0x5f3   : > { %3616 = vst [vmem:[%s6627_s14 + $0xa0] sm:$0xff] %v3584_v63  ;;  %v3585_v34 = vadd.f32 %v6612_v19, %v3547_v43  ;;  %v3131_v0 = vpop.xlane.xlu1 %3130  ;;  %v3422_v43 = vsub.f32 %v6559_v37, %v6822_v48 }
 0x5f4   : > { %4458 = vrsqrt.f32 %v3449_v14  ;;  %v6819_v46 = vmul.f32 0.0078125, %v3131_v0  ;;  %v3324_v26 = vmul.f32 %v6817_v13, %v6817_v13  ;;  %v3420_v12 = vsub.f32 %v6566_v62, %v6817_v13 }
 0x5f5   : > { %3617 = vst [vmem:[%s6627_s14 + $0xa8] sm:$0xff] %v3585_v34  ;;  %v3257_v54 = vpop.xlane.xlu0 %3256  ;;  %v3423_v62 = vsub.f32 %v6562_v15, %v6828_v9 }
 0x5f6   : > { %v3292_v57 = vmul.f32 0.0078125, %v3257_v54  ;;  %v3325_v21 = vmul.f32 %v6819_v46, %v6819_v46  ;;  %v3421_v27 = vsub.f32 %v6570_v51, %v6819_v46 }
 0x5f7   : > { %v3259_v17 = vpop.xlane.xlu1 %3258 }
 0x5f8   : > { %v4453_v45 = vpop.eup %4452  ;;  %v3356_v58 = vsub.f32 %v3292_v57, %v3324_v26  ;;  %v3293_v6 = vmul.f32 0.0078125, %v3259_v17 }
 0x5f9   : > { %v3514_v59 = vmul.f32 %v4453_v45, %v3418_v36  ;;  %v3261_v18 = vpop.xlane.xlu0 %3260 }
 0x5fa   : > { %v4455_v8 = vpop.eup %4454  ;;  %v3388_v35 = vmax.f32 %v3356_v58, 0.0  ;;  %v3357_v1 = vsub.f32 %v3293_v6, %v3325_v21  ;;  %v3294_v47 = vmul.f32 0.0078125, %v3261_v18 }
 0x5fb   : > { %v3552_v44 = vmul.f32 %v6604_v32, %v3514_v59  ;;  %v3515_v23 = vmul.f32 %v4455_v8, %v3419_v28  ;;  %v3263_v5 = vpop.xlane.xlu1 %3262 }
 0x5fc   : > { %v4457_v39 = vpop.eup %4456  ;;  %v3452_v52 = vadd.f32 1e-05, %v3388_v35  ;;  %v3389_v29 = vmax.f32 %v3357_v1, 0.0  ;;  %v3358_v53 = vsub.f32 %v3294_v47, %v3326_v11  ;;  %v3295_v10 = vmul.f32 0.0078125, %v3263_v5 }
 0x5fd   : > { %v3590_v38 = vadd.f32 %v6612_v19, %v3552_v44  ;;  %v3553_v50 = vmul.f32 %v6604_v32, %v3515_v23  ;;  %v3512_v49 = vmul.f32 %v4457_v39, %v3416_v61 }
 0x5fe   : > { %v4459_v25 = vpop.eup %4458  ;;  %4460 = vrsqrt.f32 %v3452_v52  ;;  %v3453_v24 = vadd.f32 1e-05, %v3389_v29  ;;  %v3390_v42 = vmax.f32 %v3358_v53, 0.0  ;;  %v3359_v56 = vsub.f32 %v3295_v10, %v3327_v40 }
 0x5ff   : > { %3622 = vst [vmem:[%s6627_s14 + $0xd0] sm:$0xff] %v3590_v38  ;;  %v3591_v20 = vadd.f32 %v6612_v19, %v3553_v50  ;;  %v3550_v31 = vmul.f32 %v6604_v32, %v3512_v49  ;;  %v3513_v2 = vmul.f32 %v4459_v25, %v3417_v3 }
 0x600   : > { %4462 = vrsqrt.f32 %v3453_v24  ;;  %v3454_v16 = vadd.f32 1e-05, %v3390_v42  ;;  %v3391_v41 = vmax.f32 %v3359_v56, 0.0 }
 0x601   : > { %3623 = vst [vmem:[%s6627_s14 + $0xd8] sm:$0xff] %v3591_v20  ;;  %v3588_v22 = vadd.f32 %v6612_v19, %v3550_v31  ;;  %v3551_v4 = vmul.f32 %v6604_v32, %v3513_v2 }
 0x602   : > { %4464 = vrsqrt.f32 %v3454_v16  ;;  %v3455_v33 = vadd.f32 1e-05, %v3391_v41 }
 0x603   : > { %3620 = vst [vmem:[%s6627_s14 + $0xc0] sm:$0xff] %v3588_v22  ;;  %v3589_v7 = vadd.f32 %v6612_v19, %v3551_v4 }
 0x604   : > { %4466 = vrsqrt.f32 %v3455_v33 }
 0x605   : > { %3621 = vst [vmem:[%s6627_s14 + $0xc8] sm:$0xff] %v3589_v7 }
 0x608   : > { %v4461_v60 = vpop.eup %4460 }
 0x609   : > { %v3516_v30 = vmul.f32 %v4461_v60, %v3420_v12 }
 0x60a   : > { %v4463_v63 = vpop.eup %4462 }
 0x60b   : > { %v3554_v55 = vmul.f32 %v6604_v32, %v3516_v30  ;;  %v3517_v14 = vmul.f32 %v4463_v63, %v3421_v27 }
 0x60c   : > { %v4465_v34 = vpop.eup %4464 }
 0x60d   : > { %v3592_v13 = vadd.f32 %v6612_v19, %v3554_v55  ;;  %v3555_v51 = vmul.f32 %v6604_v32, %v3517_v14  ;;  %v3518_v0 = vmul.f32 %v4465_v34, %v3422_v43 }
 0x60e   : > { %v4467_v46 = vpop.eup %4466 }
 0x60f   : > { %3624 = vst [vmem:[%s6627_s14 + $0xe0] sm:$0xff] %v3592_v13  ;;  %v3593_v54 = vadd.f32 %v6612_v19, %v3555_v51  ;;  %v3556_v37 = vmul.f32 %v6604_v32, %v3518_v0  ;;  %v3519_v48 = vmul.f32 %v4467_v46, %v3423_v62  ;;  %3635 = sbr.rel (!%p7122_p1) target bundleno = 1587 (0x633), region = 92 }
 0x611   : > { %3625 = vst [vmem:[%s6627_s14 + $0xe8] sm:$0xff] %v3593_v54  ;;  %v3594_v26 = vadd.f32 %v6612_v19, %v3556_v37  ;;  %v3557_v57 = vmul.f32 %v6604_v32, %v3519_v48 }
 0x613   : > { %3626 = vst [vmem:[%s6627_s14 + $0xf0] sm:$0xff] %v3594_v26  ;;  %v3595_v15 = vadd.f32 %v6612_v19, %v3557_v57 }
 0x615   : > { %3627 = vst [vmem:[%s6627_s14 + $0xf8] sm:$0xff] %v3595_v15 }
 0x616   : > { %s7135_s23 = smov (!%p3638_p6, %s3637_s23), 32 }
 0x617   : > { %s6878_s13 = sshll.u32 %s7135_s23, 7 }
 0x618   : > { %s3642_s17 = ssub.s32 4096, %s6878_s13 }
 0x619   : > { %3643 = vsyncadd %s3629_s24, %s3642_s17  ;;  %p3868_p3 = scmp.ne.s32.totalorder %s6878_s13, 0  ;;  %s3877_s10 = sshll.u32 %s4760_s29, 12 }
 0x61a   : > { %s7123_s20 = sld [smem:[#allocation54_spill]]  ;;  %s3648_s11 = sshll.u32 %s6627_s14, 4  ;;  %s6891_s11 = int_to_ptr.vmem [resolvable:$true] %s3648_s11 }
 0x61b   : > { %s4580_s19 = scalar_lea.vmem %s6891_s11, %s6878_s13  ;;  %s4666_s22 = smov [#allocation10]  }
 0x61c   : > { %p4581_p5 = scmp.ne.s32.totalorder %s6891_s11, %s4580_s19  ;;  %s4584_s30 = sshll.u32 %s4666_s22, 4  ;;  %s4585_s30 = int_to_ptr.vmem [resolvable:$false] %s4584_s30 }
 0x61d   : > { %s4586_s29 = scalar_lea.vmem %s4585_s30, 8192  ;;  %p4587_p0 = scmp.lt.s32.totalorder %s6891_s11, %s4585_s30 }
 0x61e   : > { %p4582_p11 = pnand %p4581_p5, %p3868_p3  ;;  %p4588_p12 = scmp.lt.s32.totalorder %s4586_s29, %s4580_s19 }
 0x620   : > { %s6888_s16 = scalar_lea.hbm %s7123_s20, %s3877_s10  ;;  %p4583_p13 = pneg %p4582_p11 }
 0x621   : > { %p4589_p7 = por %p4588_p12, %p4587_p0 }
 0x623   : > { %p4590_p2 = pnand %p4589_p7, %p4583_p13 }
 0x625   : > { %4593 = shalt.err (!%p4590_p2)
}
 0x626   : > { %s4594_s8 = scalar_lea.hbm %s6888_s16, %s6878_s13  ;;  %s4598_s12 = scalar_lea.hbm %s7123_s20, 6144 }
 0x627   : > { %p4595_p8 = scmp.ne.s32.totalorder %s6888_s16, %s4594_s8  ;;  %p4599_p1 = scmp.lt.u32.totalorder %s6888_s16, %s7123_s20 }
 0x628   : > { %p4600_p6 = scmp.lt.u32.totalorder %s4598_s12, %s4594_s8  ;;  %p4602_p11 = scmp.lt.u32.totalorder %s4594_s8, %s6888_s16 }
 0x629   : > { %p4596_p9 = pnand %p4595_p8, %p3868_p3 }
 0x62a   : > { %p4601_p5 = por %p4600_p6, %p4599_p1 }
 0x62b   : > { %p4597_p10 = pneg %p4596_p9 }
 0x62c   : > { %p4603_p13 = por %p4602_p11, %p4601_p5 }
 0x62e   : > { %p4604_p0 = pnand %p4603_p13, %p4597_p10 }
 0x630   : > { %4607 = shalt.err (!%p4604_p0)
}
 0x631   : > { %s4667_s17 = smov 128   ;;  %s4668_s10 = smov 8  }
 0x632   : > { %3654 = dma.vmem_to_hbm [thread:$0]  (%p3868_p3), %s6891_s11, %s6878_s13, %s6888_s16, %s3629_s24, %s4667_s17, %s4667_s17, %s4668_s10  }
 0x633 PF: > { %s7124_s25 = sld [smem:[#allocation15_spill]]  ;;  %s7125_s18 = sld [smem:[#allocation19_spill]] }
 0x639   : > { %s3663_s19 = sand.u32 1, %s7124_s25   ;;  %p7126_p12 = scmp.ne.s32.totalorder %s7125_s18, 0 }
 0x63a   : > { %s3664_s22 = scalar_lea.sflag [#allocation4], %s3663_s19 }
 0x63b   : > { %p4103_p7 = pnand %p3755_p4, %p7126_p12 }
 0x63d   : > { %4637 = dma.done.wait (!%p4103_p7), %s3664_s22, 4096  }
 0x63e   : > { %4639 = vsyncadd (!%p4103_p7), %s3664_s22, 4294963200  ;;  %s7127_s28 = sld [smem:[#allocation16_spill]]  ;;  %s7128_s30 = sld [smem:[#allocation17_spill]] }
 0x63f   : > { %s7129_s25 = smov %s4646_s26  ;;  %s7130_s26 = smov %s4650_s27 }
 0x644   : > { %p28_p2 = scmp.ge.s32.totalorder %s7127_s28, 4   ;;  %s7131_s27 = smov %s7128_s30 }
 0x646   :  { %30 = sbr.rel (!%p28_p2) target bundleno = 14 (0xe), region = 129 }
 0x64d   :  { %3669 = vsyncpa [#allocation3], 1 }
 0x64e   :  { %3671 = vsyncpa [#allocation3 + $0x1], 1 }
 0x64f   :  { %3672 = vsyncpa [#allocation6], 1 }
 0x650   :  { %3673 = vsyncpa [#allocation9], 1 }
 0x651   :  { %3674 = vsyncpa [#allocation4], 1 }
 0x652   :  { %3676 = vsyncpa [#allocation4 + $0x1], 1 }

</bundles_post_ra>
